<compile_context>
chip_gen: v6e
topology: v6e:2x2x1
jax: 0.10.0
libtpu: 0.0.40
codegen_flags: <defaults>
</compile_context>

<pallas_src>
import functools

import jax
import jax.numpy as jnp
from jax.experimental import pallas as pl
from jax.experimental.pallas import tpu as pltpu

EPS = 1e-5
_MIB = 1 << 20


# --------------------------------------------------------------------------
# VMEM budgeting (generation-aware tile caps)
# --------------------------------------------------------------------------
def _vmem_limits():
    cap_bytes = None
    try:
        cap_bytes = getattr(pltpu.get_tpu_info(), "vmem_capacity_bytes", None)
    except Exception:
        cap_bytes = None
    if not cap_bytes:
        cap_bytes = 64 * _MIB                      # conservative (v7x per-core)
    limit = int(min(cap_bytes // 2, 48 * _MIB))    # scoped limit we request
    budget = int((limit * 3) // 4)                 # what the tiler targets
    return limit, budget


_VMEM_LIMIT, _VMEM_BUDGET = _vmem_limits()


def _token_cap(K, Cout):
    # Double-buffered: bf16 slab tile + f32 residual in/out + bf16 act out,
    # plus double-buffered bf16 weights.
    per_tok = 4 * K + 20 * Cout
    fixed = 4 * K * Cout + 64 * 1024
    cap = (_VMEM_BUDGET - fixed) // max(per_tok, 1)
    cap = max(128, min(int(cap), 4096))
    return (cap // 128) * 128


def _token_tile(M, cap):
    if M <= 128 and M <= cap:
        return M
    # Prefer ~4 grid steps (pipeline depth on v5e/v6e, >=2 for v7x megacore).
    for parts in (4, 2):
        t = M // parts
        if M % parts == 0 and t % 128 == 0 and t <= cap:
            return t
    if M <= cap:
        return M
    t = 128
    while t * 2 <= cap and M % (t * 2) == 0:
        t *= 2
    return t if M % t == 0 else M


# --------------------------------------------------------------------------
# Pallas kernels
# --------------------------------------------------------------------------
def _conv_kernel(a_ref, w_ref, s_ref, b_ref, *refs, has_res, emit_res):
    """out = W @ slab (+ residual); epilogue: bn(scale,shift)+ReLU -> bf16 act.

    refs = ([res_in], [res_out_f32], act_out_bf16)
    """
    out = jnp.dot(w_ref[...], a_ref[...], preferred_element_type=jnp.float32)
    k = 0
    if has_res:
        out = out + refs[k][...]
        k += 1
    if emit_res:
        refs[k][...] = out
        k += 1
    act = jnp.maximum(out * s_ref[...] + b_ref[...], 0.0)
    refs[k][...] = act.astype(jnp.bfloat16)


def _tail_kernel(x_ref, pool_ref, w_ref, bias_ref, o_ref, feat_ref):
    # x is already relu(bn_final(.)) in (C, tokens) bf16.  Global 8x8 mean is
    # a matmul with the (tokens, N) pooling matrix; then Linear(128, 10).
    feat = jnp.dot(x_ref[...].astype(jnp.float32), pool_ref[...],
                   preferred_element_type=jnp.float32)          # (C, N)
    feat_ref[...] = feat
    o_ref[...] = (jnp.dot(w_ref[...], feat, preferred_element_type=jnp.float32)
                  + bias_ref[...])                               # (10, N)


# --------------------------------------------------------------------------
# pallas_call wrappers
# --------------------------------------------------------------------------
def conv_fused(slab, w_t, scale, shift, residual=None, emit_res=True):
    """slab: (K, M) bf16, w_t: (Cout, K) bf16 -> tuple of outputs (see kernel)."""
    K, M = slab.shape
    Cout = w_t.shape[0]
    has_res = residual is not None

    tm = _token_tile(M, _token_cap(K, Cout))
    n_tok = M // tm
    # Guarantee grid >= 2 (v7x: 2 TensorCores) by splitting Cout when the
    # token grid collapses to 1 (layer3 at small batch).
    tc = Cout // 2 if (n_tok == 1 and Cout >= 64 and (Cout // 2) % 16 == 0) else Cout
    grid = (n_tok, Cout // tc)

    in_specs = [
        pl.BlockSpec((K, tm), lambda i, j: (0, i)),
        pl.BlockSpec((tc, K), lambda i, j: (j, 0)),
        pl.BlockSpec((tc, 1), lambda i, j: (j, 0)),
        pl.BlockSpec((tc, 1), lambda i, j: (j, 0)),
    ]
    args = [slab, w_t, scale.reshape(Cout, 1), shift.reshape(Cout, 1)]
    if has_res:
        in_specs.append(pl.BlockSpec((tc, tm), lambda i, j: (j, i)))
        args.append(residual)

    out_shapes, out_specs = [], []
    if emit_res:
        out_shapes.append(jax.ShapeDtypeStruct((Cout, M), jnp.float32))
        out_specs.append(pl.BlockSpec((tc, tm), lambda i, j: (j, i)))
    out_shapes.append(jax.ShapeDtypeStruct((Cout, M), jnp.bfloat16))
    out_specs.append(pl.BlockSpec((tc, tm), lambda i, j: (j, i)))

    flops = 2 * M * K * Cout
    bytes_acc = (M * K * 2 + Cout * K * 2 + Cout * M * 2
                 + (Cout * M * 4 if emit_res else 0)
                 + (Cout * M * 4 if has_res else 0))

    outs = pl.pallas_call(
        functools.partial(_conv_kernel, has_res=has_res, emit_res=emit_res),
        out_shape=tuple(out_shapes),
        grid=grid,
        in_specs=in_specs,
        out_specs=tuple(out_specs),
        compiler_params=pltpu.CompilerParams(
            dimension_semantics=("parallel", "parallel"),
            vmem_limit_bytes=_VMEM_LIMIT),
        cost_estimate=pl.CostEstimate(flops=int(flops), transcendentals=0,
                                      bytes_accessed=int(bytes_acc)),
    )(*args)
    return outs


def tail_head(act, N, H, W, w_lin, b_lin):
    """act: (128, N*H*W) bf16 already relu(bn_final(.)) -> (N,10), (N,128)."""
    C, M = act.shape
    assert H == 8 and W == 8 and M == N * H * W, "tail assumes an 8x8 final map"
    pool = jnp.repeat(jnp.eye(N, dtype=jnp.float32), H * W, axis=0) / float(H * W)
    out, feat = pl.pallas_call(
        _tail_kernel,
        out_shape=(jax.ShapeDtypeStruct((10, N), jnp.float32),
                   jax.ShapeDtypeStruct((C, N), jnp.float32)),
        grid=(1,),
        in_specs=[pl.BlockSpec((C, M), lambda i: (0, 0)),
                  pl.BlockSpec((M, N), lambda i: (0, 0)),
                  pl.BlockSpec((10, C), lambda i: (0, 0)),
                  pl.BlockSpec((10, 1), lambda i: (0, 0))],
        out_specs=(pl.BlockSpec((10, N), lambda i: (0, 0)),
                   pl.BlockSpec((C, N), lambda i: (0, 0))),
        compiler_params=pltpu.CompilerParams(
            dimension_semantics=("arbitrary",),
            vmem_limit_bytes=_VMEM_LIMIT),
    )(act, pool, w_lin, b_lin.reshape(10, 1))
    return out.T, feat.T


# --------------------------------------------------------------------------
# Glue (plain JAX inside the jit region)
# --------------------------------------------------------------------------
def _bn_fold(bn):
    scale = bn["gamma"] / jnp.sqrt(bn["var"] + EPS)
    shift = bn["beta"] - bn["mean"] * scale
    return scale, shift


def _im2col(x, stride):
    """x: (C, N, H, W) bf16 -> slab (9*C, N*Ho*Wo) bf16; K tap-major, c-minor."""
    C, N, H, W = x.shape
    xp = jnp.pad(x, ((0, 0), (0, 0), (1, 1), (1, 1)))
    Ho = (H + 2 - 3) // stride + 1
    Wo = (W + 2 - 3) // stride + 1
    taps = []
    for dy in range(3):
        for dx in range(3):
            taps.append(xp[:, :, dy:dy + (Ho - 1) * stride + 1:stride,
                           dx:dx + (Wo - 1) * stride + 1:stride])
    slab = jnp.stack(taps, axis=0).reshape(9 * C, N * Ho * Wo)
    return slab, (Ho, Wo)


# --------------------------------------------------------------------------
# Model definition (PreActBlock / PreActResNet)
# --------------------------------------------------------------------------
def preact_block(res, act, shape, p, next_bn, emit_res):
    """res: (Cin, M) f32 raw x; act: (Cin, M) bf16 relu(bn1(x)) (pre-applied)."""
    Cin, N, H, W = shape
    stride = p["stride"]
    Cout = p["conv1_wt"].shape[0]

    # conv1( relu(bn1(x)) ) with bn2+relu fused as the epilogue -> act1 bf16.
    slab1, (Ho, Wo) = _im2col(act.reshape(Cin, N, H, W), stride)
    s2, b2 = _bn_fold(p["bn2"])
    (act1,) = conv_fused(slab1, p["conv1_wt"], s2, b2, emit_res=False)

    # conv2( relu(bn2(h1)) ) + shortcut, next block's bn1+relu as epilogue.
    slab2, _ = _im2col(act1.reshape(Cout, N, Ho, Wo), 1)
    sn, bnsh = _bn_fold(next_bn)
    if p["proj"]:
        # 1x1 stride-s shortcut on the *raw* input, folded into the matmul K.
        xs = res.reshape(Cin, N, H, W)[:, :, ::stride, ::stride]
        xs = xs.reshape(Cin, N * Ho * Wo).astype(jnp.bfloat16)
        slab2 = jnp.concatenate([slab2, xs], axis=0)
        outs = conv_fused(slab2, p["conv2_wt"], sn, bnsh, emit_res=emit_res)
    else:
        outs = conv_fused(slab2, p["conv2_wt"], sn, bnsh,
                          residual=res, emit_res=emit_res)
    if emit_res:
        new_res, new_act = outs
    else:
        new_res, (new_act,) = None, outs
    return new_res, new_act, (Cout, N, Ho, Wo)


def preact_resnet_forward(params, x_nchw, get_feat=False):
    # NCHW -> channels-first (C, N, H, W); conv operands in bf16.
    xin = jnp.transpose(x_nchw, (1, 0, 2, 3)).astype(jnp.bfloat16)
    _, N, H, W = xin.shape

    blocks = list(params["layer1"]) + list(params["layer2"]) + list(params["layer3"])

    # Stem conv (zero padding on the raw input); epilogue = bn1 of block 0.
    slab, (H, W) = _im2col(xin, 1)
    s0, b0 = _bn_fold(blocks[0]["bn1"])
    res, act = conv_fused(slab, params["conv1_wt"], s0, b0, emit_res=True)
    Ccur = params["conv1_wt"].shape[0]

    for bi, p in enumerate(blocks):
        last = bi + 1 == len(blocks)
        next_bn = params["bn_final"] if last else blocks[bi + 1]["bn1"]
        res, act, (Ccur, N, H, W) = preact_block(
            res, act, (Ccur, N, H, W), p, next_bn, emit_res=not last)

    out, feat = tail_head(act, N, H, W, params["linear_w"], params["linear_b"])
    if get_feat:
        return out, feat
    return out


# --------------------------------------------------------------------------
# Deterministic parameter initialization (shapes from the PyTorch __init__)
# --------------------------------------------------------------------------
def _bn_init(key, c):
    k1, k2, k3, k4 = jax.random.split(key, 4)
    return dict(
        gamma=1.0 + 0.1 * jax.random.normal(k1, (c,), jnp.float32),
        beta=0.1 * jax.random.normal(k2, (c,), jnp.float32),
        mean=0.1 * jax.random.normal(k3, (c,), jnp.float32),
        var=1.0 + 0.1 * jnp.abs(jax.random.normal(k4, (c,), jnp.float32)),
    )


def _conv3x3_init(key, cin, cout):
    std = (2.0 / (9.0 * cin)) ** 0.5
    w = std * jax.random.normal(key, (3, 3, cin, cout), jnp.float32)   # HWIO
    # -> (Cout, 9*Cin) matching the (tap, cin) im2col K order; bf16 for the MXU.
    return jnp.transpose(w, (3, 0, 1, 2)).reshape(cout, 9 * cin).astype(jnp.bfloat16)


def _block_init(key, cin, cout, stride):
    ks = jax.random.split(key, 5)
    proj = (stride != 1) or (cin != cout)
    conv2 = _conv3x3_init(ks[3], cout, cout)
    p = dict(
        stride=stride, proj=proj,
        bn1=_bn_init(ks[0], cin),
        conv1_wt=_conv3x3_init(ks[1], cin, cout),
        bn2=_bn_init(ks[2], cout),
    )
    if proj:
        std = (2.0 / cin) ** 0.5
        wsc = (std * jax.random.normal(ks[4], (cout, cin), jnp.float32)
               ).astype(jnp.bfloat16)
        p["conv2_wt"] = jnp.concatenate([conv2, wsc], axis=1)  # (Cout, 9*Cout+Cin)
    else:
        p["conv2_wt"] = conv2
    return p


def _layer_init(key, cin, cout, num_blocks, stride):
    blocks = []
    strides = [stride] + [1] * (num_blocks - 1)
    planes_in = cin
    for i, s in enumerate(strides):
        blocks.append(_block_init(jax.random.fold_in(key, i), planes_in, cout, s))
        planes_in = cout
    return blocks


def init_params(key):
    ks = jax.random.split(key, 7)
    return dict(
        conv1_wt=_conv3x3_init(ks[0], 3, 32),
        layer1=_layer_init(ks[1], 32, 32, 5, 1),
        layer2=_layer_init(ks[2], 32, 64, 5, 2),
        layer3=_layer_init(ks[3], 64, 128, 5, 2),
        bn_final=_bn_init(ks[4], 128),
        linear_w=0.1 * jax.random.normal(ks[5], (10, 128), jnp.float32),
        linear_b=0.1 * jax.random.normal(ks[6], (10,), jnp.float32),
    )


# --------------------------------------------------------------------------
if __name__ == "__main__":
    key = jax.random.PRNGKey(0)
    pkey, xkey = jax.random.split(key)
    params = init_params(pkey)

    # CIFAR-sized input: 3x32x32 so the final feature map is 8x8 for
    # AvgPool2d(8, stride=1).
    x = jax.random.normal(xkey, (2, 3, 32, 32), jnp.float32)

    fwd = jax.jit(functools.partial(preact_resnet_forward, params))
    out = fwd(x)
    out = jax.block_until_ready(out)
    assert out.shape == (2, 10) and out.dtype == jnp.float32
    print("KERNEL_OK")
</pallas_src>

<mosaic_0001>
module attributes {stable_mosaic.version = 11 : i64} {
  func.func @_conv_kernel(%arg0: i32, %arg1: i32, %arg2: memref<27x512xbf16, #tpu.memory_space<vmem>>, %arg3: memref<32x27xbf16, #tpu.memory_space<vmem>>, %arg4: memref<32x1xf32, #tpu.memory_space<vmem>>, %arg5: memref<32x1xf32, #tpu.memory_space<vmem>>, %arg6: memref<32x512xf32, #tpu.memory_space<vmem>>, %arg7: memref<32x512xbf16, #tpu.memory_space<vmem>>) attributes {dimension_semantics = [#tpu.dimension_semantics<parallel>, #tpu.dimension_semantics<parallel>], iteration_bounds = array<i64: 4, 1>, scalar_prefetch = 0 : i64, scratch_operands = 0 : i64, tpu.core_type = #tpu.core_type<tc>, window_params = [{transform_indices = @transform_0, window_bounds = array<i64: 27, 512>}, {transform_indices = @transform_1, window_bounds = array<i64: 32, 27>}, {transform_indices = @transform_2, window_bounds = array<i64: 32, 1>}, {transform_indices = @transform_3, window_bounds = array<i64: 32, 1>}, {transform_indices = @transform_4, window_bounds = array<i64: 32, 512>}, {transform_indices = @transform_5, window_bounds = array<i64: 32, 512>}]} {
    %c0 = arith.constant 0 : index
    %c0_0 = arith.constant 0 : index
    %0 = vector.load %arg3[%c0, %c0_0] : memref<32x27xbf16, #tpu.memory_space<vmem>>, vector<32x27xbf16>
    %c0_1 = arith.constant 0 : index
    %c0_2 = arith.constant 0 : index
    %1 = vector.load %arg2[%c0_1, %c0_2] : memref<27x512xbf16, #tpu.memory_space<vmem>>, vector<27x512xbf16>
    %cst = arith.constant dense<0.000000e+00> : vector<32x512xf32>
    %2 = tpu.matmul %0, %1, %cst {dimension_numbers = #tpu.dot_dimension_numbers<[1], [0], [0], [1], [0, 0, 1, 1], [], []>} : vector<32x27xbf16>, vector<27x512xbf16>, vector<32x512xf32> -> vector<32x512xf32>
    %c0_3 = arith.constant 0 : index
    %c0_4 = arith.constant 0 : index
    %3 = vector.load %arg6[%c0_3, %c0_4] : memref<32x512xf32, #tpu.memory_space<vmem>>, vector<32x512xf32>
    tpu.vector_store %arg6[%c0_3, %c0_4], %2 {strides = array<i32>} : memref<32x512xf32, #tpu.memory_space<vmem>>, vector<32x512xf32>,
    %c0_5 = arith.constant 0 : index
    %c0_6 = arith.constant 0 : index
    %4 = vector.load %arg4[%c0_5, %c0_6] : memref<32x1xf32, #tpu.memory_space<vmem>>, vector<32x1xf32>
    %5 = vector.broadcast %4 : vector<32x1xf32> to vector<32x512xf32>
    %6 = arith.mulf %2, %5 : vector<32x512xf32>
    %c0_7 = arith.constant 0 : index
    %c0_8 = arith.constant 0 : index
    %7 = vector.load %arg5[%c0_7, %c0_8] : memref<32x1xf32, #tpu.memory_space<vmem>>, vector<32x1xf32>
    %8 = vector.broadcast %7 : vector<32x1xf32> to vector<32x512xf32>
    %9 = arith.addf %6, %8 : vector<32x512xf32>
    %cst_9 = arith.constant 0.000000e+00 : f32
    %10 = vector.broadcast %cst_9 : f32 to vector<32x512xf32>
    %11 = arith.maximumf %9, %10 : vector<32x512xf32>
    %12 = arith.truncf %11 : vector<32x512xf32> to vector<32x512xbf16>
    %c0_10 = arith.constant 0 : index
    %c0_11 = arith.constant 0 : index
    %13 = vector.load %arg7[%c0_10, %c0_11] : memref<32x512xbf16, #tpu.memory_space<vmem>>, vector<32x512xbf16>
    tpu.vector_store %arg7[%c0_10, %c0_11], %12 {strides = array<i32>} : memref<32x512xbf16, #tpu.memory_space<vmem>>, vector<32x512xbf16>,
    return
  }
  func.func @transform_0(%arg0: i32, %arg1: i32) -> (i32, i32) {
    %c0_i32 = arith.constant 0 : i32
    %c0_i32_0 = arith.constant 0 : i32
    return %c0_i32, %arg0 : i32, i32
  }
  func.func @transform_1(%arg0: i32, %arg1: i32) -> (i32, i32) {
    %c0_i32 = arith.constant 0 : i32
    %c0_i32_0 = arith.constant 0 : i32
    return %arg1, %c0_i32 : i32, i32
  }
  func.func @transform_2(%arg0: i32, %arg1: i32) -> (i32, i32) {
    %c0_i32 = arith.constant 0 : i32
    %c0_i32_0 = arith.constant 0 : i32
    return %arg1, %c0_i32 : i32, i32
  }
  func.func @transform_3(%arg0: i32, %arg1: i32) -> (i32, i32) {
    %c0_i32 = arith.constant 0 : i32
    %c0_i32_0 = arith.constant 0 : i32
    return %arg1, %c0_i32 : i32, i32
  }
  func.func @transform_4(%arg0: i32, %arg1: i32) -> (i32, i32) {
    %c0_i32 = arith.constant 0 : i32
    return %arg1, %arg0 : i32, i32
  }
  func.func @transform_5(%arg0: i32, %arg1: i32) -> (i32, i32) {
    %c0_i32 = arith.constant 0 : i32
    return %arg1, %arg0 : i32, i32
  }
}

module attributes {stable_mosaic.version = 11 : i64} {
  func.func @_conv_kernel(%arg0: i32, %arg1: i32, %arg2: memref<288x512xbf16, #tpu.memory_space<vmem>>, %arg3: memref<32x288xbf16, #tpu.memory_space<vmem>>, %arg4: memref<32x1xf32, #tpu.memory_space<vmem>>, %arg5: memref<32x1xf32, #tpu.memory_space<vmem>>, %arg6: memref<32x512xbf16, #tpu.memory_space<vmem>>) attributes {dimension_semantics = [#tpu.dimension_semantics<parallel>, #tpu.dimension_semantics<parallel>], iteration_bounds = array<i64: 4, 1>, scalar_prefetch = 0 : i64, scratch_operands = 0 : i64, tpu.core_type = #tpu.core_type<tc>, window_params = [{transform_indices = @transform_0, window_bounds = array<i64: 288, 512>}, {transform_indices = @transform_1, window_bounds = array<i64: 32, 288>}, {transform_indices = @transform_2, window_bounds = array<i64: 32, 1>}, {transform_indices = @transform_3, window_bounds = array<i64: 32, 1>}, {transform_indices = @transform_4, window_bounds = array<i64: 32, 512>}]} {
    %c0 = arith.constant 0 : index
    %c0_0 = arith.constant 0 : index
    %0 = vector.load %arg3[%c0, %c0_0] : memref<32x288xbf16, #tpu.memory_space<vmem>>, vector<32x288xbf16>
    %c0_1 = arith.constant 0 : index
    %c0_2 = arith.constant 0 : index
    %1 = vector.load %arg2[%c0_1, %c0_2] : memref<288x512xbf16, #tpu.memory_space<vmem>>, vector<288x512xbf16>
    %cst = arith.constant dense<0.000000e+00> : vector<32x512xf32>
    %2 = tpu.matmul %0, %1, %cst {dimension_numbers = #tpu.dot_dimension_numbers<[1], [0], [0], [1], [0, 0, 1, 1], [], []>} : vector<32x288xbf16>, vector<288x512xbf16>, vector<32x512xf32> -> vector<32x512xf32>
    %c0_3 = arith.constant 0 : index
    %c0_4 = arith.constant 0 : index
    %3 = vector.load %arg4[%c0_3, %c0_4] : memref<32x1xf32, #tpu.memory_space<vmem>>, vector<32x1xf32>
    %4 = vector.broadcast %3 : vector<32x1xf32> to vector<32x512xf32>
    %5 = arith.mulf %2, %4 : vector<32x512xf32>
    %c0_5 = arith.constant 0 : index
    %c0_6 = arith.constant 0 : index
    %6 = vector.load %arg5[%c0_5, %c0_6] : memref<32x1xf32, #tpu.memory_space<vmem>>, vector<32x1xf32>
    %7 = vector.broadcast %6 : vector<32x1xf32> to vector<32x512xf32>
    %8 = arith.addf %5, %7 : vector<32x512xf32>
    %cst_7 = arith.constant 0.000000e+00 : f32
    %9 = vector.broadcast %cst_7 : f32 to vector<32x512xf32>
    %10 = arith.maximumf %8, %9 : vector<32x512xf32>
    %11 = arith.truncf %10 : vector<32x512xf32> to vector<32x512xbf16>
    %c0_8 = arith.constant 0 : index
    %c0_9 = arith.constant 0 : index
    %12 = vector.load %arg6[%c0_8, %c0_9] : memref<32x512xbf16, #tpu.memory_space<vmem>>, vector<32x512xbf16>
    tpu.vector_store %arg6[%c0_8, %c0_9], %11 {strides = array<i32>} : memref<32x512xbf16, #tpu.memory_space<vmem>>, vector<32x512xbf16>,
    return
  }
  func.func @transform_0(%arg0: i32, %arg1: i32) -> (i32, i32) {
    %c0_i32 = arith.constant 0 : i32
    %c0_i32_0 = arith.constant 0 : i32
    return %c0_i32, %arg0 : i32, i32
  }
  func.func @transform_1(%arg0: i32, %arg1: i32) -> (i32, i32) {
    %c0_i32 = arith.constant 0 : i32
    %c0_i32_0 = arith.constant 0 : i32
    return %arg1, %c0_i32 : i32, i32
  }
  func.func @transform_2(%arg0: i32, %arg1: i32) -> (i32, i32) {
    %c0_i32 = arith.constant 0 : i32
    %c0_i32_0 = arith.constant 0 : i32
    return %arg1, %c0_i32 : i32, i32
  }
  func.func @transform_3(%arg0: i32, %arg1: i32) -> (i32, i32) {
    %c0_i32 = arith.constant 0 : i32
    %c0_i32_0 = arith.constant 0 : i32
    return %arg1, %c0_i32 : i32, i32
  }
  func.func @transform_4(%arg0: i32, %arg1: i32) -> (i32, i32) {
    %c0_i32 = arith.constant 0 : i32
    return %arg1, %arg0 : i32, i32
  }
}

module attributes {stable_mosaic.version = 11 : i64} {
  func.func @_conv_kernel(%arg0: i32, %arg1: i32, %arg2: memref<288x512xbf16, #tpu.memory_space<vmem>>, %arg3: memref<32x288xbf16, #tpu.memory_space<vmem>>, %arg4: memref<32x1xf32, #tpu.memory_space<vmem>>, %arg5: memref<32x1xf32, #tpu.memory_space<vmem>>, %arg6: memref<32x512xf32, #tpu.memory_space<vmem>>, %arg7: memref<32x512xf32, #tpu.memory_space<vmem>>, %arg8: memref<32x512xbf16, #tpu.memory_space<vmem>>) attributes {dimension_semantics = [#tpu.dimension_semantics<parallel>, #tpu.dimension_semantics<parallel>], iteration_bounds = array<i64: 4, 1>, scalar_prefetch = 0 : i64, scratch_operands = 0 : i64, tpu.core_type = #tpu.core_type<tc>, window_params = [{transform_indices = @transform_0, window_bounds = array<i64: 288, 512>}, {transform_indices = @transform_1, window_bounds = array<i64: 32, 288>}, {transform_indices = @transform_2, window_bounds = array<i64: 32, 1>}, {transform_indices = @transform_3, window_bounds = array<i64: 32, 1>}, {transform_indices = @transform_4, window_bounds = array<i64: 32, 512>}, {transform_indices = @transform_5, window_bounds = array<i64: 32, 512>}, {transform_indices = @transform_6, window_bounds = array<i64: 32, 512>}]} {
    %c0 = arith.constant 0 : index
    %c0_0 = arith.constant 0 : index
    %0 = vector.load %arg3[%c0, %c0_0] : memref<32x288xbf16, #tpu.memory_space<vmem>>, vector<32x288xbf16>
    %c0_1 = arith.constant 0 : index
    %c0_2 = arith.constant 0 : index
    %1 = vector.load %arg2[%c0_1, %c0_2] : memref<288x512xbf16, #tpu.memory_space<vmem>>, vector<288x512xbf16>
    %cst = arith.constant dense<0.000000e+00> : vector<32x512xf32>
    %2 = tpu.matmul %0, %1, %cst {dimension_numbers = #tpu.dot_dimension_numbers<[1], [0], [0], [1], [0, 0, 1, 1], [], []>} : vector<32x288xbf16>, vector<288x512xbf16>, vector<32x512xf32> -> vector<32x512xf32>
    %c0_3 = arith.constant 0 : index
    %c0_4 = arith.constant 0 : index
    %3 = vector.load %arg6[%c0_3, %c0_4] : memref<32x512xf32, #tpu.memory_space<vmem>>, vector<32x512xf32>
    %4 = arith.addf %2, %3 : vector<32x512xf32>
    %c0_5 = arith.constant 0 : index
    %c0_6 = arith.constant 0 : index
    %5 = vector.load %arg7[%c0_5, %c0_6] : memref<32x512xf32, #tpu.memory_space<vmem>>, vector<32x512xf32>
    tpu.vector_store %arg7[%c0_5, %c0_6], %4 {strides = array<i32>} : memref<32x512xf32, #tpu.memory_space<vmem>>, vector<32x512xf32>,
    %c0_7 = arith.constant 0 : index
    %c0_8 = arith.constant 0 : index
    %6 = vector.load %arg4[%c0_7, %c0_8] : memref<32x1xf32, #tpu.memory_space<vmem>>, vector<32x1xf32>
    %7 = vector.broadcast %6 : vector<32x1xf32> to vector<32x512xf32>
    %8 = arith.mulf %4, %7 : vector<32x512xf32>
    %c0_9 = arith.constant 0 : index
    %c0_10 = arith.constant 0 : index
    %9 = vector.load %arg5[%c0_9, %c0_10] : memref<32x1xf32, #tpu.memory_space<vmem>>, vector<32x1xf32>
    %10 = vector.broadcast %9 : vector<32x1xf32> to vector<32x512xf32>
    %11 = arith.addf %8, %10 : vector<32x512xf32>
    %cst_11 = arith.constant 0.000000e+00 : f32
    %12 = vector.broadcast %cst_11 : f32 to vector<32x512xf32>
    %13 = arith.maximumf %11, %12 : vector<32x512xf32>
    %14 = arith.truncf %13 : vector<32x512xf32> to vector<32x512xbf16>
    %c0_12 = arith.constant 0 : index
    %c0_13 = arith.constant 0 : index
    %15 = vector.load %arg8[%c0_12, %c0_13] : memref<32x512xbf16, #tpu.memory_space<vmem>>, vector<32x512xbf16>
    tpu.vector_store %arg8[%c0_12, %c0_13], %14 {strides = array<i32>} : memref<32x512xbf16, #tpu.memory_space<vmem>>, vector<32x512xbf16>,
    return
  }
  func.func @transform_0(%arg0: i32, %arg1: i32) -> (i32, i32) {
    %c0_i32 = arith.constant 0 : i32
    %c0_i32_0 = arith.constant 0 : i32
    return %c0_i32, %arg0 : i32, i32
  }
  func.func @transform_1(%arg0: i32, %arg1: i32) -> (i32, i32) {
    %c0_i32 = arith.constant 0 : i32
    %c0_i32_0 = arith.constant 0 : i32
    return %arg1, %c0_i32 : i32, i32
  }
  func.func @transform_2(%arg0: i32, %arg1: i32) -> (i32, i32) {
    %c0_i32 = arith.constant 0 : i32
    %c0_i32_0 = arith.constant 0 : i32
    return %arg1, %c0_i32 : i32, i32
  }
  func.func @transform_3(%arg0: i32, %arg1: i32) -> (i32, i32) {
    %c0_i32 = arith.constant 0 : i32
    %c0_i32_0 = arith.constant 0 : i32
    return %arg1, %c0_i32 : i32, i32
  }
  func.func @transform_4(%arg0: i32, %arg1: i32) -> (i32, i32) {
    %c0_i32 = arith.constant 0 : i32
    return %arg1, %arg0 : i32, i32
  }
  func.func @transform_5(%arg0: i32, %arg1: i32) -> (i32, i32) {
    %c0_i32 = arith.constant 0 : i32
    return %arg1, %arg0 : i32, i32
  }
  func.func @transform_6(%arg0: i32, %arg1: i32) -> (i32, i32) {
    %c0_i32 = arith.constant 0 : i32
    return %arg1, %arg0 : i32, i32
  }
}

module attributes {stable_mosaic.version = 11 : i64} {
  func.func @_conv_kernel(%arg0: i32, %arg1: i32, %arg2: memref<288x128xbf16, #tpu.memory_space<vmem>>, %arg3: memref<64x288xbf16, #tpu.memory_space<vmem>>, %arg4: memref<64x1xf32, #tpu.memory_space<vmem>>, %arg5: memref<64x1xf32, #tpu.memory_space<vmem>>, %arg6: memref<64x128xbf16, #tpu.memory_space<vmem>>) attributes {dimension_semantics = [#tpu.dimension_semantics<parallel>, #tpu.dimension_semantics<parallel>], iteration_bounds = array<i64: 4, 1>, scalar_prefetch = 0 : i64, scratch_operands = 0 : i64, tpu.core_type = #tpu.core_type<tc>, window_params = [{transform_indices = @transform_0, window_bounds = array<i64: 288, 128>}, {transform_indices = @transform_1, window_bounds = array<i64: 64, 288>}, {transform_indices = @transform_2, window_bounds = array<i64: 64, 1>}, {transform_indices = @transform_3, window_bounds = array<i64: 64, 1>}, {transform_indices = @transform_4, window_bounds = array<i64: 64, 128>}]} {
    %c0 = arith.constant 0 : index
    %c0_0 = arith.constant 0 : index
    %0 = vector.load %arg3[%c0, %c0_0] : memref<64x288xbf16, #tpu.memory_space<vmem>>, vector<64x288xbf16>
    %c0_1 = arith.constant 0 : index
    %c0_2 = arith.constant 0 : index
    %1 = vector.load %arg2[%c0_1, %c0_2] : memref<288x128xbf16, #tpu.memory_space<vmem>>, vector<288x128xbf16>
    %cst = arith.constant dense<0.000000e+00> : vector<64x128xf32>
    %2 = tpu.matmul %0, %1, %cst {dimension_numbers = #tpu.dot_dimension_numbers<[1], [0], [0], [1], [0, 0, 1, 1], [], []>} : vector<64x288xbf16>, vector<288x128xbf16>, vector<64x128xf32> -> vector<64x128xf32>
    %c0_3 = arith.constant 0 : index
    %c0_4 = arith.constant 0 : index
    %3 = vector.load %arg4[%c0_3, %c0_4] : memref<64x1xf32, #tpu.memory_space<vmem>>, vector<64x1xf32>
    %4 = vector.broadcast %3 : vector<64x1xf32> to vector<64x128xf32>
    %5 = arith.mulf %2, %4 : vector<64x128xf32>
    %c0_5 = arith.constant 0 : index
    %c0_6 = arith.constant 0 : index
    %6 = vector.load %arg5[%c0_5, %c0_6] : memref<64x1xf32, #tpu.memory_space<vmem>>, vector<64x1xf32>
    %7 = vector.broadcast %6 : vector<64x1xf32> to vector<64x128xf32>
    %8 = arith.addf %5, %7 : vector<64x128xf32>
    %cst_7 = arith.constant 0.000000e+00 : f32
    %9 = vector.broadcast %cst_7 : f32 to vector<64x128xf32>
    %10 = arith.maximumf %8, %9 : vector<64x128xf32>
    %11 = arith.truncf %10 : vector<64x128xf32> to vector<64x128xbf16>
    %c0_8 = arith.constant 0 : index
    %c0_9 = arith.constant 0 : index
    %12 = vector.load %arg6[%c0_8, %c0_9] : memref<64x128xbf16, #tpu.memory_space<vmem>>, vector<64x128xbf16>
    tpu.vector_store %arg6[%c0_8, %c0_9], %11 {strides = array<i32>} : memref<64x128xbf16, #tpu.memory_space<vmem>>, vector<64x128xbf16>,
    return
  }
  func.func @transform_0(%arg0: i32, %arg1: i32) -> (i32, i32) {
    %c0_i32 = arith.constant 0 : i32
    %c0_i32_0 = arith.constant 0 : i32
    return %c0_i32, %arg0 : i32, i32
  }
  func.func @transform_1(%arg0: i32, %arg1: i32) -> (i32, i32) {
    %c0_i32 = arith.constant 0 : i32
    %c0_i32_0 = arith.constant 0 : i32
    return %arg1, %c0_i32 : i32, i32
  }
  func.func @transform_2(%arg0: i32, %arg1: i32) -> (i32, i32) {
    %c0_i32 = arith.constant 0 : i32
    %c0_i32_0 = arith.constant 0 : i32
    return %arg1, %c0_i32 : i32, i32
  }
  func.func @transform_3(%arg0: i32, %arg1: i32) -> (i32, i32) {
    %c0_i32 = arith.constant 0 : i32
    %c0_i32_0 = arith.constant 0 : i32
    return %arg1, %c0_i32 : i32, i32
  }
  func.func @transform_4(%arg0: i32, %arg1: i32) -> (i32, i32) {
    %c0_i32 = arith.constant 0 : i32
    return %arg1, %arg0 : i32, i32
  }
}

module attributes {stable_mosaic.version = 11 : i64} {
  func.func @_conv_kernel(%arg0: i32, %arg1: i32, %arg2: memref<608x128xbf16, #tpu.memory_space<vmem>>, %arg3: memref<64x608xbf16, #tpu.memory_space<vmem>>, %arg4: memref<64x1xf32, #tpu.memory_space<vmem>>, %arg5: memref<64x1xf32, #tpu.memory_space<vmem>>, %arg6: memref<64x128xf32, #tpu.memory_space<vmem>>, %arg7: memref<64x128xbf16, #tpu.memory_space<vmem>>) attributes {dimension_semantics = [#tpu.dimension_semantics<parallel>, #tpu.dimension_semantics<parallel>], iteration_bounds = array<i64: 4, 1>, scalar_prefetch = 0 : i64, scratch_operands = 0 : i64, tpu.core_type = #tpu.core_type<tc>, window_params = [{transform_indices = @transform_0, window_bounds = array<i64: 608, 128>}, {transform_indices = @transform_1, window_bounds = array<i64: 64, 608>}, {transform_indices = @transform_2, window_bounds = array<i64: 64, 1>}, {transform_indices = @transform_3, window_bounds = array<i64: 64, 1>}, {transform_indices = @transform_4, window_bounds = array<i64: 64, 128>}, {transform_indices = @transform_5, window_bounds = array<i64: 64, 128>}]} {
    %c0 = arith.constant 0 : index
    %c0_0 = arith.constant 0 : index
    %0 = vector.load %arg3[%c0, %c0_0] : memref<64x608xbf16, #tpu.memory_space<vmem>>, vector<64x608xbf16>
    %c0_1 = arith.constant 0 : index
    %c0_2 = arith.constant 0 : index
    %1 = vector.load %arg2[%c0_1, %c0_2] : memref<608x128xbf16, #tpu.memory_space<vmem>>, vector<608x128xbf16>
    %cst = arith.constant dense<0.000000e+00> : vector<64x128xf32>
    %2 = tpu.matmul %0, %1, %cst {dimension_numbers = #tpu.dot_dimension_numbers<[1], [0], [0], [1], [0, 0, 1, 1], [], []>} : vector<64x608xbf16>, vector<608x128xbf16>, vector<64x128xf32> -> vector<64x128xf32>
    %c0_3 = arith.constant 0 : index
    %c0_4 = arith.constant 0 : index
    %3 = vector.load %arg6[%c0_3, %c0_4] : memref<64x128xf32, #tpu.memory_space<vmem>>, vector<64x128xf32>
    tpu.vector_store %arg6[%c0_3, %c0_4], %2 {strides = array<i32>} : memref<64x128xf32, #tpu.memory_space<vmem>>, vector<64x128xf32>,
    %c0_5 = arith.constant 0 : index
    %c0_6 = arith.constant 0 : index
    %4 = vector.load %arg4[%c0_5, %c0_6] : memref<64x1xf32, #tpu.memory_space<vmem>>, vector<64x1xf32>
    %5 = vector.broadcast %4 : vector<64x1xf32> to vector<64x128xf32>
    %6 = arith.mulf %2, %5 : vector<64x128xf32>
    %c0_7 = arith.constant 0 : index
    %c0_8 = arith.constant 0 : index
    %7 = vector.load %arg5[%c0_7, %c0_8] : memref<64x1xf32, #tpu.memory_space<vmem>>, vector<64x1xf32>
    %8 = vector.broadcast %7 : vector<64x1xf32> to vector<64x128xf32>
    %9 = arith.addf %6, %8 : vector<64x128xf32>
    %cst_9 = arith.constant 0.000000e+00 : f32
    %10 = vector.broadcast %cst_9 : f32 to vector<64x128xf32>
    %11 = arith.maximumf %9, %10 : vector<64x128xf32>
    %12 = arith.truncf %11 : vector<64x128xf32> to vector<64x128xbf16>
    %c0_10 = arith.constant 0 : index
    %c0_11 = arith.constant 0 : index
    %13 = vector.load %arg7[%c0_10, %c0_11] : memref<64x128xbf16, #tpu.memory_space<vmem>>, vector<64x128xbf16>
    tpu.vector_store %arg7[%c0_10, %c0_11], %12 {strides = array<i32>} : memref<64x128xbf16, #tpu.memory_space<vmem>>, vector<64x128xbf16>,
    return
  }
  func.func @transform_0(%arg0: i32, %arg1: i32) -> (i32, i32) {
    %c0_i32 = arith.constant 0 : i32
    %c0_i32_0 = arith.constant 0 : i32
    return %c0_i32, %arg0 : i32, i32
  }
  func.func @transform_1(%arg0: i32, %arg1: i32) -> (i32, i32) {
    %c0_i32 = arith.constant 0 : i32
    %c0_i32_0 = arith.constant 0 : i32
    return %arg1, %c0_i32 : i32, i32
  }
  func.func @transform_2(%arg0: i32, %arg1: i32) -> (i32, i32) {
    %c0_i32 = arith.constant 0 : i32
    %c0_i32_0 = arith.constant 0 : i32
    return %arg1, %c0_i32 : i32, i32
  }
  func.func @transform_3(%arg0: i32, %arg1: i32) -> (i32, i32) {
    %c0_i32 = arith.constant 0 : i32
    %c0_i32_0 = arith.constant 0 : i32
    return %arg1, %c0_i32 : i32, i32
  }
  func.func @transform_4(%arg0: i32, %arg1: i32) -> (i32, i32) {
    %c0_i32 = arith.constant 0 : i32
    return %arg1, %arg0 : i32, i32
  }
  func.func @transform_5(%arg0: i32, %arg1: i32) -> (i32, i32) {
    %c0_i32 = arith.constant 0 : i32
    return %arg1, %arg0 : i32, i32
  }
}

module attributes {stable_mosaic.version = 11 : i64} {
  func.func @_conv_kernel(%arg0: i32, %arg1: i32, %arg2: memref<576x128xbf16, #tpu.memory_space<vmem>>, %arg3: memref<64x576xbf16, #tpu.memory_space<vmem>>, %arg4: memref<64x1xf32, #tpu.memory_space<vmem>>, %arg5: memref<64x1xf32, #tpu.memory_space<vmem>>, %arg6: memref<64x128xbf16, #tpu.memory_space<vmem>>) attributes {dimension_semantics = [#tpu.dimension_semantics<parallel>, #tpu.dimension_semantics<parallel>], iteration_bounds = array<i64: 4, 1>, scalar_prefetch = 0 : i64, scratch_operands = 0 : i64, tpu.core_type = #tpu.core_type<tc>, window_params = [{transform_indices = @transform_0, window_bounds = array<i64: 576, 128>}, {transform_indices = @transform_1, window_bounds = array<i64: 64, 576>}, {transform_indices = @transform_2, window_bounds = array<i64: 64, 1>}, {transform_indices = @transform_3, window_bounds = array<i64: 64, 1>}, {transform_indices = @transform_4, window_bounds = array<i64: 64, 128>}]} {
    %c0 = arith.constant 0 : index
    %c0_0 = arith.constant 0 : index
    %0 = vector.load %arg3[%c0, %c0_0] : memref<64x576xbf16, #tpu.memory_space<vmem>>, vector<64x576xbf16>
    %c0_1 = arith.constant 0 : index
    %c0_2 = arith.constant 0 : index
    %1 = vector.load %arg2[%c0_1, %c0_2] : memref<576x128xbf16, #tpu.memory_space<vmem>>, vector<576x128xbf16>
    %cst = arith.constant dense<0.000000e+00> : vector<64x128xf32>
    %2 = tpu.matmul %0, %1, %cst {dimension_numbers = #tpu.dot_dimension_numbers<[1], [0], [0], [1], [0, 0, 1, 1], [], []>} : vector<64x576xbf16>, vector<576x128xbf16>, vector<64x128xf32> -> vector<64x128xf32>
    %c0_3 = arith.constant 0 : index
    %c0_4 = arith.constant 0 : index
    %3 = vector.load %arg4[%c0_3, %c0_4] : memref<64x1xf32, #tpu.memory_space<vmem>>, vector<64x1xf32>
    %4 = vector.broadcast %3 : vector<64x1xf32> to vector<64x128xf32>
    %5 = arith.mulf %2, %4 : vector<64x128xf32>
    %c0_5 = arith.constant 0 : index
    %c0_6 = arith.constant 0 : index
    %6 = vector.load %arg5[%c0_5, %c0_6] : memref<64x1xf32, #tpu.memory_space<vmem>>, vector<64x1xf32>
    %7 = vector.broadcast %6 : vector<64x1xf32> to vector<64x128xf32>
    %8 = arith.addf %5, %7 : vector<64x128xf32>
    %cst_7 = arith.constant 0.000000e+00 : f32
    %9 = vector.broadcast %cst_7 : f32 to vector<64x128xf32>
    %10 = arith.maximumf %8, %9 : vector<64x128xf32>
    %11 = arith.truncf %10 : vector<64x128xf32> to vector<64x128xbf16>
    %c0_8 = arith.constant 0 : index
    %c0_9 = arith.constant 0 : index
    %12 = vector.load %arg6[%c0_8, %c0_9] : memref<64x128xbf16, #tpu.memory_space<vmem>>, vector<64x128xbf16>
    tpu.vector_store %arg6[%c0_8, %c0_9], %11 {strides = array<i32>} : memref<64x128xbf16, #tpu.memory_space<vmem>>, vector<64x128xbf16>,
    return
  }
  func.func @transform_0(%arg0: i32, %arg1: i32) -> (i32, i32) {
    %c0_i32 = arith.constant 0 : i32
    %c0_i32_0 = arith.constant 0 : i32
    return %c0_i32, %arg0 : i32, i32
  }
  func.func @transform_1(%arg0: i32, %arg1: i32) -> (i32, i32) {
    %c0_i32 = arith.constant 0 : i32
    %c0_i32_0 = arith.constant 0 : i32
    return %arg1, %c0_i32 : i32, i32
  }
  func.func @transform_2(%arg0: i32, %arg1: i32) -> (i32, i32) {
    %c0_i32 = arith.constant 0 : i32
    %c0_i32_0 = arith.constant 0 : i32
    return %arg1, %c0_i32 : i32, i32
  }
  func.func @transform_3(%arg0: i32, %arg1: i32) -> (i32, i32) {
    %c0_i32 = arith.constant 0 : i32
    %c0_i32_0 = arith.constant 0 : i32
    return %arg1, %c0_i32 : i32, i32
  }
  func.func @transform_4(%arg0: i32, %arg1: i32) -> (i32, i32) {
    %c0_i32 = arith.constant 0 : i32
    return %arg1, %arg0 : i32, i32
  }
}

module attributes {stable_mosaic.version = 11 : i64} {
  func.func @_conv_kernel(%arg0: i32, %arg1: i32, %arg2: memref<576x128xbf16, #tpu.memory_space<vmem>>, %arg3: memref<64x576xbf16, #tpu.memory_space<vmem>>, %arg4: memref<64x1xf32, #tpu.memory_space<vmem>>, %arg5: memref<64x1xf32, #tpu.memory_space<vmem>>, %arg6: memref<64x128xf32, #tpu.memory_space<vmem>>, %arg7: memref<64x128xf32, #tpu.memory_space<vmem>>, %arg8: memref<64x128xbf16, #tpu.memory_space<vmem>>) attributes {dimension_semantics = [#tpu.dimension_semantics<parallel>, #tpu.dimension_semantics<parallel>], iteration_bounds = array<i64: 4, 1>, scalar_prefetch = 0 : i64, scratch_operands = 0 : i64, tpu.core_type = #tpu.core_type<tc>, window_params = [{transform_indices = @transform_0, window_bounds = array<i64: 576, 128>}, {transform_indices = @transform_1, window_bounds = array<i64: 64, 576>}, {transform_indices = @transform_2, window_bounds = array<i64: 64, 1>}, {transform_indices = @transform_3, window_bounds = array<i64: 64, 1>}, {transform_indices = @transform_4, window_bounds = array<i64: 64, 128>}, {transform_indices = @transform_5, window_bounds = array<i64: 64, 128>}, {transform_indices = @transform_6, window_bounds = array<i64: 64, 128>}]} {
    %c0 = arith.constant 0 : index
    %c0_0 = arith.constant 0 : index
    %0 = vector.load %arg3[%c0, %c0_0] : memref<64x576xbf16, #tpu.memory_space<vmem>>, vector<64x576xbf16>
    %c0_1 = arith.constant 0 : index
    %c0_2 = arith.constant 0 : index
    %1 = vector.load %arg2[%c0_1, %c0_2] : memref<576x128xbf16, #tpu.memory_space<vmem>>, vector<576x128xbf16>
    %cst = arith.constant dense<0.000000e+00> : vector<64x128xf32>
    %2 = tpu.matmul %0, %1, %cst {dimension_numbers = #tpu.dot_dimension_numbers<[1], [0], [0], [1], [0, 0, 1, 1], [], []>} : vector<64x576xbf16>, vector<576x128xbf16>, vector<64x128xf32> -> vector<64x128xf32>
    %c0_3 = arith.constant 0 : index
    %c0_4 = arith.constant 0 : index
    %3 = vector.load %arg6[%c0_3, %c0_4] : memref<64x128xf32, #tpu.memory_space<vmem>>, vector<64x128xf32>
    %4 = arith.addf %2, %3 : vector<64x128xf32>
    %c0_5 = arith.constant 0 : index
    %c0_6 = arith.constant 0 : index
    %5 = vector.load %arg7[%c0_5, %c0_6] : memref<64x128xf32, #tpu.memory_space<vmem>>, vector<64x128xf32>
    tpu.vector_store %arg7[%c0_5, %c0_6], %4 {strides = array<i32>} : memref<64x128xf32, #tpu.memory_space<vmem>>, vector<64x128xf32>,
    %c0_7 = arith.constant 0 : index
    %c0_8 = arith.constant 0 : index
    %6 = vector.load %arg4[%c0_7, %c0_8] : memref<64x1xf32, #tpu.memory_space<vmem>>, vector<64x1xf32>
    %7 = vector.broadcast %6 : vector<64x1xf32> to vector<64x128xf32>
    %8 = arith.mulf %4, %7 : vector<64x128xf32>
    %c0_9 = arith.constant 0 : index
    %c0_10 = arith.constant 0 : index
    %9 = vector.load %arg5[%c0_9, %c0_10] : memref<64x1xf32, #tpu.memory_space<vmem>>, vector<64x1xf32>
    %10 = vector.broadcast %9 : vector<64x1xf32> to vector<64x128xf32>
    %11 = arith.addf %8, %10 : vector<64x128xf32>
    %cst_11 = arith.constant 0.000000e+00 : f32
    %12 = vector.broadcast %cst_11 : f32 to vector<64x128xf32>
    %13 = arith.maximumf %11, %12 : vector<64x128xf32>
    %14 = arith.truncf %13 : vector<64x128xf32> to vector<64x128xbf16>
    %c0_12 = arith.constant 0 : index
    %c0_13 = arith.constant 0 : index
    %15 = vector.load %arg8[%c0_12, %c0_13] : memref<64x128xbf16, #tpu.memory_space<vmem>>, vector<64x128xbf16>
    tpu.vector_store %arg8[%c0_12, %c0_13], %14 {strides = array<i32>} : memref<64x128xbf16, #tpu.memory_space<vmem>>, vector<64x128xbf16>,
    return
  }
  func.func @transform_0(%arg0: i32, %arg1: i32) -> (i32, i32) {
    %c0_i32 = arith.constant 0 : i32
    %c0_i32_0 = arith.constant 0 : i32
    return %c0_i32, %arg0 : i32, i32
  }
  func.func @transform_1(%arg0: i32, %arg1: i32) -> (i32, i32) {
    %c0_i32 = arith.constant 0 : i32
    %c0_i32_0 = arith.constant 0 : i32
    return %arg1, %c0_i32 : i32, i32
  }
  func.func @transform_2(%arg0: i32, %arg1: i32) -> (i32, i32) {
    %c0_i32 = arith.constant 0 : i32
    %c0_i32_0 = arith.constant 0 : i32
    return %arg1, %c0_i32 : i32, i32
  }
  func.func @transform_3(%arg0: i32, %arg1: i32) -> (i32, i32) {
    %c0_i32 = arith.constant 0 : i32
    %c0_i32_0 = arith.constant 0 : i32
    return %arg1, %c0_i32 : i32, i32
  }
  func.func @transform_4(%arg0: i32, %arg1: i32) -> (i32, i32) {
    %c0_i32 = arith.constant 0 : i32
    return %arg1, %arg0 : i32, i32
  }
  func.func @transform_5(%arg0: i32, %arg1: i32) -> (i32, i32) {
    %c0_i32 = arith.constant 0 : i32
    return %arg1, %arg0 : i32, i32
  }
  func.func @transform_6(%arg0: i32, %arg1: i32) -> (i32, i32) {
    %c0_i32 = arith.constant 0 : i32
    return %arg1, %arg0 : i32, i32
  }
}

module attributes {stable_mosaic.version = 11 : i64} {
  func.func @_conv_kernel(%arg0: i32, %arg1: i32, %arg2: memref<576x128xbf16, #tpu.memory_space<vmem>>, %arg3: memref<64x576xbf16, #tpu.memory_space<vmem>>, %arg4: memref<64x1xf32, #tpu.memory_space<vmem>>, %arg5: memref<64x1xf32, #tpu.memory_space<vmem>>, %arg6: memref<64x128xbf16, #tpu.memory_space<vmem>>) attributes {dimension_semantics = [#tpu.dimension_semantics<parallel>, #tpu.dimension_semantics<parallel>], iteration_bounds = array<i64: 1, 2>, scalar_prefetch = 0 : i64, scratch_operands = 0 : i64, tpu.core_type = #tpu.core_type<tc>, window_params = [{transform_indices = @transform_0, window_bounds = array<i64: 576, 128>}, {transform_indices = @transform_1, window_bounds = array<i64: 64, 576>}, {transform_indices = @transform_2, window_bounds = array<i64: 64, 1>}, {transform_indices = @transform_3, window_bounds = array<i64: 64, 1>}, {transform_indices = @transform_4, window_bounds = array<i64: 64, 128>}]} {
    %c0 = arith.constant 0 : index
    %c0_0 = arith.constant 0 : index
    %0 = vector.load %arg3[%c0, %c0_0] : memref<64x576xbf16, #tpu.memory_space<vmem>>, vector<64x576xbf16>
    %c0_1 = arith.constant 0 : index
    %c0_2 = arith.constant 0 : index
    %1 = vector.load %arg2[%c0_1, %c0_2] : memref<576x128xbf16, #tpu.memory_space<vmem>>, vector<576x128xbf16>
    %cst = arith.constant dense<0.000000e+00> : vector<64x128xf32>
    %2 = tpu.matmul %0, %1, %cst {dimension_numbers = #tpu.dot_dimension_numbers<[1], [0], [0], [1], [0, 0, 1, 1], [], []>} : vector<64x576xbf16>, vector<576x128xbf16>, vector<64x128xf32> -> vector<64x128xf32>
    %c0_3 = arith.constant 0 : index
    %c0_4 = arith.constant 0 : index
    %3 = vector.load %arg4[%c0_3, %c0_4] : memref<64x1xf32, #tpu.memory_space<vmem>>, vector<64x1xf32>
    %4 = vector.broadcast %3 : vector<64x1xf32> to vector<64x128xf32>
    %5 = arith.mulf %2, %4 : vector<64x128xf32>
    %c0_5 = arith.constant 0 : index
    %c0_6 = arith.constant 0 : index
    %6 = vector.load %arg5[%c0_5, %c0_6] : memref<64x1xf32, #tpu.memory_space<vmem>>, vector<64x1xf32>
    %7 = vector.broadcast %6 : vector<64x1xf32> to vector<64x128xf32>
    %8 = arith.addf %5, %7 : vector<64x128xf32>
    %cst_7 = arith.constant 0.000000e+00 : f32
    %9 = vector.broadcast %cst_7 : f32 to vector<64x128xf32>
    %10 = arith.maximumf %8, %9 : vector<64x128xf32>
    %11 = arith.truncf %10 : vector<64x128xf32> to vector<64x128xbf16>
    %c0_8 = arith.constant 0 : index
    %c0_9 = arith.constant 0 : index
    %12 = vector.load %arg6[%c0_8, %c0_9] : memref<64x128xbf16, #tpu.memory_space<vmem>>, vector<64x128xbf16>
    tpu.vector_store %arg6[%c0_8, %c0_9], %11 {strides = array<i32>} : memref<64x128xbf16, #tpu.memory_space<vmem>>, vector<64x128xbf16>,
    return
  }
  func.func @transform_0(%arg0: i32, %arg1: i32) -> (i32, i32) {
    %c0_i32 = arith.constant 0 : i32
    %c0_i32_0 = arith.constant 0 : i32
    return %c0_i32, %arg0 : i32, i32
  }
  func.func @transform_1(%arg0: i32, %arg1: i32) -> (i32, i32) {
    %c0_i32 = arith.constant 0 : i32
    %c0_i32_0 = arith.constant 0 : i32
    return %arg1, %c0_i32 : i32, i32
  }
  func.func @transform_2(%arg0: i32, %arg1: i32) -> (i32, i32) {
    %c0_i32 = arith.constant 0 : i32
    %c0_i32_0 = arith.constant 0 : i32
    return %arg1, %c0_i32 : i32, i32
  }
  func.func @transform_3(%arg0: i32, %arg1: i32) -> (i32, i32) {
    %c0_i32 = arith.constant 0 : i32
    %c0_i32_0 = arith.constant 0 : i32
    return %arg1, %c0_i32 : i32, i32
  }
  func.func @transform_4(%arg0: i32, %arg1: i32) -> (i32, i32) {
    %c0_i32 = arith.constant 0 : i32
    return %arg1, %arg0 : i32, i32
  }
}

module attributes {stable_mosaic.version = 11 : i64} {
  func.func @_conv_kernel(%arg0: i32, %arg1: i32, %arg2: memref<1216x128xbf16, #tpu.memory_space<vmem>>, %arg3: memref<64x1216xbf16, #tpu.memory_space<vmem>>, %arg4: memref<64x1xf32, #tpu.memory_space<vmem>>, %arg5: memref<64x1xf32, #tpu.memory_space<vmem>>, %arg6: memref<64x128xf32, #tpu.memory_space<vmem>>, %arg7: memref<64x128xbf16, #tpu.memory_space<vmem>>) attributes {dimension_semantics = [#tpu.dimension_semantics<parallel>, #tpu.dimension_semantics<parallel>], iteration_bounds = array<i64: 1, 2>, scalar_prefetch = 0 : i64, scratch_operands = 0 : i64, tpu.core_type = #tpu.core_type<tc>, window_params = [{transform_indices = @transform_0, window_bounds = array<i64: 1216, 128>}, {transform_indices = @transform_1, window_bounds = array<i64: 64, 1216>}, {transform_indices = @transform_2, window_bounds = array<i64: 64, 1>}, {transform_indices = @transform_3, window_bounds = array<i64: 64, 1>}, {transform_indices = @transform_4, window_bounds = array<i64: 64, 128>}, {transform_indices = @transform_5, window_bounds = array<i64: 64, 128>}]} {
    %c0 = arith.constant 0 : index
    %c0_0 = arith.constant 0 : index
    %0 = vector.load %arg3[%c0, %c0_0] : memref<64x1216xbf16, #tpu.memory_space<vmem>>, vector<64x1216xbf16>
    %c0_1 = arith.constant 0 : index
    %c0_2 = arith.constant 0 : index
    %1 = vector.load %arg2[%c0_1, %c0_2] : memref<1216x128xbf16, #tpu.memory_space<vmem>>, vector<1216x128xbf16>
    %cst = arith.constant dense<0.000000e+00> : vector<64x128xf32>
    %2 = tpu.matmul %0, %1, %cst {dimension_numbers = #tpu.dot_dimension_numbers<[1], [0], [0], [1], [0, 0, 1, 1], [], []>} : vector<64x1216xbf16>, vector<1216x128xbf16>, vector<64x128xf32> -> vector<64x128xf32>
    %c0_3 = arith.constant 0 : index
    %c0_4 = arith.constant 0 : index
    %3 = vector.load %arg6[%c0_3, %c0_4] : memref<64x128xf32, #tpu.memory_space<vmem>>, vector<64x128xf32>
    tpu.vector_store %arg6[%c0_3, %c0_4], %2 {strides = array<i32>} : memref<64x128xf32, #tpu.memory_space<vmem>>, vector<64x128xf32>,
    %c0_5 = arith.constant 0 : index
    %c0_6 = arith.constant 0 : index
    %4 = vector.load %arg4[%c0_5, %c0_6] : memref<64x1xf32, #tpu.memory_space<vmem>>, vector<64x1xf32>
    %5 = vector.broadcast %4 : vector<64x1xf32> to vector<64x128xf32>
    %6 = arith.mulf %2, %5 : vector<64x128xf32>
    %c0_7 = arith.constant 0 : index
    %c0_8 = arith.constant 0 : index
    %7 = vector.load %arg5[%c0_7, %c0_8] : memref<64x1xf32, #tpu.memory_space<vmem>>, vector<64x1xf32>
    %8 = vector.broadcast %7 : vector<64x1xf32> to vector<64x128xf32>
    %9 = arith.addf %6, %8 : vector<64x128xf32>
    %cst_9 = arith.constant 0.000000e+00 : f32
    %10 = vector.broadcast %cst_9 : f32 to vector<64x128xf32>
    %11 = arith.maximumf %9, %10 : vector<64x128xf32>
    %12 = arith.truncf %11 : vector<64x128xf32> to vector<64x128xbf16>
    %c0_10 = arith.constant 0 : index
    %c0_11 = arith.constant 0 : index
    %13 = vector.load %arg7[%c0_10, %c0_11] : memref<64x128xbf16, #tpu.memory_space<vmem>>, vector<64x128xbf16>
    tpu.vector_store %arg7[%c0_10, %c0_11], %12 {strides = array<i32>} : memref<64x128xbf16, #tpu.memory_space<vmem>>, vector<64x128xbf16>,
    return
  }
  func.func @transform_0(%arg0: i32, %arg1: i32) -> (i32, i32) {
    %c0_i32 = arith.constant 0 : i32
    %c0_i32_0 = arith.constant 0 : i32
    return %c0_i32, %arg0 : i32, i32
  }
  func.func @transform_1(%arg0: i32, %arg1: i32) -> (i32, i32) {
    %c0_i32 = arith.constant 0 : i32
    %c0_i32_0 = arith.constant 0 : i32
    return %arg1, %c0_i32 : i32, i32
  }
  func.func @transform_2(%arg0: i32, %arg1: i32) -> (i32, i32) {
    %c0_i32 = arith.constant 0 : i32
    %c0_i32_0 = arith.constant 0 : i32
    return %arg1, %c0_i32 : i32, i32
  }
  func.func @transform_3(%arg0: i32, %arg1: i32) -> (i32, i32) {
    %c0_i32 = arith.constant 0 : i32
    %c0_i32_0 = arith.constant 0 : i32
    return %arg1, %c0_i32 : i32, i32
  }
  func.func @transform_4(%arg0: i32, %arg1: i32) -> (i32, i32) {
    %c0_i32 = arith.constant 0 : i32
    return %arg1, %arg0 : i32, i32
  }
  func.func @transform_5(%arg0: i32, %arg1: i32) -> (i32, i32) {
    %c0_i32 = arith.constant 0 : i32
    return %arg1, %arg0 : i32, i32
  }
}

module attributes {stable_mosaic.version = 11 : i64} {
  func.func @_conv_kernel(%arg0: i32, %arg1: i32, %arg2: memref<1152x128xbf16, #tpu.memory_space<vmem>>, %arg3: memref<64x1152xbf16, #tpu.memory_space<vmem>>, %arg4: memref<64x1xf32, #tpu.memory_space<vmem>>, %arg5: memref<64x1xf32, #tpu.memory_space<vmem>>, %arg6: memref<64x128xbf16, #tpu.memory_space<vmem>>) attributes {dimension_semantics = [#tpu.dimension_semantics<parallel>, #tpu.dimension_semantics<parallel>], iteration_bounds = array<i64: 1, 2>, scalar_prefetch = 0 : i64, scratch_operands = 0 : i64, tpu.core_type = #tpu.core_type<tc>, window_params = [{transform_indices = @transform_0, window_bounds = array<i64: 1152, 128>}, {transform_indices = @transform_1, window_bounds = array<i64: 64, 1152>}, {transform_indices = @transform_2, window_bounds = array<i64: 64, 1>}, {transform_indices = @transform_3, window_bounds = array<i64: 64, 1>}, {transform_indices = @transform_4, window_bounds = array<i64: 64, 128>}]} {
    %c0 = arith.constant 0 : index
    %c0_0 = arith.constant 0 : index
    %0 = vector.load %arg3[%c0, %c0_0] : memref<64x1152xbf16, #tpu.memory_space<vmem>>, vector<64x1152xbf16>
    %c0_1 = arith.constant 0 : index
    %c0_2 = arith.constant 0 : index
    %1 = vector.load %arg2[%c0_1, %c0_2] : memref<1152x128xbf16, #tpu.memory_space<vmem>>, vector<1152x128xbf16>
    %cst = arith.constant dense<0.000000e+00> : vector<64x128xf32>
    %2 = tpu.matmul %0, %1, %cst {dimension_numbers = #tpu.dot_dimension_numbers<[1], [0], [0], [1], [0, 0, 1, 1], [], []>} : vector<64x1152xbf16>, vector<1152x128xbf16>, vector<64x128xf32> -> vector<64x128xf32>
    %c0_3 = arith.constant 0 : index
    %c0_4 = arith.constant 0 : index
    %3 = vector.load %arg4[%c0_3, %c0_4] : memref<64x1xf32, #tpu.memory_space<vmem>>, vector<64x1xf32>
    %4 = vector.broadcast %3 : vector<64x1xf32> to vector<64x128xf32>
    %5 = arith.mulf %2, %4 : vector<64x128xf32>
    %c0_5 = arith.constant 0 : index
    %c0_6 = arith.constant 0 : index
    %6 = vector.load %arg5[%c0_5, %c0_6] : memref<64x1xf32, #tpu.memory_space<vmem>>, vector<64x1xf32>
    %7 = vector.broadcast %6 : vector<64x1xf32> to vector<64x128xf32>
    %8 = arith.addf %5, %7 : vector<64x128xf32>
    %cst_7 = arith.constant 0.000000e+00 : f32
    %9 = vector.broadcast %cst_7 : f32 to vector<64x128xf32>
    %10 = arith.maximumf %8, %9 : vector<64x128xf32>
    %11 = arith.truncf %10 : vector<64x128xf32> to vector<64x128xbf16>
    %c0_8 = arith.constant 0 : index
    %c0_9 = arith.constant 0 : index
    %12 = vector.load %arg6[%c0_8, %c0_9] : memref<64x128xbf16, #tpu.memory_space<vmem>>, vector<64x128xbf16>
    tpu.vector_store %arg6[%c0_8, %c0_9], %11 {strides = array<i32>} : memref<64x128xbf16, #tpu.memory_space<vmem>>, vector<64x128xbf16>,
    return
  }
  func.func @transform_0(%arg0: i32, %arg1: i32) -> (i32, i32) {
    %c0_i32 = arith.constant 0 : i32
    %c0_i32_0 = arith.constant 0 : i32
    return %c0_i32, %arg0 : i32, i32
  }
  func.func @transform_1(%arg0: i32, %arg1: i32) -> (i32, i32) {
    %c0_i32 = arith.constant 0 : i32
    %c0_i32_0 = arith.constant 0 : i32
    return %arg1, %c0_i32 : i32, i32
  }
  func.func @transform_2(%arg0: i32, %arg1: i32) -> (i32, i32) {
    %c0_i32 = arith.constant 0 : i32
    %c0_i32_0 = arith.constant 0 : i32
    return %arg1, %c0_i32 : i32, i32
  }
  func.func @transform_3(%arg0: i32, %arg1: i32) -> (i32, i32) {
    %c0_i32 = arith.constant 0 : i32
    %c0_i32_0 = arith.constant 0 : i32
    return %arg1, %c0_i32 : i32, i32
  }
  func.func @transform_4(%arg0: i32, %arg1: i32) -> (i32, i32) {
    %c0_i32 = arith.constant 0 : i32
    return %arg1, %arg0 : i32, i32
  }
}

module attributes {stable_mosaic.version = 11 : i64} {
  func.func @_conv_kernel(%arg0: i32, %arg1: i32, %arg2: memref<1152x128xbf16, #tpu.memory_space<vmem>>, %arg3: memref<64x1152xbf16, #tpu.memory_space<vmem>>, %arg4: memref<64x1xf32, #tpu.memory_space<vmem>>, %arg5: memref<64x1xf32, #tpu.memory_space<vmem>>, %arg6: memref<64x128xf32, #tpu.memory_space<vmem>>, %arg7: memref<64x128xf32, #tpu.memory_space<vmem>>, %arg8: memref<64x128xbf16, #tpu.memory_space<vmem>>) attributes {dimension_semantics = [#tpu.dimension_semantics<parallel>, #tpu.dimension_semantics<parallel>], iteration_bounds = array<i64: 1, 2>, scalar_prefetch = 0 : i64, scratch_operands = 0 : i64, tpu.core_type = #tpu.core_type<tc>, window_params = [{transform_indices = @transform_0, window_bounds = array<i64: 1152, 128>}, {transform_indices = @transform_1, window_bounds = array<i64: 64, 1152>}, {transform_indices = @transform_2, window_bounds = array<i64: 64, 1>}, {transform_indices = @transform_3, window_bounds = array<i64: 64, 1>}, {transform_indices = @transform_4, window_bounds = array<i64: 64, 128>}, {transform_indices = @transform_5, window_bounds = array<i64: 64, 128>}, {transform_indices = @transform_6, window_bounds = array<i64: 64, 128>}]} {
    %c0 = arith.constant 0 : index
    %c0_0 = arith.constant 0 : index
    %0 = vector.load %arg3[%c0, %c0_0] : memref<64x1152xbf16, #tpu.memory_space<vmem>>, vector<64x1152xbf16>
    %c0_1 = arith.constant 0 : index
    %c0_2 = arith.constant 0 : index
    %1 = vector.load %arg2[%c0_1, %c0_2] : memref<1152x128xbf16, #tpu.memory_space<vmem>>, vector<1152x128xbf16>
    %cst = arith.constant dense<0.000000e+00> : vector<64x128xf32>
    %2 = tpu.matmul %0, %1, %cst {dimension_numbers = #tpu.dot_dimension_numbers<[1], [0], [0], [1], [0, 0, 1, 1], [], []>} : vector<64x1152xbf16>, vector<1152x128xbf16>, vector<64x128xf32> -> vector<64x128xf32>
    %c0_3 = arith.constant 0 : index
    %c0_4 = arith.constant 0 : index
    %3 = vector.load %arg6[%c0_3, %c0_4] : memref<64x128xf32, #tpu.memory_space<vmem>>, vector<64x128xf32>
    %4 = arith.addf %2, %3 : vector<64x128xf32>
    %c0_5 = arith.constant 0 : index
    %c0_6 = arith.constant 0 : index
    %5 = vector.load %arg7[%c0_5, %c0_6] : memref<64x128xf32, #tpu.memory_space<vmem>>, vector<64x128xf32>
    tpu.vector_store %arg7[%c0_5, %c0_6], %4 {strides = array<i32>} : memref<64x128xf32, #tpu.memory_space<vmem>>, vector<64x128xf32>,
    %c0_7 = arith.constant 0 : index
    %c0_8 = arith.constant 0 : index
    %6 = vector.load %arg4[%c0_7, %c0_8] : memref<64x1xf32, #tpu.memory_space<vmem>>, vector<64x1xf32>
    %7 = vector.broadcast %6 : vector<64x1xf32> to vector<64x128xf32>
    %8 = arith.mulf %4, %7 : vector<64x128xf32>
    %c0_9 = arith.constant 0 : index
    %c0_10 = arith.constant 0 : index
    %9 = vector.load %arg5[%c0_9, %c0_10] : memref<64x1xf32, #tpu.memory_space<vmem>>, vector<64x1xf32>
    %10 = vector.broadcast %9 : vector<64x1xf32> to vector<64x128xf32>
    %11 = arith.addf %8, %10 : vector<64x128xf32>
    %cst_11 = arith.constant 0.000000e+00 : f32
    %12 = vector.broadcast %cst_11 : f32 to vector<64x128xf32>
    %13 = arith.maximumf %11, %12 : vector<64x128xf32>
    %14 = arith.truncf %13 : vector<64x128xf32> to vector<64x128xbf16>
    %c0_12 = arith.constant 0 : index
    %c0_13 = arith.constant 0 : index
    %15 = vector.load %arg8[%c0_12, %c0_13] : memref<64x128xbf16, #tpu.memory_space<vmem>>, vector<64x128xbf16>
    tpu.vector_store %arg8[%c0_12, %c0_13], %14 {strides = array<i32>} : memref<64x128xbf16, #tpu.memory_space<vmem>>, vector<64x128xbf16>,
    return
  }
  func.func @transform_0(%arg0: i32, %arg1: i32) -> (i32, i32) {
    %c0_i32 = arith.constant 0 : i32
    %c0_i32_0 = arith.constant 0 : i32
    return %c0_i32, %arg0 : i32, i32
  }
  func.func @transform_1(%arg0: i32, %arg1: i32) -> (i32, i32) {
    %c0_i32 = arith.constant 0 : i32
    %c0_i32_0 = arith.constant 0 : i32
    return %arg1, %c0_i32 : i32, i32
  }
  func.func @transform_2(%arg0: i32, %arg1: i32) -> (i32, i32) {
    %c0_i32 = arith.constant 0 : i32
    %c0_i32_0 = arith.constant 0 : i32
    return %arg1, %c0_i32 : i32, i32
  }
  func.func @transform_3(%arg0: i32, %arg1: i32) -> (i32, i32) {
    %c0_i32 = arith.constant 0 : i32
    %c0_i32_0 = arith.constant 0 : i32
    return %arg1, %c0_i32 : i32, i32
  }
  func.func @transform_4(%arg0: i32, %arg1: i32) -> (i32, i32) {
    %c0_i32 = arith.constant 0 : i32
    return %arg1, %arg0 : i32, i32
  }
  func.func @transform_5(%arg0: i32, %arg1: i32) -> (i32, i32) {
    %c0_i32 = arith.constant 0 : i32
    return %arg1, %arg0 : i32, i32
  }
  func.func @transform_6(%arg0: i32, %arg1: i32) -> (i32, i32) {
    %c0_i32 = arith.constant 0 : i32
    return %arg1, %arg0 : i32, i32
  }
}

module attributes {stable_mosaic.version = 11 : i64} {
  func.func @_conv_kernel(%arg0: i32, %arg1: i32, %arg2: memref<1152x128xbf16, #tpu.memory_space<vmem>>, %arg3: memref<64x1152xbf16, #tpu.memory_space<vmem>>, %arg4: memref<64x1xf32, #tpu.memory_space<vmem>>, %arg5: memref<64x1xf32, #tpu.memory_space<vmem>>, %arg6: memref<64x128xf32, #tpu.memory_space<vmem>>, %arg7: memref<64x128xbf16, #tpu.memory_space<vmem>>) attributes {dimension_semantics = [#tpu.dimension_semantics<parallel>, #tpu.dimension_semantics<parallel>], iteration_bounds = array<i64: 1, 2>, scalar_prefetch = 0 : i64, scratch_operands = 0 : i64, tpu.core_type = #tpu.core_type<tc>, window_params = [{transform_indices = @transform_0, window_bounds = array<i64: 1152, 128>}, {transform_indices = @transform_1, window_bounds = array<i64: 64, 1152>}, {transform_indices = @transform_2, window_bounds = array<i64: 64, 1>}, {transform_indices = @transform_3, window_bounds = array<i64: 64, 1>}, {transform_indices = @transform_4, window_bounds = array<i64: 64, 128>}, {transform_indices = @transform_5, window_bounds = array<i64: 64, 128>}]} {
    %c0 = arith.constant 0 : index
    %c0_0 = arith.constant 0 : index
    %0 = vector.load %arg3[%c0, %c0_0] : memref<64x1152xbf16, #tpu.memory_space<vmem>>, vector<64x1152xbf16>
    %c0_1 = arith.constant 0 : index
    %c0_2 = arith.constant 0 : index
    %1 = vector.load %arg2[%c0_1, %c0_2] : memref<1152x128xbf16, #tpu.memory_space<vmem>>, vector<1152x128xbf16>
    %cst = arith.constant dense<0.000000e+00> : vector<64x128xf32>
    %2 = tpu.matmul %0, %1, %cst {dimension_numbers = #tpu.dot_dimension_numbers<[1], [0], [0], [1], [0, 0, 1, 1], [], []>} : vector<64x1152xbf16>, vector<1152x128xbf16>, vector<64x128xf32> -> vector<64x128xf32>
    %c0_3 = arith.constant 0 : index
    %c0_4 = arith.constant 0 : index
    %3 = vector.load %arg6[%c0_3, %c0_4] : memref<64x128xf32, #tpu.memory_space<vmem>>, vector<64x128xf32>
    %4 = arith.addf %2, %3 : vector<64x128xf32>
    %c0_5 = arith.constant 0 : index
    %c0_6 = arith.constant 0 : index
    %5 = vector.load %arg4[%c0_5, %c0_6] : memref<64x1xf32, #tpu.memory_space<vmem>>, vector<64x1xf32>
    %6 = vector.broadcast %5 : vector<64x1xf32> to vector<64x128xf32>
    %7 = arith.mulf %4, %6 : vector<64x128xf32>
    %c0_7 = arith.constant 0 : index
    %c0_8 = arith.constant 0 : index
    %8 = vector.load %arg5[%c0_7, %c0_8] : memref<64x1xf32, #tpu.memory_space<vmem>>, vector<64x1xf32>
    %9 = vector.broadcast %8 : vector<64x1xf32> to vector<64x128xf32>
    %10 = arith.addf %7, %9 : vector<64x128xf32>
    %cst_9 = arith.constant 0.000000e+00 : f32
    %11 = vector.broadcast %cst_9 : f32 to vector<64x128xf32>
    %12 = arith.maximumf %10, %11 : vector<64x128xf32>
    %13 = arith.truncf %12 : vector<64x128xf32> to vector<64x128xbf16>
    %c0_10 = arith.constant 0 : index
    %c0_11 = arith.constant 0 : index
    %14 = vector.load %arg7[%c0_10, %c0_11] : memref<64x128xbf16, #tpu.memory_space<vmem>>, vector<64x128xbf16>
    tpu.vector_store %arg7[%c0_10, %c0_11], %13 {strides = array<i32>} : memref<64x128xbf16, #tpu.memory_space<vmem>>, vector<64x128xbf16>,
    return
  }
  func.func @transform_0(%arg0: i32, %arg1: i32) -> (i32, i32) {
    %c0_i32 = arith.constant 0 : i32
    %c0_i32_0 = arith.constant 0 : i32
    return %c0_i32, %arg0 : i32, i32
  }
  func.func @transform_1(%arg0: i32, %arg1: i32) -> (i32, i32) {
    %c0_i32 = arith.constant 0 : i32
    %c0_i32_0 = arith.constant 0 : i32
    return %arg1, %c0_i32 : i32, i32
  }
  func.func @transform_2(%arg0: i32, %arg1: i32) -> (i32, i32) {
    %c0_i32 = arith.constant 0 : i32
    %c0_i32_0 = arith.constant 0 : i32
    return %arg1, %c0_i32 : i32, i32
  }
  func.func @transform_3(%arg0: i32, %arg1: i32) -> (i32, i32) {
    %c0_i32 = arith.constant 0 : i32
    %c0_i32_0 = arith.constant 0 : i32
    return %arg1, %c0_i32 : i32, i32
  }
  func.func @transform_4(%arg0: i32, %arg1: i32) -> (i32, i32) {
    %c0_i32 = arith.constant 0 : i32
    return %arg1, %arg0 : i32, i32
  }
  func.func @transform_5(%arg0: i32, %arg1: i32) -> (i32, i32) {
    %c0_i32 = arith.constant 0 : i32
    return %arg1, %arg0 : i32, i32
  }
}

module attributes {stable_mosaic.version = 11 : i64} {
  func.func @_tail_kernel(%arg0: i32, %arg1: memref<128x128xbf16, #tpu.memory_space<vmem>>, %arg2: memref<128x2xf32, #tpu.memory_space<vmem>>, %arg3: memref<10x128xf32, #tpu.memory_space<vmem>>, %arg4: memref<10x1xf32, #tpu.memory_space<vmem>>, %arg5: memref<10x2xf32, #tpu.memory_space<vmem>>, %arg6: memref<128x2xf32, #tpu.memory_space<vmem>>) attributes {dimension_semantics = [#tpu.dimension_semantics<arbitrary>], iteration_bounds = array<i64: 1>, scalar_prefetch = 0 : i64, scratch_operands = 0 : i64, tpu.core_type = #tpu.core_type<tc>, window_params = [{pipeline_mode = #tpu.pipeline_mode<synchronous>, transform_indices = @transform_0, window_bounds = array<i64: 128, 128>}, {pipeline_mode = #tpu.pipeline_mode<synchronous>, transform_indices = @transform_1, window_bounds = array<i64: 128, 2>}, {pipeline_mode = #tpu.pipeline_mode<synchronous>, transform_indices = @transform_2, window_bounds = array<i64: 10, 128>}, {pipeline_mode = #tpu.pipeline_mode<synchronous>, transform_indices = @transform_3, window_bounds = array<i64: 10, 1>}, {pipeline_mode = #tpu.pipeline_mode<synchronous>, transform_indices = @transform_4, window_bounds = array<i64: 10, 2>}, {pipeline_mode = #tpu.pipeline_mode<synchronous>, transform_indices = @transform_5, window_bounds = array<i64: 128, 2>}]} {
    %c0 = arith.constant 0 : index
    %c0_0 = arith.constant 0 : index
    %0 = vector.load %arg1[%c0, %c0_0] : memref<128x128xbf16, #tpu.memory_space<vmem>>, vector<128x128xbf16>
    %1 = arith.extf %0 : vector<128x128xbf16> to vector<128x128xf32>
    %c0_1 = arith.constant 0 : index
    %c0_2 = arith.constant 0 : index
    %2 = vector.load %arg2[%c0_1, %c0_2] : memref<128x2xf32, #tpu.memory_space<vmem>>, vector<128x2xf32>
    %cst = arith.constant dense<0.000000e+00> : vector<128x2xf32>
    %3 = tpu.matmul %1, %2, %cst {dimension_numbers = #tpu.dot_dimension_numbers<[1], [0], [0], [1], [0, 0, 1, 1], [], []>} : vector<128x128xf32>, vector<128x2xf32>, vector<128x2xf32> -> vector<128x2xf32>
    %c0_3 = arith.constant 0 : index
    %c0_4 = arith.constant 0 : index
    %4 = vector.load %arg6[%c0_3, %c0_4] : memref<128x2xf32, #tpu.memory_space<vmem>>, vector<128x2xf32>
    tpu.vector_store %arg6[%c0_3, %c0_4], %3 {strides = array<i32>} : memref<128x2xf32, #tpu.memory_space<vmem>>, vector<128x2xf32>,
    %c0_5 = arith.constant 0 : index
    %c0_6 = arith.constant 0 : index
    %5 = vector.load %arg3[%c0_5, %c0_6] : memref<10x128xf32, #tpu.memory_space<vmem>>, vector<10x128xf32>
    %cst_7 = arith.constant dense<0.000000e+00> : vector<10x2xf32>
    %6 = tpu.matmul %5, %3, %cst_7 {dimension_numbers = #tpu.dot_dimension_numbers<[1], [0], [0], [1], [0, 0, 1, 1], [], []>} : vector<10x128xf32>, vector<128x2xf32>, vector<10x2xf32> -> vector<10x2xf32>
    %c0_8 = arith.constant 0 : index
    %c0_9 = arith.constant 0 : index
    %7 = vector.load %arg4[%c0_8, %c0_9] : memref<10x1xf32, #tpu.memory_space<vmem>>, vector<10x1xf32>
    %8 = vector.broadcast %7 : vector<10x1xf32> to vector<10x2xf32>
    %9 = arith.addf %6, %8 : vector<10x2xf32>
    %c0_10 = arith.constant 0 : index
    %c0_11 = arith.constant 0 : index
    %10 = vector.load %arg5[%c0_10, %c0_11] : memref<10x2xf32, #tpu.memory_space<vmem>>, vector<10x2xf32>
    tpu.vector_store %arg5[%c0_10, %c0_11], %9 {strides = array<i32>} : memref<10x2xf32, #tpu.memory_space<vmem>>, vector<10x2xf32>,
    return
  }
  func.func @transform_0(%arg0: i32) -> (i32, i32) {
    %c0_i32 = arith.constant 0 : i32
    %c0_i32_0 = arith.constant 0 : i32
    %c0_i32_1 = arith.constant 0 : i32
    return %c0_i32, %c0_i32_0 : i32, i32
  }
  func.func @transform_1(%arg0: i32) -> (i32, i32) {
    %c0_i32 = arith.constant 0 : i32
    %c0_i32_0 = arith.constant 0 : i32
    %c0_i32_1 = arith.constant 0 : i32
    return %c0_i32, %c0_i32_0 : i32, i32
  }
  func.func @transform_2(%arg0: i32) -> (i32, i32) {
    %c0_i32 = arith.constant 0 : i32
    %c0_i32_0 = arith.constant 0 : i32
    %c0_i32_1 = arith.constant 0 : i32
    return %c0_i32, %c0_i32_0 : i32, i32
  }
  func.func @transform_3(%arg0: i32) -> (i32, i32) {
    %c0_i32 = arith.constant 0 : i32
    %c0_i32_0 = arith.constant 0 : i32
    %c0_i32_1 = arith.constant 0 : i32
    return %c0_i32, %c0_i32_0 : i32, i32
  }
  func.func @transform_4(%arg0: i32) -> (i32, i32) {
    %c0_i32 = arith.constant 0 : i32
    %c0_i32_0 = arith.constant 0 : i32
    %c0_i32_1 = arith.constant 0 : i32
    return %c0_i32, %c0_i32_0 : i32, i32
  }
  func.func @transform_5(%arg0: i32) -> (i32, i32) {
    %c0_i32 = arith.constant 0 : i32
    %c0_i32_0 = arith.constant 0 : i32
    %c0_i32_1 = arith.constant 0 : i32
    return %c0_i32, %c0_i32_0 : i32, i32
  }
}

</mosaic_0001>

<bundles_post_ra>
// kernel: preact_resnet_forward.32
= control target key start
LH: loop header
LB: loop body
LE: loop exit
PB: predicated region body
PF: predicated region fallthrough
CT: control target
= control target key end

     0   :  { %s1136_s18 = smov 0   ;;  %s1138_s19 = smov 0   ;;  %s1320_s0 = inlined_call_operand.vmem [shape: bf16[27,2048], index: 0, kind: input, shape index: {}]   ;;  %s1321_s1 = inlined_call_operand.vmem [shape: bf16[32,27], index: 1, kind: input, shape index: {}]   ;;  %s1322_s2 = inlined_call_operand.vmem [shape: f32[32,1], index: 2, kind: input, shape index: {}]   ;;  %s1323_s3 = inlined_call_operand.vmem [shape: f32[32,1], index: 3, kind: input, shape index: {}]   ;;  %s1324_s4 = inlined_call_operand.vmem [shape: f32[32,2048], index: 4, kind: output, shape index: {0}]   ;;  %s1325_s5 = inlined_call_operand.vmem [shape: bf16[32,2048], index: 5, kind: output, shape index: {1}]  }
   0x1   :  { %s1140_s20 = smov 0   ;;  %s1142_s21 = smov 0  }
   0x2   :  { %s1144_s22 = smov 0  }
   0x3 LB: > { %s28_s23 = sadd.s32 1, %s1098_s21  ;;  %s951_s24 = sadd.s32 4294967295, %s1102_s22   ;;  %s1102_s22 = sphi %s1144_s22, %s16_s22   ;;  %s1098_s21 = sphi %s1142_s21, %s1330_s21   ;;  %s1094_s20 = sphi %s1140_s20, %s1329_s20   ;;  %s1090_s19 = sphi %s1138_s19, %s1328_s19   ;;  %s1086_s18 = sphi %s1136_s18, %s1327_s18  }
   0x4   : > { %p30_p0 = scmp.ge.s32.totalorder %s28_s23, 4  ;;  %p42_p1 = scmp.ne.s32.totalorder %s1090_s19, %s1086_s18 }
   0x5   : > { %p43_p2 = scmp.eq.s32.totalorder %s1102_s22, 0  ;;  %p152_p4 = scmp.eq.s32.totalorder %s951_s24, 3 }
   0x6   : > { %s1332_s23 = smov (%p30_p0, %s28_s23), 0  ;;  %s35_s26 = sadd.s32 1, %s1090_s19 }
   0x7   : > { %p44_p3 = por %p43_p2, %p42_p1  ;;  %s32_s25 = ssub.s32 %s1098_s21, %s1332_s23 }
   0x8   : > { %p33_p5 = scmp.eq.s32.totalorder %s32_s25, 0  ;;  %p1171_p6 = por %p152_p4, %p42_p1 }
   0x9   : > { %p957_p7 = scmp.ge.s32.totalorder %s1102_s22, 4 }
   0xa   : > { %s1176_s28 = scalar_select %p33_p5, %s1090_s19, %s35_s26  }
   0xb   : > { %229 = sbr.rel (%p957_p7) target bundleno = 24 (0x18), region = 28 }
  0x10   : > { %232 = sbr.rel (!%p44_p3) target bundleno = 24 (0x18), region = 32  ;;  %s234_s29 = sand.u32 (%p44_p3), 1, %s1090_s19  }
  0x11   : > { %s995_s30 = sshll.u32 (%p44_p3), %s1098_s21, 4  ;;  %s958_s6 = sshll.u32 (%p44_p3), %s234_s29, 6 }
  0x12   : > { %s239_s9 = scalar_lea.vmem (%p44_p3), %s1320_s0, %s995_s30  ;;  %s236_s10 = scalar_lea.vmem (%p44_p3), [#allocation2], %s958_s6 }
  0x13   : > { %v252_v0 = vld [vmem:[%s239_s9] sm:$0xff] (%p44_p3)  ;;  %v254_v1 = vld [vmem:[%s239_s9 + $0x8] sm:$0xff] (%p44_p3) }
  0x14   : > { %v256_v2 = vld [vmem:[%s239_s9 + $0x40] sm:$0xff] (%p44_p3)  ;;  %253 = vst [vmem:[%s236_s10] sm:$0xff] (%p44_p3), %v252_v0  ;;  %255 = vst [vmem:[%s236_s10 + $0x8] sm:$0xff] (%p44_p3), %v254_v1  ;;  %v258_v3 = vld [vmem:[%s239_s9 + $0x48] sm:$0xff] (%p44_p3) }
  0x15   : > { %257 = vst [vmem:[%s236_s10 + $0x10] sm:$0xff] %v256_v2  ;;  %v260_v4 = vld [vmem:[%s239_s9 + $0x80] sm:$0xff]  ;;  %v262_v5 = vld [vmem:[%s239_s9 + $0x88] sm:$0xff]  ;;  %259 = vst [vmem:[%s236_s10 + $0x18] sm:$0xff] %v258_v3 }
  0x16   : > { %261 = vst [vmem:[%s236_s10 + $0x20] sm:$0xff] %v260_v4  ;;  %263 = vst [vmem:[%s236_s10 + $0x28] sm:$0xff] %v262_v5  ;;  %v264_v6 = vld [vmem:[%s239_s9 + $0xc0] sm:$0xff]  ;;  %v266_v7 = vld [vmem:[%s239_s9 + $0xc8] sm:$0xff] }
  0x17   : > { %265 = vst [vmem:[%s236_s10 + $0x30] sm:$0xff] %v264_v6  ;;  %267 = vst [vmem:[%s236_s10 + $0x38] sm:$0xff] %v266_v7 }
  0x18 PF: > { %p961_p8 = scmp.ge.s32.totalorder %s1102_s22, 1  ;;  %p272_p9 = scmp.lt.s32.totalorder %s1102_s22, 5 }
  0x1a   : > { %p273_p10 = pnand %p961_p8, %p272_p9 }
  0x1b   : > { %s279_s11 = sand.u32 (!%p273_p10), 1, %s1086_s18  }
  0x1c   : > { %276 = sbr.rel (%p273_p10) target bundleno = 272 (0x110), region = 55  ;;  %s1189_s12 = sshll.u32 (!%p273_p10), %s279_s11, 6 }
  0x1d   : > { %s281_s13 = scalar_lea.vmem (!%p273_p10), [#allocation2], %s1189_s12  ;;  %s963_s25 = sshll.u32 (!%p273_p10), %s279_s11, 7 }
  0x1e   : > { %s1232_s26 = scalar_lea.vmem (!%p273_p10), [#allocation3], %s963_s25  ;;  %s1247_s18 = scalar_lea.vmem (!%p273_p10), [#allocation4], %s1189_s12 }
  0x21   : > { %vm413_vm0 = vcmask 1044480   ;;  %vm414_vm1 = vcmask 1045504   ;;  %v1104_v8 = vmov 65535   ;;  %v1105_v10 = vmov 0   ;;  %v1056_v17 = vld [vmem:[%s281_s13 + $0x4] ss:$16 sps:$4 sm:$0xff]  }
  0x22   : > { %v415_v9 = vsel %vm413_vm0, 4294967295, %v1104_v8  ;;  %461 = vmatprep.mubr.bf16.mxu0 %v1105_v10  ;;  %514 = vmatprep.mubr.bf16.mxu1 %v1105_v10  ;;  %v1050_v12 = vld [vmem:[%s281_s13 + $0x24] ss:$16 sps:$4 sm:$0x3f]   ;;  %v1058_v20 = vld [vmem:[%s281_s13 + $0xc] ss:$16 sps:$4 sm:$0xff]  }
  0x23   : > { %1049 = vset.pattern.permute.xlu1 %v1105_v10  ;;  %1048 = vset.pattern.permute.xlu0 %v1105_v10  ;;  %v416_v11 = vsel %vm414_vm1, %v415_v9, 0  ;;  %v1052_v13 = vld [vmem:[%s281_s13 + $0x2c] ss:$16 sps:$4 sm:$0x3f]   ;;  %v1060_v22 = vld [vmem:[%s281_s13] ss:$16 sps:$4 sm:$0xff]  }
  0x24   : > { %v1054_v14 = vld [vmem:[%s281_s13 + $0x20] ss:$16 sps:$4 sm:$0x3f]   ;;  %v421_v15 = vand.u32 %v1050_v12, %v416_v11  ;;  %v1055_v16 = vld [vmem:[%s281_s13 + $0x28] ss:$16 sps:$4 sm:$0x3f]   ;;  %v427_v18 = vand.u32 %v1052_v13, %v416_v11 }
  0x25   : > { %v418_v19 = vand.u32 %v1054_v14, %v416_v11  ;;  %v424_v21 = vand.u32 %v1055_v16, %v416_v11  ;;  %v553_v23 = vld [vmem:[%s1322_s2 + $0x10] sm:$0xff]  ;;  %v551_v24 = vld [vmem:[%s1322_s2] sm:$0xff]  ;;  %v1061_v25 = vld [vmem:[%s281_s13 + $0x8] ss:$16 sps:$4 sm:$0xff]   ;;  %vm406_vm2 = vcmask 220160   ;;  %s1004_s11 = sshll.u32 (%p1171_p6), %s1094_s20, 5 }
  0x26   : > { %441 = vmatprep.subr.bf16.mxu0 %v421_v15  ;;  %494 = vmatprep.subr.bf16.mxu1 %v427_v18  ;;  %v1062_v26 = vld [vmem:[%s1321_s1] sm:$0xff]   ;;  %v554_v27 = vld [vmem:[%s1322_s2 + $0x18] sm:$0xff]  ;;  %v552_v28 = vld [vmem:[%s1322_s2 + $0x8] sm:$0xff]  ;;  %s719_s30 = scalar_lea.vmem (%p1171_p6), %s1324_s4, %s1004_s11 }
  0x27   : > { %442 = vmatpush1.bf16.msra.mxu0 %v418_v19  ;;  %495 = vmatpush1.bf16.msra.mxu1 %v424_v21  ;;  %v592_v29 = vld [vmem:[%s1323_s3 + $0x8] sm:$0xff]  ;;  %v591_v30 = vld [vmem:[%s1323_s3] sm:$0xff]  ;;  %v594_v32 = vld [vmem:[%s1323_s3 + $0x18] sm:$0xff] }
  0x28   : > { %443 = vmatprep.subr.bf16.mxu0 %v1056_v17  ;;  %496 = vmatprep.subr.bf16.mxu1 %v1058_v20  ;;  %v1063_v31 = vld [vmem:[%s1321_s1 + $0x8] sm:$0xff]   ;;  %v593_v33 = vld [vmem:[%s1323_s3 + $0x10] sm:$0xff] }
  0x29   : > { %567 = vperm.xlu1 %1049, %v553_v23   ;;  %557 = vperm.xlu0 %1048, %v551_v24  }
  0x2b   : > { %444 = vmatpush1.bf16.msra.mxu0 %v1060_v22  ;;  %497 = vmatpush1.bf16.msra.mxu1 %v1061_v25 }
  0x2d   : > { %572 = vperm.xlu1 %1049, %v554_v27   ;;  %562 = vperm.xlu0 %1048, %v552_v28  }
  0x2e   : > { %975 = vmatmul.mubr.msk.bf16.vlgmr.msra.gmra.mxu0 %vm406_vm2, %v1062_v26  ;;  %977 = vmatmul.mubr.msk.bf16.vlgmr.msra.gmra.mxu1 %vm406_vm2, %v1062_v26 }
  0x2f   : > { %471 = vmatprep.mubr.bf16.mxu0 %v1105_v10  ;;  %524 = vmatprep.mubr.bf16.mxu1 %v1105_v10 }
  0x31   : > { %602 = vperm.xlu1 %1049, %v592_v29   ;;  %597 = vperm.xlu0 %1048, %v591_v30  }
  0x35   : > { %612 = vperm.xlu1 %1049, %v594_v32   ;;  %607 = vperm.xlu0 %1048, %v593_v33  }
  0x36   : > { %976 = vmatmul.mubr.msk.bf16.gmra.mxu0 %vm406_vm2, %v1063_v31  ;;  %978 = vmatmul.mubr.msk.bf16.gmra.mxu1 %vm406_vm2, %v1063_v31 }
  0xa4   : > { %v558_v34 = vpop.permute.xlu0 %557  ;;  %v1226_v35 = vpop.permute.xlu1 %567 }
  0xa8   : > { %v563_v36 = vpop.permute.xlu0 %562  ;;  %v1230_v37 = vpop.permute.xlu1 %572 }
  0xac   : > { %v598_v41 = vpop.permute.xlu0 %597  ;;  %v603_v53 = vpop.permute.xlu1 %602 }
  0xb0   : > { %v608_v8 = vpop.permute.xlu0 %607  ;;  %v613_v26 = vpop.permute.xlu1 %612 }
  0xee   : > { %v463_v38 = vpop.f32.mrf.mxu0  ;;  %v516_v40 = vpop.f32.mrf.mxu1 }
  0xef   : > { %535 = vst [vmem:[%s1232_s26] sm:$0xff] %v463_v38  ;;  %v575_v39 = vmul.f32 %v558_v34, %v463_v38  ;;  %537 = vst [vmem:[%s1232_s26 + $0x10] sm:$0xff] %v516_v40  ;;  %v577_v42 = vmul.f32 %v558_v34, %v516_v40 }
  0xf0   : > { %v465_v43 = vpop.f32.mrf.mxu0  ;;  %v518_v46 = vpop.f32.mrf.mxu1 }
  0xf1   : > { %v615_v44 = vadd.f32 %v598_v41, %v575_v39  ;;  %536 = vst [vmem:[%s1232_s26 + $0x8] sm:$0xff] %v465_v43  ;;  %v576_v45 = vmul.f32 %v558_v34, %v465_v43  ;;  %v617_v47 = vadd.f32 %v598_v41, %v577_v42  ;;  %538 = vst [vmem:[%s1232_s26 + $0x18] sm:$0xff] %v518_v46 }
  0xf2   : > { %v578_v48 = vmul.f32 %v558_v34, %v518_v46  ;;  %v467_v49 = vpop.f32.mrf.mxu0  ;;  %v520_v52 = vpop.f32.mrf.mxu1 }
  0xf3   : > { %v616_v50 = vadd.f32 %v598_v41, %v576_v45  ;;  %539 = vst [vmem:[%s1232_s26 + $0x20] sm:$0xff] %v467_v49  ;;  %v579_v51 = vmul.f32 %v563_v36, %v467_v49  ;;  %541 = vst [vmem:[%s1232_s26 + $0x30] sm:$0xff] %v520_v52  ;;  %v581_v55 = vmul.f32 %v563_v36, %v520_v52  ;;  %v631_v57 = vmax.f32 %v615_v44, 0.0 }
  0xf4   : > { %v618_v54 = vadd.f32 %v598_v41, %v578_v48  ;;  %v469_v56 = vpop.f32.mrf.mxu0  ;;  %v522_v61 = vpop.f32.mrf.mxu1  ;;  %v633_v62 = vmax.f32 %v617_v47, 0.0 }
  0xf5   : > { %v632_v58 = vmax.f32 %v616_v50, 0.0  ;;  %v619_v59 = vadd.f32 %v603_v53, %v579_v51  ;;  %540 = vst [vmem:[%s1232_s26 + $0x28] sm:$0xff] %v469_v56  ;;  %v580_v60 = vmul.f32 %v563_v36, %v469_v56  ;;  %v621_v0 = vadd.f32 %v603_v53, %v581_v55  ;;  %542 = vst [vmem:[%s1232_s26 + $0x38] sm:$0xff] %v522_v61 }
  0xf6   : > { %v634_v63 = vmax.f32 %v618_v54, 0.0  ;;  %v582_v1 = vmul.f32 %v563_v36, %v522_v61  ;;  %v473_v2 = vpop.f32.mrf.mxu0  ;;  %v526_v6 = vpop.f32.mrf.mxu1  ;;  %v736_v52 = vld [vmem:[%s1232_s26 + $0x10] sm:$0xff] (%p1171_p6) }
  0xf7   : > { %v996_v3 = vpack.c.bf16 %v632_v58, %v631_v57  ;;  %v620_v4 = vadd.f32 %v603_v53, %v580_v60  ;;  %543 = vst [vmem:[%s1232_s26 + $0x40] sm:$0xff] %v473_v2  ;;  %v583_v5 = vmul.f32 %v1226_v35, %v473_v2  ;;  %545 = vst [vmem:[%s1232_s26 + $0x50] sm:$0xff] %v526_v6  ;;  %v635_v12 = vmax.f32 %v619_v59, 0.0 }
  0xf8   : > { %v997_v7 = vpack.c.bf16 %v634_v63, %v633_v62  ;;  %v622_v9 = vadd.f32 %v603_v53, %v582_v1  ;;  %v585_v10 = vmul.f32 %v1226_v35, %v526_v6  ;;  %v475_v11 = vpop.f32.mrf.mxu0  ;;  %v528_v16 = vpop.f32.mrf.mxu1  ;;  %v637_v17 = vmax.f32 %v621_v0, 0.0  ;;  %v734_v51 = vld [vmem:[%s1232_s26 + $0x8] sm:$0xff] (%p1171_p6)  ;;  %v738_v53 = vld [vmem:[%s1232_s26 + $0x18] sm:$0xff] (%p1171_p6)  ;;  %737 = vst [vmem:[%s719_s30 + $0x10] sm:$0xff] (%p1171_p6), %v736_v52 }
  0xf9   : > { %695 = vst [vmem:[%s1247_s18] sm:$0xff] %v996_v3  ;;  %v636_v13 = vmax.f32 %v620_v4, 0.0  ;;  %v623_v14 = vadd.f32 %v608_v8, %v583_v5  ;;  %544 = vst [vmem:[%s1232_s26 + $0x48] sm:$0xff] %v475_v11  ;;  %v584_v15 = vmul.f32 %v1226_v35, %v475_v11  ;;  %v586_v20 = vmul.f32 %v1226_v35, %v528_v16 }
  0xfa   : > { %696 = vst [vmem:[%s1247_s18 + $0x8] sm:$0xff] %v997_v7  ;;  %v638_v18 = vmax.f32 %v622_v9, 0.0  ;;  %v625_v19 = vadd.f32 %v608_v8, %v585_v10  ;;  %546 = vst [vmem:[%s1232_s26 + $0x58] sm:$0xff] %v528_v16  ;;  %v477_v21 = vpop.f32.mrf.mxu0  ;;  %v530_v25 = vpop.f32.mrf.mxu1  ;;  %v740_v54 = vld [vmem:[%s1232_s26 + $0x20] sm:$0xff] (%p1171_p6)  ;;  %v744_v56 = vld [vmem:[%s1232_s26 + $0x30] sm:$0xff] (%p1171_p6) }
  0xfb   : > { %v998_v22 = vpack.c.bf16 %v636_v13, %v635_v12  ;;  %v624_v23 = vadd.f32 %v608_v8, %v584_v15  ;;  %547 = vst [vmem:[%s1232_s26 + $0x60] sm:$0xff] %v477_v21  ;;  %v587_v24 = vmul.f32 %v1230_v37, %v477_v21  ;;  %v626_v28 = vadd.f32 %v608_v8, %v586_v20 }
  0xfc   : > { %v999_v27 = vpack.c.bf16 %v638_v18, %v637_v17  ;;  %549 = vst [vmem:[%s1232_s26 + $0x70] sm:$0xff] %v530_v25  ;;  %v589_v29 = vmul.f32 %v1230_v37, %v530_v25  ;;  %v479_v30 = vpop.f32.mrf.mxu0  ;;  %v639_v31 = vmax.f32 %v623_v14, 0.0  ;;  %v532_v35 = vpop.f32.mrf.mxu1  ;;  %v641_v36 = vmax.f32 %v625_v19, 0.0  ;;  %v742_v55 = vld [vmem:[%s1232_s26 + $0x28] sm:$0xff] (%p1171_p6)  ;;  %735 = vst [vmem:[%s719_s30 + $0x8] sm:$0xff] (%p1171_p6), %v734_v51  ;;  %v746_v57 = vld [vmem:[%s1232_s26 + $0x38] sm:$0xff] (%p1171_p6) }
  0xfd   : > { %697 = vst [vmem:[%s1247_s18 + $0x10] sm:$0xff] %v998_v22  ;;  %v640_v32 = vmax.f32 %v624_v23, 0.0  ;;  %v627_v33 = vadd.f32 %v613_v26, %v587_v24  ;;  %548 = vst [vmem:[%s1232_s26 + $0x68] sm:$0xff] %v479_v30  ;;  %v588_v34 = vmul.f32 %v1230_v37, %v479_v30  ;;  %v642_v38 = vmax.f32 %v626_v28, 0.0 }
  0xfe   : > { %698 = vst [vmem:[%s1247_s18 + $0x18] sm:$0xff] %v999_v27  ;;  %v629_v39 = vadd.f32 %v613_v26, %v589_v29  ;;  %550 = vst [vmem:[%s1232_s26 + $0x78] sm:$0xff] %v532_v35  ;;  %v590_v40 = vmul.f32 %v1230_v37, %v532_v35  ;;  %v732_v37 = vld [vmem:[%s1232_s26] sm:$0xff] (%p1171_p6)  ;;  %v752_v60 = vld [vmem:[%s1232_s26 + $0x50] sm:$0xff] (%p1171_p6) }
  0xff   : > { %v1000_v41 = vpack.c.bf16 %v640_v32, %v639_v31  ;;  %v628_v42 = vadd.f32 %v613_v26, %v588_v34  ;;  %v1001_v43 = vpack.c.bf16 %v642_v38, %v641_v36  ;;  %v643_v45 = vmax.f32 %v627_v33, 0.0  ;;  %733 = vst [vmem:[%s719_s30] sm:$0xff] (%p1171_p6), %v732_v37  ;;  %739 = vst [vmem:[%s719_s30 + $0x18] sm:$0xff] (%p1171_p6), %v738_v53  ;;  %v748_v58 = vld [vmem:[%s1232_s26 + $0x40] sm:$0xff] (%p1171_p6) }
 0x100   : > { %v630_v44 = vadd.f32 %v613_v26, %v590_v40  ;;  %v645_v47 = vmax.f32 %v629_v39, 0.0  ;;  %741 = vst [vmem:[%s719_s30 + $0x80] sm:$0xff] (%p1171_p6), %v740_v54  ;;  %743 = vst [vmem:[%s719_s30 + $0x88] sm:$0xff] (%p1171_p6), %v742_v55  ;;  %v750_v59 = vld [vmem:[%s1232_s26 + $0x48] sm:$0xff] (%p1171_p6) }
 0x101   : > { %699 = vst [vmem:[%s1247_s18 + $0x20] sm:$0xff] %v1000_v41  ;;  %v644_v46 = vmax.f32 %v628_v42, 0.0  ;;  %700 = vst [vmem:[%s1247_s18 + $0x28] sm:$0xff] %v1001_v43  ;;  %v754_v61 = vld [vmem:[%s1232_s26 + $0x58] sm:$0xff] (%p1171_p6) }
 0x102   : > { %v646_v48 = vmax.f32 %v630_v44, 0.0  ;;  %713 = sbr.rel (!%p1171_p6) target bundleno = 264 (0x108), region = 63  ;;  %745 = vst [vmem:[%s719_s30 + $0x90] sm:$0xff] (%p1171_p6), %v744_v56  ;;  %747 = vst [vmem:[%s719_s30 + $0x98] sm:$0xff] (%p1171_p6), %v746_v57  ;;  %v756_v62 = vld [vmem:[%s1232_s26 + $0x60] sm:$0xff] (%p1171_p6) }
 0x103   : > { %v1002_v49 = vpack.c.bf16 %v644_v46, %v643_v45  ;;  %749 = vst [vmem:[%s719_s30 + $0x100] sm:$0xff] (%p1171_p6), %v748_v58  ;;  %751 = vst [vmem:[%s719_s30 + $0x108] sm:$0xff] (%p1171_p6), %v750_v59  ;;  %v760_v0 = vld [vmem:[%s1232_s26 + $0x70] sm:$0xff] (%p1171_p6) }
 0x104   : > { %v1003_v50 = vpack.c.bf16 %v646_v48, %v645_v47  ;;  %753 = vst [vmem:[%s719_s30 + $0x110] sm:$0xff] (%p1171_p6), %v752_v60  ;;  %755 = vst [vmem:[%s719_s30 + $0x118] sm:$0xff] (%p1171_p6), %v754_v61  ;;  %v758_v63 = vld [vmem:[%s1232_s26 + $0x68] sm:$0xff] (%p1171_p6) }
 0x105   : > { %701 = vst [vmem:[%s1247_s18 + $0x30] sm:$0xff] %v1002_v49  ;;  %757 = vst [vmem:[%s719_s30 + $0x180] sm:$0xff] (%p1171_p6), %v756_v62  ;;  %v762_v1 = vld [vmem:[%s1232_s26 + $0x78] sm:$0xff] (%p1171_p6) }
 0x106   : > { %702 = vst [vmem:[%s1247_s18 + $0x38] sm:$0xff] %v1003_v50  ;;  %759 = vst [vmem:[%s719_s30 + $0x188] sm:$0xff] (%p1171_p6), %v758_v63 }
 0x107   : > { %761 = vst [vmem:[%s719_s30 + $0x190] sm:$0xff] %v760_v0  ;;  %763 = vst [vmem:[%s719_s30 + $0x198] sm:$0xff] %v762_v1 }
 0x108 PF: > { %769 = sbr.rel (!%p1171_p6) target bundleno = 272 (0x110), region = 86  ;;  %s1005_s6 = sshll.u32 (%p1171_p6), %s1094_s20, 4  ;;  %v788_v2 = vld [vmem:[%s1247_s18] sm:$0xff] (%p1171_p6)  ;;  %v790_v3 = vld [vmem:[%s1247_s18 + $0x8] sm:$0xff] (%p1171_p6)  ;;  %v792_v4 = vld [vmem:[%s1247_s18 + $0x10] sm:$0xff] (%p1171_p6) }
 0x109   : > { %s775_s9 = scalar_lea.vmem (%p1171_p6), %s1325_s5, %s1005_s6  ;;  %v794_v5 = vld [vmem:[%s1247_s18 + $0x18] sm:$0xff] (%p1171_p6)  ;;  %v796_v6 = vld [vmem:[%s1247_s18 + $0x20] sm:$0xff] (%p1171_p6)  ;;  %v798_v7 = vld [vmem:[%s1247_s18 + $0x28] sm:$0xff] (%p1171_p6) }
 0x10a   : > { %789 = vst [vmem:[%s775_s9] sm:$0xff] (%p1171_p6), %v788_v2  ;;  %791 = vst [vmem:[%s775_s9 + $0x8] sm:$0xff] (%p1171_p6), %v790_v3 }
 0x10b   : > { %793 = vst [vmem:[%s775_s9 + $0x40] sm:$0xff] (%p1171_p6), %v792_v4  ;;  %795 = vst [vmem:[%s775_s9 + $0x48] sm:$0xff] (%p1171_p6), %v794_v5 }
 0x10c   : > { %797 = vst [vmem:[%s775_s9 + $0x80] sm:$0xff] (%p1171_p6), %v796_v6  ;;  %799 = vst [vmem:[%s775_s9 + $0x88] sm:$0xff] (%p1171_p6), %v798_v7 }
 0x10d   : > { %v800_v8 = vld [vmem:[%s1247_s18 + $0x30] sm:$0xff] }
 0x10e   : > { %v802_v9 = vld [vmem:[%s1247_s18 + $0x38] sm:$0xff]  ;;  %801 = vst [vmem:[%s775_s9 + $0xc0] sm:$0xff] %v800_v8 }
 0x10f   : > { %803 = vst [vmem:[%s775_s9 + $0xc8] sm:$0xff] %v802_v9 }
 0x110 PF: > { %s16_s22 = sadd.s32 1, %s1102_s22   ;;  %s1327_s18 = smov %s1090_s19 }
 0x111   : > { %p13_p11 = scmp.ge.s32.totalorder %s16_s22, 6   ;;  %s1328_s19 = smov %s1176_s28 }
 0x112   : > { %s1329_s20 = smov %s1098_s21  ;;  %s1330_s21 = smov %s1332_s23 }
 0x113   :  { %15 = sbr.rel (!%p13_p11) target bundleno = 3 (0x3), region = 161 }

// kernel: preact_resnet_forward.33
= control target key start
LH: loop header
LB: loop body
LE: loop exit
PB: predicated region body
PF: predicated region fallthrough
CT: control target
= control target key end

     0   :  { %s1782_s15 = smov 0   ;;  %s1784_s16 = smov 0   ;;  %s2206_s0 = inlined_call_operand.vmem [shape: bf16[288,2048], index: 0, kind: input, shape index: {}]   ;;  %s2207_s1 = inlined_call_operand.vmem [shape: bf16[32,288], index: 1, kind: input, shape index: {}]   ;;  %s2208_s2 = inlined_call_operand.vmem [shape: f32[32,1], index: 2, kind: input, shape index: {}]   ;;  %s2209_s3 = inlined_call_operand.vmem [shape: f32[32,1], index: 3, kind: input, shape index: {}]   ;;  %s2210_s4 = inlined_call_operand.vmem [shape: bf16[32,2048], index: 4, kind: output, shape index: {}]  }
   0x1   :  { %s1786_s17 = smov 0   ;;  %s1788_s18 = smov 0  }
   0x2   :  { %s1790_s19 = smov 0  }
   0x3 LB: > { %s26_s20 = sadd.s32 1, %s1750_s18  ;;  %s1439_s21 = sadd.s32 4294967295, %s1754_s19   ;;  %s1754_s19 = sphi %s1790_s19, %s14_s19   ;;  %s1750_s18 = sphi %s1788_s18, %s2215_s18   ;;  %s1746_s17 = sphi %s1786_s17, %s2214_s17   ;;  %s1742_s16 = sphi %s1784_s16, %s2213_s16   ;;  %s1738_s15 = sphi %s1782_s15, %s2212_s15  }
   0x4   : > { %p28_p0 = scmp.ge.s32.totalorder %s26_s20, 4  ;;  %p40_p1 = scmp.ne.s32.totalorder %s1742_s16, %s1738_s15 }
   0x5   : > { %p41_p2 = scmp.eq.s32.totalorder %s1754_s19, 0  ;;  %p150_p4 = scmp.eq.s32.totalorder %s1439_s21, 3 }
   0x6   : > { %s2217_s20 = smov (%p28_p0, %s26_s20), 0  ;;  %s33_s23 = sadd.s32 1, %s1742_s16 }
   0x7   : > { %p42_p3 = por %p41_p2, %p40_p1  ;;  %s30_s22 = ssub.s32 %s1750_s18, %s2217_s20 }
   0x8   : > { %p31_p5 = scmp.eq.s32.totalorder %s30_s22, 0  ;;  %p1817_p6 = por %p150_p4, %p40_p1 }
   0x9   : > { %p1445_p7 = scmp.ge.s32.totalorder %s1754_s19, 4 }
   0xa   : > { %s1822_s25 = scalar_select %p31_p5, %s1742_s16, %s33_s23  }
   0xb   : > { %200 = sbr.rel (%p1445_p7) target bundleno = 56 (0x38), region = 28 }
  0x10   : > { %203 = sbr.rel (!%p42_p3) target bundleno = 56 (0x38), region = 32  ;;  %s205_s26 = sand.u32 (%p42_p3), 1, %s1742_s16  }
  0x11   : > { %s1545_s27 = sshll.u32 (%p42_p3), %s1750_s18, 4  ;;  %s1555_s28 = smul.u32 (%p42_p3), 576, %s205_s26 }
  0x12   : > { %s1830_s5 = scalar_lea.vmem (%p42_p3), %s2206_s0, %s1545_s27 }
  0x13   : > { %v223_v0 = vld [vmem:[%s1830_s5] sm:$0xff] (%p42_p3)  ;;  %v225_v1 = vld [vmem:[%s1830_s5 + $0x8] sm:$0xff] (%p42_p3)  ;;  %s1838_s6 = scalar_lea.vmem (%p42_p3), [#allocation2], %s1555_s28 }
  0x14   : > { %v227_v2 = vld [vmem:[%s1830_s5 + $0x40] sm:$0xff] (%p42_p3)  ;;  %v229_v3 = vld [vmem:[%s1830_s5 + $0x48] sm:$0xff] (%p42_p3)  ;;  %224 = vst [vmem:[%s1838_s6] sm:$0xff] (%p42_p3), %v223_v0  ;;  %226 = vst [vmem:[%s1838_s6 + $0x8] sm:$0xff] (%p42_p3), %v225_v1 }
  0x15   : > { %v231_v4 = vld [vmem:[%s1830_s5 + $0x80] sm:$0xff]  ;;  %v233_v5 = vld [vmem:[%s1830_s5 + $0x88] sm:$0xff]  ;;  %228 = vst [vmem:[%s1838_s6 + $0x10] sm:$0xff] %v227_v2  ;;  %230 = vst [vmem:[%s1838_s6 + $0x18] sm:$0xff] %v229_v3 }
  0x16   : > { %232 = vst [vmem:[%s1838_s6 + $0x20] sm:$0xff] %v231_v4  ;;  %234 = vst [vmem:[%s1838_s6 + $0x28] sm:$0xff] %v233_v5  ;;  %v235_v6 = vld [vmem:[%s1830_s5 + $0xc0] sm:$0xff]  ;;  %v237_v7 = vld [vmem:[%s1830_s5 + $0xc8] sm:$0xff] }
  0x17   : > { %v239_v8 = vld [vmem:[%s1830_s5 + $0x100] sm:$0xff]  ;;  %236 = vst [vmem:[%s1838_s6 + $0x30] sm:$0xff] %v235_v6  ;;  %238 = vst [vmem:[%s1838_s6 + $0x38] sm:$0xff] %v237_v7  ;;  %v241_v9 = vld [vmem:[%s1830_s5 + $0x108] sm:$0xff] }
  0x18   : > { %240 = vst [vmem:[%s1838_s6 + $0x40] sm:$0xff] %v239_v8  ;;  %v243_v10 = vld [vmem:[%s1830_s5 + $0x140] sm:$0xff]  ;;  %v245_v11 = vld [vmem:[%s1830_s5 + $0x148] sm:$0xff]  ;;  %242 = vst [vmem:[%s1838_s6 + $0x48] sm:$0xff] %v241_v9 }
  0x19   : > { %244 = vst [vmem:[%s1838_s6 + $0x50] sm:$0xff] %v243_v10  ;;  %246 = vst [vmem:[%s1838_s6 + $0x58] sm:$0xff] %v245_v11  ;;  %v247_v12 = vld [vmem:[%s1830_s5 + $0x180] sm:$0xff]  ;;  %v249_v13 = vld [vmem:[%s1830_s5 + $0x188] sm:$0xff] }
  0x1a   : > { %v251_v14 = vld [vmem:[%s1830_s5 + $0x1c0] sm:$0xff]  ;;  %248 = vst [vmem:[%s1838_s6 + $0x60] sm:$0xff] %v247_v12  ;;  %250 = vst [vmem:[%s1838_s6 + $0x68] sm:$0xff] %v249_v13  ;;  %v253_v15 = vld [vmem:[%s1830_s5 + $0x1c8] sm:$0xff] }
  0x1b   : > { %252 = vst [vmem:[%s1838_s6 + $0x70] sm:$0xff] %v251_v14  ;;  %v255_v16 = vld [vmem:[%s1830_s5 + $0x200] sm:$0xff]  ;;  %v257_v17 = vld [vmem:[%s1830_s5 + $0x208] sm:$0xff]  ;;  %254 = vst [vmem:[%s1838_s6 + $0x78] sm:$0xff] %v253_v15 }
  0x1c   : > { %256 = vst [vmem:[%s1838_s6 + $0x80] sm:$0xff] %v255_v16  ;;  %258 = vst [vmem:[%s1838_s6 + $0x88] sm:$0xff] %v257_v17  ;;  %v259_v18 = vld [vmem:[%s1830_s5 + $0x240] sm:$0xff]  ;;  %v261_v19 = vld [vmem:[%s1830_s5 + $0x248] sm:$0xff] }
  0x1d   : > { %v263_v20 = vld [vmem:[%s1830_s5 + $0x280] sm:$0xff]  ;;  %260 = vst [vmem:[%s1838_s6 + $0x90] sm:$0xff] %v259_v18  ;;  %262 = vst [vmem:[%s1838_s6 + $0x98] sm:$0xff] %v261_v19  ;;  %v265_v21 = vld [vmem:[%s1830_s5 + $0x288] sm:$0xff] }
  0x1e   : > { %264 = vst [vmem:[%s1838_s6 + $0xa0] sm:$0xff] %v263_v20  ;;  %v267_v22 = vld [vmem:[%s1830_s5 + $0x2c0] sm:$0xff]  ;;  %v269_v23 = vld [vmem:[%s1830_s5 + $0x2c8] sm:$0xff]  ;;  %266 = vst [vmem:[%s1838_s6 + $0xa8] sm:$0xff] %v265_v21 }
  0x1f   : > { %268 = vst [vmem:[%s1838_s6 + $0xb0] sm:$0xff] %v267_v22  ;;  %270 = vst [vmem:[%s1838_s6 + $0xb8] sm:$0xff] %v269_v23  ;;  %v271_v24 = vld [vmem:[%s1830_s5 + $0x300] sm:$0xff]  ;;  %v273_v25 = vld [vmem:[%s1830_s5 + $0x308] sm:$0xff] }
  0x20   : > { %v275_v26 = vld [vmem:[%s1830_s5 + $0x340] sm:$0xff]  ;;  %272 = vst [vmem:[%s1838_s6 + $0xc0] sm:$0xff] %v271_v24  ;;  %274 = vst [vmem:[%s1838_s6 + $0xc8] sm:$0xff] %v273_v25  ;;  %v277_v27 = vld [vmem:[%s1830_s5 + $0x348] sm:$0xff] }
  0x21   : > { %276 = vst [vmem:[%s1838_s6 + $0xd0] sm:$0xff] %v275_v26  ;;  %v279_v28 = vld [vmem:[%s1830_s5 + $0x380] sm:$0xff]  ;;  %v281_v29 = vld [vmem:[%s1830_s5 + $0x388] sm:$0xff]  ;;  %278 = vst [vmem:[%s1838_s6 + $0xd8] sm:$0xff] %v277_v27 }
  0x22   : > { %280 = vst [vmem:[%s1838_s6 + $0xe0] sm:$0xff] %v279_v28  ;;  %282 = vst [vmem:[%s1838_s6 + $0xe8] sm:$0xff] %v281_v29  ;;  %v283_v30 = vld [vmem:[%s1830_s5 + $0x3c0] sm:$0xff]  ;;  %v285_v31 = vld [vmem:[%s1830_s5 + $0x3c8] sm:$0xff] }
  0x23   : > { %v287_v32 = vld [vmem:[%s1830_s5 + $0x400] sm:$0xff]  ;;  %284 = vst [vmem:[%s1838_s6 + $0xf0] sm:$0xff] %v283_v30  ;;  %286 = vst [vmem:[%s1838_s6 + $0xf8] sm:$0xff] %v285_v31  ;;  %v289_v33 = vld [vmem:[%s1830_s5 + $0x408] sm:$0xff] }
  0x24   : > { %288 = vst [vmem:[%s1838_s6 + $0x100] sm:$0xff] %v287_v32  ;;  %v291_v34 = vld [vmem:[%s1830_s5 + $0x440] sm:$0xff]  ;;  %v293_v35 = vld [vmem:[%s1830_s5 + $0x448] sm:$0xff]  ;;  %290 = vst [vmem:[%s1838_s6 + $0x108] sm:$0xff] %v289_v33 }
  0x25   : > { %292 = vst [vmem:[%s1838_s6 + $0x110] sm:$0xff] %v291_v34  ;;  %294 = vst [vmem:[%s1838_s6 + $0x118] sm:$0xff] %v293_v35  ;;  %v295_v36 = vld [vmem:[%s1830_s5 + $0x480] sm:$0xff]  ;;  %v297_v37 = vld [vmem:[%s1830_s5 + $0x488] sm:$0xff] }
  0x26   : > { %v299_v38 = vld [vmem:[%s1830_s5 + $0x4c0] sm:$0xff]  ;;  %296 = vst [vmem:[%s1838_s6 + $0x120] sm:$0xff] %v295_v36  ;;  %298 = vst [vmem:[%s1838_s6 + $0x128] sm:$0xff] %v297_v37  ;;  %v301_v39 = vld [vmem:[%s1830_s5 + $0x4c8] sm:$0xff] }
  0x27   : > { %300 = vst [vmem:[%s1838_s6 + $0x130] sm:$0xff] %v299_v38  ;;  %v303_v40 = vld [vmem:[%s1830_s5 + $0x500] sm:$0xff]  ;;  %v305_v41 = vld [vmem:[%s1830_s5 + $0x508] sm:$0xff]  ;;  %302 = vst [vmem:[%s1838_s6 + $0x138] sm:$0xff] %v301_v39 }
  0x28   : > { %304 = vst [vmem:[%s1838_s6 + $0x140] sm:$0xff] %v303_v40  ;;  %306 = vst [vmem:[%s1838_s6 + $0x148] sm:$0xff] %v305_v41  ;;  %v307_v42 = vld [vmem:[%s1830_s5 + $0x540] sm:$0xff]  ;;  %v309_v43 = vld [vmem:[%s1830_s5 + $0x548] sm:$0xff] }
  0x29   : > { %v311_v44 = vld [vmem:[%s1830_s5 + $0x580] sm:$0xff]  ;;  %308 = vst [vmem:[%s1838_s6 + $0x150] sm:$0xff] %v307_v42  ;;  %310 = vst [vmem:[%s1838_s6 + $0x158] sm:$0xff] %v309_v43  ;;  %v313_v45 = vld [vmem:[%s1830_s5 + $0x588] sm:$0xff] }
  0x2a   : > { %312 = vst [vmem:[%s1838_s6 + $0x160] sm:$0xff] %v311_v44  ;;  %v315_v46 = vld [vmem:[%s1830_s5 + $0x5c0] sm:$0xff]  ;;  %v317_v47 = vld [vmem:[%s1830_s5 + $0x5c8] sm:$0xff]  ;;  %314 = vst [vmem:[%s1838_s6 + $0x168] sm:$0xff] %v313_v45 }
  0x2b   : > { %316 = vst [vmem:[%s1838_s6 + $0x170] sm:$0xff] %v315_v46  ;;  %318 = vst [vmem:[%s1838_s6 + $0x178] sm:$0xff] %v317_v47  ;;  %v319_v48 = vld [vmem:[%s1830_s5 + $0x600] sm:$0xff]  ;;  %v321_v49 = vld [vmem:[%s1830_s5 + $0x608] sm:$0xff] }
  0x2c   : > { %v323_v50 = vld [vmem:[%s1830_s5 + $0x640] sm:$0xff]  ;;  %320 = vst [vmem:[%s1838_s6 + $0x180] sm:$0xff] %v319_v48  ;;  %322 = vst [vmem:[%s1838_s6 + $0x188] sm:$0xff] %v321_v49  ;;  %v325_v51 = vld [vmem:[%s1830_s5 + $0x648] sm:$0xff] }
  0x2d   : > { %324 = vst [vmem:[%s1838_s6 + $0x190] sm:$0xff] %v323_v50  ;;  %v327_v52 = vld [vmem:[%s1830_s5 + $0x680] sm:$0xff]  ;;  %v329_v53 = vld [vmem:[%s1830_s5 + $0x688] sm:$0xff]  ;;  %326 = vst [vmem:[%s1838_s6 + $0x198] sm:$0xff] %v325_v51 }
  0x2e   : > { %328 = vst [vmem:[%s1838_s6 + $0x1a0] sm:$0xff] %v327_v52  ;;  %330 = vst [vmem:[%s1838_s6 + $0x1a8] sm:$0xff] %v329_v53  ;;  %v331_v54 = vld [vmem:[%s1830_s5 + $0x6c0] sm:$0xff]  ;;  %v333_v55 = vld [vmem:[%s1830_s5 + $0x6c8] sm:$0xff] }
  0x2f   : > { %v335_v56 = vld [vmem:[%s1830_s5 + $0x700] sm:$0xff]  ;;  %332 = vst [vmem:[%s1838_s6 + $0x1b0] sm:$0xff] %v331_v54  ;;  %334 = vst [vmem:[%s1838_s6 + $0x1b8] sm:$0xff] %v333_v55  ;;  %v337_v57 = vld [vmem:[%s1830_s5 + $0x708] sm:$0xff] }
  0x30   : > { %336 = vst [vmem:[%s1838_s6 + $0x1c0] sm:$0xff] %v335_v56  ;;  %v339_v58 = vld [vmem:[%s1830_s5 + $0x740] sm:$0xff]  ;;  %v341_v59 = vld [vmem:[%s1830_s5 + $0x748] sm:$0xff]  ;;  %338 = vst [vmem:[%s1838_s6 + $0x1c8] sm:$0xff] %v337_v57 }
  0x31   : > { %340 = vst [vmem:[%s1838_s6 + $0x1d0] sm:$0xff] %v339_v58  ;;  %342 = vst [vmem:[%s1838_s6 + $0x1d8] sm:$0xff] %v341_v59  ;;  %v343_v60 = vld [vmem:[%s1830_s5 + $0x780] sm:$0xff]  ;;  %v345_v61 = vld [vmem:[%s1830_s5 + $0x788] sm:$0xff] }
  0x32   : > { %v347_v62 = vld [vmem:[%s1830_s5 + $0x7c0] sm:$0xff]  ;;  %344 = vst [vmem:[%s1838_s6 + $0x1e0] sm:$0xff] %v343_v60  ;;  %346 = vst [vmem:[%s1838_s6 + $0x1e8] sm:$0xff] %v345_v61  ;;  %v349_v63 = vld [vmem:[%s1830_s5 + $0x7c8] sm:$0xff] }
  0x33   : > { %348 = vst [vmem:[%s1838_s6 + $0x1f0] sm:$0xff] %v347_v62  ;;  %v351_v0 = vld [vmem:[%s1830_s5 + $0x800] sm:$0xff]  ;;  %v353_v1 = vld [vmem:[%s1830_s5 + $0x808] sm:$0xff]  ;;  %350 = vst [vmem:[%s1838_s6 + $0x1f8] sm:$0xff] %v349_v63 }
  0x34   : > { %352 = vst [vmem:[%s1838_s6 + $0x200] sm:$0xff] %v351_v0  ;;  %354 = vst [vmem:[%s1838_s6 + $0x208] sm:$0xff] %v353_v1  ;;  %v355_v2 = vld [vmem:[%s1830_s5 + $0x840] sm:$0xff]  ;;  %v357_v3 = vld [vmem:[%s1830_s5 + $0x848] sm:$0xff] }
  0x35   : > { %v359_v4 = vld [vmem:[%s1830_s5 + $0x880] sm:$0xff]  ;;  %356 = vst [vmem:[%s1838_s6 + $0x210] sm:$0xff] %v355_v2  ;;  %358 = vst [vmem:[%s1838_s6 + $0x218] sm:$0xff] %v357_v3  ;;  %v361_v5 = vld [vmem:[%s1830_s5 + $0x888] sm:$0xff] }
  0x36   : > { %360 = vst [vmem:[%s1838_s6 + $0x220] sm:$0xff] %v359_v4  ;;  %v363_v6 = vld [vmem:[%s1830_s5 + $0x8c0] sm:$0xff]  ;;  %v365_v7 = vld [vmem:[%s1830_s5 + $0x8c8] sm:$0xff]  ;;  %362 = vst [vmem:[%s1838_s6 + $0x228] sm:$0xff] %v361_v5 }
  0x37   : > { %364 = vst [vmem:[%s1838_s6 + $0x230] sm:$0xff] %v363_v6  ;;  %366 = vst [vmem:[%s1838_s6 + $0x238] sm:$0xff] %v365_v7 }
  0x38 PF: > { %p1448_p8 = scmp.ge.s32.totalorder %s1754_s19, 1  ;;  %p371_p9 = scmp.lt.s32.totalorder %s1754_s19, 5 }
  0x3a   : > { %p372_p10 = pnand %p1448_p8, %p371_p9 }
  0x3b   : > { %s378_s7 = sand.u32 (!%p372_p10), 1, %s1738_s15  }
  0x3c   : > { %375 = sbr.rel (%p372_p10) target bundleno = 374 (0x176), region = 55 }
  0x3d   : > { %s1556_s8 = smul.u32 (!%p372_p10), 576, %s378_s7 }
  0x3f   : > { %s1989_s11 = scalar_lea.vmem (!%p372_p10), [#allocation2], %s1556_s8 }
  0x41   : > { %v1756_v8 = vmov 0   ;;  %v1696_v9 = vld [vmem:[%s2207_s1 + $0x4] ss:$12 sps:$4 sm:$0xff]   ;;  %v2003_v19 = vld [vmem:[%s2207_s1 + $0x8] ss:$12 sps:$4 sm:$0xff]   ;;  %vm911_vm0 = vcmask 261120  }
  0x42   : > { %1003 = vmatprep.mubr.bf16.mxu1 %v1756_v8  ;;  %1598 = vset.pattern.permute.xlu0 %v1756_v8  ;;  %v1600_v10 = vld [vmem:[%s1989_s11 + $0xe4] ss:$16 sps:$4 sm:$0xff]   ;;  %v1602_v11 = vld [vmem:[%s1989_s11 + $0xe0] ss:$16 sps:$4 sm:$0xff]   ;;  %v1617_v21 = vld [vmem:[%s1989_s11 + $0xec] ss:$16 sps:$4 sm:$0xff]  }
  0x43   : > { %1599 = vset.pattern.permute.xlu1 %v1756_v8  ;;  %950 = vmatprep.mubr.bf16.mxu0 %v1696_v9  ;;  %v1603_v12 = vld [vmem:[%s1989_s11 + $0x224] ss:$16 sps:$4 sm:$0xff]   ;;  %v1607_v14 = vld [vmem:[%s1989_s11 + $0x220] ss:$16 sps:$4 sm:$0xff]   ;;  %v1615_v23 = vld [vmem:[%s1989_s11 + $0xe8] ss:$16 sps:$4 sm:$0xff]  }
  0x44   : > { %918 = vmatprep.subr.bf16.mxu0 %v1600_v10  ;;  %v1605_v13 = vld [vmem:[%s1989_s11 + $0xc4] ss:$16 sps:$4 sm:$0xff]   ;;  %v1608_v15 = vld [vmem:[%s1989_s11 + $0xc0] ss:$16 sps:$4 sm:$0xff]   ;;  %983 = vmatprep.subr.bf16.mxu1 %v1603_v12  ;;  %v1624_v24 = vld [vmem:[%s1989_s11 + $0xcc] ss:$16 sps:$4 sm:$0xff]  }
  0x45   : > { %919 = vmatpush1.bf16.msra.mxu0 %v1602_v11  ;;  %v1609_v16 = vld [vmem:[%s1989_s11 + $0x204] ss:$16 sps:$4 sm:$0xff]   ;;  %984 = vmatpush1.bf16.msra.mxu1 %v1607_v14  ;;  %v1613_v18 = vld [vmem:[%s1989_s11 + $0x200] ss:$16 sps:$4 sm:$0xff]   ;;  %v1622_v27 = vld [vmem:[%s1989_s11 + $0xc8] ss:$16 sps:$4 sm:$0xff]  }
  0x46   : > { %920 = vmatprep.subr.bf16.mxu0 %v1605_v13  ;;  %v1611_v17 = vld [vmem:[%s1989_s11 + $0xa4] ss:$16 sps:$4 sm:$0xff]   ;;  %985 = vmatprep.subr.bf16.mxu1 %v1609_v16  ;;  %v1614_v20 = vld [vmem:[%s1989_s11 + $0xa0] ss:$16 sps:$4 sm:$0xff]   ;;  %v1630_v28 = vld [vmem:[%s1989_s11 + $0xac] ss:$16 sps:$4 sm:$0xff]  }
  0x47   : > { %v1618_v22 = vld [vmem:[%s1989_s11 + $0x84] ss:$16 sps:$4 sm:$0xff]   ;;  %v1621_v25 = vld [vmem:[%s1989_s11 + $0x80] ss:$16 sps:$4 sm:$0xff]   ;;  %v1628_v32 = vld [vmem:[%s1989_s11 + $0xa8] ss:$16 sps:$4 sm:$0xff]  }
  0x48   : > { %v1625_v26 = vld [vmem:[%s1989_s11 + $0x64] ss:$16 sps:$4 sm:$0xff]   ;;  %v1627_v29 = vld [vmem:[%s1989_s11 + $0x60] ss:$16 sps:$4 sm:$0xff]   ;;  %v1636_v33 = vld [vmem:[%s1989_s11 + $0x8c] ss:$16 sps:$4 sm:$0xff]  }
  0x49   : > { %921 = vmatpush1.bf16.msra.mxu0 %v1608_v15  ;;  %986 = vmatpush1.bf16.msra.mxu1 %v1613_v18  ;;  %v2021_v30 = vld [vmem:[%s2207_s1 + $0x20] ss:$12 sps:$4 sm:$0xff]   ;;  %v1631_v31 = vld [vmem:[%s1989_s11 + $0x44] ss:$16 sps:$4 sm:$0xff]   ;;  %v1634_v36 = vld [vmem:[%s1989_s11 + $0x88] ss:$16 sps:$4 sm:$0xff]  }
  0x4a   : > { %922 = vmatprep.subr.bf16.mxu0 %v1611_v17  ;;  %1024 = vmatprep.subr.bf16.mxu1 %v1617_v21  ;;  %v1633_v34 = vld [vmem:[%s1989_s11 + $0x40] ss:$16 sps:$4 sm:$0xff]   ;;  %v1637_v35 = vld [vmem:[%s1989_s11 + $0x24] ss:$16 sps:$4 sm:$0xff]   ;;  %v1642_v37 = vld [vmem:[%s1989_s11 + $0x6c] ss:$16 sps:$4 sm:$0xff]  }
  0x4b   : > { %v1639_v38 = vld [vmem:[%s1989_s11 + $0x20] ss:$16 sps:$4 sm:$0xff]   ;;  %v1643_v39 = vld [vmem:[%s1989_s11 + $0x4] ss:$16 sps:$4 sm:$0xff]   ;;  %v1640_v40 = vld [vmem:[%s1989_s11 + $0x68] ss:$16 sps:$4 sm:$0xff]  }
  0x4c   : > { %1528 = vmatmul.mubr.msk.bf16.vlgmr.msra.gmra.mxu1 %vm911_vm0, %v2003_v19  ;;  %v1648_v41 = vld [vmem:[%s1989_s11 + $0x4c] ss:$16 sps:$4 sm:$0xff]   ;;  %v1645_v42 = vld [vmem:[%s1989_s11] ss:$16 sps:$4 sm:$0xff]   ;;  %v1649_v43 = vld [vmem:[%s1989_s11 + $0x1e4] ss:$16 sps:$4 sm:$0xff]  }
  0x4d   : > { %923 = vmatpush1.bf16.msra.mxu0 %v1614_v20  ;;  %1025 = vmatpush1.bf16.msra.mxu1 %v1615_v23  ;;  %v1646_v44 = vld [vmem:[%s1989_s11 + $0x48] ss:$16 sps:$4 sm:$0xff]   ;;  %v1654_v45 = vld [vmem:[%s1989_s11 + $0x2c] ss:$16 sps:$4 sm:$0xff]   ;;  %v1651_v46 = vld [vmem:[%s1989_s11 + $0x1e0] ss:$16 sps:$4 sm:$0xff]  }
  0x4e   : > { %924 = vmatprep.subr.bf16.mxu0 %v1618_v22  ;;  %1013 = vmatprep.mubr.bf16.mxu1 %v1756_v8  ;;  %v1655_v47 = vld [vmem:[%s1989_s11 + $0x1c4] ss:$16 sps:$4 sm:$0xff]   ;;  %v1652_v48 = vld [vmem:[%s1989_s11 + $0x28] ss:$16 sps:$4 sm:$0xff]   ;;  %v1660_v49 = vld [vmem:[%s1989_s11 + $0xc] ss:$16 sps:$4 sm:$0xff]  }
  0x4f   : > { %1026 = vmatprep.subr.bf16.mxu1 %v1624_v24  ;;  %v1657_v50 = vld [vmem:[%s1989_s11 + $0x1c0] ss:$16 sps:$4 sm:$0xff]   ;;  %v1661_v51 = vld [vmem:[%s1989_s11 + $0x1a4] ss:$16 sps:$4 sm:$0xff]   ;;  %v1658_v52 = vld [vmem:[%s1989_s11 + $0x8] ss:$16 sps:$4 sm:$0xff]  }
  0x50   : > { %v1666_v53 = vld [vmem:[%s1989_s11 + $0x1ec] ss:$16 sps:$4 sm:$0xff]   ;;  %v1663_v54 = vld [vmem:[%s1989_s11 + $0x1a0] ss:$16 sps:$4 sm:$0xff]   ;;  %v1667_v55 = vld [vmem:[%s1989_s11 + $0x184] ss:$16 sps:$4 sm:$0xff]  }
  0x51   : > { %925 = vmatpush1.bf16.msra.mxu0 %v1621_v25  ;;  %1027 = vmatpush1.bf16.msra.mxu1 %v1622_v27  ;;  %v1664_v56 = vld [vmem:[%s1989_s11 + $0x1e8] ss:$16 sps:$4 sm:$0xff]   ;;  %v1672_v57 = vld [vmem:[%s1989_s11 + $0x1cc] ss:$16 sps:$4 sm:$0xff]   ;;  %v1669_v58 = vld [vmem:[%s1989_s11 + $0x180] ss:$16 sps:$4 sm:$0xff]  }
  0x52   : > { %926 = vmatprep.subr.bf16.mxu0 %v1625_v26  ;;  %1028 = vmatprep.subr.bf16.mxu1 %v1630_v28  ;;  %v1673_v59 = vld [vmem:[%s1989_s11 + $0x164] ss:$16 sps:$4 sm:$0xff]   ;;  %v1670_v60 = vld [vmem:[%s1989_s11 + $0x1c8] ss:$16 sps:$4 sm:$0xff]   ;;  %v1678_v61 = vld [vmem:[%s1989_s11 + $0x1ac] ss:$16 sps:$4 sm:$0xff]  }
  0x53   : > { %v1675_v62 = vld [vmem:[%s1989_s11 + $0x160] ss:$16 sps:$4 sm:$0xff]   ;;  %v1679_v63 = vld [vmem:[%s1989_s11 + $0x144] ss:$16 sps:$4 sm:$0xff]   ;;  %v1676_v0 = vld [vmem:[%s1989_s11 + $0x1a8] ss:$16 sps:$4 sm:$0xff]  }
  0x54   : > { %1529 = vmatmul.mubr.msk.bf16.gmra.mxu1 %vm911_vm0, %v2021_v30  ;;  %v1130_v1 = vld [vmem:[%s2208_s2] sm:$0xff]  ;;  %v1132_v2 = vld [vmem:[%s2208_s2 + $0x10] sm:$0xff]  ;;  %v1684_v3 = vld [vmem:[%s1989_s11 + $0x18c] ss:$16 sps:$4 sm:$0xff]  }
  0x55   : > { %927 = vmatpush1.bf16.msra.mxu0 %v1627_v29  ;;  %1029 = vmatpush1.bf16.msra.mxu1 %v1628_v32  ;;  %v1681_v4 = vld [vmem:[%s1989_s11 + $0x140] ss:$16 sps:$4 sm:$0xff]   ;;  %v1131_v5 = vld [vmem:[%s2208_s2 + $0x8] sm:$0xff]  ;;  %v1685_v6 = vld [vmem:[%s1989_s11 + $0x124] ss:$16 sps:$4 sm:$0xff]  }
  0x56   : > { %928 = vmatprep.subr.bf16.mxu0 %v1631_v31  ;;  %1056 = vmatprep.mubr.bf16.mxu1 %v1696_v9  ;;  %v1133_v7 = vld [vmem:[%s2208_s2 + $0x18] sm:$0xff]  ;;  %v1687_v11 = vld [vmem:[%s1989_s11 + $0x120] ss:$16 sps:$4 sm:$0xff]   ;;  %v1691_v13 = vld [vmem:[%s1989_s11 + $0x104] ss:$16 sps:$4 sm:$0xff]  }
  0x57   : > { %1030 = vmatprep.subr.bf16.mxu1 %v1636_v33  ;;  %1136 = vperm.xlu0 %1598, %v1130_v1   ;;  %v1682_v9 = vld [vmem:[%s1989_s11 + $0x188] ss:$16 sps:$4 sm:$0xff]   ;;  %v1690_v10 = vld [vmem:[%s1989_s11 + $0x16c] ss:$16 sps:$4 sm:$0xff]   ;;  %v1170_v12 = vld [vmem:[%s2209_s3] sm:$0xff] }
  0x58   : > { %1146 = vperm.xlu1 %1599, %v1132_v2   ;;  %v1171_v14 = vld [vmem:[%s2209_s3 + $0x8] sm:$0xff]  ;;  %v1693_v17 = vld [vmem:[%s1989_s11 + $0x100] ss:$16 sps:$4 sm:$0xff]   ;;  %v1173_v21 = vld [vmem:[%s2209_s3 + $0x18] sm:$0xff] }
  0x59   : > { %929 = vmatpush1.bf16.msra.mxu0 %v1633_v34  ;;  %1031 = vmatpush1.bf16.msra.mxu1 %v1634_v36  ;;  %v1688_v15 = vld [vmem:[%s1989_s11 + $0x168] ss:$16 sps:$4 sm:$0xff]   ;;  %v1699_v16 = vld [vmem:[%s1989_s11 + $0x14c] ss:$16 sps:$4 sm:$0xff]   ;;  %v1172_v18 = vld [vmem:[%s2209_s3 + $0x10] sm:$0xff] }
  0x5a   : > { %930 = vmatprep.subr.bf16.mxu0 %v1637_v35  ;;  %1032 = vmatprep.subr.bf16.mxu1 %v1642_v37  ;;  %v1702_v20 = vld [vmem:[%s1989_s11 + $0x22c] ss:$16 sps:$4 sm:$0xff]   ;;  %v1697_v22 = vld [vmem:[%s1989_s11 + $0x148] ss:$16 sps:$4 sm:$0xff]  }
  0x5b   : > { %1141 = vperm.xlu0 %1598, %v1131_v5   ;;  %v1694_v23 = vld [vmem:[%s2207_s1] ss:$12 sps:$4 sm:$0xff]   ;;  %v1700_v25 = vld [vmem:[%s1989_s11 + $0x228] ss:$16 sps:$4 sm:$0xff]  }
  0x5c   : > { %1151 = vperm.xlu1 %1599, %v1133_v7   ;;  %v1706_v24 = vld [vmem:[%s1989_s11 + $0x12c] ss:$16 sps:$4 sm:$0xff]   ;;  %v1704_v28 = vld [vmem:[%s1989_s11 + $0x128] ss:$16 sps:$4 sm:$0xff]  }
  0x5d   : > { %931 = vmatpush1.bf16.msra.mxu0 %v1639_v38  ;;  %1033 = vmatpush1.bf16.msra.mxu1 %v1640_v40  ;;  %v1707_v26 = vld [vmem:[%s2207_s1 + $0x1c] ss:$12 sps:$4 sm:$0xff]   ;;  %v1712_v33 = vld [vmem:[%s2207_s1 + $0x18] ss:$12 sps:$4 sm:$0xff]  }
  0x5e   : > { %932 = vmatprep.subr.bf16.mxu0 %v1643_v39  ;;  %1034 = vmatprep.subr.bf16.mxu1 %v1648_v41  ;;  %v1715_v27 = vld [vmem:[%s1989_s11 + $0x20c] ss:$16 sps:$4 sm:$0xff]   ;;  %v1713_v31 = vld [vmem:[%s1989_s11 + $0x208] ss:$16 sps:$4 sm:$0xff]  }
  0x5f   : > { %1176 = vperm.xlu0 %1598, %v1170_v12   ;;  %v1711_v29 = vld [vmem:[%s1989_s11 + $0x10c] ss:$16 sps:$4 sm:$0xff]   ;;  %v1709_v32 = vld [vmem:[%s1989_s11 + $0x108] ss:$16 sps:$4 sm:$0xff]   ;;  %s1449_s11 = sshll.u32 %s378_s7, 6  ;;  %s1554_s7 = sshll.u32 (%p1817_p6), %s1746_s17, 4 }
  0x60   : > { %1181 = vperm.xlu1 %1599, %v1171_v14   ;;  %s2142_s15 = scalar_lea.vmem [#allocation3], %s1449_s11  ;;  %s1294_s6 = scalar_lea.vmem (%p1817_p6), %s2210_s4, %s1554_s7 }
  0x61   : > { %933 = vmatpush1.bf16.msra.mxu0 %v1645_v42  ;;  %1035 = vmatpush1.bf16.msra.mxu1 %v1646_v44 }
  0x62   : > { %934 = vmatprep.subr.bf16.mxu0 %v1649_v43  ;;  %1036 = vmatprep.subr.bf16.mxu1 %v1654_v45 }
  0x63   : > { %1186 = vperm.xlu0 %1598, %v1172_v18  }
  0x64   : > { %1191 = vperm.xlu1 %1599, %v1173_v21  }
  0x65   : > { %935 = vmatpush2.bf16.msra.mxu0 %v1651_v46  ;;  %1037 = vmatpush1.bf16.msra.mxu1 %v1652_v48 }
  0x66   : > { %936 = vmatprep.subr.bf16.mxu0 %v1655_v47  ;;  %1038 = vmatprep.subr.bf16.mxu1 %v1660_v49 }
  0x69   : > { %937 = vmatpush2.bf16.msra.mxu0 %v1657_v50  ;;  %1039 = vmatpush1.bf16.msra.mxu1 %v1658_v52 }
  0x6a   : > { %938 = vmatprep.subr.bf16.mxu0 %v1661_v51  ;;  %1040 = vmatprep.subr.bf16.mxu1 %v1666_v53 }
  0x6d   : > { %939 = vmatpush2.bf16.msra.mxu0 %v1663_v54  ;;  %1041 = vmatpush2.bf16.msra.mxu1 %v1664_v56 }
  0x6e   : > { %940 = vmatprep.subr.bf16.mxu0 %v1667_v55  ;;  %1042 = vmatprep.subr.bf16.mxu1 %v1672_v57 }
  0x71   : > { %941 = vmatpush2.bf16.msra.mxu0 %v1669_v58  ;;  %1043 = vmatpush2.bf16.msra.mxu1 %v1670_v60 }
  0x72   : > { %942 = vmatprep.subr.bf16.mxu0 %v1673_v59  ;;  %1044 = vmatprep.subr.bf16.mxu1 %v1678_v61 }
  0x75   : > { %943 = vmatpush2.bf16.msra.mxu0 %v1675_v62  ;;  %1045 = vmatpush2.bf16.msra.mxu1 %v1676_v0 }
  0x76   : > { %944 = vmatprep.subr.bf16.mxu0 %v1679_v63  ;;  %1046 = vmatprep.subr.bf16.mxu1 %v1684_v3 }
  0x79   : > { %945 = vmatpush2.bf16.msra.mxu0 %v1681_v4  ;;  %1047 = vmatpush2.bf16.msra.mxu1 %v1682_v9 }
  0x7a   : > { %946 = vmatprep.subr.bf16.mxu0 %v1685_v6  ;;  %1048 = vmatprep.subr.bf16.mxu1 %v1690_v10 }
  0x7d   : > { %947 = vmatpush2.bf16.msra.mxu0 %v1687_v11  ;;  %1049 = vmatpush2.bf16.msra.mxu1 %v1688_v15 }
  0x7e   : > { %948 = vmatprep.subr.bf16.mxu0 %v1691_v13  ;;  %1050 = vmatprep.subr.bf16.mxu1 %v1699_v16 }
  0x81   : > { %949 = vmatpush2.bf16.msra.mxu0 %v1693_v17  ;;  %1051 = vmatpush2.bf16.msra.mxu1 %v1697_v22 }
  0x82   : > { %1089 = vmatprep.subr.bf16.mxu0 %v1702_v20  ;;  %1052 = vmatprep.subr.bf16.mxu1 %v1706_v24 }
  0x84   : > { %951 = vmatmul.mubr.bf16.vlgmr.msra.gmra.mxu0 %v1694_v23 }
  0x85   : > { %1090 = vmatpush1.bf16.msra.mxu0 %v1700_v25  ;;  %960 = vmatprep.mubr.bf16.mxu0 %v1707_v26 }
  0x86   : > { %1091 = vmatprep.subr.bf16.mxu0 %v1715_v27  ;;  %1053 = vmatpush2.bf16.msra.mxu1 %v1704_v28 }
  0x87   : > { %1054 = vmatprep.subr.bf16.mxu1 %v1711_v29 }
  0x89   : > { %1092 = vmatpush1.bf16.msra.mxu0 %v1713_v31 }
  0x8a   : > { %1055 = vmatpush2.bf16.msra.mxu1 %v1709_v32 }
  0x8c   : > { %961 = vmatmul.mubr.bf16.gmra.mxu0 %v1712_v33 }
  0x8d   : > { %1109 = vmatprep.mubr.bf16.mxu0 %v1756_v8  ;;  %1057 = vmatmul.mubr.bf16.vlgmr.msra.gmra.mxu1 %v1694_v23 }
  0x8e   : > { %1066 = vmatprep.mubr.bf16.mxu1 %v1707_v26 }
  0x94   : > { %1530 = vmatmul.mubr.msk.bf16.vlgmr.msra.gmra.mxu0 %vm911_vm0, %v2003_v19 }
  0x95   : > { %1119 = vmatprep.mubr.bf16.mxu0 %v1756_v8  ;;  %1067 = vmatmul.mubr.bf16.gmra.mxu1 %v1712_v33 }
  0x9c   : > { %1531 = vmatmul.mubr.msk.bf16.gmra.mxu0 %vm911_vm0, %v2021_v30 }
  0xd2   : > { %v2117_v37 = vpop.permute.xlu0 %1136 }
  0xd3   : > { %v2119_v39 = vpop.permute.xlu1 %1146 }
  0xd6   : > { %v2121_v41 = vpop.permute.xlu0 %1141 }
  0xd7   : > { %v2123_v19 = vpop.permute.xlu1 %1151 }
  0xda   : > { %v2125_v44 = vpop.permute.xlu0 %1176 }
  0xdb   : > { %v2130_v52 = vpop.permute.xlu1 %1181 }
  0xde   : > { %v2140_v5 = vpop.permute.xlu0 %1186 }
  0xdf   : > { %v2145_v13 = vpop.permute.xlu1 %1191 }
 0x10c   : > { %v1005_v34 = vpop.f32.mrf.mxu1 }
 0x10e   : > { %v1007_v35 = vpop.f32.mrf.mxu1 }
 0x110   : > { %v1009_v36 = vpop.f32.mrf.mxu1 }
 0x112   : > { %v1011_v38 = vpop.f32.mrf.mxu1 }
 0x114   : > { %v1015_v40 = vpop.f32.mrf.mxu1 }
 0x116   : > { %v1017_v42 = vpop.f32.mrf.mxu1 }
 0x118   : > { %v1019_v45 = vpop.f32.mrf.mxu1 }
 0x11a   : > { %v1021_v54 = vpop.f32.mrf.mxu1 }
 0x144   : > { %v952_v8 = vpop.f32.mrf.mxu0 }
 0x145   : > { %v1006_v43 = vadd.f32 %v1005_v34, %v952_v8 }
 0x146   : > { %v954_v30 = vpop.f32.mrf.mxu0 }
 0x147   : > { %v1154_v46 = vmul.f32 %v2117_v37, %v1006_v43  ;;  %v1008_v47 = vadd.f32 %v1007_v35, %v954_v30 }
 0x148   : > { %v956_v48 = vpop.f32.mrf.mxu0 }
 0x149   : > { %v1155_v49 = vmul.f32 %v2117_v37, %v1008_v47  ;;  %v1194_v50 = vadd.f32 %v2125_v44, %v1154_v46  ;;  %v1010_v51 = vadd.f32 %v1009_v36, %v956_v48 }
 0x14a   : > { %v958_v53 = vpop.f32.mrf.mxu0 }
 0x14b   : > { %v1195_v55 = vadd.f32 %v2125_v44, %v1155_v49  ;;  %v1158_v56 = vmul.f32 %v2121_v41, %v1010_v51  ;;  %v1012_v57 = vadd.f32 %v1011_v38, %v958_v53  ;;  %v1210_v58 = vmax.f32 %v1194_v50, 0.0 }
 0x14c   : > { %v962_v59 = vpop.f32.mrf.mxu0 }
 0x14d   : > { %v1211_v60 = vmax.f32 %v1195_v55, 0.0  ;;  %v1159_v61 = vmul.f32 %v2121_v41, %v1012_v57  ;;  %v1198_v62 = vadd.f32 %v2130_v52, %v1158_v56  ;;  %v1016_v63 = vadd.f32 %v1015_v40, %v962_v59  ;;  %v1058_v1 = vpop.f32.mrf.mxu1 }
 0x14e   : > { %v964_v0 = vpop.f32.mrf.mxu0 }
 0x14f   : > { %v1546_v2 = vpack.c.bf16 %v1211_v60, %v1210_v58  ;;  %v1199_v3 = vadd.f32 %v2130_v52, %v1159_v61  ;;  %v1162_v4 = vmul.f32 %v2119_v39, %v1016_v63  ;;  %v1018_v6 = vadd.f32 %v1017_v42, %v964_v0  ;;  %v1060_v9 = vpop.f32.mrf.mxu1 }
 0x150   : > { %v966_v7 = vpop.f32.mrf.mxu0  ;;  %v1214_v10 = vmax.f32 %v1198_v62, 0.0 }
 0x151   : > { %1274 = vst [vmem:[%s2142_s15] sm:$0xff] %v1546_v2  ;;  %v1215_v11 = vmax.f32 %v1199_v3, 0.0  ;;  %v1020_v12 = vadd.f32 %v1019_v45, %v966_v7  ;;  %v1163_v14 = vmul.f32 %v2119_v39, %v1018_v6  ;;  %v1202_v15 = vadd.f32 %v2140_v5, %v1162_v4  ;;  %v1062_v17 = vpop.f32.mrf.mxu1 }
 0x152   : > { %v968_v16 = vpop.f32.mrf.mxu0 }
 0x153   : > { %v1548_v18 = vpack.c.bf16 %v1215_v11, %v1214_v10  ;;  %v1166_v20 = vmul.f32 %v2123_v19, %v1020_v12  ;;  %v1022_v21 = vadd.f32 %v1021_v54, %v968_v16  ;;  %v1203_v22 = vadd.f32 %v2140_v5, %v1163_v14  ;;  %v1064_v24 = vpop.f32.mrf.mxu1 }
 0x154   : > { %v1111_v23 = vpop.f32.mrf.mxu0  ;;  %v1218_v28 = vmax.f32 %v1202_v15, 0.0 }
 0x155   : > { %1276 = vst [vmem:[%s2142_s15 + $0x10] sm:$0xff] %v1548_v18  ;;  %v1167_v25 = vmul.f32 %v2123_v19, %v1022_v21  ;;  %v1206_v26 = vadd.f32 %v2145_v13, %v1166_v20  ;;  %v1112_v27 = vadd.f32 %v1111_v23, %v1058_v1  ;;  %v1219_v29 = vmax.f32 %v1203_v22, 0.0  ;;  %v1068_v32 = vpop.f32.mrf.mxu1 }
 0x156   : > { %v1113_v31 = vpop.f32.mrf.mxu0 }
 0x157   : > { %v1207_v33 = vadd.f32 %v2145_v13, %v1167_v25  ;;  %v1156_v34 = vmul.f32 %v2117_v37, %v1112_v27  ;;  %v1114_v35 = vadd.f32 %v1113_v31, %v1060_v9  ;;  %v1550_v36 = vpack.c.bf16 %v1219_v29, %v1218_v28  ;;  %v1070_v45 = vpop.f32.mrf.mxu1 }
 0x158   : > { %v1222_v38 = vmax.f32 %v1206_v26, 0.0  ;;  %v1115_v40 = vpop.f32.mrf.mxu0 }
 0x159   : > { %v1223_v42 = vmax.f32 %v1207_v33, 0.0  ;;  %v1196_v8 = vadd.f32 %v2125_v44, %v1156_v34  ;;  %v1157_v43 = vmul.f32 %v2117_v37, %v1114_v35  ;;  %v1116_v30 = vadd.f32 %v1115_v40, %v1062_v17  ;;  %1278 = vst [vmem:[%s2142_s15 + $0x20] sm:$0xff] %v1550_v36  ;;  %v1072_v57 = vpop.f32.mrf.mxu1 }
 0x15a   : > { %v1117_v46 = vpop.f32.mrf.mxu0 }
 0x15b   : > { %v1552_v47 = vpack.c.bf16 %v1223_v42, %v1222_v38  ;;  %v1197_v48 = vadd.f32 %v2125_v44, %v1157_v43  ;;  %v1160_v49 = vmul.f32 %v2121_v41, %v1116_v30  ;;  %v1118_v50 = vadd.f32 %v1117_v46, %v1064_v24 }
 0x15c   : > { %v1121_v51 = vpop.f32.mrf.mxu0  ;;  %v1212_v53 = vmax.f32 %v1196_v8, 0.0 }
 0x15d   : > { %1280 = vst [vmem:[%s2142_s15 + $0x30] sm:$0xff] %v1552_v47  ;;  %v1213_v54 = vmax.f32 %v1197_v48, 0.0  ;;  %v1122_v55 = vadd.f32 %v1121_v51, %v1068_v32  ;;  %v1200_v56 = vadd.f32 %v2130_v52, %v1160_v49  ;;  %v1161_v37 = vmul.f32 %v2121_v41, %v1118_v50  ;;  %v1074_v41 = vpop.f32.mrf.mxu1 }
 0x15e   : > { %v1123_v58 = vpop.f32.mrf.mxu0 }
 0x15f   : > { %v1547_v59 = vpack.c.bf16 %v1213_v54, %v1212_v53  ;;  %v1164_v60 = vmul.f32 %v2119_v39, %v1122_v55  ;;  %v1124_v61 = vadd.f32 %v1123_v58, %v1070_v45  ;;  %v1201_v44 = vadd.f32 %v2130_v52, %v1161_v37 }
 0x160   : > { %v1125_v62 = vpop.f32.mrf.mxu0  ;;  %v1216_v2 = vmax.f32 %v1200_v56, 0.0  ;;  %v1315_v21 = vld [vmem:[%s2142_s15 + $0x20] sm:$0xff] (%p1817_p6) }
 0x161   : > { %1275 = vst [vmem:[%s2142_s15 + $0x8] sm:$0xff] %v1547_v59  ;;  %v1204_v63 = vadd.f32 %v2140_v5, %v1164_v60  ;;  %v1165_v0 = vmul.f32 %v2119_v39, %v1124_v61  ;;  %v1126_v1 = vadd.f32 %v1125_v62, %v1072_v57  ;;  %v1217_v3 = vmax.f32 %v1201_v44, 0.0  ;;  %1316 = vst [vmem:[%s1294_s6 + $0x80] sm:$0xff] (%p1817_p6), %v1315_v21 }
 0x162   : > { %v1127_v4 = vpop.f32.mrf.mxu0 }
 0x163   : > { %v1205_v6 = vadd.f32 %v2140_v5, %v1165_v0  ;;  %v1168_v7 = vmul.f32 %v2123_v19, %v1126_v1  ;;  %v1128_v9 = vadd.f32 %v1127_v4, %v1074_v41  ;;  %v1549_v52 = vpack.c.bf16 %v1217_v3, %v1216_v2 }
 0x164   : > { %v1220_v10 = vmax.f32 %v1204_v63, 0.0  ;;  %v1319_v23 = vld [vmem:[%s2142_s15 + $0x30] sm:$0xff] (%p1817_p6) }
 0x165   : > { %v1221_v11 = vmax.f32 %v1205_v6, 0.0  ;;  %v1208_v12 = vadd.f32 %v2145_v13, %v1168_v7  ;;  %v1169_v14 = vmul.f32 %v2123_v19, %v1128_v9  ;;  %1277 = vst [vmem:[%s2142_s15 + $0x18] sm:$0xff] %v1549_v52  ;;  %v1307_v19 = vld [vmem:[%s2142_s15] sm:$0xff] (%p1817_p6)  ;;  %1320 = vst [vmem:[%s1294_s6 + $0xc0] sm:$0xff] (%p1817_p6), %v1319_v23 }
 0x166   : > { %1308 = vst [vmem:[%s1294_s6] sm:$0xff] (%p1817_p6), %v1307_v19 }
 0x167   : > { %v1551_v39 = vpack.c.bf16 %v1221_v11, %v1220_v10  ;;  %v1209_v15 = vadd.f32 %v2145_v13, %v1169_v14  ;;  %v1224_v16 = vmax.f32 %v1208_v12, 0.0  ;;  %v1311_v13 = vld [vmem:[%s2142_s15 + $0x10] sm:$0xff] (%p1817_p6) }
 0x168   : > { %v1309_v5 = vld [vmem:[%s2142_s15 + $0x8] sm:$0xff] (%p1817_p6)  ;;  %1312 = vst [vmem:[%s1294_s6 + $0x40] sm:$0xff] (%p1817_p6), %v1311_v13 }
 0x169   : > { %1279 = vst [vmem:[%s2142_s15 + $0x28] sm:$0xff] %v1551_v39  ;;  %v1225_v17 = vmax.f32 %v1209_v15, 0.0  ;;  %1288 = sbr.rel (!%p1817_p6) target bundleno = 374 (0x176), region = 63  ;;  %1310 = vst [vmem:[%s1294_s6 + $0x8] sm:$0xff] (%p1817_p6), %v1309_v5 }
 0x16b   : > { %v1553_v18 = vpack.c.bf16 %v1225_v17, %v1224_v16 }
 0x16c   : > { %v1313_v20 = vld [vmem:[%s2142_s15 + $0x18] sm:$0xff] (%p1817_p6) }
 0x16d   : > { %1281 = vst [vmem:[%s2142_s15 + $0x38] sm:$0xff] %v1553_v18  ;;  %1314 = vst [vmem:[%s1294_s6 + $0x48] sm:$0xff] (%p1817_p6), %v1313_v20 }
 0x170   : > { %v1317_v22 = vld [vmem:[%s2142_s15 + $0x28] sm:$0xff] }
 0x171   : > { %1318 = vst [vmem:[%s1294_s6 + $0x88] sm:$0xff] %v1317_v22 }
 0x174   : > { %v1321_v24 = vld [vmem:[%s2142_s15 + $0x38] sm:$0xff] }
 0x175   : > { %1322 = vst [vmem:[%s1294_s6 + $0xc8] sm:$0xff] %v1321_v24 }
 0x176 PF: > { %s14_s19 = sadd.s32 1, %s1754_s19   ;;  %s2212_s15 = smov %s1742_s16 }
 0x177   : > { %p11_p11 = scmp.ge.s32.totalorder %s14_s19, 6   ;;  %s2213_s16 = smov %s1822_s25 }
 0x178   : > { %s2214_s17 = smov %s1750_s18  ;;  %s2215_s18 = smov %s2217_s20 }
 0x179   :  { %13 = sbr.rel (!%p11_p11) target bundleno = 3 (0x3), region = 126 }

// kernel: preact_resnet_forward.34
= control target key start
LH: loop header
LB: loop body
LE: loop exit
PB: predicated region body
PF: predicated region fallthrough
CT: control target
= control target key end

     0   :  { %s2088_s21 = smov 0   ;;  %s2090_s22 = smov 0   ;;  %s2602_s0 = inlined_call_operand.vmem [shape: bf16[288,2048], index: 0, kind: input, shape index: {}]   ;;  %s2603_s1 = inlined_call_operand.vmem [shape: bf16[32,288], index: 1, kind: input, shape index: {}]   ;;  %s2604_s2 = inlined_call_operand.vmem [shape: f32[32,1], index: 2, kind: input, shape index: {}]   ;;  %s2605_s3 = inlined_call_operand.vmem [shape: f32[32,1], index: 3, kind: input, shape index: {}]   ;;  %s2606_s4 = inlined_call_operand.vmem [shape: f32[32,2048], index: 4, kind: input, shape index: {}]   ;;  %s2607_s5 = inlined_call_operand.vmem [shape: f32[32,2048], index: 5, kind: output, shape index: {0}]   ;;  %s2608_s6 = inlined_call_operand.vmem [shape: bf16[32,2048], index: 6, kind: output, shape index: {1}]  }
   0x1   :  { %s2092_s23 = smov 0   ;;  %s2094_s24 = smov 0  }
   0x2   :  { %s2096_s25 = smov 0  }
   0x3 LB: > { %s29_s26 = sadd.s32 1, %s2046_s24  ;;  %s1725_s27 = sadd.s32 4294967295, %s2050_s25   ;;  %s2050_s25 = sphi %s2096_s25, %s17_s25   ;;  %s2046_s24 = sphi %s2094_s24, %s2614_s24   ;;  %s2042_s23 = sphi %s2092_s23, %s2613_s23   ;;  %s2038_s22 = sphi %s2090_s22, %s2612_s22   ;;  %s2034_s21 = sphi %s2088_s21, %s2611_s21  }
   0x4   : > { %p31_p0 = scmp.ge.s32.totalorder %s29_s26, 4  ;;  %p43_p1 = scmp.ne.s32.totalorder %s2038_s22, %s2034_s21 }
   0x5   : > { %p44_p2 = scmp.eq.s32.totalorder %s2050_s25, 0  ;;  %p181_p4 = scmp.eq.s32.totalorder %s1725_s27, 3 }
   0x6   : > { %s2616_s26 = smov (%p31_p0, %s29_s26), 0  ;;  %s36_s30 = sadd.s32 1, %s2038_s22 }
   0x7   : > { %p2120_p3 = por %p44_p2, %p43_p1  ;;  %s33_s29 = ssub.s32 %s2046_s24, %s2616_s26 }
   0x8   : > { %p34_p5 = scmp.eq.s32.totalorder %s33_s29, 0  ;;  %p2127_p6 = por %p181_p4, %p43_p1 }
   0x9   : > { %p1731_p7 = scmp.ge.s32.totalorder %s2050_s25, 4 }
   0xa   : > { %s2132_s8 = scalar_select %p34_p5, %s2038_s22, %s36_s30  }
   0xb   : > { %259 = sbr.rel (%p1731_p7) target bundleno = 68 (0x44), region = 28 }
  0x10   : > { %262 = sbr.rel (!%p2120_p3) target bundleno = 56 (0x38), region = 32  ;;  %s264_s9 = sand.u32 (%p2120_p3), 1, %s2038_s22  }
  0x11   : > { %s1839_s10 = sshll.u32 (%p2120_p3), %s2046_s24, 4  ;;  %s1851_s11 = smul.u32 (%p2120_p3), 576, %s264_s9 }
  0x12   : > { %s2142_s14 = scalar_lea.vmem (%p2120_p3), %s2602_s0, %s1839_s10 }
  0x13   : > { %v282_v0 = vld [vmem:[%s2142_s14] sm:$0xff] (%p2120_p3)  ;;  %v284_v1 = vld [vmem:[%s2142_s14 + $0x8] sm:$0xff] (%p2120_p3)  ;;  %s2150_s15 = scalar_lea.vmem (%p2120_p3), [#allocation2], %s1851_s11 }
  0x14   : > { %v286_v2 = vld [vmem:[%s2142_s14 + $0x40] sm:$0xff] (%p2120_p3)  ;;  %v288_v3 = vld [vmem:[%s2142_s14 + $0x48] sm:$0xff] (%p2120_p3)  ;;  %283 = vst [vmem:[%s2150_s15] sm:$0xff] (%p2120_p3), %v282_v0  ;;  %285 = vst [vmem:[%s2150_s15 + $0x8] sm:$0xff] (%p2120_p3), %v284_v1 }
  0x15   : > { %v290_v4 = vld [vmem:[%s2142_s14 + $0x80] sm:$0xff]  ;;  %v292_v5 = vld [vmem:[%s2142_s14 + $0x88] sm:$0xff]  ;;  %287 = vst [vmem:[%s2150_s15 + $0x10] sm:$0xff] %v286_v2  ;;  %289 = vst [vmem:[%s2150_s15 + $0x18] sm:$0xff] %v288_v3 }
  0x16   : > { %291 = vst [vmem:[%s2150_s15 + $0x20] sm:$0xff] %v290_v4  ;;  %293 = vst [vmem:[%s2150_s15 + $0x28] sm:$0xff] %v292_v5  ;;  %v294_v6 = vld [vmem:[%s2142_s14 + $0xc0] sm:$0xff]  ;;  %v296_v7 = vld [vmem:[%s2142_s14 + $0xc8] sm:$0xff] }
  0x17   : > { %v298_v8 = vld [vmem:[%s2142_s14 + $0x100] sm:$0xff]  ;;  %295 = vst [vmem:[%s2150_s15 + $0x30] sm:$0xff] %v294_v6  ;;  %297 = vst [vmem:[%s2150_s15 + $0x38] sm:$0xff] %v296_v7  ;;  %v300_v9 = vld [vmem:[%s2142_s14 + $0x108] sm:$0xff] }
  0x18   : > { %299 = vst [vmem:[%s2150_s15 + $0x40] sm:$0xff] %v298_v8  ;;  %v302_v10 = vld [vmem:[%s2142_s14 + $0x140] sm:$0xff]  ;;  %v304_v11 = vld [vmem:[%s2142_s14 + $0x148] sm:$0xff]  ;;  %301 = vst [vmem:[%s2150_s15 + $0x48] sm:$0xff] %v300_v9 }
  0x19   : > { %303 = vst [vmem:[%s2150_s15 + $0x50] sm:$0xff] %v302_v10  ;;  %305 = vst [vmem:[%s2150_s15 + $0x58] sm:$0xff] %v304_v11  ;;  %v306_v12 = vld [vmem:[%s2142_s14 + $0x180] sm:$0xff]  ;;  %v308_v13 = vld [vmem:[%s2142_s14 + $0x188] sm:$0xff] }
  0x1a   : > { %v310_v14 = vld [vmem:[%s2142_s14 + $0x1c0] sm:$0xff]  ;;  %307 = vst [vmem:[%s2150_s15 + $0x60] sm:$0xff] %v306_v12  ;;  %309 = vst [vmem:[%s2150_s15 + $0x68] sm:$0xff] %v308_v13  ;;  %v312_v15 = vld [vmem:[%s2142_s14 + $0x1c8] sm:$0xff] }
  0x1b   : > { %311 = vst [vmem:[%s2150_s15 + $0x70] sm:$0xff] %v310_v14  ;;  %v314_v16 = vld [vmem:[%s2142_s14 + $0x200] sm:$0xff]  ;;  %v316_v17 = vld [vmem:[%s2142_s14 + $0x208] sm:$0xff]  ;;  %313 = vst [vmem:[%s2150_s15 + $0x78] sm:$0xff] %v312_v15 }
  0x1c   : > { %315 = vst [vmem:[%s2150_s15 + $0x80] sm:$0xff] %v314_v16  ;;  %317 = vst [vmem:[%s2150_s15 + $0x88] sm:$0xff] %v316_v17  ;;  %v318_v18 = vld [vmem:[%s2142_s14 + $0x240] sm:$0xff]  ;;  %v320_v19 = vld [vmem:[%s2142_s14 + $0x248] sm:$0xff] }
  0x1d   : > { %v322_v20 = vld [vmem:[%s2142_s14 + $0x280] sm:$0xff]  ;;  %319 = vst [vmem:[%s2150_s15 + $0x90] sm:$0xff] %v318_v18  ;;  %321 = vst [vmem:[%s2150_s15 + $0x98] sm:$0xff] %v320_v19  ;;  %v324_v21 = vld [vmem:[%s2142_s14 + $0x288] sm:$0xff] }
  0x1e   : > { %323 = vst [vmem:[%s2150_s15 + $0xa0] sm:$0xff] %v322_v20  ;;  %v326_v22 = vld [vmem:[%s2142_s14 + $0x2c0] sm:$0xff]  ;;  %v328_v23 = vld [vmem:[%s2142_s14 + $0x2c8] sm:$0xff]  ;;  %325 = vst [vmem:[%s2150_s15 + $0xa8] sm:$0xff] %v324_v21 }
  0x1f   : > { %327 = vst [vmem:[%s2150_s15 + $0xb0] sm:$0xff] %v326_v22  ;;  %329 = vst [vmem:[%s2150_s15 + $0xb8] sm:$0xff] %v328_v23  ;;  %v330_v24 = vld [vmem:[%s2142_s14 + $0x300] sm:$0xff]  ;;  %v332_v25 = vld [vmem:[%s2142_s14 + $0x308] sm:$0xff] }
  0x20   : > { %v334_v26 = vld [vmem:[%s2142_s14 + $0x340] sm:$0xff]  ;;  %331 = vst [vmem:[%s2150_s15 + $0xc0] sm:$0xff] %v330_v24  ;;  %333 = vst [vmem:[%s2150_s15 + $0xc8] sm:$0xff] %v332_v25  ;;  %v336_v27 = vld [vmem:[%s2142_s14 + $0x348] sm:$0xff] }
  0x21   : > { %335 = vst [vmem:[%s2150_s15 + $0xd0] sm:$0xff] %v334_v26  ;;  %v338_v28 = vld [vmem:[%s2142_s14 + $0x380] sm:$0xff]  ;;  %v340_v29 = vld [vmem:[%s2142_s14 + $0x388] sm:$0xff]  ;;  %337 = vst [vmem:[%s2150_s15 + $0xd8] sm:$0xff] %v336_v27 }
  0x22   : > { %339 = vst [vmem:[%s2150_s15 + $0xe0] sm:$0xff] %v338_v28  ;;  %341 = vst [vmem:[%s2150_s15 + $0xe8] sm:$0xff] %v340_v29  ;;  %v342_v30 = vld [vmem:[%s2142_s14 + $0x3c0] sm:$0xff]  ;;  %v344_v31 = vld [vmem:[%s2142_s14 + $0x3c8] sm:$0xff] }
  0x23   : > { %v346_v32 = vld [vmem:[%s2142_s14 + $0x400] sm:$0xff]  ;;  %343 = vst [vmem:[%s2150_s15 + $0xf0] sm:$0xff] %v342_v30  ;;  %345 = vst [vmem:[%s2150_s15 + $0xf8] sm:$0xff] %v344_v31  ;;  %v348_v33 = vld [vmem:[%s2142_s14 + $0x408] sm:$0xff] }
  0x24   : > { %347 = vst [vmem:[%s2150_s15 + $0x100] sm:$0xff] %v346_v32  ;;  %v350_v34 = vld [vmem:[%s2142_s14 + $0x440] sm:$0xff]  ;;  %v352_v35 = vld [vmem:[%s2142_s14 + $0x448] sm:$0xff]  ;;  %349 = vst [vmem:[%s2150_s15 + $0x108] sm:$0xff] %v348_v33 }
  0x25   : > { %351 = vst [vmem:[%s2150_s15 + $0x110] sm:$0xff] %v350_v34  ;;  %353 = vst [vmem:[%s2150_s15 + $0x118] sm:$0xff] %v352_v35  ;;  %v354_v36 = vld [vmem:[%s2142_s14 + $0x480] sm:$0xff]  ;;  %v356_v37 = vld [vmem:[%s2142_s14 + $0x488] sm:$0xff] }
  0x26   : > { %v358_v38 = vld [vmem:[%s2142_s14 + $0x4c0] sm:$0xff]  ;;  %355 = vst [vmem:[%s2150_s15 + $0x120] sm:$0xff] %v354_v36  ;;  %357 = vst [vmem:[%s2150_s15 + $0x128] sm:$0xff] %v356_v37  ;;  %v360_v39 = vld [vmem:[%s2142_s14 + $0x4c8] sm:$0xff] }
  0x27   : > { %359 = vst [vmem:[%s2150_s15 + $0x130] sm:$0xff] %v358_v38  ;;  %v362_v40 = vld [vmem:[%s2142_s14 + $0x500] sm:$0xff]  ;;  %v364_v41 = vld [vmem:[%s2142_s14 + $0x508] sm:$0xff]  ;;  %361 = vst [vmem:[%s2150_s15 + $0x138] sm:$0xff] %v360_v39 }
  0x28   : > { %363 = vst [vmem:[%s2150_s15 + $0x140] sm:$0xff] %v362_v40  ;;  %365 = vst [vmem:[%s2150_s15 + $0x148] sm:$0xff] %v364_v41  ;;  %v366_v42 = vld [vmem:[%s2142_s14 + $0x540] sm:$0xff]  ;;  %v368_v43 = vld [vmem:[%s2142_s14 + $0x548] sm:$0xff] }
  0x29   : > { %v370_v44 = vld [vmem:[%s2142_s14 + $0x580] sm:$0xff]  ;;  %367 = vst [vmem:[%s2150_s15 + $0x150] sm:$0xff] %v366_v42  ;;  %369 = vst [vmem:[%s2150_s15 + $0x158] sm:$0xff] %v368_v43  ;;  %v372_v45 = vld [vmem:[%s2142_s14 + $0x588] sm:$0xff] }
  0x2a   : > { %371 = vst [vmem:[%s2150_s15 + $0x160] sm:$0xff] %v370_v44  ;;  %v374_v46 = vld [vmem:[%s2142_s14 + $0x5c0] sm:$0xff]  ;;  %v376_v47 = vld [vmem:[%s2142_s14 + $0x5c8] sm:$0xff]  ;;  %373 = vst [vmem:[%s2150_s15 + $0x168] sm:$0xff] %v372_v45 }
  0x2b   : > { %375 = vst [vmem:[%s2150_s15 + $0x170] sm:$0xff] %v374_v46  ;;  %377 = vst [vmem:[%s2150_s15 + $0x178] sm:$0xff] %v376_v47  ;;  %v378_v48 = vld [vmem:[%s2142_s14 + $0x600] sm:$0xff]  ;;  %v380_v49 = vld [vmem:[%s2142_s14 + $0x608] sm:$0xff] }
  0x2c   : > { %v382_v50 = vld [vmem:[%s2142_s14 + $0x640] sm:$0xff]  ;;  %379 = vst [vmem:[%s2150_s15 + $0x180] sm:$0xff] %v378_v48  ;;  %381 = vst [vmem:[%s2150_s15 + $0x188] sm:$0xff] %v380_v49  ;;  %v384_v51 = vld [vmem:[%s2142_s14 + $0x648] sm:$0xff] }
  0x2d   : > { %383 = vst [vmem:[%s2150_s15 + $0x190] sm:$0xff] %v382_v50  ;;  %v386_v52 = vld [vmem:[%s2142_s14 + $0x680] sm:$0xff]  ;;  %v388_v53 = vld [vmem:[%s2142_s14 + $0x688] sm:$0xff]  ;;  %385 = vst [vmem:[%s2150_s15 + $0x198] sm:$0xff] %v384_v51 }
  0x2e   : > { %387 = vst [vmem:[%s2150_s15 + $0x1a0] sm:$0xff] %v386_v52  ;;  %389 = vst [vmem:[%s2150_s15 + $0x1a8] sm:$0xff] %v388_v53  ;;  %v390_v54 = vld [vmem:[%s2142_s14 + $0x6c0] sm:$0xff]  ;;  %v392_v55 = vld [vmem:[%s2142_s14 + $0x6c8] sm:$0xff] }
  0x2f   : > { %v394_v56 = vld [vmem:[%s2142_s14 + $0x700] sm:$0xff]  ;;  %391 = vst [vmem:[%s2150_s15 + $0x1b0] sm:$0xff] %v390_v54  ;;  %393 = vst [vmem:[%s2150_s15 + $0x1b8] sm:$0xff] %v392_v55  ;;  %v396_v57 = vld [vmem:[%s2142_s14 + $0x708] sm:$0xff] }
  0x30   : > { %395 = vst [vmem:[%s2150_s15 + $0x1c0] sm:$0xff] %v394_v56  ;;  %v398_v58 = vld [vmem:[%s2142_s14 + $0x740] sm:$0xff]  ;;  %v400_v59 = vld [vmem:[%s2142_s14 + $0x748] sm:$0xff]  ;;  %397 = vst [vmem:[%s2150_s15 + $0x1c8] sm:$0xff] %v396_v57 }
  0x31   : > { %399 = vst [vmem:[%s2150_s15 + $0x1d0] sm:$0xff] %v398_v58  ;;  %401 = vst [vmem:[%s2150_s15 + $0x1d8] sm:$0xff] %v400_v59  ;;  %v402_v60 = vld [vmem:[%s2142_s14 + $0x780] sm:$0xff]  ;;  %v404_v61 = vld [vmem:[%s2142_s14 + $0x788] sm:$0xff] }
  0x32   : > { %v406_v62 = vld [vmem:[%s2142_s14 + $0x7c0] sm:$0xff]  ;;  %403 = vst [vmem:[%s2150_s15 + $0x1e0] sm:$0xff] %v402_v60  ;;  %405 = vst [vmem:[%s2150_s15 + $0x1e8] sm:$0xff] %v404_v61  ;;  %v408_v63 = vld [vmem:[%s2142_s14 + $0x7c8] sm:$0xff] }
  0x33   : > { %407 = vst [vmem:[%s2150_s15 + $0x1f0] sm:$0xff] %v406_v62  ;;  %v410_v0 = vld [vmem:[%s2142_s14 + $0x800] sm:$0xff]  ;;  %v412_v1 = vld [vmem:[%s2142_s14 + $0x808] sm:$0xff]  ;;  %409 = vst [vmem:[%s2150_s15 + $0x1f8] sm:$0xff] %v408_v63 }
  0x34   : > { %411 = vst [vmem:[%s2150_s15 + $0x200] sm:$0xff] %v410_v0  ;;  %413 = vst [vmem:[%s2150_s15 + $0x208] sm:$0xff] %v412_v1  ;;  %v414_v2 = vld [vmem:[%s2142_s14 + $0x840] sm:$0xff]  ;;  %v416_v3 = vld [vmem:[%s2142_s14 + $0x848] sm:$0xff] }
  0x35   : > { %v418_v4 = vld [vmem:[%s2142_s14 + $0x880] sm:$0xff]  ;;  %415 = vst [vmem:[%s2150_s15 + $0x210] sm:$0xff] %v414_v2  ;;  %417 = vst [vmem:[%s2150_s15 + $0x218] sm:$0xff] %v416_v3  ;;  %v420_v5 = vld [vmem:[%s2142_s14 + $0x888] sm:$0xff] }
  0x36   : > { %419 = vst [vmem:[%s2150_s15 + $0x220] sm:$0xff] %v418_v4  ;;  %v422_v6 = vld [vmem:[%s2142_s14 + $0x8c0] sm:$0xff]  ;;  %v424_v7 = vld [vmem:[%s2142_s14 + $0x8c8] sm:$0xff]  ;;  %421 = vst [vmem:[%s2150_s15 + $0x228] sm:$0xff] %v420_v5 }
  0x37   : > { %423 = vst [vmem:[%s2150_s15 + $0x230] sm:$0xff] %v422_v6  ;;  %425 = vst [vmem:[%s2150_s15 + $0x238] sm:$0xff] %v424_v7 }
  0x38 PF: > { %431 = sbr.rel (!%p2120_p3) target bundleno = 68 (0x44), region = 55  ;;  %s433_s16 = sand.u32 (%p2120_p3), 1, %s2038_s22  }
  0x39   : > { %s1840_s17 = sshll.u32 (%p2120_p3), %s2046_s24, 5  ;;  %s1734_s18 = sshll.u32 (%p2120_p3), %s433_s16, 7 }
  0x3a   : > { %s2297_s27 = scalar_lea.vmem (%p2120_p3), %s2606_s4, %s1840_s17  ;;  %s435_s28 = scalar_lea.vmem (%p2120_p3), [#allocation3], %s1734_s18 }
  0x3b   : > { %v454_v8 = vld [vmem:[%s2297_s27] sm:$0xff] (%p2120_p3)  ;;  %v456_v9 = vld [vmem:[%s2297_s27 + $0x8] sm:$0xff] (%p2120_p3)  ;;  %v458_v10 = vld [vmem:[%s2297_s27 + $0x10] sm:$0xff] (%p2120_p3) }
  0x3c   : > { %455 = vst [vmem:[%s435_s28] sm:$0xff] (%p2120_p3), %v454_v8  ;;  %457 = vst [vmem:[%s435_s28 + $0x8] sm:$0xff] (%p2120_p3), %v456_v9  ;;  %v460_v11 = vld [vmem:[%s2297_s27 + $0x18] sm:$0xff] (%p2120_p3)  ;;  %v462_v12 = vld [vmem:[%s2297_s27 + $0x80] sm:$0xff] (%p2120_p3) }
  0x3d   : > { %459 = vst [vmem:[%s435_s28 + $0x10] sm:$0xff] %v458_v10  ;;  %v464_v13 = vld [vmem:[%s2297_s27 + $0x88] sm:$0xff]  ;;  %461 = vst [vmem:[%s435_s28 + $0x18] sm:$0xff] %v460_v11  ;;  %v466_v14 = vld [vmem:[%s2297_s27 + $0x90] sm:$0xff] }
  0x3e   : > { %463 = vst [vmem:[%s435_s28 + $0x20] sm:$0xff] %v462_v12  ;;  %465 = vst [vmem:[%s435_s28 + $0x28] sm:$0xff] %v464_v13  ;;  %v468_v15 = vld [vmem:[%s2297_s27 + $0x98] sm:$0xff]  ;;  %v470_v16 = vld [vmem:[%s2297_s27 + $0x100] sm:$0xff] }
  0x3f   : > { %467 = vst [vmem:[%s435_s28 + $0x30] sm:$0xff] %v466_v14  ;;  %469 = vst [vmem:[%s435_s28 + $0x38] sm:$0xff] %v468_v15  ;;  %v472_v17 = vld [vmem:[%s2297_s27 + $0x108] sm:$0xff]  ;;  %v474_v18 = vld [vmem:[%s2297_s27 + $0x110] sm:$0xff] }
  0x40   : > { %471 = vst [vmem:[%s435_s28 + $0x40] sm:$0xff] %v470_v16  ;;  %v476_v19 = vld [vmem:[%s2297_s27 + $0x118] sm:$0xff]  ;;  %473 = vst [vmem:[%s435_s28 + $0x48] sm:$0xff] %v472_v17  ;;  %v478_v20 = vld [vmem:[%s2297_s27 + $0x180] sm:$0xff] }
  0x41   : > { %475 = vst [vmem:[%s435_s28 + $0x50] sm:$0xff] %v474_v18  ;;  %477 = vst [vmem:[%s435_s28 + $0x58] sm:$0xff] %v476_v19  ;;  %v480_v21 = vld [vmem:[%s2297_s27 + $0x188] sm:$0xff]  ;;  %v482_v22 = vld [vmem:[%s2297_s27 + $0x190] sm:$0xff] }
  0x42   : > { %479 = vst [vmem:[%s435_s28 + $0x60] sm:$0xff] %v478_v20  ;;  %481 = vst [vmem:[%s435_s28 + $0x68] sm:$0xff] %v480_v21  ;;  %v484_v23 = vld [vmem:[%s2297_s27 + $0x198] sm:$0xff] }
  0x43   : > { %483 = vst [vmem:[%s435_s28 + $0x70] sm:$0xff] %v482_v22  ;;  %485 = vst [vmem:[%s435_s28 + $0x78] sm:$0xff] %v484_v23 }
  0x44 PF: > { %p1737_p8 = scmp.ge.s32.totalorder %s2050_s25, 1  ;;  %p490_p9 = scmp.lt.s32.totalorder %s2050_s25, 5 }
  0x46   : > { %p491_p10 = pnand %p1737_p8, %p490_p9 }
  0x47   : > { %s2318_s29 = sand.u32 (!%p491_p10), 1, %s2034_s21  }
  0x48   : > { %494 = sbr.rel (%p491_p10) target bundleno = 386 (0x182), region = 78  ;;  %s1740_s9 = sshll.u32 (!%p491_p10), %s2318_s29, 6 }
  0x49   : > { %s1852_s30 = smul.u32 (!%p491_p10), 576, %s2318_s29 }
  0x4b   : > { %s2327_s11 = scalar_lea.vmem (!%p491_p10), [#allocation2], %s1852_s30 }
  0x4d   : > { %v2052_v24 = vmov 0   ;;  %v1995_v25 = vld [vmem:[%s2603_s1 + $0x4] ss:$12 sps:$4 sm:$0xff]   ;;  %v2341_v35 = vld [vmem:[%s2603_s1 + $0x8] ss:$12 sps:$4 sm:$0xff]   ;;  %vm1069_vm0 = vcmask 261120  }
  0x4e   : > { %1161 = vmatprep.mubr.bf16.mxu1 %v2052_v24  ;;  %1894 = vset.pattern.permute.xlu0 %v2052_v24  ;;  %v1896_v26 = vld [vmem:[%s2327_s11 + $0xe4] ss:$16 sps:$4 sm:$0xff]   ;;  %v1898_v27 = vld [vmem:[%s2327_s11 + $0xe0] ss:$16 sps:$4 sm:$0xff]   ;;  %v1913_v37 = vld [vmem:[%s2327_s11 + $0xec] ss:$16 sps:$4 sm:$0xff]  }
  0x4f   : > { %1895 = vset.pattern.permute.xlu1 %v2052_v24  ;;  %1108 = vmatprep.mubr.bf16.mxu0 %v1995_v25  ;;  %v1899_v28 = vld [vmem:[%s2327_s11 + $0x224] ss:$16 sps:$4 sm:$0xff]   ;;  %v1901_v29 = vld [vmem:[%s2327_s11 + $0x220] ss:$16 sps:$4 sm:$0xff]   ;;  %v1911_v39 = vld [vmem:[%s2327_s11 + $0xe8] ss:$16 sps:$4 sm:$0xff]  }
  0x50   : > { %1076 = vmatprep.subr.bf16.mxu0 %v1896_v26  ;;  %v1902_v30 = vld [vmem:[%s2327_s11 + $0xc4] ss:$16 sps:$4 sm:$0xff]   ;;  %v1904_v31 = vld [vmem:[%s2327_s11 + $0xc0] ss:$16 sps:$4 sm:$0xff]   ;;  %1141 = vmatprep.subr.bf16.mxu1 %v1899_v28  ;;  %v1920_v40 = vld [vmem:[%s2327_s11 + $0xcc] ss:$16 sps:$4 sm:$0xff]  }
  0x51   : > { %1077 = vmatpush1.bf16.msra.mxu0 %v1898_v27  ;;  %v1905_v32 = vld [vmem:[%s2327_s11 + $0x204] ss:$16 sps:$4 sm:$0xff]   ;;  %1142 = vmatpush1.bf16.msra.mxu1 %v1901_v29  ;;  %v1907_v33 = vld [vmem:[%s2327_s11 + $0x200] ss:$16 sps:$4 sm:$0xff]   ;;  %v1918_v43 = vld [vmem:[%s2327_s11 + $0xc8] ss:$16 sps:$4 sm:$0xff]  }
  0x52   : > { %1078 = vmatprep.subr.bf16.mxu0 %v1902_v30  ;;  %1143 = vmatprep.subr.bf16.mxu1 %v1905_v32  ;;  %v1908_v34 = vld [vmem:[%s2327_s11 + $0xa4] ss:$16 sps:$4 sm:$0xff]   ;;  %v1910_v36 = vld [vmem:[%s2327_s11 + $0xa0] ss:$16 sps:$4 sm:$0xff]   ;;  %v1926_v44 = vld [vmem:[%s2327_s11 + $0xac] ss:$16 sps:$4 sm:$0xff]  }
  0x53   : > { %v1915_v38 = vld [vmem:[%s2327_s11 + $0x84] ss:$16 sps:$4 sm:$0xff]   ;;  %v1917_v41 = vld [vmem:[%s2327_s11 + $0x80] ss:$16 sps:$4 sm:$0xff]   ;;  %v1924_v48 = vld [vmem:[%s2327_s11 + $0xa8] ss:$16 sps:$4 sm:$0xff]  }
  0x54   : > { %v1921_v42 = vld [vmem:[%s2327_s11 + $0x64] ss:$16 sps:$4 sm:$0xff]   ;;  %v1923_v45 = vld [vmem:[%s2327_s11 + $0x60] ss:$16 sps:$4 sm:$0xff]   ;;  %v1932_v49 = vld [vmem:[%s2327_s11 + $0x8c] ss:$16 sps:$4 sm:$0xff]  }
  0x55   : > { %1079 = vmatpush1.bf16.msra.mxu0 %v1904_v31  ;;  %1144 = vmatpush1.bf16.msra.mxu1 %v1907_v33  ;;  %v2359_v46 = vld [vmem:[%s2603_s1 + $0x20] ss:$12 sps:$4 sm:$0xff]   ;;  %v1927_v47 = vld [vmem:[%s2327_s11 + $0x44] ss:$16 sps:$4 sm:$0xff]   ;;  %v1930_v52 = vld [vmem:[%s2327_s11 + $0x88] ss:$16 sps:$4 sm:$0xff]  }
  0x56   : > { %1080 = vmatprep.subr.bf16.mxu0 %v1908_v34  ;;  %1182 = vmatprep.subr.bf16.mxu1 %v1913_v37  ;;  %v1929_v50 = vld [vmem:[%s2327_s11 + $0x40] ss:$16 sps:$4 sm:$0xff]   ;;  %v1933_v51 = vld [vmem:[%s2327_s11 + $0x24] ss:$16 sps:$4 sm:$0xff]   ;;  %v1938_v53 = vld [vmem:[%s2327_s11 + $0x6c] ss:$16 sps:$4 sm:$0xff]  }
  0x57   : > { %v1935_v54 = vld [vmem:[%s2327_s11 + $0x20] ss:$16 sps:$4 sm:$0xff]   ;;  %v1939_v55 = vld [vmem:[%s2327_s11 + $0x4] ss:$16 sps:$4 sm:$0xff]   ;;  %v1936_v56 = vld [vmem:[%s2327_s11 + $0x68] ss:$16 sps:$4 sm:$0xff]  }
  0x58   : > { %1819 = vmatmul.mubr.msk.bf16.vlgmr.msra.gmra.mxu1 %vm1069_vm0, %v2341_v35  ;;  %v1944_v57 = vld [vmem:[%s2327_s11 + $0x4c] ss:$16 sps:$4 sm:$0xff]   ;;  %v1941_v58 = vld [vmem:[%s2327_s11] ss:$16 sps:$4 sm:$0xff]   ;;  %v1945_v59 = vld [vmem:[%s2327_s11 + $0x1e4] ss:$16 sps:$4 sm:$0xff]  }
  0x59   : > { %1081 = vmatpush1.bf16.msra.mxu0 %v1910_v36  ;;  %1183 = vmatpush1.bf16.msra.mxu1 %v1911_v39  ;;  %v1942_v60 = vld [vmem:[%s2327_s11 + $0x48] ss:$16 sps:$4 sm:$0xff]   ;;  %v1950_v61 = vld [vmem:[%s2327_s11 + $0x2c] ss:$16 sps:$4 sm:$0xff]   ;;  %v1947_v62 = vld [vmem:[%s2327_s11 + $0x1e0] ss:$16 sps:$4 sm:$0xff]  }
  0x5a   : > { %1082 = vmatprep.subr.bf16.mxu0 %v1915_v38  ;;  %1171 = vmatprep.mubr.bf16.mxu1 %v2052_v24  ;;  %v1951_v63 = vld [vmem:[%s2327_s11 + $0x1c4] ss:$16 sps:$4 sm:$0xff]   ;;  %v1948_v0 = vld [vmem:[%s2327_s11 + $0x28] ss:$16 sps:$4 sm:$0xff]   ;;  %v1956_v1 = vld [vmem:[%s2327_s11 + $0xc] ss:$16 sps:$4 sm:$0xff]  }
  0x5b   : > { %1184 = vmatprep.subr.bf16.mxu1 %v1920_v40  ;;  %v1953_v2 = vld [vmem:[%s2327_s11 + $0x1c0] ss:$16 sps:$4 sm:$0xff]   ;;  %v1957_v3 = vld [vmem:[%s2327_s11 + $0x1a4] ss:$16 sps:$4 sm:$0xff]   ;;  %v1954_v4 = vld [vmem:[%s2327_s11 + $0x8] ss:$16 sps:$4 sm:$0xff]  }
  0x5c   : > { %v1962_v5 = vld [vmem:[%s2327_s11 + $0x1ec] ss:$16 sps:$4 sm:$0xff]   ;;  %v1959_v6 = vld [vmem:[%s2327_s11 + $0x1a0] ss:$16 sps:$4 sm:$0xff]   ;;  %v1963_v7 = vld [vmem:[%s2327_s11 + $0x184] ss:$16 sps:$4 sm:$0xff]  }
  0x5d   : > { %1083 = vmatpush1.bf16.msra.mxu0 %v1917_v41  ;;  %1185 = vmatpush1.bf16.msra.mxu1 %v1918_v43  ;;  %v1960_v8 = vld [vmem:[%s2327_s11 + $0x1e8] ss:$16 sps:$4 sm:$0xff]   ;;  %v1968_v9 = vld [vmem:[%s2327_s11 + $0x1cc] ss:$16 sps:$4 sm:$0xff]   ;;  %v1965_v10 = vld [vmem:[%s2327_s11 + $0x180] ss:$16 sps:$4 sm:$0xff]  }
  0x5e   : > { %1084 = vmatprep.subr.bf16.mxu0 %v1921_v42  ;;  %1186 = vmatprep.subr.bf16.mxu1 %v1926_v44  ;;  %v1969_v11 = vld [vmem:[%s2327_s11 + $0x164] ss:$16 sps:$4 sm:$0xff]   ;;  %v1966_v12 = vld [vmem:[%s2327_s11 + $0x1c8] ss:$16 sps:$4 sm:$0xff]   ;;  %v1974_v13 = vld [vmem:[%s2327_s11 + $0x1ac] ss:$16 sps:$4 sm:$0xff]  }
  0x5f   : > { %v1971_v14 = vld [vmem:[%s2327_s11 + $0x160] ss:$16 sps:$4 sm:$0xff]   ;;  %v1975_v15 = vld [vmem:[%s2327_s11 + $0x144] ss:$16 sps:$4 sm:$0xff]   ;;  %v1972_v16 = vld [vmem:[%s2327_s11 + $0x1a8] ss:$16 sps:$4 sm:$0xff]  }
  0x60   : > { %1820 = vmatmul.mubr.msk.bf16.gmra.mxu1 %vm1069_vm0, %v2359_v46  ;;  %v1304_v17 = vld [vmem:[%s2604_s2] sm:$0xff]  ;;  %v1306_v18 = vld [vmem:[%s2604_s2 + $0x10] sm:$0xff]  ;;  %v1980_v19 = vld [vmem:[%s2327_s11 + $0x18c] ss:$16 sps:$4 sm:$0xff]   ;;  %s1849_s10 = sshll.u32 (%p2127_p6), %s2042_s23, 5 }
  0x61   : > { %1085 = vmatpush1.bf16.msra.mxu0 %v1923_v45  ;;  %1187 = vmatpush1.bf16.msra.mxu1 %v1924_v48  ;;  %v1977_v20 = vld [vmem:[%s2327_s11 + $0x140] ss:$16 sps:$4 sm:$0xff]   ;;  %v1305_v21 = vld [vmem:[%s2604_s2 + $0x8] sm:$0xff]  ;;  %v1981_v22 = vld [vmem:[%s2327_s11 + $0x124] ss:$16 sps:$4 sm:$0xff]   ;;  %s1472_s13 = scalar_lea.vmem (%p2127_p6), %s2607_s5, %s1849_s10 }
  0x62   : > { %1086 = vmatprep.subr.bf16.mxu0 %v1927_v47  ;;  %1214 = vmatprep.mubr.bf16.mxu1 %v1995_v25  ;;  %v1307_v23 = vld [vmem:[%s2604_s2 + $0x18] sm:$0xff]  ;;  %v1983_v27 = vld [vmem:[%s2327_s11 + $0x120] ss:$16 sps:$4 sm:$0xff]   ;;  %v1987_v29 = vld [vmem:[%s2327_s11 + $0x104] ss:$16 sps:$4 sm:$0xff]  }
  0x63   : > { %1188 = vmatprep.subr.bf16.mxu1 %v1932_v49  ;;  %1310 = vperm.xlu0 %1894, %v1304_v17   ;;  %v1978_v25 = vld [vmem:[%s2327_s11 + $0x188] ss:$16 sps:$4 sm:$0xff]   ;;  %v1986_v26 = vld [vmem:[%s2327_s11 + $0x16c] ss:$16 sps:$4 sm:$0xff]   ;;  %v1344_v28 = vld [vmem:[%s2605_s3] sm:$0xff] }
  0x64   : > { %1320 = vperm.xlu1 %1895, %v1306_v18   ;;  %v1345_v30 = vld [vmem:[%s2605_s3 + $0x8] sm:$0xff]  ;;  %v1989_v33 = vld [vmem:[%s2327_s11 + $0x100] ss:$16 sps:$4 sm:$0xff]   ;;  %v1347_v37 = vld [vmem:[%s2605_s3 + $0x18] sm:$0xff] }
  0x65   : > { %1087 = vmatpush1.bf16.msra.mxu0 %v1929_v50  ;;  %1189 = vmatpush1.bf16.msra.mxu1 %v1930_v52  ;;  %v1984_v31 = vld [vmem:[%s2327_s11 + $0x168] ss:$16 sps:$4 sm:$0xff]   ;;  %v1992_v32 = vld [vmem:[%s2327_s11 + $0x14c] ss:$16 sps:$4 sm:$0xff]   ;;  %v1346_v34 = vld [vmem:[%s2605_s3 + $0x10] sm:$0xff] }
  0x66   : > { %1088 = vmatprep.subr.bf16.mxu0 %v1933_v51  ;;  %1190 = vmatprep.subr.bf16.mxu1 %v1938_v53  ;;  %v1998_v36 = vld [vmem:[%s2327_s11 + $0x22c] ss:$16 sps:$4 sm:$0xff]   ;;  %v1990_v38 = vld [vmem:[%s2327_s11 + $0x148] ss:$16 sps:$4 sm:$0xff]  }
  0x67   : > { %1315 = vperm.xlu0 %1894, %v1305_v21   ;;  %v1993_v39 = vld [vmem:[%s2603_s1] ss:$12 sps:$4 sm:$0xff]   ;;  %v1996_v41 = vld [vmem:[%s2327_s11 + $0x228] ss:$16 sps:$4 sm:$0xff]  }
  0x68   : > { %1325 = vperm.xlu1 %1895, %v1307_v23   ;;  %v2002_v40 = vld [vmem:[%s2327_s11 + $0x12c] ss:$16 sps:$4 sm:$0xff]   ;;  %v2000_v44 = vld [vmem:[%s2327_s11 + $0x128] ss:$16 sps:$4 sm:$0xff]  }
  0x69   : > { %1089 = vmatpush1.bf16.msra.mxu0 %v1935_v54  ;;  %1191 = vmatpush1.bf16.msra.mxu1 %v1936_v56  ;;  %v2006_v42 = vld [vmem:[%s2603_s1 + $0x1c] ss:$12 sps:$4 sm:$0xff]   ;;  %v2008_v49 = vld [vmem:[%s2603_s1 + $0x18] ss:$12 sps:$4 sm:$0xff]  }
  0x6a   : > { %1090 = vmatprep.subr.bf16.mxu0 %v1939_v55  ;;  %1192 = vmatprep.subr.bf16.mxu1 %v1944_v57  ;;  %v2011_v43 = vld [vmem:[%s2327_s11 + $0x20c] ss:$16 sps:$4 sm:$0xff]   ;;  %v2009_v47 = vld [vmem:[%s2327_s11 + $0x208] ss:$16 sps:$4 sm:$0xff]  }
  0x6b   : > { %1350 = vperm.xlu0 %1894, %v1344_v28   ;;  %v2005_v45 = vld [vmem:[%s2327_s11 + $0x10c] ss:$16 sps:$4 sm:$0xff]   ;;  %v2003_v48 = vld [vmem:[%s2327_s11 + $0x108] ss:$16 sps:$4 sm:$0xff]   ;;  %s1738_s11 = sshll.u32 %s2318_s29, 7  ;;  %s2499_s29 = scalar_lea.vmem [#allocation5], %s1740_s9 }
  0x6c   : > { %1355 = vperm.xlu1 %1895, %v1345_v30   ;;  %s2460_s28 = scalar_lea.vmem [#allocation3], %s1738_s11  ;;  %s2472_s30 = scalar_lea.vmem [#allocation4], %s1738_s11 }
  0x6d   : > { %1091 = vmatpush1.bf16.msra.mxu0 %v1941_v58  ;;  %1193 = vmatpush1.bf16.msra.mxu1 %v1942_v60  ;;  %v664_v58 = vld [vmem:[%s2460_s28 + $0x8] sm:$0xff]  ;;  %v675_v30 = vld [vmem:[%s2460_s28 + $0x60] sm:$0xff] }
  0x6e   : > { %1092 = vmatprep.subr.bf16.mxu0 %v1945_v59  ;;  %1194 = vmatprep.subr.bf16.mxu1 %v1950_v61 }
  0x6f   : > { %1360 = vperm.xlu0 %1894, %v1346_v34  }
  0x70   : > { %1365 = vperm.xlu1 %1895, %v1347_v37  }
  0x71   : > { %1093 = vmatpush2.bf16.msra.mxu0 %v1947_v62  ;;  %1195 = vmatpush1.bf16.msra.mxu1 %v1948_v0  ;;  %v667_v62 = vld [vmem:[%s2460_s28 + $0x20] sm:$0xff] }
  0x72   : > { %1094 = vmatprep.subr.bf16.mxu0 %v1951_v63  ;;  %1196 = vmatprep.subr.bf16.mxu1 %v1956_v1 }
  0x75   : > { %1095 = vmatpush2.bf16.msra.mxu0 %v1953_v2  ;;  %1197 = vmatpush1.bf16.msra.mxu1 %v1954_v4  ;;  %v668_v4 = vld [vmem:[%s2460_s28 + $0x28] sm:$0xff] }
  0x76   : > { %1096 = vmatprep.subr.bf16.mxu0 %v1957_v3  ;;  %1198 = vmatprep.subr.bf16.mxu1 %v1962_v5 }
  0x79   : > { %1097 = vmatpush2.bf16.msra.mxu0 %v1959_v6  ;;  %1199 = vmatpush2.bf16.msra.mxu1 %v1960_v8 }
  0x7a   : > { %1098 = vmatprep.subr.bf16.mxu0 %v1963_v7  ;;  %1200 = vmatprep.subr.bf16.mxu1 %v1968_v9 }
  0x7d   : > { %1099 = vmatpush2.bf16.msra.mxu0 %v1965_v10  ;;  %1201 = vmatpush2.bf16.msra.mxu1 %v1966_v12 }
  0x7e   : > { %1100 = vmatprep.subr.bf16.mxu0 %v1969_v11  ;;  %1202 = vmatprep.subr.bf16.mxu1 %v1974_v13 }
  0x81   : > { %1101 = vmatpush2.bf16.msra.mxu0 %v1971_v14  ;;  %1203 = vmatpush2.bf16.msra.mxu1 %v1972_v16  ;;  %v671_v14 = vld [vmem:[%s2460_s28 + $0x40] sm:$0xff] }
  0x82   : > { %1102 = vmatprep.subr.bf16.mxu0 %v1975_v15  ;;  %1204 = vmatprep.subr.bf16.mxu1 %v1980_v19 }
  0x85   : > { %1103 = vmatpush2.bf16.msra.mxu0 %v1977_v20  ;;  %1205 = vmatpush2.bf16.msra.mxu1 %v1978_v25  ;;  %v672_v20 = vld [vmem:[%s2460_s28 + $0x48] sm:$0xff] }
  0x86   : > { %1104 = vmatprep.subr.bf16.mxu0 %v1981_v22  ;;  %1206 = vmatprep.subr.bf16.mxu1 %v1986_v26  ;;  %v665_v22 = vld [vmem:[%s2460_s28 + $0x10] sm:$0xff] }
  0x89   : > { %1105 = vmatpush2.bf16.msra.mxu0 %v1983_v27  ;;  %1207 = vmatpush2.bf16.msra.mxu1 %v1984_v31 }
  0x8a   : > { %1106 = vmatprep.subr.bf16.mxu0 %v1987_v29  ;;  %1208 = vmatprep.subr.bf16.mxu1 %v1992_v32 }
  0x8d   : > { %1107 = vmatpush2.bf16.msra.mxu0 %v1989_v33  ;;  %1209 = vmatpush2.bf16.msra.mxu1 %v1990_v38 }
  0x8e   : > { %1247 = vmatprep.subr.bf16.mxu0 %v1998_v36  ;;  %1210 = vmatprep.subr.bf16.mxu1 %v2002_v40  ;;  %v676_v36 = vld [vmem:[%s2460_s28 + $0x68] sm:$0xff] }
  0x90   : > { %1109 = vmatmul.mubr.bf16.vlgmr.msra.gmra.mxu0 %v1993_v39 }
  0x91   : > { %1248 = vmatpush1.bf16.msra.mxu0 %v1996_v41  ;;  %1118 = vmatprep.mubr.bf16.mxu0 %v2006_v42 }
  0x92   : > { %1249 = vmatprep.subr.bf16.mxu0 %v2011_v43  ;;  %1211 = vmatpush2.bf16.msra.mxu1 %v2000_v44  ;;  %v666_v43 = vld [vmem:[%s2460_s28 + $0x18] sm:$0xff] }
  0x93   : > { %1212 = vmatprep.subr.bf16.mxu1 %v2005_v45 }
  0x95   : > { %1250 = vmatpush1.bf16.msra.mxu0 %v2009_v47 }
  0x96   : > { %1213 = vmatpush2.bf16.msra.mxu1 %v2003_v48 }
  0x98   : > { %1119 = vmatmul.mubr.bf16.gmra.mxu0 %v2008_v49 }
  0x99   : > { %1267 = vmatprep.mubr.bf16.mxu0 %v2052_v24  ;;  %1215 = vmatmul.mubr.bf16.vlgmr.msra.gmra.mxu1 %v1993_v39 }
  0x9a   : > { %1224 = vmatprep.mubr.bf16.mxu1 %v2006_v42 }
  0xa0   : > { %1821 = vmatmul.mubr.msk.bf16.vlgmr.msra.gmra.mxu0 %vm1069_vm0, %v2341_v35 }
  0xa1   : > { %1277 = vmatprep.mubr.bf16.mxu0 %v2052_v24  ;;  %1225 = vmatmul.mubr.bf16.gmra.mxu1 %v2008_v49  ;;  %v663_v24 = vld [vmem:[%s2460_s28] sm:$0xff] }
  0xa8   : > { %1822 = vmatmul.mubr.msk.bf16.gmra.mxu0 %vm1069_vm0, %v2359_v46 }
  0xde   : > { %v2455_v54 = vpop.permute.xlu0 %1310 }
  0xdf   : > { %v2458_v56 = vpop.permute.xlu1 %1320 }
  0xe2   : > { %v2463_v35 = vpop.permute.xlu0 %1315 }
  0xe3   : > { %v2466_v60 = vpop.permute.xlu1 %1325 }
  0xe6   : > { %v2469_v3 = vpop.permute.xlu0 %1350 }
  0xe7   : > { %v2480_v16 = vpop.permute.xlu1 %1355 }
  0xea   : > { %v2494_v40 = vpop.permute.xlu0 %1360 }
 0x118   : > { %v1163_v50 = vpop.f32.mrf.mxu1 }
 0x11a   : > { %v1165_v51 = vpop.f32.mrf.mxu1 }
 0x11c   : > { %v1167_v52 = vpop.f32.mrf.mxu1 }
 0x11e   : > { %v1169_v53 = vpop.f32.mrf.mxu1 }
 0x120   : > { %v1173_v55 = vpop.f32.mrf.mxu1 }
 0x122   : > { %v1175_v46 = vpop.f32.mrf.mxu1 }
 0x124   : > { %v1177_v63 = vpop.f32.mrf.mxu1 }
 0x126   : > { %v1179_v9 = vpop.f32.mrf.mxu1 }
 0x150   : > { %v1110_v57 = vpop.f32.mrf.mxu0 }
 0x151   : > { %v1111_v59 = vadd.f32 %v1110_v57, %v663_v24 }
 0x152   : > { %v1112_v61 = vpop.f32.mrf.mxu0 }
 0x153   : > { %v1164_v0 = vadd.f32 %v1163_v50, %v1111_v59  ;;  %v1113_v1 = vadd.f32 %v1112_v61, %v664_v58  ;;  %v669_v58 = vld [vmem:[%s2460_s28 + $0x30] sm:$0xff] }
 0x154   : > { %v1114_v2 = vpop.f32.mrf.mxu0 }
 0x155   : > { %1288 = vst [vmem:[%s2472_s30] sm:$0xff] %v1164_v0  ;;  %v1328_v5 = vmul.f32 %v2455_v54, %v1164_v0  ;;  %v1166_v6 = vadd.f32 %v1165_v51, %v1113_v1  ;;  %v1115_v7 = vadd.f32 %v1114_v2, %v667_v62  ;;  %v2506_v62 = vpop.permute.xlu1 %1365  ;;  %v673_v1 = vld [vmem:[%s2460_s28 + $0x50] sm:$0xff] }
 0x156   : > { %v1116_v8 = vpop.f32.mrf.mxu0 }
 0x157   : > { %1289 = vst [vmem:[%s2472_s30 + $0x8] sm:$0xff] %v1166_v6  ;;  %v1329_v10 = vmul.f32 %v2455_v54, %v1166_v6  ;;  %v1168_v11 = vadd.f32 %v1167_v52, %v1115_v7  ;;  %v1368_v12 = vadd.f32 %v2469_v3, %v1328_v5  ;;  %v1117_v13 = vadd.f32 %v1116_v8, %v668_v4  ;;  %v670_v6 = vld [vmem:[%s2460_s28 + $0x38] sm:$0xff] }
 0x158   : > { %v1120_v15 = vpop.f32.mrf.mxu0 }
 0x159   : > { %1292 = vst [vmem:[%s2472_s30 + $0x20] sm:$0xff] %v1168_v11  ;;  %v1332_v17 = vmul.f32 %v2463_v35, %v1168_v11  ;;  %v1369_v18 = vadd.f32 %v2469_v3, %v1329_v10  ;;  %v1170_v19 = vadd.f32 %v1169_v53, %v1117_v13  ;;  %v1121_v21 = vadd.f32 %v1120_v15, %v671_v14  ;;  %v1216_v23 = vpop.f32.mrf.mxu1 }
 0x15a   : > { %v1122_v25 = vpop.f32.mrf.mxu0  ;;  %v1384_v26 = vmax.f32 %v1368_v12, 0.0  ;;  %v1217_v38 = vadd.f32 %v1216_v23, %v665_v22 }
 0x15b   : > { %v1385_v27 = vmax.f32 %v1369_v18, 0.0  ;;  %1293 = vst [vmem:[%s2472_s30 + $0x28] sm:$0xff] %v1170_v19  ;;  %v1333_v28 = vmul.f32 %v2463_v35, %v1170_v19  ;;  %v1372_v29 = vadd.f32 %v2480_v16, %v1332_v17  ;;  %v1174_v31 = vadd.f32 %v1173_v55, %v1121_v21  ;;  %v1218_v33 = vpop.f32.mrf.mxu1 }
 0x15c   : > { %v1123_v32 = vadd.f32 %v1122_v25, %v672_v20  ;;  %v1124_v34 = vpop.f32.mrf.mxu0  ;;  %v1219_v57 = vadd.f32 %v1218_v33, %v666_v43  ;;  %v674_v20 = vld [vmem:[%s2460_s28 + $0x58] sm:$0xff] }
 0x15d   : > { %v1841_v37 = vpack.c.bf16 %v1385_v27, %v1384_v26  ;;  %v1373_v39 = vadd.f32 %v2480_v16, %v1333_v28  ;;  %1296 = vst [vmem:[%s2472_s30 + $0x40] sm:$0xff] %v1174_v31  ;;  %v1336_v41 = vmul.f32 %v2458_v56, %v1174_v31  ;;  %v1125_v44 = vadd.f32 %v1124_v34, %v675_v30  ;;  %v1220_v45 = vpop.f32.mrf.mxu1 }
 0x15e   : > { %v1176_v42 = vadd.f32 %v1175_v46, %v1123_v32  ;;  %v1126_v47 = vpop.f32.mrf.mxu0  ;;  %v1388_v48 = vmax.f32 %v1372_v29, 0.0  ;;  %v677_v32 = vld [vmem:[%s2460_s28 + $0x70] sm:$0xff] }
 0x15f   : > { %1448 = vst [vmem:[%s2499_s29] sm:$0xff] %v1841_v37  ;;  %v1389_v49 = vmax.f32 %v1373_v39, 0.0  ;;  %v1127_v50 = vadd.f32 %v1126_v47, %v676_v36  ;;  %v1178_v52 = vadd.f32 %v1177_v63, %v1125_v44  ;;  %v1376_v53 = vadd.f32 %v2494_v40, %v1336_v41  ;;  %v1222_v55 = vpop.f32.mrf.mxu1  ;;  %v678_v41 = vld [vmem:[%s2460_s28 + $0x78] sm:$0xff] }
 0x160   : > { %1297 = vst [vmem:[%s2472_s30 + $0x48] sm:$0xff] %v1176_v42  ;;  %v1337_v51 = vmul.f32 %v2458_v56, %v1176_v42  ;;  %v1269_v24 = vpop.f32.mrf.mxu0  ;;  %v1223_v22 = vadd.f32 %v1222_v55, %v670_v6 }
 0x161   : > { %v1843_v46 = vpack.c.bf16 %v1389_v49, %v1388_v48  ;;  %v1180_v59 = vadd.f32 %v1179_v9, %v1127_v50  ;;  %v1270_v61 = vadd.f32 %v1269_v24, %v1217_v38  ;;  %1300 = vst [vmem:[%s2472_s30 + $0x60] sm:$0xff] %v1178_v52  ;;  %v1340_v0 = vmul.f32 %v2466_v60, %v1178_v52  ;;  %v1226_v2 = vpop.f32.mrf.mxu1 }
 0x162   : > { %v1377_v63 = vadd.f32 %v2494_v40, %v1337_v51  ;;  %v1271_v4 = vpop.f32.mrf.mxu0  ;;  %v1221_v9 = vadd.f32 %v1220_v45, %v669_v58  ;;  %v1392_v10 = vmax.f32 %v1376_v53, 0.0  ;;  %v1227_v17 = vadd.f32 %v1226_v2, %v673_v1 }
 0x163   : > { %1450 = vst [vmem:[%s2499_s29 + $0x10] sm:$0xff] %v1843_v46  ;;  %1301 = vst [vmem:[%s2472_s30 + $0x68] sm:$0xff] %v1180_v59  ;;  %v1341_v5 = vmul.f32 %v2466_v60, %v1180_v59  ;;  %v1330_v7 = vmul.f32 %v2455_v54, %v1270_v61  ;;  %v1272_v8 = vadd.f32 %v1271_v4, %v1219_v57  ;;  %v1228_v13 = vpop.f32.mrf.mxu1 }
 0x164   : > { %1290 = vst [vmem:[%s2472_s30 + $0x10] sm:$0xff] %v1270_v61  ;;  %v1393_v11 = vmax.f32 %v1377_v63, 0.0  ;;  %v1380_v12 = vadd.f32 %v2506_v62, %v1340_v0  ;;  %v1273_v14 = vpop.f32.mrf.mxu0  ;;  %v1229_v30 = vadd.f32 %v1228_v13, %v674_v20 }
 0x165   : > { %v1370_v15 = vadd.f32 %v2469_v3, %v1330_v7  ;;  %v1381_v18 = vadd.f32 %v2506_v62, %v1341_v5  ;;  %1291 = vst [vmem:[%s2472_s30 + $0x18] sm:$0xff] %v1272_v8  ;;  %v1331_v19 = vmul.f32 %v2455_v54, %v1272_v8  ;;  %v1274_v23 = vadd.f32 %v1273_v14, %v1221_v9  ;;  %v1230_v25 = vpop.f32.mrf.mxu1  ;;  %v1493_v8 = vld [vmem:[%s2472_s30 + $0x20] sm:$0xff] (%p2127_p6)  ;;  %v1495_v9 = vld [vmem:[%s2472_s30 + $0x28] sm:$0xff] (%p2127_p6) }
 0x166   : > { %v1845_v21 = vpack.c.bf16 %v1393_v11, %v1392_v10  ;;  %v1275_v26 = vpop.f32.mrf.mxu0  ;;  %v1396_v27 = vmax.f32 %v1380_v12, 0.0  ;;  %v1231_v45 = vadd.f32 %v1230_v25, %v677_v32  ;;  %1494 = vst [vmem:[%s1472_s13 + $0x80] sm:$0xff] (%p2127_p6), %v1493_v8  ;;  %1496 = vst [vmem:[%s1472_s13 + $0x88] sm:$0xff] (%p2127_p6), %v1495_v9  ;;  %v1501_v12 = vld [vmem:[%s2472_s30 + $0x40] sm:$0xff] (%p2127_p6) }
 0x167   : > { %v1397_v28 = vmax.f32 %v1381_v18, 0.0  ;;  %v1371_v29 = vadd.f32 %v2469_v3, %v1331_v19  ;;  %1294 = vst [vmem:[%s2472_s30 + $0x30] sm:$0xff] %v1274_v23  ;;  %v1334_v31 = vmul.f32 %v2463_v35, %v1274_v23  ;;  %v1276_v54 = vadd.f32 %v1275_v26, %v1223_v22  ;;  %v1232_v42 = vpop.f32.mrf.mxu1  ;;  %1502 = vst [vmem:[%s1472_s13 + $0x100] sm:$0xff] (%p2127_p6), %v1501_v12  ;;  %v1503_v13 = vld [vmem:[%s2472_s30 + $0x48] sm:$0xff] (%p2127_p6) }
 0x168   : > { %1452 = vst [vmem:[%s2499_s29 + $0x20] sm:$0xff] %v1845_v21  ;;  %v1279_v33 = vpop.f32.mrf.mxu0  ;;  %v1386_v34 = vmax.f32 %v1370_v15, 0.0  ;;  %v1233_v51 = vadd.f32 %v1232_v42, %v678_v41  ;;  %1504 = vst [vmem:[%s1472_s13 + $0x108] sm:$0xff] (%p2127_p6), %v1503_v13 }
 0x169   : > { %v1847_v36 = vpack.c.bf16 %v1397_v28, %v1396_v27  ;;  %v1387_v37 = vmax.f32 %v1371_v29, 0.0  ;;  %v1280_v38 = vadd.f32 %v1279_v33, %v1227_v17  ;;  %v1374_v39 = vadd.f32 %v2480_v16, %v1334_v31  ;;  %1295 = vst [vmem:[%s2472_s30 + $0x38] sm:$0xff] %v1276_v54  ;;  %v1509_v17 = vld [vmem:[%s2472_s30 + $0x60] sm:$0xff] (%p2127_p6) }
 0x16a   : > { %v1335_v3 = vmul.f32 %v2463_v35, %v1276_v54  ;;  %v1281_v43 = vpop.f32.mrf.mxu0  ;;  %v1511_v18 = vld [vmem:[%s2472_s30 + $0x68] sm:$0xff] (%p2127_p6)  ;;  %1510 = vst [vmem:[%s1472_s13 + $0x180] sm:$0xff] (%p2127_p6), %v1509_v17 }
 0x16b   : > { %1454 = vst [vmem:[%s2499_s29 + $0x30] sm:$0xff] %v1847_v36  ;;  %v1842_v44 = vpack.c.bf16 %v1387_v37, %v1386_v34  ;;  %1298 = vst [vmem:[%s2472_s30 + $0x50] sm:$0xff] %v1280_v38  ;;  %v1338_v47 = vmul.f32 %v2458_v56, %v1280_v38  ;;  %v1282_v48 = vadd.f32 %v1281_v43, %v1229_v30  ;;  %v1390_v55 = vmax.f32 %v1374_v39, 0.0  ;;  %v1489_v6 = vld [vmem:[%s2472_s30 + $0x10] sm:$0xff] (%p2127_p6) }
 0x16c   : > { %v1375_v49 = vadd.f32 %v2480_v16, %v1335_v3  ;;  %v1283_v50 = vpop.f32.mrf.mxu0  ;;  %v1491_v7 = vld [vmem:[%s2472_s30 + $0x18] sm:$0xff] (%p2127_p6)  ;;  %1490 = vst [vmem:[%s1472_s13 + $0x10] sm:$0xff] (%p2127_p6), %v1489_v6  ;;  %1512 = vst [vmem:[%s1472_s13 + $0x188] sm:$0xff] (%p2127_p6), %v1511_v18 }
 0x16d   : > { %1449 = vst [vmem:[%s2499_s29 + $0x8] sm:$0xff] %v1842_v44  ;;  %v1378_v52 = vadd.f32 %v2494_v40, %v1338_v47  ;;  %1299 = vst [vmem:[%s2472_s30 + $0x58] sm:$0xff] %v1282_v48  ;;  %v1339_v35 = vmul.f32 %v2458_v56, %v1282_v48  ;;  %v1284_v53 = vadd.f32 %v1283_v50, %v1231_v45 }
 0x16e   : > { %v1391_v24 = vmax.f32 %v1375_v49, 0.0  ;;  %v1285_v46 = vpop.f32.mrf.mxu0  ;;  %1492 = vst [vmem:[%s1472_s13 + $0x18] sm:$0xff] (%p2127_p6), %v1491_v7  ;;  %v1497_v10 = vld [vmem:[%s2472_s30 + $0x30] sm:$0xff] (%p2127_p6) }
 0x16f   : > { %v1379_v57 = vadd.f32 %v2494_v40, %v1339_v35  ;;  %1302 = vst [vmem:[%s2472_s30 + $0x70] sm:$0xff] %v1284_v53  ;;  %v1342_v16 = vmul.f32 %v2466_v60, %v1284_v53  ;;  %v1286_v58 = vadd.f32 %v1285_v46, %v1233_v51  ;;  %v1394_v61 = vmax.f32 %v1378_v52, 0.0  ;;  %1498 = vst [vmem:[%s1472_s13 + $0x90] sm:$0xff] (%p2127_p6), %v1497_v10 }
 0x170   : > { %v1844_v59 = vpack.c.bf16 %v1391_v24, %v1390_v55  ;;  %v1499_v11 = vld [vmem:[%s2472_s30 + $0x38] sm:$0xff] (%p2127_p6) }
 0x171   : > { %v1395_v0 = vmax.f32 %v1379_v57, 0.0  ;;  %v1382_v63 = vadd.f32 %v2506_v62, %v1342_v16  ;;  %1303 = vst [vmem:[%s2472_s30 + $0x78] sm:$0xff] %v1286_v58  ;;  %v1343_v56 = vmul.f32 %v2466_v60, %v1286_v58  ;;  %v1485_v60 = vld [vmem:[%s2472_s30] sm:$0xff] (%p2127_p6)  ;;  %1500 = vst [vmem:[%s1472_s13 + $0x98] sm:$0xff] (%p2127_p6), %v1499_v11 }
 0x172   : > { %1451 = vst [vmem:[%s2499_s29 + $0x18] sm:$0xff] %v1844_v59  ;;  %1486 = vst [vmem:[%s1472_s13] sm:$0xff] (%p2127_p6), %v1485_v60  ;;  %v1505_v14 = vld [vmem:[%s2472_s30 + $0x50] sm:$0xff] (%p2127_p6) }
 0x173   : > { %v1846_v1 = vpack.c.bf16 %v1395_v0, %v1394_v61  ;;  %v1383_v2 = vadd.f32 %v2506_v62, %v1343_v56  ;;  %v1398_v4 = vmax.f32 %v1382_v63, 0.0  ;;  %v1487_v62 = vld [vmem:[%s2472_s30 + $0x8] sm:$0xff] (%p2127_p6)  ;;  %1506 = vst [vmem:[%s1472_s13 + $0x110] sm:$0xff] (%p2127_p6), %v1505_v14 }
 0x174   : > { %1488 = vst [vmem:[%s1472_s13 + $0x8] sm:$0xff] (%p2127_p6), %v1487_v62  ;;  %v1507_v15 = vld [vmem:[%s2472_s30 + $0x58] sm:$0xff] (%p2127_p6) }
 0x175   : > { %1453 = vst [vmem:[%s2499_s29 + $0x28] sm:$0xff] %v1846_v1  ;;  %v1399_v40 = vmax.f32 %v1383_v2, 0.0  ;;  %1466 = sbr.rel (!%p2127_p6) target bundleno = 378 (0x17a), region = 90  ;;  %1508 = vst [vmem:[%s1472_s13 + $0x118] sm:$0xff] (%p2127_p6), %v1507_v15 }
 0x176   : > { %v1513_v19 = vld [vmem:[%s2472_s30 + $0x70] sm:$0xff] (%p2127_p6) }
 0x177   : > { %v1848_v5 = vpack.c.bf16 %v1399_v40, %v1398_v4  ;;  %1514 = vst [vmem:[%s1472_s13 + $0x190] sm:$0xff] (%p2127_p6), %v1513_v19 }
 0x178   : > { %v1515_v20 = vld [vmem:[%s2472_s30 + $0x78] sm:$0xff] (%p2127_p6) }
 0x179   : > { %1455 = vst [vmem:[%s2499_s29 + $0x38] sm:$0xff] %v1848_v5  ;;  %1516 = vst [vmem:[%s1472_s13 + $0x198] sm:$0xff] (%p2127_p6), %v1515_v20 }
 0x17a PF: > { %1522 = sbr.rel (!%p2127_p6) target bundleno = 386 (0x182), region = 113  ;;  %s1850_s14 = sshll.u32 (%p2127_p6), %s2042_s23, 4  ;;  %v1541_v21 = vld [vmem:[%s2499_s29] sm:$0xff] (%p2127_p6)  ;;  %v1543_v22 = vld [vmem:[%s2499_s29 + $0x8] sm:$0xff] (%p2127_p6)  ;;  %v1545_v23 = vld [vmem:[%s2499_s29 + $0x10] sm:$0xff] (%p2127_p6) }
 0x17b   : > { %s1528_s17 = scalar_lea.vmem (%p2127_p6), %s2608_s6, %s1850_s14  ;;  %v1547_v25 = vld [vmem:[%s2499_s29 + $0x18] sm:$0xff] (%p2127_p6)  ;;  %v1549_v26 = vld [vmem:[%s2499_s29 + $0x20] sm:$0xff] (%p2127_p6)  ;;  %v1553_v28 = vld [vmem:[%s2499_s29 + $0x30] sm:$0xff] (%p2127_p6) }
 0x17c   : > { %v1551_v27 = vld [vmem:[%s2499_s29 + $0x28] sm:$0xff] (%p2127_p6)  ;;  %1542 = vst [vmem:[%s1528_s17] sm:$0xff] (%p2127_p6), %v1541_v21  ;;  %1544 = vst [vmem:[%s1528_s17 + $0x8] sm:$0xff] (%p2127_p6), %v1543_v22 }
 0x17d   : > { %1546 = vst [vmem:[%s1528_s17 + $0x40] sm:$0xff] (%p2127_p6), %v1545_v23  ;;  %1548 = vst [vmem:[%s1528_s17 + $0x48] sm:$0xff] (%p2127_p6), %v1547_v25 }
 0x17e   : > { %1550 = vst [vmem:[%s1528_s17 + $0x80] sm:$0xff] (%p2127_p6), %v1549_v26  ;;  %1552 = vst [vmem:[%s1528_s17 + $0x88] sm:$0xff] (%p2127_p6), %v1551_v27 }
 0x17f   : > { %1554 = vst [vmem:[%s1528_s17 + $0xc0] sm:$0xff] %v1553_v28 }
 0x180   : > { %v1555_v29 = vld [vmem:[%s2499_s29 + $0x38] sm:$0xff] }
 0x181   : > { %1556 = vst [vmem:[%s1528_s17 + $0xc8] sm:$0xff] %v1555_v29 }
 0x182 PF: > { %s17_s25 = sadd.s32 1, %s2050_s25   ;;  %s2611_s21 = smov %s2038_s22 }
 0x183   : > { %p14_p11 = scmp.ge.s32.totalorder %s17_s25, 6   ;;  %s2612_s22 = smov %s2132_s8 }
 0x184   : > { %s2613_s23 = smov %s2046_s24  ;;  %s2614_s24 = smov %s2616_s26 }
 0x185   :  { %16 = sbr.rel (!%p14_p11) target bundleno = 3 (0x3), region = 196 }

// kernel: preact_resnet_forward.43
= control target key start
LH: loop header
LB: loop body
LE: loop exit
PB: predicated region body
PF: predicated region fallthrough
CT: control target
= control target key end

     0   :  { %s1482_s15 = smov 0   ;;  %s1484_s16 = smov 0   ;;  %s1762_s0 = inlined_call_operand.vmem [shape: bf16[288,512], index: 0, kind: input, shape index: {}]   ;;  %s1763_s1 = inlined_call_operand.vmem [shape: bf16[64,288], index: 1, kind: input, shape index: {}]   ;;  %s1764_s2 = inlined_call_operand.vmem [shape: f32[64,1], index: 2, kind: input, shape index: {}]   ;;  %s1765_s3 = inlined_call_operand.vmem [shape: f32[64,1], index: 3, kind: input, shape index: {}]   ;;  %s1766_s4 = inlined_call_operand.vmem [shape: bf16[64,512], index: 4, kind: output, shape index: {}]  }
   0x1   :  { %s1486_s17 = smov 0   ;;  %s1488_s18 = smov 0  }
   0x2   :  { %s1490_s19 = smov 0  }
   0x3 LB: > { %s26_s20 = sadd.s32 1, %s1450_s18  ;;  %s1176_s21 = sadd.s32 4294967295, %s1454_s19   ;;  %s1454_s19 = sphi %s1490_s19, %s14_s19   ;;  %s1450_s18 = sphi %s1488_s18, %s1771_s18   ;;  %s1446_s17 = sphi %s1486_s17, %s1770_s17   ;;  %s1442_s16 = sphi %s1484_s16, %s1769_s16   ;;  %s1438_s15 = sphi %s1482_s15, %s1768_s15  }
   0x4   : > { %p28_p0 = scmp.ge.s32.totalorder %s26_s20, 4  ;;  %p40_p1 = scmp.ne.s32.totalorder %s1442_s16, %s1438_s15 }
   0x5   : > { %p41_p2 = scmp.eq.s32.totalorder %s1454_s19, 0  ;;  %p150_p4 = scmp.eq.s32.totalorder %s1176_s21, 3 }
   0x6   : > { %s1773_s20 = smov (%p28_p0, %s26_s20), 0  ;;  %s33_s23 = sadd.s32 1, %s1442_s16 }
   0x7   : > { %p42_p3 = por %p41_p2, %p40_p1  ;;  %s30_s22 = ssub.s32 %s1450_s18, %s1773_s20 }
   0x8   : > { %p31_p5 = scmp.eq.s32.totalorder %s30_s22, 0  ;;  %p1517_p6 = por %p150_p4, %p40_p1 }
   0x9   : > { %p1182_p7 = scmp.ge.s32.totalorder %s1454_s19, 4 }
   0xa   : > { %s1522_s25 = scalar_select %p31_p5, %s1442_s16, %s33_s23  }
   0xb   : > { %200 = sbr.rel (%p1182_p7) target bundleno = 44 (0x2c), region = 28 }
  0x10   : > { %203 = sbr.rel (!%p42_p3) target bundleno = 44 (0x2c), region = 32  ;;  %s205_s26 = sand.u32 (%p42_p3), 1, %s1442_s16  }
  0x11   : > { %s1183_s27 = sshll.u32 (%p42_p3), %s1450_s18, 2  ;;  %s1337_s28 = smul.u32 (%p42_p3), 144, %s205_s26 }
  0x12   : > { %s1530_s5 = scalar_lea.vmem (%p42_p3), %s1762_s0, %s1183_s27 }
  0x13   : > { %v226_v0 = vld [vmem:[%s1530_s5] sm:$0xf] (%p42_p3)  ;;  %v228_v1 = vld [vmem:[%s1530_s5 + $0x10] sm:$0xf] (%p42_p3)  ;;  %s1537_s6 = scalar_lea.vmem (%p42_p3), [#allocation2], %s1337_s28 }
  0x14   : > { %v230_v2 = vld [vmem:[%s1530_s5 + $0x20] sm:$0xf] (%p42_p3)  ;;  %v232_v3 = vld [vmem:[%s1530_s5 + $0x30] sm:$0xf] (%p42_p3)  ;;  %227 = vst [vmem:[%s1537_s6] sm:$0xf] (%p42_p3), %v226_v0 }
  0x15   : > { %v234_v4 = vld [vmem:[%s1530_s5 + $0x40] sm:$0xf]  ;;  %229 = vst [vmem:[%s1537_s6 + $0x4] sm:$0xf] %v228_v1  ;;  %231 = vst [vmem:[%s1537_s6 + $0x8] sm:$0xf] %v230_v2 }
  0x16   : > { %233 = vst [vmem:[%s1537_s6 + $0xc] sm:$0xf] %v232_v3  ;;  %235 = vst [vmem:[%s1537_s6 + $0x10] sm:$0xf] %v234_v4  ;;  %v236_v5 = vld [vmem:[%s1530_s5 + $0x50] sm:$0xf] }
  0x17   : > { %v238_v6 = vld [vmem:[%s1530_s5 + $0x60] sm:$0xf]  ;;  %v240_v7 = vld [vmem:[%s1530_s5 + $0x70] sm:$0xf]  ;;  %237 = vst [vmem:[%s1537_s6 + $0x14] sm:$0xf] %v236_v5 }
  0x18   : > { %239 = vst [vmem:[%s1537_s6 + $0x18] sm:$0xf] %v238_v6  ;;  %241 = vst [vmem:[%s1537_s6 + $0x1c] sm:$0xf] %v240_v7  ;;  %v242_v8 = vld [vmem:[%s1530_s5 + $0x80] sm:$0xf] }
  0x19   : > { %v244_v9 = vld [vmem:[%s1530_s5 + $0x90] sm:$0xf]  ;;  %v246_v10 = vld [vmem:[%s1530_s5 + $0xa0] sm:$0xf]  ;;  %243 = vst [vmem:[%s1537_s6 + $0x20] sm:$0xf] %v242_v8 }
  0x1a   : > { %245 = vst [vmem:[%s1537_s6 + $0x24] sm:$0xf] %v244_v9  ;;  %247 = vst [vmem:[%s1537_s6 + $0x28] sm:$0xf] %v246_v10  ;;  %v248_v11 = vld [vmem:[%s1530_s5 + $0xb0] sm:$0xf] }
  0x1b   : > { %v250_v12 = vld [vmem:[%s1530_s5 + $0xc0] sm:$0xf]  ;;  %v252_v13 = vld [vmem:[%s1530_s5 + $0xd0] sm:$0xf]  ;;  %249 = vst [vmem:[%s1537_s6 + $0x2c] sm:$0xf] %v248_v11 }
  0x1c   : > { %251 = vst [vmem:[%s1537_s6 + $0x30] sm:$0xf] %v250_v12  ;;  %253 = vst [vmem:[%s1537_s6 + $0x34] sm:$0xf] %v252_v13  ;;  %v254_v14 = vld [vmem:[%s1530_s5 + $0xe0] sm:$0xf] }
  0x1d   : > { %v256_v15 = vld [vmem:[%s1530_s5 + $0xf0] sm:$0xf]  ;;  %v258_v16 = vld [vmem:[%s1530_s5 + $0x100] sm:$0xf]  ;;  %255 = vst [vmem:[%s1537_s6 + $0x38] sm:$0xf] %v254_v14 }
  0x1e   : > { %257 = vst [vmem:[%s1537_s6 + $0x3c] sm:$0xf] %v256_v15  ;;  %259 = vst [vmem:[%s1537_s6 + $0x40] sm:$0xf] %v258_v16  ;;  %v260_v17 = vld [vmem:[%s1530_s5 + $0x110] sm:$0xf] }
  0x1f   : > { %v262_v18 = vld [vmem:[%s1530_s5 + $0x120] sm:$0xf]  ;;  %v264_v19 = vld [vmem:[%s1530_s5 + $0x130] sm:$0xf]  ;;  %261 = vst [vmem:[%s1537_s6 + $0x44] sm:$0xf] %v260_v17 }
  0x20   : > { %263 = vst [vmem:[%s1537_s6 + $0x48] sm:$0xf] %v262_v18  ;;  %265 = vst [vmem:[%s1537_s6 + $0x4c] sm:$0xf] %v264_v19  ;;  %v266_v20 = vld [vmem:[%s1530_s5 + $0x140] sm:$0xf] }
  0x21   : > { %v268_v21 = vld [vmem:[%s1530_s5 + $0x150] sm:$0xf]  ;;  %v270_v22 = vld [vmem:[%s1530_s5 + $0x160] sm:$0xf]  ;;  %267 = vst [vmem:[%s1537_s6 + $0x50] sm:$0xf] %v266_v20 }
  0x22   : > { %269 = vst [vmem:[%s1537_s6 + $0x54] sm:$0xf] %v268_v21  ;;  %271 = vst [vmem:[%s1537_s6 + $0x58] sm:$0xf] %v270_v22  ;;  %v272_v23 = vld [vmem:[%s1530_s5 + $0x170] sm:$0xf] }
  0x23   : > { %v274_v24 = vld [vmem:[%s1530_s5 + $0x180] sm:$0xf]  ;;  %v276_v25 = vld [vmem:[%s1530_s5 + $0x190] sm:$0xf]  ;;  %273 = vst [vmem:[%s1537_s6 + $0x5c] sm:$0xf] %v272_v23 }
  0x24   : > { %275 = vst [vmem:[%s1537_s6 + $0x60] sm:$0xf] %v274_v24  ;;  %277 = vst [vmem:[%s1537_s6 + $0x64] sm:$0xf] %v276_v25  ;;  %v278_v26 = vld [vmem:[%s1530_s5 + $0x1a0] sm:$0xf] }
  0x25   : > { %v280_v27 = vld [vmem:[%s1530_s5 + $0x1b0] sm:$0xf]  ;;  %v282_v28 = vld [vmem:[%s1530_s5 + $0x1c0] sm:$0xf]  ;;  %279 = vst [vmem:[%s1537_s6 + $0x68] sm:$0xf] %v278_v26 }
  0x26   : > { %281 = vst [vmem:[%s1537_s6 + $0x6c] sm:$0xf] %v280_v27  ;;  %283 = vst [vmem:[%s1537_s6 + $0x70] sm:$0xf] %v282_v28  ;;  %v284_v29 = vld [vmem:[%s1530_s5 + $0x1d0] sm:$0xf] }
  0x27   : > { %v286_v30 = vld [vmem:[%s1530_s5 + $0x1e0] sm:$0xf]  ;;  %v288_v31 = vld [vmem:[%s1530_s5 + $0x1f0] sm:$0xf]  ;;  %285 = vst [vmem:[%s1537_s6 + $0x74] sm:$0xf] %v284_v29 }
  0x28   : > { %287 = vst [vmem:[%s1537_s6 + $0x78] sm:$0xf] %v286_v30  ;;  %289 = vst [vmem:[%s1537_s6 + $0x7c] sm:$0xf] %v288_v31  ;;  %v290_v32 = vld [vmem:[%s1530_s5 + $0x200] sm:$0xf] }
  0x29   : > { %v292_v33 = vld [vmem:[%s1530_s5 + $0x210] sm:$0xf]  ;;  %v294_v34 = vld [vmem:[%s1530_s5 + $0x220] sm:$0xf]  ;;  %291 = vst [vmem:[%s1537_s6 + $0x80] sm:$0xf] %v290_v32 }
  0x2a   : > { %293 = vst [vmem:[%s1537_s6 + $0x84] sm:$0xf] %v292_v33  ;;  %295 = vst [vmem:[%s1537_s6 + $0x88] sm:$0xf] %v294_v34  ;;  %v296_v35 = vld [vmem:[%s1530_s5 + $0x230] sm:$0xf] }
  0x2b   : > { %297 = vst [vmem:[%s1537_s6 + $0x8c] sm:$0xf] %v296_v35 }
  0x2c PF: > { %p1184_p8 = scmp.ge.s32.totalorder %s1454_s19, 1  ;;  %p392_p9 = scmp.lt.s32.totalorder %s1454_s19, 5 }
  0x2e   : > { %p393_p10 = pnand %p1184_p8, %p392_p9 }
  0x2f   : > { %s399_s7 = sand.u32 (!%p393_p10), 1, %s1438_s15  }
  0x30   : > { %396 = sbr.rel (%p393_p10) target bundleno = 325 (0x145), region = 73  ;;  %s1185_s22 = sshll.u32 (!%p393_p10), %s399_s7, 5 }
  0x31   : > { %s1338_s8 = smul.u32 (!%p393_p10), 144, %s399_s7  ;;  %s1726_s15 = scalar_lea.vmem (!%p393_p10), [#allocation3], %s1185_s22 }
  0x33   : > { %s1617_s13 = scalar_lea.vmem (!%p393_p10), [#allocation2], %s1338_s8 }
  0x35   : > { %v1400_v36 = vld [vmem:[%s1763_s1 + $0x4] ss:$12 sps:$4 sm:$0xff]   ;;  %v1403_v37 = vld [vmem:[%s1763_s1 + $0x4c] ss:$12 sps:$4 sm:$0xff]   ;;  %v1456_v38 = vmov 0   ;;  %vm680_vm0 = vcmask 261120  }
  0x36   : > { %1381 = vset.pattern.permute.xlu1 %v1456_v38  ;;  %1380 = vset.pattern.permute.xlu0 %v1456_v38  ;;  %v1382_v39 = vld [vmem:[%s1617_s13 + $0x78] sm:$0xff]   ;;  %v1384_v41 = vld [vmem:[%s1617_s13 + $0x70] sm:$0xff]   ;;  %v1386_v43 = vld [vmem:[%s1617_s13 + $0x68] sm:$0xff]   ;;  %s1229_s7 = sshll.u32 (%p1517_p6), %s1446_s17, 2 }
  0x37   : > { %725 = vmatprep.mubr.bf16.mxu0 %v1400_v36  ;;  %749 = vmatprep.mubr.bf16.mxu1 %v1403_v37  ;;  %v1383_v40 = vld [vmem:[%s1617_s13 + $0x38] sm:$0xff]   ;;  %v1385_v42 = vld [vmem:[%s1617_s13 + $0x30] sm:$0xff]   ;;  %v1387_v44 = vld [vmem:[%s1617_s13 + $0x28] sm:$0xff]   ;;  %s994_s27 = scalar_lea.vmem (%p1517_p6), %s1766_s4, %s1229_s7 }
  0x38   : > { %1263 = vmatprep.subr.bf16.mxu0 %v1382_v39  ;;  %1321 = vmatprep.subr.bf16.mxu1 %v1382_v39  ;;  %v1388_v45 = vld [vmem:[%s1617_s13 + $0x60] sm:$0xff]   ;;  %v1390_v47 = vld [vmem:[%s1617_s13 + $0x58] sm:$0xff]   ;;  %v1392_v49 = vld [vmem:[%s1617_s13 + $0x50] sm:$0xff]  }
  0x39   : > { %1264 = vmatpush3.bf16.msra.mxu0 %v1383_v40  ;;  %1329 = vmatpush3.bf16.msra.mxu1 %v1383_v40  ;;  %v1389_v46 = vld [vmem:[%s1617_s13 + $0x20] sm:$0xff]   ;;  %v1391_v48 = vld [vmem:[%s1617_s13 + $0x18] sm:$0xff]   ;;  %v1393_v50 = vld [vmem:[%s1617_s13 + $0x10] sm:$0xff]  }
  0x3a   : > { %1265 = vmatprep.subr.bf16.mxu0 %v1384_v41  ;;  %1322 = vmatprep.subr.bf16.mxu1 %v1384_v41  ;;  %v1394_v51 = vld [vmem:[%s1617_s13 + $0x48] sm:$0xff]   ;;  %v825_v53 = vld [vmem:[%s1764_s2 + $0x10] sm:$0xff]  ;;  %v823_v54 = vld [vmem:[%s1764_s2] sm:$0xff] }
  0x3b   : > { %v1395_v52 = vld [vmem:[%s1617_s13 + $0x8] sm:$0xff]   ;;  %v1396_v55 = vld [vmem:[%s1617_s13 + $0x40] sm:$0xff]   ;;  %843 = vperm.xlu1 %1381, %v825_v53   ;;  %833 = vperm.xlu0 %1380, %v823_v54  }
  0x3c   : > { %v826_v56 = vld [vmem:[%s1764_s2 + $0x18] sm:$0xff]  ;;  %v824_v57 = vld [vmem:[%s1764_s2 + $0x8] sm:$0xff]  ;;  %v1397_v58 = vld [vmem:[%s1617_s13] sm:$0xff]  }
  0x3d   : > { %1266 = vmatpush3.bf16.msra.mxu0 %v1385_v42  ;;  %1330 = vmatpush3.bf16.msra.mxu1 %v1385_v42  ;;  %v1404_v59 = vld [vmem:[%s1617_s13 + $0x88] sm:$0xff]   ;;  %v827_v63 = vld [vmem:[%s1764_s2 + $0x20] sm:$0xff]  ;;  %v829_v4 = vld [vmem:[%s1764_s2 + $0x30] sm:$0xff] }
  0x3e   : > { %1267 = vmatprep.subr.bf16.mxu0 %v1386_v43  ;;  %1323 = vmatprep.subr.bf16.mxu1 %v1386_v43  ;;  %v1398_v60 = vld [vmem:[%s1763_s1] ss:$12 sps:$4 sm:$0xff]   ;;  %v1401_v61 = vld [vmem:[%s1763_s1 + $0x48] ss:$12 sps:$4 sm:$0xff]   ;;  %v830_v3 = vld [vmem:[%s1764_s2 + $0x38] sm:$0xff] }
  0x3f   : > { %848 = vperm.xlu1 %1381, %v826_v56   ;;  %838 = vperm.xlu0 %1380, %v824_v57   ;;  %v828_v62 = vld [vmem:[%s1764_s2 + $0x28] sm:$0xff]  ;;  %v1405_v1 = vld [vmem:[%s1617_s13 + $0x80] sm:$0xff]   ;;  %v882_v11 = vld [vmem:[%s1765_s3 + $0x18] sm:$0xff] }
  0x40   : > { %v1406_v0 = vld [vmem:[%s1763_s1 + $0x1c] ss:$12 sps:$4 sm:$0xff]   ;;  %v1409_v5 = vld [vmem:[%s1763_s1 + $0x18] ss:$12 sps:$4 sm:$0xff]   ;;  %v1410_v6 = vld [vmem:[%s1763_s1 + $0x20] ss:$12 sps:$4 sm:$0xff]  }
  0x41   : > { %1268 = vmatpush3.bf16.msra.mxu0 %v1387_v44  ;;  %1331 = vmatpush3.bf16.msra.mxu1 %v1387_v44  ;;  %v1408_v2 = vld [vmem:[%s1763_s1 + $0x8] ss:$12 sps:$4 sm:$0xff]   ;;  %v879_v8 = vld [vmem:[%s1765_s3] sm:$0xff]  ;;  %v1414_v13 = vld [vmem:[%s1763_s1 + $0x30] ss:$12 sps:$4 sm:$0xff]  }
  0x42   : > { %1269 = vmatprep.subr.bf16.mxu0 %v1388_v45  ;;  %1324 = vmatprep.subr.bf16.mxu1 %v1388_v45  ;;  %v880_v7 = vld [vmem:[%s1765_s3 + $0x8] sm:$0xff]  ;;  %v1411_v9 = vld [vmem:[%s1763_s1 + $0x34] ss:$12 sps:$4 sm:$0xff]   ;;  %v1413_v10 = vld [vmem:[%s1763_s1 + $0x38] ss:$12 sps:$4 sm:$0xff]  }
  0x43   : > { %858 = vperm.xlu1 %1381, %v828_v62   ;;  %853 = vperm.xlu0 %1380, %v827_v63   ;;  %v881_v12 = vld [vmem:[%s1765_s3 + $0x10] sm:$0xff]  ;;  %v884_v15 = vld [vmem:[%s1765_s3 + $0x28] sm:$0xff]  ;;  %v883_v16 = vld [vmem:[%s1765_s3 + $0x20] sm:$0xff] }
  0x44   : > { %v1415_v14 = vld [vmem:[%s1763_s1 + $0x50] ss:$12 sps:$4 sm:$0xff]  }
  0x45   : > { %1270 = vmatpush3.bf16.msra.mxu0 %v1389_v46  ;;  %1332 = vmatpush3.bf16.msra.mxu1 %v1389_v46  ;;  %v886_v17 = vld [vmem:[%s1765_s3 + $0x38] sm:$0xff]  ;;  %v885_v18 = vld [vmem:[%s1765_s3 + $0x30] sm:$0xff] }
  0x46   : > { %1271 = vmatprep.subr.bf16.mxu0 %v1390_v47  ;;  %1325 = vmatprep.subr.bf16.mxu1 %v1390_v47 }
  0x47   : > { %868 = vperm.xlu1 %1381, %v830_v3   ;;  %863 = vperm.xlu0 %1380, %v829_v4  }
  0x49   : > { %1272 = vmatpush3.bf16.msra.mxu0 %v1391_v48  ;;  %1333 = vmatpush3.bf16.msra.mxu1 %v1391_v48 }
  0x4a   : > { %1273 = vmatprep.subr.bf16.mxu0 %v1392_v49  ;;  %1326 = vmatprep.subr.bf16.mxu1 %v1392_v49 }
  0x4b   : > { %894 = vperm.xlu1 %1381, %v880_v7   ;;  %889 = vperm.xlu0 %1380, %v879_v8  }
  0x4d   : > { %1274 = vmatpush3.bf16.msra.mxu0 %v1393_v50  ;;  %1334 = vmatpush3.bf16.msra.mxu1 %v1393_v50 }
  0x4e   : > { %1275 = vmatprep.subr.bf16.mxu0 %v1394_v51  ;;  %1327 = vmatprep.subr.bf16.mxu1 %v1394_v51 }
  0x4f   : > { %904 = vperm.xlu1 %1381, %v882_v11   ;;  %899 = vperm.xlu0 %1380, %v881_v12  }
  0x51   : > { %1276 = vmatpush3.bf16.msra.mxu0 %v1395_v52  ;;  %1335 = vmatpush3.bf16.msra.mxu1 %v1395_v52 }
  0x52   : > { %1277 = vmatprep.subr.bf16.mxu0 %v1396_v55  ;;  %1328 = vmatprep.subr.bf16.mxu1 %v1396_v55 }
  0x53   : > { %914 = vperm.xlu1 %1381, %v884_v15   ;;  %909 = vperm.xlu0 %1380, %v883_v16  }
  0x55   : > { %1278 = vmatpush3.bf16.msra.mxu0 %v1397_v58  ;;  %1336 = vmatpush3.bf16.msra.mxu1 %v1397_v58 }
  0x56   : > { %1309 = vmatprep.subr.bf16.mxu1 %v1404_v59 }
  0x57   : > { %924 = vperm.xlu1 %1381, %v886_v17   ;;  %919 = vperm.xlu0 %1380, %v885_v18  }
  0x58   : > { %726 = vmatmul.mubr.bf16.vlgmr.msra.gmra.mxu0 %v1398_v60  ;;  %750 = vmatmul.mubr.bf16.vlgmr.msra.gmra.mxu1 %v1401_v61 }
  0x59   : > { %1310 = vmatpush3.bf16.msra.mxu1 %v1404_v59  ;;  %733 = vmatprep.mubr.bf16.mxu0 %v1406_v0 }
  0x5a   : > { %1311 = vmatprep.subr.bf16.mxu1 %v1405_v1  ;;  %1313 = vmatprep.mubr.msk.bf16.mxu1 %vm680_vm0, %v1408_v2 }
  0x5d   : > { %1312 = vmatpush3.bf16.msra.mxu1 %v1405_v1 }
  0x60   : > { %734 = vmatmul.mubr.bf16.gmra.mxu0 %v1409_v5  ;;  %1314 = vmatmul.mubr.msk.bf16.vlgmr.msra.gmra.mxu1 %vm680_vm0, %v1410_v6 }
  0x61   : > { %741 = vmatprep.mubr.bf16.mxu0 %v1411_v9  ;;  %1317 = vmatprep.mubr.msk.bf16.mxu1 %vm680_vm0, %v1413_v10 }
  0x68   : > { %742 = vmatmul.mubr.bf16.gmra.mxu0 %v1414_v13  ;;  %1318 = vmatmul.mubr.msk.bf16.gmra.mxu1 %vm680_vm0, %v1415_v14 }
  0xb6   : > { %v834_v19 = vpop.permute.xlu0 %833  ;;  %v844_v20 = vpop.permute.xlu1 %843 }
  0xba   : > { %v839_v21 = vpop.permute.xlu0 %838  ;;  %v849_v22 = vpop.permute.xlu1 %848 }
  0xbe   : > { %v1719_v23 = vpop.permute.xlu0 %853  ;;  %v1721_v24 = vpop.permute.xlu1 %858 }
  0xc2   : > { %v864_v25 = vpop.permute.xlu0 %863  ;;  %v869_v26 = vpop.permute.xlu1 %868 }
  0xc6   : > { %v890_v31 = vpop.permute.xlu0 %889  ;;  %v895_v34 = vpop.permute.xlu1 %894 }
  0xca   : > { %v900_v39 = vpop.permute.xlu0 %899  ;;  %v905_v43 = vpop.permute.xlu1 %904 }
  0xce   : > { %v910_v53 = vpop.permute.xlu0 %909  ;;  %v915_v61 = vpop.permute.xlu1 %914 }
  0xd2   : > { %v920_v16 = vpop.permute.xlu0 %919 }
 0x118   : > { %v1279_v27 = vpop.f32.mrf.mxu0  ;;  %v1297_v28 = vpop.f32.mrf.mxu1 }
 0x11a   : > { %v1280_v29 = vpop.f32.mrf.mxu0  ;;  %v1298_v30 = vpop.f32.mrf.mxu1 }
 0x11b   : > { %v1281_v40 = vadd.f32 %v1280_v29, %v1279_v27  ;;  %v1299_v57 = vadd.f32 %v1298_v30, %v1297_v28  ;;  %v925_v28 = vpop.permute.xlu1 %924 }
 0x11c   : > { %v1282_v32 = vpop.f32.mrf.mxu0  ;;  %v1300_v33 = vpop.f32.mrf.mxu1 }
 0x11e   : > { %v1283_v35 = vpop.f32.mrf.mxu0  ;;  %v1301_v36 = vpop.f32.mrf.mxu1 }
 0x11f   : > { %v1284_v48 = vadd.f32 %v1283_v35, %v1282_v32  ;;  %v1302_v4 = vadd.f32 %v1301_v36, %v1300_v33 }
 0x120   : > { %v1285_v37 = vpop.f32.mrf.mxu0  ;;  %v1315_v38 = vpop.f32.mrf.mxu1 }
 0x122   : > { %v1286_v41 = vpop.f32.mrf.mxu0  ;;  %v792_v42 = vpop.f32.mrf.mxu1 }
 0x123   : > { %v1287_v44 = vadd.f32 %v1286_v41, %v1285_v37  ;;  %v793_v45 = vadd.f32 %v1281_v40, %v792_v42 }
 0x124   : > { %v1288_v46 = vpop.f32.mrf.mxu0  ;;  %v1316_v47 = vpop.f32.mrf.mxu1 }
 0x125   : > { %v801_v49 = vadd.f32 %v1315_v38, %v1287_v44  ;;  %v871_v50 = vmul.f32 %v834_v19, %v793_v45 }
 0x126   : > { %v1289_v51 = vpop.f32.mrf.mxu0  ;;  %v795_v52 = vpop.f32.mrf.mxu1 }
 0x127   : > { %v873_v54 = vmul.f32 %v844_v20, %v801_v49  ;;  %v1290_v55 = vadd.f32 %v1289_v51, %v1288_v46  ;;  %v796_v56 = vadd.f32 %v1284_v48, %v795_v52  ;;  %v927_v58 = vadd.f32 %v890_v31, %v871_v50 }
 0x128   : > { %v1291_v59 = vpop.f32.mrf.mxu0  ;;  %v1319_v60 = vpop.f32.mrf.mxu1 }
 0x129   : > { %v804_v62 = vadd.f32 %v1316_v47, %v1290_v55  ;;  %v872_v63 = vmul.f32 %v839_v21, %v796_v56  ;;  %v929_v0 = vadd.f32 %v900_v39, %v873_v54  ;;  %v817_v1 = vadd.f32 %v1319_v60, %v1299_v57 }
 0x12a   : > { %v1292_v2 = vpop.f32.mrf.mxu0  ;;  %v808_v3 = vpop.f32.mrf.mxu1  ;;  %v935_v8 = vmax.f32 %v927_v58, 0.0 }
 0x12b   : > { %v874_v5 = vmul.f32 %v849_v22, %v804_v62  ;;  %v928_v6 = vadd.f32 %v895_v34, %v872_v63  ;;  %v1293_v7 = vadd.f32 %v1292_v2, %v1291_v59  ;;  %v877_v9 = vmul.f32 %v864_v25, %v817_v1 }
 0x12c   : > { %v1294_v10 = vpop.f32.mrf.mxu0  ;;  %v1320_v11 = vpop.f32.mrf.mxu1  ;;  %v937_v17 = vmax.f32 %v929_v0, 0.0 }
 0x12d   : > { %v930_v12 = vadd.f32 %v905_v43, %v874_v5  ;;  %v936_v13 = vmax.f32 %v928_v6, 0.0  ;;  %v809_v14 = vadd.f32 %v1293_v7, %v808_v3  ;;  %v820_v15 = vadd.f32 %v1320_v11, %v1302_v4 }
 0x12e   : > { %v1295_v18 = vpop.f32.mrf.mxu0  ;;  %v933_v21 = vadd.f32 %v920_v16, %v877_v9  ;;  %v811_v31 = vpop.f32.mrf.mxu1 }
 0x12f   : > { %v938_v19 = vmax.f32 %v930_v12, 0.0  ;;  %v1243_v20 = vpack.c.bf16 %v936_v13, %v935_v8  ;;  %v878_v27 = vmul.f32 %v869_v26, %v820_v15  ;;  %v875_v22 = vmul.f32 %v1719_v23, %v809_v14 }
 0x130   : > { %v1296_v29 = vadd.f32 %v1295_v18, %v1294_v10  ;;  %v941_v33 = vmax.f32 %v933_v21, 0.0 }
 0x131   : > { %v1248_v30 = vpack.c.bf16 %v938_v19, %v937_v17  ;;  %1244 = vst [vmem:[%s1726_s15] sm:$0xff] %v1243_v20   ;;  %v934_v25 = vadd.f32 %v925_v28, %v878_v27  ;;  %v931_v35 = vadd.f32 %v910_v53, %v875_v22 }
 0x132   : > { %v812_v32 = vadd.f32 %v1296_v29, %v811_v31 }
 0x133   : > { %1260 = vst [vmem:[%s1726_s15 + $0x8] sm:$0xff] %v1248_v30   ;;  %v942_v34 = vmax.f32 %v934_v25, 0.0  ;;  %v939_v37 = vmax.f32 %v931_v35, 0.0 }
 0x134   : > { %v876_v26 = vmul.f32 %v1721_v24, %v812_v32 }
 0x135   : > { %v1258_v36 = vpack.c.bf16 %v942_v34, %v941_v33 }
 0x136   : > { %v932_v23 = vadd.f32 %v915_v61, %v876_v26 }
 0x137   : > { %1262 = vst [vmem:[%s1726_s15 + $0x18] sm:$0xff] %v1258_v36  }
 0x138   : > { %v940_v38 = vmax.f32 %v932_v23, 0.0  ;;  %989 = sbr.rel (!%p1517_p6) target bundleno = 325 (0x145), region = 81  ;;  %v1011_v24 = vld [vmem:[%s1726_s15] sm:$0xf] (%p1517_p6)  ;;  %v1013_v40 = vld [vmem:[%s1726_s15 + $0x4] sm:$0xf] (%p1517_p6) }
 0x139   : > { %1012 = vst [vmem:[%s994_s27] sm:$0xf] (%p1517_p6), %v1011_v24  ;;  %1014 = vst [vmem:[%s994_s27 + $0x10] sm:$0xf] (%p1517_p6), %v1013_v40 }
 0x13a   : > { %v1253_v39 = vpack.c.bf16 %v940_v38, %v939_v37  ;;  %v1015_v41 = vld [vmem:[%s1726_s15 + $0x8] sm:$0xf] (%p1517_p6)  ;;  %v1017_v42 = vld [vmem:[%s1726_s15 + $0xc] sm:$0xf] (%p1517_p6) }
 0x13b   : > { %1016 = vst [vmem:[%s994_s27 + $0x20] sm:$0xf] (%p1517_p6), %v1015_v41  ;;  %1018 = vst [vmem:[%s994_s27 + $0x30] sm:$0xf] (%p1517_p6), %v1017_v42 }
 0x13c   : > { %1261 = vst [vmem:[%s1726_s15 + $0x10] sm:$0xff] %v1253_v39  }
 0x13e   : > { %v1023_v45 = vld [vmem:[%s1726_s15 + $0x18] sm:$0xf]  ;;  %v1025_v46 = vld [vmem:[%s1726_s15 + $0x1c] sm:$0xf] }
 0x13f   : > { %1024 = vst [vmem:[%s994_s27 + $0x60] sm:$0xf] %v1023_v45  ;;  %1026 = vst [vmem:[%s994_s27 + $0x70] sm:$0xf] %v1025_v46 }
 0x143   : > { %v1019_v43 = vld [vmem:[%s1726_s15 + $0x10] sm:$0xf]  ;;  %v1021_v44 = vld [vmem:[%s1726_s15 + $0x14] sm:$0xf] }
 0x144   : > { %1020 = vst [vmem:[%s994_s27 + $0x40] sm:$0xf] %v1019_v43  ;;  %1022 = vst [vmem:[%s994_s27 + $0x50] sm:$0xf] %v1021_v44 }
 0x145 PF: > { %s14_s19 = sadd.s32 1, %s1454_s19   ;;  %s1768_s15 = smov %s1442_s16 }
 0x146   : > { %p11_p11 = scmp.ge.s32.totalorder %s14_s19, 6   ;;  %s1769_s16 = smov %s1522_s25 }
 0x147   : > { %s1770_s17 = smov %s1450_s18  ;;  %s1771_s18 = smov %s1773_s20 }
 0x148   :  { %13 = sbr.rel (!%p11_p11) target bundleno = 3 (0x3), region = 162 }

// kernel: preact_resnet_forward.44
= control target key start
LH: loop header
LB: loop body
LE: loop exit
PB: predicated region body
PF: predicated region fallthrough
CT: control target
= control target key end

     0   :  { %s2179_s18 = smov 0   ;;  %s2181_s19 = smov 0   ;;  %s2629_s0 = inlined_call_operand.vmem [shape: bf16[608,512], index: 0, kind: input, shape index: {}]   ;;  %s2630_s1 = inlined_call_operand.vmem [shape: bf16[64,608], index: 1, kind: input, shape index: {}]   ;;  %s2631_s2 = inlined_call_operand.vmem [shape: f32[64,1], index: 2, kind: input, shape index: {}]   ;;  %s2632_s3 = inlined_call_operand.vmem [shape: f32[64,1], index: 3, kind: input, shape index: {}]   ;;  %s2633_s4 = inlined_call_operand.vmem [shape: f32[64,512], index: 4, kind: output, shape index: {0}]   ;;  %s2634_s5 = inlined_call_operand.vmem [shape: bf16[64,512], index: 5, kind: output, shape index: {1}]  }
   0x1   :  { %s2183_s20 = smov 0   ;;  %s2185_s21 = smov 0  }
   0x2   :  { %s2187_s22 = smov 0  }
   0x3 LB: > { %s28_s23 = sadd.s32 1, %s2142_s21  ;;  %s1757_s24 = sadd.s32 4294967295, %s2146_s22   ;;  %s2146_s22 = sphi %s2187_s22, %s16_s22   ;;  %s2142_s21 = sphi %s2185_s21, %s2639_s21   ;;  %s2138_s20 = sphi %s2183_s20, %s2638_s20   ;;  %s2134_s19 = sphi %s2181_s19, %s2637_s19   ;;  %s2130_s18 = sphi %s2179_s18, %s2636_s18  }
   0x4   : > { %p30_p0 = scmp.ge.s32.totalorder %s28_s23, 4  ;;  %p42_p1 = scmp.ne.s32.totalorder %s2134_s19, %s2130_s18 }
   0x5   : > { %p43_p2 = scmp.eq.s32.totalorder %s2146_s22, 0  ;;  %p152_p4 = scmp.eq.s32.totalorder %s1757_s24, 3 }
   0x6   : > { %s2641_s23 = smov (%p30_p0, %s28_s23), 0  ;;  %s35_s26 = sadd.s32 1, %s2134_s19 }
   0x7   : > { %p44_p3 = por %p43_p2, %p42_p1  ;;  %s32_s25 = ssub.s32 %s2142_s21, %s2641_s23 }
   0x8   : > { %p33_p5 = scmp.eq.s32.totalorder %s32_s25, 0  ;;  %p2214_p6 = por %p152_p4, %p42_p1 }
   0x9   : > { %p1763_p7 = scmp.ge.s32.totalorder %s2146_s22, 4 }
   0xa   : > { %s2219_s28 = scalar_select %p33_p5, %s2134_s19, %s35_s26  }
   0xb   : > { %230 = sbr.rel (%p1763_p7) target bundleno = 71 (0x47), region = 28 }
  0x10   : > { %233 = sbr.rel (!%p44_p3) target bundleno = 71 (0x47), region = 32  ;;  %s235_s29 = sand.u32 (%p44_p3), 1, %s2134_s19  }
  0x11   : > { %s1764_s30 = sshll.u32 (%p44_p3), %s2142_s21, 2  ;;  %s1997_s6 = smul.u32 (%p44_p3), 304, %s235_s29 }
  0x12   : > { %s2227_s9 = scalar_lea.vmem (%p44_p3), %s2629_s0, %s1764_s30 }
  0x13   : > { %v256_v0 = vld [vmem:[%s2227_s9] sm:$0xf] (%p44_p3)  ;;  %v258_v1 = vld [vmem:[%s2227_s9 + $0x10] sm:$0xf] (%p44_p3)  ;;  %s2234_s10 = scalar_lea.vmem (%p44_p3), [#allocation2], %s1997_s6 }
  0x14   : > { %v260_v2 = vld [vmem:[%s2227_s9 + $0x20] sm:$0xf] (%p44_p3)  ;;  %v262_v3 = vld [vmem:[%s2227_s9 + $0x30] sm:$0xf] (%p44_p3)  ;;  %257 = vst [vmem:[%s2234_s10] sm:$0xf] (%p44_p3), %v256_v0 }
  0x15   : > { %v264_v4 = vld [vmem:[%s2227_s9 + $0x40] sm:$0xf]  ;;  %259 = vst [vmem:[%s2234_s10 + $0x4] sm:$0xf] %v258_v1  ;;  %261 = vst [vmem:[%s2234_s10 + $0x8] sm:$0xf] %v260_v2 }
  0x16   : > { %263 = vst [vmem:[%s2234_s10 + $0xc] sm:$0xf] %v262_v3  ;;  %265 = vst [vmem:[%s2234_s10 + $0x10] sm:$0xf] %v264_v4  ;;  %v266_v5 = vld [vmem:[%s2227_s9 + $0x50] sm:$0xf] }
  0x17   : > { %v268_v6 = vld [vmem:[%s2227_s9 + $0x60] sm:$0xf]  ;;  %v270_v7 = vld [vmem:[%s2227_s9 + $0x70] sm:$0xf]  ;;  %267 = vst [vmem:[%s2234_s10 + $0x14] sm:$0xf] %v266_v5 }
  0x18   : > { %269 = vst [vmem:[%s2234_s10 + $0x18] sm:$0xf] %v268_v6  ;;  %271 = vst [vmem:[%s2234_s10 + $0x1c] sm:$0xf] %v270_v7  ;;  %v272_v8 = vld [vmem:[%s2227_s9 + $0x80] sm:$0xf] }
  0x19   : > { %v274_v9 = vld [vmem:[%s2227_s9 + $0x90] sm:$0xf]  ;;  %v276_v10 = vld [vmem:[%s2227_s9 + $0xa0] sm:$0xf]  ;;  %273 = vst [vmem:[%s2234_s10 + $0x20] sm:$0xf] %v272_v8 }
  0x1a   : > { %275 = vst [vmem:[%s2234_s10 + $0x24] sm:$0xf] %v274_v9  ;;  %277 = vst [vmem:[%s2234_s10 + $0x28] sm:$0xf] %v276_v10  ;;  %v278_v11 = vld [vmem:[%s2227_s9 + $0xb0] sm:$0xf] }
  0x1b   : > { %v280_v12 = vld [vmem:[%s2227_s9 + $0xc0] sm:$0xf]  ;;  %v282_v13 = vld [vmem:[%s2227_s9 + $0xd0] sm:$0xf]  ;;  %279 = vst [vmem:[%s2234_s10 + $0x2c] sm:$0xf] %v278_v11 }
  0x1c   : > { %281 = vst [vmem:[%s2234_s10 + $0x30] sm:$0xf] %v280_v12  ;;  %283 = vst [vmem:[%s2234_s10 + $0x34] sm:$0xf] %v282_v13  ;;  %v284_v14 = vld [vmem:[%s2227_s9 + $0xe0] sm:$0xf] }
  0x1d   : > { %v286_v15 = vld [vmem:[%s2227_s9 + $0xf0] sm:$0xf]  ;;  %v288_v16 = vld [vmem:[%s2227_s9 + $0x100] sm:$0xf]  ;;  %285 = vst [vmem:[%s2234_s10 + $0x38] sm:$0xf] %v284_v14 }
  0x1e   : > { %287 = vst [vmem:[%s2234_s10 + $0x3c] sm:$0xf] %v286_v15  ;;  %289 = vst [vmem:[%s2234_s10 + $0x40] sm:$0xf] %v288_v16  ;;  %v290_v17 = vld [vmem:[%s2227_s9 + $0x110] sm:$0xf] }
  0x1f   : > { %v292_v18 = vld [vmem:[%s2227_s9 + $0x120] sm:$0xf]  ;;  %v294_v19 = vld [vmem:[%s2227_s9 + $0x130] sm:$0xf]  ;;  %291 = vst [vmem:[%s2234_s10 + $0x44] sm:$0xf] %v290_v17 }
  0x20   : > { %293 = vst [vmem:[%s2234_s10 + $0x48] sm:$0xf] %v292_v18  ;;  %295 = vst [vmem:[%s2234_s10 + $0x4c] sm:$0xf] %v294_v19  ;;  %v296_v20 = vld [vmem:[%s2227_s9 + $0x140] sm:$0xf] }
  0x21   : > { %v298_v21 = vld [vmem:[%s2227_s9 + $0x150] sm:$0xf]  ;;  %v300_v22 = vld [vmem:[%s2227_s9 + $0x160] sm:$0xf]  ;;  %297 = vst [vmem:[%s2234_s10 + $0x50] sm:$0xf] %v296_v20 }
  0x22   : > { %299 = vst [vmem:[%s2234_s10 + $0x54] sm:$0xf] %v298_v21  ;;  %301 = vst [vmem:[%s2234_s10 + $0x58] sm:$0xf] %v300_v22  ;;  %v302_v23 = vld [vmem:[%s2227_s9 + $0x170] sm:$0xf] }
  0x23   : > { %v304_v24 = vld [vmem:[%s2227_s9 + $0x180] sm:$0xf]  ;;  %v306_v25 = vld [vmem:[%s2227_s9 + $0x190] sm:$0xf]  ;;  %303 = vst [vmem:[%s2234_s10 + $0x5c] sm:$0xf] %v302_v23 }
  0x24   : > { %305 = vst [vmem:[%s2234_s10 + $0x60] sm:$0xf] %v304_v24  ;;  %307 = vst [vmem:[%s2234_s10 + $0x64] sm:$0xf] %v306_v25  ;;  %v308_v26 = vld [vmem:[%s2227_s9 + $0x1a0] sm:$0xf] }
  0x25   : > { %v310_v27 = vld [vmem:[%s2227_s9 + $0x1b0] sm:$0xf]  ;;  %v312_v28 = vld [vmem:[%s2227_s9 + $0x1c0] sm:$0xf]  ;;  %309 = vst [vmem:[%s2234_s10 + $0x68] sm:$0xf] %v308_v26 }
  0x26   : > { %311 = vst [vmem:[%s2234_s10 + $0x6c] sm:$0xf] %v310_v27  ;;  %313 = vst [vmem:[%s2234_s10 + $0x70] sm:$0xf] %v312_v28  ;;  %v314_v29 = vld [vmem:[%s2227_s9 + $0x1d0] sm:$0xf] }
  0x27   : > { %v316_v30 = vld [vmem:[%s2227_s9 + $0x1e0] sm:$0xf]  ;;  %v318_v31 = vld [vmem:[%s2227_s9 + $0x1f0] sm:$0xf]  ;;  %315 = vst [vmem:[%s2234_s10 + $0x74] sm:$0xf] %v314_v29 }
  0x28   : > { %317 = vst [vmem:[%s2234_s10 + $0x78] sm:$0xf] %v316_v30  ;;  %319 = vst [vmem:[%s2234_s10 + $0x7c] sm:$0xf] %v318_v31  ;;  %v320_v32 = vld [vmem:[%s2227_s9 + $0x200] sm:$0xf] }
  0x29   : > { %v322_v33 = vld [vmem:[%s2227_s9 + $0x210] sm:$0xf]  ;;  %v324_v34 = vld [vmem:[%s2227_s9 + $0x220] sm:$0xf]  ;;  %321 = vst [vmem:[%s2234_s10 + $0x80] sm:$0xf] %v320_v32 }
  0x2a   : > { %323 = vst [vmem:[%s2234_s10 + $0x84] sm:$0xf] %v322_v33  ;;  %325 = vst [vmem:[%s2234_s10 + $0x88] sm:$0xf] %v324_v34  ;;  %v326_v35 = vld [vmem:[%s2227_s9 + $0x230] sm:$0xf] }
  0x2b   : > { %v328_v36 = vld [vmem:[%s2227_s9 + $0x240] sm:$0xf]  ;;  %v330_v37 = vld [vmem:[%s2227_s9 + $0x250] sm:$0xf]  ;;  %327 = vst [vmem:[%s2234_s10 + $0x8c] sm:$0xf] %v326_v35 }
  0x2c   : > { %329 = vst [vmem:[%s2234_s10 + $0x90] sm:$0xf] %v328_v36  ;;  %331 = vst [vmem:[%s2234_s10 + $0x94] sm:$0xf] %v330_v37  ;;  %v332_v38 = vld [vmem:[%s2227_s9 + $0x260] sm:$0xf] }
  0x2d   : > { %v334_v39 = vld [vmem:[%s2227_s9 + $0x270] sm:$0xf]  ;;  %v336_v40 = vld [vmem:[%s2227_s9 + $0x280] sm:$0xf]  ;;  %333 = vst [vmem:[%s2234_s10 + $0x98] sm:$0xf] %v332_v38 }
  0x2e   : > { %335 = vst [vmem:[%s2234_s10 + $0x9c] sm:$0xf] %v334_v39  ;;  %337 = vst [vmem:[%s2234_s10 + $0xa0] sm:$0xf] %v336_v40  ;;  %v338_v41 = vld [vmem:[%s2227_s9 + $0x290] sm:$0xf] }
  0x2f   : > { %v340_v42 = vld [vmem:[%s2227_s9 + $0x2a0] sm:$0xf]  ;;  %v342_v43 = vld [vmem:[%s2227_s9 + $0x2b0] sm:$0xf]  ;;  %339 = vst [vmem:[%s2234_s10 + $0xa4] sm:$0xf] %v338_v41 }
  0x30   : > { %341 = vst [vmem:[%s2234_s10 + $0xa8] sm:$0xf] %v340_v42  ;;  %343 = vst [vmem:[%s2234_s10 + $0xac] sm:$0xf] %v342_v43  ;;  %v344_v44 = vld [vmem:[%s2227_s9 + $0x2c0] sm:$0xf] }
  0x31   : > { %v346_v45 = vld [vmem:[%s2227_s9 + $0x2d0] sm:$0xf]  ;;  %v348_v46 = vld [vmem:[%s2227_s9 + $0x2e0] sm:$0xf]  ;;  %345 = vst [vmem:[%s2234_s10 + $0xb0] sm:$0xf] %v344_v44 }
  0x32   : > { %347 = vst [vmem:[%s2234_s10 + $0xb4] sm:$0xf] %v346_v45  ;;  %349 = vst [vmem:[%s2234_s10 + $0xb8] sm:$0xf] %v348_v46  ;;  %v350_v47 = vld [vmem:[%s2227_s9 + $0x2f0] sm:$0xf] }
  0x33   : > { %v352_v48 = vld [vmem:[%s2227_s9 + $0x300] sm:$0xf]  ;;  %v354_v49 = vld [vmem:[%s2227_s9 + $0x310] sm:$0xf]  ;;  %351 = vst [vmem:[%s2234_s10 + $0xbc] sm:$0xf] %v350_v47 }
  0x34   : > { %353 = vst [vmem:[%s2234_s10 + $0xc0] sm:$0xf] %v352_v48  ;;  %355 = vst [vmem:[%s2234_s10 + $0xc4] sm:$0xf] %v354_v49  ;;  %v356_v50 = vld [vmem:[%s2227_s9 + $0x320] sm:$0xf] }
  0x35   : > { %v358_v51 = vld [vmem:[%s2227_s9 + $0x330] sm:$0xf]  ;;  %v360_v52 = vld [vmem:[%s2227_s9 + $0x340] sm:$0xf]  ;;  %357 = vst [vmem:[%s2234_s10 + $0xc8] sm:$0xf] %v356_v50 }
  0x36   : > { %359 = vst [vmem:[%s2234_s10 + $0xcc] sm:$0xf] %v358_v51  ;;  %361 = vst [vmem:[%s2234_s10 + $0xd0] sm:$0xf] %v360_v52  ;;  %v362_v53 = vld [vmem:[%s2227_s9 + $0x350] sm:$0xf] }
  0x37   : > { %v364_v54 = vld [vmem:[%s2227_s9 + $0x360] sm:$0xf]  ;;  %v366_v55 = vld [vmem:[%s2227_s9 + $0x370] sm:$0xf]  ;;  %363 = vst [vmem:[%s2234_s10 + $0xd4] sm:$0xf] %v362_v53 }
  0x38   : > { %365 = vst [vmem:[%s2234_s10 + $0xd8] sm:$0xf] %v364_v54  ;;  %367 = vst [vmem:[%s2234_s10 + $0xdc] sm:$0xf] %v366_v55  ;;  %v368_v56 = vld [vmem:[%s2227_s9 + $0x380] sm:$0xf] }
  0x39   : > { %v370_v57 = vld [vmem:[%s2227_s9 + $0x390] sm:$0xf]  ;;  %v372_v58 = vld [vmem:[%s2227_s9 + $0x3a0] sm:$0xf]  ;;  %369 = vst [vmem:[%s2234_s10 + $0xe0] sm:$0xf] %v368_v56 }
  0x3a   : > { %371 = vst [vmem:[%s2234_s10 + $0xe4] sm:$0xf] %v370_v57  ;;  %373 = vst [vmem:[%s2234_s10 + $0xe8] sm:$0xf] %v372_v58  ;;  %v374_v59 = vld [vmem:[%s2227_s9 + $0x3b0] sm:$0xf] }
  0x3b   : > { %v376_v60 = vld [vmem:[%s2227_s9 + $0x3c0] sm:$0xf]  ;;  %v378_v61 = vld [vmem:[%s2227_s9 + $0x3d0] sm:$0xf]  ;;  %375 = vst [vmem:[%s2234_s10 + $0xec] sm:$0xf] %v374_v59 }
  0x3c   : > { %377 = vst [vmem:[%s2234_s10 + $0xf0] sm:$0xf] %v376_v60  ;;  %379 = vst [vmem:[%s2234_s10 + $0xf4] sm:$0xf] %v378_v61  ;;  %v380_v62 = vld [vmem:[%s2227_s9 + $0x3e0] sm:$0xf] }
  0x3d   : > { %v382_v63 = vld [vmem:[%s2227_s9 + $0x3f0] sm:$0xf]  ;;  %v384_v0 = vld [vmem:[%s2227_s9 + $0x400] sm:$0xf]  ;;  %381 = vst [vmem:[%s2234_s10 + $0xf8] sm:$0xf] %v380_v62 }
  0x3e   : > { %383 = vst [vmem:[%s2234_s10 + $0xfc] sm:$0xf] %v382_v63  ;;  %385 = vst [vmem:[%s2234_s10 + $0x100] sm:$0xf] %v384_v0  ;;  %v386_v1 = vld [vmem:[%s2227_s9 + $0x410] sm:$0xf] }
  0x3f   : > { %v388_v2 = vld [vmem:[%s2227_s9 + $0x420] sm:$0xf]  ;;  %v390_v3 = vld [vmem:[%s2227_s9 + $0x430] sm:$0xf]  ;;  %387 = vst [vmem:[%s2234_s10 + $0x104] sm:$0xf] %v386_v1 }
  0x40   : > { %389 = vst [vmem:[%s2234_s10 + $0x108] sm:$0xf] %v388_v2  ;;  %391 = vst [vmem:[%s2234_s10 + $0x10c] sm:$0xf] %v390_v3  ;;  %v392_v4 = vld [vmem:[%s2227_s9 + $0x440] sm:$0xf] }
  0x41   : > { %v394_v5 = vld [vmem:[%s2227_s9 + $0x450] sm:$0xf]  ;;  %v396_v6 = vld [vmem:[%s2227_s9 + $0x460] sm:$0xf]  ;;  %393 = vst [vmem:[%s2234_s10 + $0x110] sm:$0xf] %v392_v4 }
  0x42   : > { %395 = vst [vmem:[%s2234_s10 + $0x114] sm:$0xf] %v394_v5  ;;  %397 = vst [vmem:[%s2234_s10 + $0x118] sm:$0xf] %v396_v6  ;;  %v398_v7 = vld [vmem:[%s2227_s9 + $0x470] sm:$0xf] }
  0x43   : > { %v400_v8 = vld [vmem:[%s2227_s9 + $0x480] sm:$0xf]  ;;  %v402_v9 = vld [vmem:[%s2227_s9 + $0x490] sm:$0xf]  ;;  %399 = vst [vmem:[%s2234_s10 + $0x11c] sm:$0xf] %v398_v7 }
  0x44   : > { %401 = vst [vmem:[%s2234_s10 + $0x120] sm:$0xf] %v400_v8  ;;  %403 = vst [vmem:[%s2234_s10 + $0x124] sm:$0xf] %v402_v9  ;;  %v404_v10 = vld [vmem:[%s2227_s9 + $0x4a0] sm:$0xf] }
  0x45   : > { %v406_v11 = vld [vmem:[%s2227_s9 + $0x4b0] sm:$0xf]  ;;  %405 = vst [vmem:[%s2234_s10 + $0x128] sm:$0xf] %v404_v10 }
  0x46   : > { %407 = vst [vmem:[%s2234_s10 + $0x12c] sm:$0xf] %v406_v11 }
  0x47 PF: > { %p1765_p8 = scmp.ge.s32.totalorder %s2146_s22, 1  ;;  %p582_p9 = scmp.lt.s32.totalorder %s2146_s22, 5 }
  0x49   : > { %p583_p10 = pnand %p1765_p8, %p582_p9 }
  0x4a   : > { %s2386_s11 = sand.u32 (!%p583_p10), 1, %s2130_s18  }
  0x4b   : > { %586 = sbr.rel (%p583_p10) target bundleno = 367 (0x16f), region = 73  ;;  %s1767_s26 = sshll.u32 (!%p583_p10), %s2386_s11, 5 }
  0x4c   : > { %s1998_s12 = smul.u32 (!%p583_p10), 304, %s2386_s11 }
  0x4e   : > { %s2395_s17 = scalar_lea.vmem (!%p583_p10), [#allocation2], %s1998_s12 }
  0x50   : > { %v2076_v12 = vld [vmem:[%s2630_s1 + $0x4] ss:$20 sps:$4 sm:$0xff]   ;;  %v2079_v13 = vld [vmem:[%s2630_s1 + $0xc] ss:$20 sps:$4 sm:$0xff]   ;;  %v2148_v14 = vmov 0   ;;  %v1303_v63 = vld [vmem:[%s2631_s2 + $0x10] sm:$0xff] }
  0x51   : > { %2041 = vset.pattern.permute.xlu1 %v2148_v14  ;;  %2040 = vset.pattern.permute.xlu0 %v2148_v14  ;;  %v2042_v15 = vld [vmem:[%s2395_s17 + $0x78] sm:$0xff]   ;;  %v2046_v19 = vld [vmem:[%s2395_s17 + $0x70] sm:$0xff]   ;;  %v2050_v23 = vld [vmem:[%s2395_s17 + $0x68] sm:$0xff]   ;;  %vm1085_vm0 = vcmask 785408   ;;  %s1840_s29 = sshll.u32 (%p2214_p6), %s2138_s20, 3 }
  0x52   : > { %1130 = vmatprep.mubr.bf16.mxu0 %v2076_v12  ;;  %1195 = vmatprep.mubr.bf16.mxu1 %v2079_v13  ;;  %v2043_v16 = vld [vmem:[%s2395_s17 + $0xf8] sm:$0xff]   ;;  %v2047_v20 = vld [vmem:[%s2395_s17 + $0xf0] sm:$0xff]   ;;  %v2051_v24 = vld [vmem:[%s2395_s17 + $0xe8] sm:$0xff]   ;;  %s1476_s7 = scalar_lea.vmem (%p2214_p6), %s2633_s4, %s1840_s29 }
  0x53   : > { %1875 = vmatprep.subr.bf16.mxu0 %v2042_v15  ;;  %v2044_v17 = vld [vmem:[%s2395_s17 + $0x38] sm:$0xff]   ;;  %1915 = vmatprep.subr.bf16.mxu1 %v2043_v16  ;;  %v2048_v21 = vld [vmem:[%s2395_s17 + $0x30] sm:$0xff]   ;;  %v2052_v25 = vld [vmem:[%s2395_s17 + $0x28] sm:$0xff]  }
  0x54   : > { %v2045_v18 = vld [vmem:[%s2395_s17 + $0xb8] sm:$0xff]   ;;  %1876 = vmatpush3.bf16.msra.mxu0 %v2044_v17  ;;  %v2049_v22 = vld [vmem:[%s2395_s17 + $0xb0] sm:$0xff]   ;;  %v2053_v26 = vld [vmem:[%s2395_s17 + $0xa8] sm:$0xff]   ;;  %1321 = vperm.xlu1 %2041, %v1303_v63  }
  0x55   : > { %1916 = vmatpush3.bf16.msra.mxu1 %v2045_v18  ;;  %1877 = vmatprep.subr.bf16.mxu0 %v2046_v19  ;;  %v2054_v27 = vld [vmem:[%s2395_s17 + $0x60] sm:$0xff]   ;;  %v2058_v31 = vld [vmem:[%s2395_s17 + $0x58] sm:$0xff]   ;;  %v2062_v35 = vld [vmem:[%s2395_s17 + $0x50] sm:$0xff]  }
  0x56   : > { %1917 = vmatprep.subr.bf16.mxu1 %v2047_v20  ;;  %v2055_v28 = vld [vmem:[%s2395_s17 + $0xe0] sm:$0xff]   ;;  %v2059_v32 = vld [vmem:[%s2395_s17 + $0xd8] sm:$0xff]   ;;  %v2063_v36 = vld [vmem:[%s2395_s17 + $0xd0] sm:$0xff]  }
  0x57   : > { %v2056_v29 = vld [vmem:[%s2395_s17 + $0x20] sm:$0xff]   ;;  %v2060_v33 = vld [vmem:[%s2395_s17 + $0x18] sm:$0xff]   ;;  %v2064_v37 = vld [vmem:[%s2395_s17 + $0x10] sm:$0xff]  }
  0x58   : > { %1878 = vmatpush3.bf16.msra.mxu0 %v2048_v21  ;;  %v2057_v30 = vld [vmem:[%s2395_s17 + $0xa0] sm:$0xff]   ;;  %v2061_v34 = vld [vmem:[%s2395_s17 + $0x98] sm:$0xff]   ;;  %v2065_v38 = vld [vmem:[%s2395_s17 + $0x90] sm:$0xff]  }
  0x59   : > { %1918 = vmatpush3.bf16.msra.mxu1 %v2049_v22  ;;  %1879 = vmatprep.subr.bf16.mxu0 %v2050_v23  ;;  %v2066_v39 = vld [vmem:[%s2395_s17 + $0x48] sm:$0xff]   ;;  %v2070_v43 = vld [vmem:[%s2395_s17 + $0x40] sm:$0xff]   ;;  %v2088_v53 = vld [vmem:[%s2395_s17 + $0x118] sm:$0xff]  }
  0x5a   : > { %1919 = vmatprep.subr.bf16.mxu1 %v2051_v24  ;;  %v2067_v40 = vld [vmem:[%s2395_s17 + $0xc8] sm:$0xff]   ;;  %v2071_v44 = vld [vmem:[%s2395_s17 + $0xc0] sm:$0xff]   ;;  %v2095_v58 = vld [vmem:[%s2395_s17 + $0x110] sm:$0xff]  }
  0x5b   : > { %v2068_v41 = vld [vmem:[%s2395_s17 + $0x8] sm:$0xff]   ;;  %v2074_v45 = vld [vmem:[%s2630_s1] ss:$20 sps:$4 sm:$0xff]   ;;  %v2087_v55 = vld [vmem:[%s2630_s1 + $0x30] ss:$20 sps:$4 sm:$0xff]  }
  0x5c   : > { %1880 = vmatpush3.bf16.msra.mxu0 %v2052_v25  ;;  %v2069_v42 = vld [vmem:[%s2395_s17 + $0x88] sm:$0xff]   ;;  %v2072_v46 = vld [vmem:[%s2395_s17] sm:$0xff]  }
  0x5d   : > { %1920 = vmatpush3.bf16.msra.mxu1 %v2053_v26  ;;  %1881 = vmatprep.subr.bf16.mxu0 %v2054_v27  ;;  %v2077_v47 = vld [vmem:[%s2630_s1 + $0x8] ss:$20 sps:$4 sm:$0xff]   ;;  %v2073_v48 = vld [vmem:[%s2395_s17 + $0x80] sm:$0xff]   ;;  %v2094_v61 = vld [vmem:[%s2630_s1 + $0x58] ss:$20 sps:$4 sm:$0xff]  }
  0x5e   : > { %1921 = vmatprep.subr.bf16.mxu1 %v2055_v28  ;;  %v2080_v49 = vld [vmem:[%s2395_s17 + $0x128] sm:$0xff]   ;;  %v2081_v50 = vld [vmem:[%s2395_s17 + $0x120] sm:$0xff]  }
  0x5f   : > { %v2082_v51 = vld [vmem:[%s2630_s1 + $0x2c] ss:$20 sps:$4 sm:$0xff]   ;;  %v2084_v52 = vld [vmem:[%s2630_s1 + $0x34] ss:$20 sps:$4 sm:$0xff]   ;;  %v2091_v57 = vld [vmem:[%s2630_s1 + $0x5c] ss:$20 sps:$4 sm:$0xff]  }
  0x60   : > { %1882 = vmatpush3.bf16.msra.mxu0 %v2056_v29  ;;  %v2086_v54 = vld [vmem:[%s2630_s1 + $0x28] ss:$20 sps:$4 sm:$0xff]   ;;  %v2093_v60 = vld [vmem:[%s2630_s1 + $0x50] ss:$20 sps:$4 sm:$0xff]   ;;  %v2101_v5 = vld [vmem:[%s2630_s1 + $0x78] ss:$20 sps:$4 sm:$0xff]  }
  0x61   : > { %1922 = vmatpush3.bf16.msra.mxu1 %v2057_v30  ;;  %1883 = vmatprep.subr.bf16.mxu0 %v2058_v31  ;;  %v2089_v56 = vld [vmem:[%s2630_s1 + $0x54] ss:$20 sps:$4 sm:$0xff]   ;;  %v2097_v62 = vld [vmem:[%s2630_s1 + $0x7c] ss:$20 sps:$4 sm:$0xff]   ;;  %v2099_v0 = vld [vmem:[%s2630_s1 + $0x84] ss:$20 sps:$4 sm:$0xff]  }
  0x62   : > { %1923 = vmatprep.subr.bf16.mxu1 %v2059_v32  ;;  %v2096_v59 = vld [vmem:[%s2395_s17 + $0x108] sm:$0xff]   ;;  %v1301_v1 = vld [vmem:[%s2631_s2] sm:$0xff]  ;;  %v1307_v12 = vld [vmem:[%s2631_s2 + $0x30] sm:$0xff] }
  0x63   : > { %v2103_v2 = vld [vmem:[%s2395_s17 + $0x100] sm:$0xff]   ;;  %1311 = vperm.xlu0 %2040, %v1301_v1   ;;  %v1304_v3 = vld [vmem:[%s2631_s2 + $0x18] sm:$0xff]  ;;  %v1302_v4 = vld [vmem:[%s2631_s2 + $0x8] sm:$0xff]  ;;  %s1766_s17 = sshll.u32 %s2386_s11, 6  ;;  %s2580_s11 = scalar_lea.vmem [#allocation4], %s1767_s26 }
  0x64   : > { %1884 = vmatpush3.bf16.msra.mxu0 %v2060_v33  ;;  %1326 = vperm.xlu1 %2041, %v1304_v3   ;;  %v2102_v6 = vld [vmem:[%s2630_s1 + $0x80] ss:$20 sps:$4 sm:$0xff]   ;;  %v2104_v7 = vld [vmem:[%s2630_s1 + $0x10] ss:$20 sps:$4 sm:$0xff]   ;;  %v1306_v8 = vld [vmem:[%s2631_s2 + $0x28] sm:$0xff]  ;;  %s2560_s25 = scalar_lea.vmem [#allocation3], %s1766_s17 }
  0x65   : > { %1924 = vmatpush3.bf16.msra.mxu1 %v2061_v34  ;;  %1885 = vmatprep.subr.bf16.mxu0 %v2062_v35  ;;  %v2105_v9 = vld [vmem:[%s2630_s1 + $0x60] ss:$20 sps:$4 sm:$0xff]   ;;  %v1308_v11 = vld [vmem:[%s2631_s2 + $0x38] sm:$0xff]  ;;  %v1358_v15 = vld [vmem:[%s2632_s3 + $0x8] sm:$0xff] }
  0x66   : > { %1925 = vmatprep.subr.bf16.mxu1 %v2063_v36  ;;  %v1305_v10 = vld [vmem:[%s2631_s2 + $0x20] sm:$0xff]  ;;  %v2106_v13 = vld [vmem:[%s2630_s1 + $0x38] ss:$20 sps:$4 sm:$0xff]   ;;  %v2107_v14 = vld [vmem:[%s2630_s1 + $0x88] ss:$20 sps:$4 sm:$0xff]  }
  0x67   : > { %1316 = vperm.xlu0 %2040, %v1302_v4   ;;  %v1357_v16 = vld [vmem:[%s2632_s3] sm:$0xff]  ;;  %v1360_v17 = vld [vmem:[%s2632_s3 + $0x18] sm:$0xff]  ;;  %v1359_v18 = vld [vmem:[%s2632_s3 + $0x10] sm:$0xff] }
  0x68   : > { %1886 = vmatpush3.bf16.msra.mxu0 %v2064_v37  ;;  %1336 = vperm.xlu1 %2041, %v1306_v8   ;;  %v1362_v19 = vld [vmem:[%s2632_s3 + $0x28] sm:$0xff]  ;;  %v1361_v20 = vld [vmem:[%s2632_s3 + $0x20] sm:$0xff]  ;;  %v1364_v21 = vld [vmem:[%s2632_s3 + $0x38] sm:$0xff] }
  0x69   : > { %1926 = vmatpush3.bf16.msra.mxu1 %v2065_v38  ;;  %1887 = vmatprep.subr.bf16.mxu0 %v2066_v39  ;;  %v1363_v22 = vld [vmem:[%s2632_s3 + $0x30] sm:$0xff] }
  0x6a   : > { %1927 = vmatprep.subr.bf16.mxu1 %v2067_v40 }
  0x6b   : > { %1331 = vperm.xlu0 %2040, %v1305_v10  }
  0x6c   : > { %1888 = vmatpush3.bf16.msra.mxu0 %v2068_v41  ;;  %1346 = vperm.xlu1 %2041, %v1308_v11  }
  0x6d   : > { %1928 = vmatpush3.bf16.msra.mxu1 %v2069_v42  ;;  %1889 = vmatprep.subr.bf16.mxu0 %v2070_v43 }
  0x6e   : > { %1929 = vmatprep.subr.bf16.mxu1 %v2071_v44 }
  0x6f   : > { %1341 = vperm.xlu0 %2040, %v1307_v12  }
  0x70   : > { %1890 = vmatpush3.bf16.msra.mxu0 %v2072_v46  ;;  %1372 = vperm.xlu1 %2041, %v1358_v15  }
  0x71   : > { %1930 = vmatpush3.bf16.msra.mxu1 %v2073_v48  ;;  %1965 = vmatprep.subr.bf16.mxu0 %v2080_v49 }
  0x72   : > { %1985 = vmatprep.subr.bf16.mxu1 %v2080_v49 }
  0x73   : > { %1131 = vmatmul.mubr.bf16.vlgmr.msra.gmra.mxu0 %v2074_v45  ;;  %1367 = vperm.xlu0 %2040, %v1357_v16  }
  0x74   : > { %1196 = vmatmul.mubr.bf16.vlgmr.msra.gmra.mxu1 %v2077_v47  ;;  %1966 = vmatpush3.bf16.msra.mxu0 %v2080_v49 }
  0x75   : > { %1991 = vmatpush3.bf16.msra.mxu1 %v2080_v49  ;;  %1967 = vmatprep.subr.bf16.mxu0 %v2081_v50 }
  0x76   : > { %1986 = vmatprep.subr.bf16.mxu1 %v2081_v50  ;;  %1138 = vmatprep.mubr.bf16.mxu0 %v2082_v51 }
  0x77   : > { %1203 = vmatprep.mubr.bf16.mxu1 %v2084_v52  ;;  %1382 = vperm.xlu1 %2041, %v1360_v17  }
  0x78   : > { %1968 = vmatpush3.bf16.msra.mxu0 %v2081_v50  ;;  %1377 = vperm.xlu0 %2040, %v1359_v18  }
  0x79   : > { %1992 = vmatpush3.bf16.msra.mxu1 %v2081_v50  ;;  %1969 = vmatprep.subr.bf16.mxu0 %v2088_v53 }
  0x7a   : > { %1987 = vmatprep.subr.bf16.mxu1 %v2088_v53 }
  0x7b   : > { %1139 = vmatmul.mubr.bf16.gmra.mxu0 %v2086_v54  ;;  %1392 = vperm.xlu1 %2041, %v1362_v19  }
  0x7c   : > { %1204 = vmatmul.mubr.bf16.gmra.mxu1 %v2087_v55  ;;  %1970 = vmatpush3.bf16.msra.mxu0 %v2088_v53 }
  0x7d   : > { %1993 = vmatpush3.bf16.msra.mxu1 %v2088_v53  ;;  %1146 = vmatprep.mubr.bf16.mxu0 %v2089_v56 }
  0x7e   : > { %1211 = vmatprep.mubr.bf16.mxu1 %v2091_v57  ;;  %1971 = vmatprep.subr.bf16.mxu0 %v2095_v58 }
  0x7f   : > { %1988 = vmatprep.subr.bf16.mxu1 %v2095_v58  ;;  %1387 = vperm.xlu0 %2040, %v1361_v20  }
  0x80   : > { %1972 = vmatpush3.bf16.msra.mxu0 %v2095_v58  ;;  %1402 = vperm.xlu1 %2041, %v1364_v21  }
  0x81   : > { %1994 = vmatpush3.bf16.msra.mxu1 %v2095_v58  ;;  %1973 = vmatprep.subr.bf16.mxu0 %v2096_v59 }
  0x82   : > { %1989 = vmatprep.subr.bf16.mxu1 %v2096_v59 }
  0x83   : > { %1147 = vmatmul.mubr.bf16.gmra.mxu0 %v2093_v60  ;;  %1397 = vperm.xlu0 %2040, %v1363_v22  }
  0x84   : > { %1212 = vmatmul.mubr.bf16.gmra.mxu1 %v2094_v61  ;;  %1154 = vmatprep.mubr.bf16.mxu0 %v2097_v62 }
  0x85   : > { %1219 = vmatprep.mubr.bf16.mxu1 %v2099_v0  ;;  %1974 = vmatpush3.bf16.msra.mxu0 %v2096_v59 }
  0x86   : > { %1995 = vmatpush3.bf16.msra.mxu1 %v2096_v59  ;;  %1975 = vmatprep.subr.bf16.mxu0 %v2103_v2 }
  0x87   : > { %1990 = vmatprep.subr.bf16.mxu1 %v2103_v2 }
  0x89   : > { %1976 = vmatpush3.bf16.msra.mxu0 %v2103_v2 }
  0x8a   : > { %1996 = vmatpush3.bf16.msra.mxu1 %v2103_v2 }
  0x8b   : > { %1155 = vmatmul.mubr.bf16.gmra.mxu0 %v2101_v5 }
  0x8c   : > { %1220 = vmatmul.mubr.bf16.gmra.mxu1 %v2102_v6  ;;  %1977 = vmatprep.mubr.msk.bf16.mxu0 %vm1085_vm0, %v2104_v7 }
  0x8d   : > { %1981 = vmatprep.mubr.msk.bf16.mxu1 %vm1085_vm0, %v2105_v9 }
  0x93   : > { %1978 = vmatmul.mubr.msk.bf16.vlgmr.msra.gmra.mxu0 %vm1085_vm0, %v2106_v13 }
  0x94   : > { %1982 = vmatmul.mubr.msk.bf16.vlgmr.msra.gmra.mxu1 %vm1085_vm0, %v2107_v14 }
  0xcf   : > { %v2543_v24 = vpop.permute.xlu1 %1321 }
  0xde   : > { %v2541_v23 = vpop.permute.xlu0 %1311 }
  0xdf   : > { %v2547_v31 = vpop.permute.xlu1 %1326 }
  0xe2   : > { %v2545_v28 = vpop.permute.xlu0 %1316 }
  0xe3   : > { %v2551_v39 = vpop.permute.xlu1 %1336 }
  0xe6   : > { %v2549_v36 = vpop.permute.xlu0 %1331 }
  0xe7   : > { %v2553_v47 = vpop.permute.xlu1 %1346 }
  0xea   : > { %v1342_v44 = vpop.permute.xlu0 %1341 }
  0xeb   : > { %v2557_v55 = vpop.permute.xlu1 %1372 }
  0xee   : > { %v2555_v52 = vpop.permute.xlu0 %1367 }
  0xf2   : > { %v1383_v5 = vpop.permute.xlu1 %1382 }
  0xf3   : > { %v1378_v60 = vpop.permute.xlu0 %1377 }
  0xfa   : > { %v1388_v20 = vpop.permute.xlu0 %1387 }
 0x133   : > { %v1891_v25 = vpop.f32.mrf.mxu0 }
 0x134   : > { %v1931_v26 = vpop.f32.mrf.mxu1 }
 0x135   : > { %v1892_v27 = vpop.f32.mrf.mxu0 }
 0x136   : > { %v1932_v29 = vpop.f32.mrf.mxu1  ;;  %v1893_v3 = vadd.f32 %v1892_v27, %v1891_v25 }
 0x137   : > { %v1894_v30 = vpop.f32.mrf.mxu0  ;;  %v1933_v4 = vadd.f32 %v1932_v29, %v1931_v26 }
 0x138   : > { %v1934_v32 = vpop.f32.mrf.mxu1 }
 0x139   : > { %v1895_v33 = vpop.f32.mrf.mxu0  ;;  %v1198_v25 = vadd.f32 %v1933_v4, %v1893_v3 }
 0x13a   : > { %v1935_v34 = vpop.f32.mrf.mxu1  ;;  %v1896_v18 = vadd.f32 %v1895_v33, %v1894_v30 }
 0x13b   : > { %v1897_v35 = vpop.f32.mrf.mxu0  ;;  %v1936_v19 = vadd.f32 %v1935_v34, %v1934_v32 }
 0x13c   : > { %v1937_v37 = vpop.f32.mrf.mxu1 }
 0x13d   : > { %v1898_v38 = vpop.f32.mrf.mxu0 }
 0x13e   : > { %v1938_v40 = vpop.f32.mrf.mxu1  ;;  %v1899_v61 = vadd.f32 %v1898_v38, %v1897_v35  ;;  %v1393_v38 = vpop.permute.xlu1 %1392 }
 0x13f   : > { %v1900_v41 = vpop.f32.mrf.mxu0  ;;  %v1939_v62 = vadd.f32 %v1938_v40, %v1937_v37 }
 0x140   : > { %v1940_v42 = vpop.f32.mrf.mxu1 }
 0x141   : > { %v1901_v43 = vpop.f32.mrf.mxu0  ;;  %v1206_v13 = vadd.f32 %v1939_v62, %v1899_v61 }
 0x142   : > { %v1941_v45 = vpop.f32.mrf.mxu1  ;;  %v1902_v10 = vadd.f32 %v1901_v43, %v1900_v41  ;;  %v1403_v62 = vpop.permute.xlu1 %1402 }
 0x143   : > { %v1903_v46 = vpop.f32.mrf.mxu0  ;;  %v1942_v11 = vadd.f32 %v1941_v45, %v1940_v42 }
 0x144   : > { %v1943_v48 = vpop.f32.mrf.mxu1 }
 0x145   : > { %v1904_v49 = vpop.f32.mrf.mxu0  ;;  %v1209_v34 = vadd.f32 %v1942_v11, %v1902_v10 }
 0x146   : > { %v1944_v50 = vpop.f32.mrf.mxu1  ;;  %v1905_v7 = vadd.f32 %v1904_v49, %v1903_v46  ;;  %v1201_v49 = vadd.f32 %v1936_v19, %v1896_v18 }
 0x147   : > { %v1906_v51 = vpop.f32.mrf.mxu0  ;;  %v1945_v8 = vadd.f32 %v1944_v50, %v1943_v48 }
 0x148   : > { %v1946_v53 = vpop.f32.mrf.mxu1 }
 0x149   : > { %v1907_v54 = vpop.f32.mrf.mxu0  ;;  %v1214_v37 = vadd.f32 %v1945_v8, %v1905_v7 }
 0x14a   : > { %v1947_v56 = vpop.f32.mrf.mxu1  ;;  %v1908_v26 = vadd.f32 %v1907_v54, %v1906_v51 }
 0x14b   : > { %v1909_v57 = vpop.f32.mrf.mxu0  ;;  %v1948_v27 = vadd.f32 %v1947_v56, %v1946_v53 }
 0x14c   : > { %v1949_v58 = vpop.f32.mrf.mxu1 }
 0x14d   : > { %v1910_v59 = vpop.f32.mrf.mxu0  ;;  %v1217_v53 = vadd.f32 %v1948_v27, %v1908_v26 }
 0x14e   : > { %v1950_v63 = vpop.f32.mrf.mxu1  ;;  %v1911_v0 = vadd.f32 %v1910_v59, %v1909_v57 }
 0x14f   : > { %v1951_v1 = vadd.f32 %v1950_v63, %v1949_v58  ;;  %v1912_v2 = vpop.f32.mrf.mxu0 }
 0x150   : > { %v1952_v6 = vpop.f32.mrf.mxu1 }
 0x151   : > { %v1913_v9 = vpop.f32.mrf.mxu0  ;;  %v1222_v17 = vadd.f32 %v1951_v1, %v1911_v0 }
 0x152   : > { %v1953_v12 = vpop.f32.mrf.mxu1  ;;  %v1914_v14 = vadd.f32 %v1913_v9, %v1912_v2 }
 0x153   : > { %v1954_v15 = vadd.f32 %v1953_v12, %v1952_v6  ;;  %v1979_v16 = vpop.f32.mrf.mxu0 }
 0x154   : > { %v1271_v21 = vadd.f32 %v1979_v16, %v1206_v13  ;;  %v1983_v22 = vpop.f32.mrf.mxu1 }
 0x155   : > { %v1287_v29 = vadd.f32 %v1983_v22, %v1222_v17  ;;  %v1262_v35 = vpop.f32.mrf.mxu0  ;;  %v1225_v43 = vadd.f32 %v1954_v15, %v1914_v14 }
 0x156   : > { %1295 = vst [vmem:[%s2560_s25 + $0x10] sm:$0xff] %v1271_v21  ;;  %v1351_v30 = vmul.f32 %v2543_v24, %v1271_v21  ;;  %v1263_v32 = vadd.f32 %v1262_v35, %v1198_v25  ;;  %v1278_v33 = vpop.f32.mrf.mxu1 }
 0x157   : > { %1299 = vst [vmem:[%s2560_s25 + $0x30] sm:$0xff] %v1287_v29  ;;  %v1355_v40 = vmul.f32 %v1342_v44, %v1287_v29  ;;  %v1279_v41 = vadd.f32 %v1278_v33, %v1214_v37  ;;  %v1980_v42 = vpop.f32.mrf.mxu0  ;;  %v1398_v44 = vpop.permute.xlu0 %1397 }
 0x158   : > { %1293 = vst [vmem:[%s2560_s25] sm:$0xff] %v1263_v32  ;;  %v1349_v45 = vmul.f32 %v2541_v23, %v1263_v32  ;;  %v1274_v46 = vadd.f32 %v1980_v42, %v1209_v34  ;;  %v1984_v48 = vpop.f32.mrf.mxu1  ;;  %v1407_v54 = vadd.f32 %v1378_v60, %v1351_v30 }
 0x159   : > { %1297 = vst [vmem:[%s2560_s25 + $0x20] sm:$0xff] %v1279_v41  ;;  %v1353_v50 = vmul.f32 %v2549_v36, %v1279_v41  ;;  %v1290_v24 = vadd.f32 %v1984_v48, %v1225_v43  ;;  %v1265_v51 = vpop.f32.mrf.mxu0  ;;  %v1411_v58 = vadd.f32 %v1398_v44, %v1355_v40 }
 0x15a   : > { %1296 = vst [vmem:[%s2560_s25 + $0x18] sm:$0xff] %v1274_v46  ;;  %v1352_v56 = vmul.f32 %v2547_v31, %v1274_v46  ;;  %v1266_v57 = vadd.f32 %v1265_v51, %v1201_v49  ;;  %v1281_v23 = vpop.f32.mrf.mxu1  ;;  %v1405_v36 = vadd.f32 %v2555_v52, %v1349_v45  ;;  %v1415_v2 = vmax.f32 %v1407_v54, 0.0 }
 0x15b   : > { %1300 = vst [vmem:[%s2560_s25 + $0x38] sm:$0xff] %v1290_v24  ;;  %v1356_v59 = vmul.f32 %v2553_v47, %v1290_v24  ;;  %v1282_v61 = vadd.f32 %v1281_v23, %v1217_v53  ;;  %v1409_v60 = vadd.f32 %v1388_v20, %v1353_v50  ;;  %v1419_v6 = vmax.f32 %v1411_v58, 0.0 }
 0x15c   : > { %v1408_v63 = vadd.f32 %v1383_v5, %v1352_v56  ;;  %1294 = vst [vmem:[%s2560_s25 + $0x8] sm:$0xff] %v1266_v57  ;;  %v1350_v0 = vmul.f32 %v2545_v28, %v1266_v57  ;;  %v1413_v8 = vmax.f32 %v1405_v36, 0.0 }
 0x15d   : > { %v1412_v1 = vadd.f32 %v1403_v62, %v1356_v59  ;;  %1298 = vst [vmem:[%s2560_s25 + $0x28] sm:$0xff] %v1282_v61  ;;  %v1354_v31 = vmul.f32 %v2551_v39, %v1282_v61  ;;  %v1417_v10 = vmax.f32 %v1409_v60, 0.0  ;;  %v1523_v13 = vld [vmem:[%s2560_s25 + $0x10] sm:$0xff] (%p2214_p6) }
 0x15e   : > { %v1416_v3 = vmax.f32 %v1408_v63, 0.0  ;;  %v1406_v4 = vadd.f32 %v2557_v55, %v1350_v0  ;;  %1524 = vst [vmem:[%s1476_s7 + $0x40] sm:$0xff] (%p2214_p6), %v1523_v13  ;;  %v1531_v17 = vld [vmem:[%s2560_s25 + $0x30] sm:$0xff] (%p2214_p6) }
 0x15f   : > { %v1420_v47 = vmax.f32 %v1412_v1, 0.0  ;;  %v1410_v7 = vadd.f32 %v1393_v38, %v1354_v31  ;;  %v1519_v55 = vld [vmem:[%s2560_s25] sm:$0xff] (%p2214_p6)  ;;  %1532 = vst [vmem:[%s1476_s7 + $0xc0] sm:$0xff] (%p2214_p6), %v1531_v17 }
 0x160   : > { %v1860_v9 = vpack.c.bf16 %v1416_v3, %v1415_v2  ;;  %v1414_v52 = vmax.f32 %v1406_v4, 0.0  ;;  %v1527_v15 = vld [vmem:[%s2560_s25 + $0x20] sm:$0xff] (%p2214_p6)  ;;  %1520 = vst [vmem:[%s1476_s7] sm:$0xff] (%p2214_p6), %v1519_v55 }
 0x161   : > { %v1870_v5 = vpack.c.bf16 %v1420_v47, %v1419_v6  ;;  %v1418_v11 = vmax.f32 %v1410_v7, 0.0  ;;  %1471 = sbr.rel (!%p2214_p6) target bundleno = 358 (0x166), region = 81  ;;  %v1525_v14 = vld [vmem:[%s2560_s25 + $0x18] sm:$0xff] (%p2214_p6)  ;;  %1528 = vst [vmem:[%s1476_s7 + $0x80] sm:$0xff] (%p2214_p6), %v1527_v15 }
 0x162   : > { %1872 = vst [vmem:[%s2580_s11 + $0x8] sm:$0xff] %v1860_v9   ;;  %v1855_v28 = vpack.c.bf16 %v1414_v52, %v1413_v8  ;;  %1526 = vst [vmem:[%s1476_s7 + $0x60] sm:$0xff] (%p2214_p6), %v1525_v14  ;;  %v1533_v18 = vld [vmem:[%s2560_s25 + $0x38] sm:$0xff] (%p2214_p6) }
 0x163   : > { %1874 = vst [vmem:[%s2580_s11 + $0x18] sm:$0xff] %v1870_v5   ;;  %v1865_v39 = vpack.c.bf16 %v1418_v11, %v1417_v10  ;;  %v1521_v12 = vld [vmem:[%s2560_s25 + $0x8] sm:$0xff] (%p2214_p6)  ;;  %1534 = vst [vmem:[%s1476_s7 + $0xe0] sm:$0xff] (%p2214_p6), %v1533_v18 }
 0x164   : > { %1856 = vst [vmem:[%s2580_s11] sm:$0xff] %v1855_v28   ;;  %v1529_v16 = vld [vmem:[%s2560_s25 + $0x28] sm:$0xff] (%p2214_p6)  ;;  %1522 = vst [vmem:[%s1476_s7 + $0x20] sm:$0xff] (%p2214_p6), %v1521_v12 }
 0x165   : > { %1873 = vst [vmem:[%s2580_s11 + $0x10] sm:$0xff] %v1865_v39   ;;  %1530 = vst [vmem:[%s1476_s7 + $0xa0] sm:$0xff] (%p2214_p6), %v1529_v16 }
 0x166 PF: > { %1540 = sbr.rel (!%p2214_p6) target bundleno = 367 (0x16f), region = 119  ;;  %s1841_s8 = sshll.u32 (%p2214_p6), %s2138_s20, 2 }
 0x167   : > { %s1545_s12 = scalar_lea.vmem (%p2214_p6), %s2634_s5, %s1841_s8 }
 0x169   : > { %v1566_v21 = vld [vmem:[%s2580_s11 + $0x8] sm:$0xf] (%p2214_p6)  ;;  %v1568_v22 = vld [vmem:[%s2580_s11 + $0xc] sm:$0xf] (%p2214_p6) }
 0x16a   : > { %1567 = vst [vmem:[%s1545_s12 + $0x20] sm:$0xf] (%p2214_p6), %v1566_v21  ;;  %1569 = vst [vmem:[%s1545_s12 + $0x30] sm:$0xf] (%p2214_p6), %v1568_v22  ;;  %v1574_v27 = vld [vmem:[%s2580_s11 + $0x18] sm:$0xf] (%p2214_p6) }
 0x16b   : > { %v1562_v19 = vld [vmem:[%s2580_s11] sm:$0xf]  ;;  %v1564_v20 = vld [vmem:[%s2580_s11 + $0x4] sm:$0xf]  ;;  %v1576_v29 = vld [vmem:[%s2580_s11 + $0x1c] sm:$0xf] }
 0x16c   : > { %v1570_v25 = vld [vmem:[%s2580_s11 + $0x10] sm:$0xf]  ;;  %1563 = vst [vmem:[%s1545_s12] sm:$0xf] %v1562_v19  ;;  %1565 = vst [vmem:[%s1545_s12 + $0x10] sm:$0xf] %v1564_v20 }
 0x16d   : > { %1571 = vst [vmem:[%s1545_s12 + $0x40] sm:$0xf] %v1570_v25  ;;  %v1572_v26 = vld [vmem:[%s2580_s11 + $0x14] sm:$0xf]  ;;  %1575 = vst [vmem:[%s1545_s12 + $0x60] sm:$0xf] %v1574_v27 }
 0x16e   : > { %1573 = vst [vmem:[%s1545_s12 + $0x50] sm:$0xf] %v1572_v26  ;;  %1577 = vst [vmem:[%s1545_s12 + $0x70] sm:$0xf] %v1576_v29 }
 0x16f PF: > { %s16_s22 = sadd.s32 1, %s2146_s22   ;;  %s2636_s18 = smov %s2134_s19 }
 0x170   : > { %p13_p11 = scmp.ge.s32.totalorder %s16_s22, 6   ;;  %s2637_s19 = smov %s2219_s28 }
 0x171   : > { %s2638_s20 = smov %s2142_s21  ;;  %s2639_s21 = smov %s2641_s23 }
 0x172   :  { %15 = sbr.rel (!%p13_p11) target bundleno = 3 (0x3), region = 212 }

// kernel: preact_resnet_forward.45
= control target key start
LH: loop header
LB: loop body
LE: loop exit
PB: predicated region body
PF: predicated region fallthrough
CT: control target
= control target key end

     0   :  { %s1977_s15 = smov 0   ;;  %s1979_s16 = smov 0   ;;  %s2378_s0 = inlined_call_operand.vmem [shape: bf16[576,512], index: 0, kind: input, shape index: {}]   ;;  %s2379_s1 = inlined_call_operand.vmem [shape: bf16[64,576], index: 1, kind: input, shape index: {}]   ;;  %s2380_s2 = inlined_call_operand.vmem [shape: f32[64,1], index: 2, kind: input, shape index: {}]   ;;  %s2381_s3 = inlined_call_operand.vmem [shape: f32[64,1], index: 3, kind: input, shape index: {}]   ;;  %s2382_s4 = inlined_call_operand.vmem [shape: bf16[64,512], index: 4, kind: output, shape index: {}]  }
   0x1   :  { %s1981_s17 = smov 0   ;;  %s1983_s18 = smov 0  }
   0x2   :  { %s1985_s19 = smov 0  }
   0x3 LB: > { %s26_s20 = sadd.s32 1, %s1945_s18  ;;  %s1577_s21 = sadd.s32 4294967295, %s1949_s19   ;;  %s1949_s19 = sphi %s1985_s19, %s14_s19   ;;  %s1945_s18 = sphi %s1983_s18, %s2387_s18   ;;  %s1941_s17 = sphi %s1981_s17, %s2386_s17   ;;  %s1937_s16 = sphi %s1979_s16, %s2385_s16   ;;  %s1933_s15 = sphi %s1977_s15, %s2384_s15  }
   0x4   : > { %p28_p0 = scmp.ge.s32.totalorder %s26_s20, 4  ;;  %p40_p1 = scmp.ne.s32.totalorder %s1937_s16, %s1933_s15 }
   0x5   : > { %p41_p2 = scmp.eq.s32.totalorder %s1949_s19, 0  ;;  %p150_p4 = scmp.eq.s32.totalorder %s1577_s21, 3 }
   0x6   : > { %s2389_s20 = smov (%p28_p0, %s26_s20), 0  ;;  %s33_s23 = sadd.s32 1, %s1937_s16 }
   0x7   : > { %p42_p3 = por %p41_p2, %p40_p1  ;;  %s30_s22 = ssub.s32 %s1945_s18, %s2389_s20 }
   0x8   : > { %p31_p5 = scmp.eq.s32.totalorder %s30_s22, 0  ;;  %p2012_p6 = por %p150_p4, %p40_p1 }
   0x9   : > { %p1583_p7 = scmp.ge.s32.totalorder %s1949_s19, 4 }
   0xa   : > { %s2017_s25 = scalar_select %p31_p5, %s1937_s16, %s33_s23  }
   0xb   : > { %200 = sbr.rel (%p1583_p7) target bundleno = 68 (0x44), region = 28 }
  0x10   : > { %203 = sbr.rel (!%p42_p3) target bundleno = 68 (0x44), region = 32  ;;  %s205_s26 = sand.u32 (%p42_p3), 1, %s1937_s16  }
  0x11   : > { %s1584_s27 = sshll.u32 (%p42_p3), %s1945_s18, 2  ;;  %s1802_s28 = smul.u32 (%p42_p3), 288, %s205_s26 }
  0x12   : > { %s2025_s5 = scalar_lea.vmem (%p42_p3), %s2378_s0, %s1584_s27 }
  0x13   : > { %v226_v0 = vld [vmem:[%s2025_s5] sm:$0xf] (%p42_p3)  ;;  %v228_v1 = vld [vmem:[%s2025_s5 + $0x10] sm:$0xf] (%p42_p3)  ;;  %s2032_s6 = scalar_lea.vmem (%p42_p3), [#allocation2], %s1802_s28 }
  0x14   : > { %v230_v2 = vld [vmem:[%s2025_s5 + $0x20] sm:$0xf] (%p42_p3)  ;;  %v232_v3 = vld [vmem:[%s2025_s5 + $0x30] sm:$0xf] (%p42_p3)  ;;  %227 = vst [vmem:[%s2032_s6] sm:$0xf] (%p42_p3), %v226_v0 }
  0x15   : > { %v234_v4 = vld [vmem:[%s2025_s5 + $0x40] sm:$0xf]  ;;  %229 = vst [vmem:[%s2032_s6 + $0x4] sm:$0xf] %v228_v1  ;;  %231 = vst [vmem:[%s2032_s6 + $0x8] sm:$0xf] %v230_v2 }
  0x16   : > { %233 = vst [vmem:[%s2032_s6 + $0xc] sm:$0xf] %v232_v3  ;;  %235 = vst [vmem:[%s2032_s6 + $0x10] sm:$0xf] %v234_v4  ;;  %v236_v5 = vld [vmem:[%s2025_s5 + $0x50] sm:$0xf] }
  0x17   : > { %v238_v6 = vld [vmem:[%s2025_s5 + $0x60] sm:$0xf]  ;;  %v240_v7 = vld [vmem:[%s2025_s5 + $0x70] sm:$0xf]  ;;  %237 = vst [vmem:[%s2032_s6 + $0x14] sm:$0xf] %v236_v5 }
  0x18   : > { %239 = vst [vmem:[%s2032_s6 + $0x18] sm:$0xf] %v238_v6  ;;  %241 = vst [vmem:[%s2032_s6 + $0x1c] sm:$0xf] %v240_v7  ;;  %v242_v8 = vld [vmem:[%s2025_s5 + $0x80] sm:$0xf] }
  0x19   : > { %v244_v9 = vld [vmem:[%s2025_s5 + $0x90] sm:$0xf]  ;;  %v246_v10 = vld [vmem:[%s2025_s5 + $0xa0] sm:$0xf]  ;;  %243 = vst [vmem:[%s2032_s6 + $0x20] sm:$0xf] %v242_v8 }
  0x1a   : > { %245 = vst [vmem:[%s2032_s6 + $0x24] sm:$0xf] %v244_v9  ;;  %247 = vst [vmem:[%s2032_s6 + $0x28] sm:$0xf] %v246_v10  ;;  %v248_v11 = vld [vmem:[%s2025_s5 + $0xb0] sm:$0xf] }
  0x1b   : > { %v250_v12 = vld [vmem:[%s2025_s5 + $0xc0] sm:$0xf]  ;;  %v252_v13 = vld [vmem:[%s2025_s5 + $0xd0] sm:$0xf]  ;;  %249 = vst [vmem:[%s2032_s6 + $0x2c] sm:$0xf] %v248_v11 }
  0x1c   : > { %251 = vst [vmem:[%s2032_s6 + $0x30] sm:$0xf] %v250_v12  ;;  %253 = vst [vmem:[%s2032_s6 + $0x34] sm:$0xf] %v252_v13  ;;  %v254_v14 = vld [vmem:[%s2025_s5 + $0xe0] sm:$0xf] }
  0x1d   : > { %v256_v15 = vld [vmem:[%s2025_s5 + $0xf0] sm:$0xf]  ;;  %v258_v16 = vld [vmem:[%s2025_s5 + $0x100] sm:$0xf]  ;;  %255 = vst [vmem:[%s2032_s6 + $0x38] sm:$0xf] %v254_v14 }
  0x1e   : > { %257 = vst [vmem:[%s2032_s6 + $0x3c] sm:$0xf] %v256_v15  ;;  %259 = vst [vmem:[%s2032_s6 + $0x40] sm:$0xf] %v258_v16  ;;  %v260_v17 = vld [vmem:[%s2025_s5 + $0x110] sm:$0xf] }
  0x1f   : > { %v262_v18 = vld [vmem:[%s2025_s5 + $0x120] sm:$0xf]  ;;  %v264_v19 = vld [vmem:[%s2025_s5 + $0x130] sm:$0xf]  ;;  %261 = vst [vmem:[%s2032_s6 + $0x44] sm:$0xf] %v260_v17 }
  0x20   : > { %263 = vst [vmem:[%s2032_s6 + $0x48] sm:$0xf] %v262_v18  ;;  %265 = vst [vmem:[%s2032_s6 + $0x4c] sm:$0xf] %v264_v19  ;;  %v266_v20 = vld [vmem:[%s2025_s5 + $0x140] sm:$0xf] }
  0x21   : > { %v268_v21 = vld [vmem:[%s2025_s5 + $0x150] sm:$0xf]  ;;  %v270_v22 = vld [vmem:[%s2025_s5 + $0x160] sm:$0xf]  ;;  %267 = vst [vmem:[%s2032_s6 + $0x50] sm:$0xf] %v266_v20 }
  0x22   : > { %269 = vst [vmem:[%s2032_s6 + $0x54] sm:$0xf] %v268_v21  ;;  %271 = vst [vmem:[%s2032_s6 + $0x58] sm:$0xf] %v270_v22  ;;  %v272_v23 = vld [vmem:[%s2025_s5 + $0x170] sm:$0xf] }
  0x23   : > { %v274_v24 = vld [vmem:[%s2025_s5 + $0x180] sm:$0xf]  ;;  %v276_v25 = vld [vmem:[%s2025_s5 + $0x190] sm:$0xf]  ;;  %273 = vst [vmem:[%s2032_s6 + $0x5c] sm:$0xf] %v272_v23 }
  0x24   : > { %275 = vst [vmem:[%s2032_s6 + $0x60] sm:$0xf] %v274_v24  ;;  %277 = vst [vmem:[%s2032_s6 + $0x64] sm:$0xf] %v276_v25  ;;  %v278_v26 = vld [vmem:[%s2025_s5 + $0x1a0] sm:$0xf] }
  0x25   : > { %v280_v27 = vld [vmem:[%s2025_s5 + $0x1b0] sm:$0xf]  ;;  %v282_v28 = vld [vmem:[%s2025_s5 + $0x1c0] sm:$0xf]  ;;  %279 = vst [vmem:[%s2032_s6 + $0x68] sm:$0xf] %v278_v26 }
  0x26   : > { %281 = vst [vmem:[%s2032_s6 + $0x6c] sm:$0xf] %v280_v27  ;;  %283 = vst [vmem:[%s2032_s6 + $0x70] sm:$0xf] %v282_v28  ;;  %v284_v29 = vld [vmem:[%s2025_s5 + $0x1d0] sm:$0xf] }
  0x27   : > { %v286_v30 = vld [vmem:[%s2025_s5 + $0x1e0] sm:$0xf]  ;;  %v288_v31 = vld [vmem:[%s2025_s5 + $0x1f0] sm:$0xf]  ;;  %285 = vst [vmem:[%s2032_s6 + $0x74] sm:$0xf] %v284_v29 }
  0x28   : > { %287 = vst [vmem:[%s2032_s6 + $0x78] sm:$0xf] %v286_v30  ;;  %289 = vst [vmem:[%s2032_s6 + $0x7c] sm:$0xf] %v288_v31  ;;  %v290_v32 = vld [vmem:[%s2025_s5 + $0x200] sm:$0xf] }
  0x29   : > { %v292_v33 = vld [vmem:[%s2025_s5 + $0x210] sm:$0xf]  ;;  %v294_v34 = vld [vmem:[%s2025_s5 + $0x220] sm:$0xf]  ;;  %291 = vst [vmem:[%s2032_s6 + $0x80] sm:$0xf] %v290_v32 }
  0x2a   : > { %293 = vst [vmem:[%s2032_s6 + $0x84] sm:$0xf] %v292_v33  ;;  %295 = vst [vmem:[%s2032_s6 + $0x88] sm:$0xf] %v294_v34  ;;  %v296_v35 = vld [vmem:[%s2025_s5 + $0x230] sm:$0xf] }
  0x2b   : > { %v298_v36 = vld [vmem:[%s2025_s5 + $0x240] sm:$0xf]  ;;  %v300_v37 = vld [vmem:[%s2025_s5 + $0x250] sm:$0xf]  ;;  %297 = vst [vmem:[%s2032_s6 + $0x8c] sm:$0xf] %v296_v35 }
  0x2c   : > { %299 = vst [vmem:[%s2032_s6 + $0x90] sm:$0xf] %v298_v36  ;;  %301 = vst [vmem:[%s2032_s6 + $0x94] sm:$0xf] %v300_v37  ;;  %v302_v38 = vld [vmem:[%s2025_s5 + $0x260] sm:$0xf] }
  0x2d   : > { %v304_v39 = vld [vmem:[%s2025_s5 + $0x270] sm:$0xf]  ;;  %v306_v40 = vld [vmem:[%s2025_s5 + $0x280] sm:$0xf]  ;;  %303 = vst [vmem:[%s2032_s6 + $0x98] sm:$0xf] %v302_v38 }
  0x2e   : > { %305 = vst [vmem:[%s2032_s6 + $0x9c] sm:$0xf] %v304_v39  ;;  %307 = vst [vmem:[%s2032_s6 + $0xa0] sm:$0xf] %v306_v40  ;;  %v308_v41 = vld [vmem:[%s2025_s5 + $0x290] sm:$0xf] }
  0x2f   : > { %v310_v42 = vld [vmem:[%s2025_s5 + $0x2a0] sm:$0xf]  ;;  %v312_v43 = vld [vmem:[%s2025_s5 + $0x2b0] sm:$0xf]  ;;  %309 = vst [vmem:[%s2032_s6 + $0xa4] sm:$0xf] %v308_v41 }
  0x30   : > { %311 = vst [vmem:[%s2032_s6 + $0xa8] sm:$0xf] %v310_v42  ;;  %313 = vst [vmem:[%s2032_s6 + $0xac] sm:$0xf] %v312_v43  ;;  %v314_v44 = vld [vmem:[%s2025_s5 + $0x2c0] sm:$0xf] }
  0x31   : > { %v316_v45 = vld [vmem:[%s2025_s5 + $0x2d0] sm:$0xf]  ;;  %v318_v46 = vld [vmem:[%s2025_s5 + $0x2e0] sm:$0xf]  ;;  %315 = vst [vmem:[%s2032_s6 + $0xb0] sm:$0xf] %v314_v44 }
  0x32   : > { %317 = vst [vmem:[%s2032_s6 + $0xb4] sm:$0xf] %v316_v45  ;;  %319 = vst [vmem:[%s2032_s6 + $0xb8] sm:$0xf] %v318_v46  ;;  %v320_v47 = vld [vmem:[%s2025_s5 + $0x2f0] sm:$0xf] }
  0x33   : > { %v322_v48 = vld [vmem:[%s2025_s5 + $0x300] sm:$0xf]  ;;  %v324_v49 = vld [vmem:[%s2025_s5 + $0x310] sm:$0xf]  ;;  %321 = vst [vmem:[%s2032_s6 + $0xbc] sm:$0xf] %v320_v47 }
  0x34   : > { %323 = vst [vmem:[%s2032_s6 + $0xc0] sm:$0xf] %v322_v48  ;;  %325 = vst [vmem:[%s2032_s6 + $0xc4] sm:$0xf] %v324_v49  ;;  %v326_v50 = vld [vmem:[%s2025_s5 + $0x320] sm:$0xf] }
  0x35   : > { %v328_v51 = vld [vmem:[%s2025_s5 + $0x330] sm:$0xf]  ;;  %v330_v52 = vld [vmem:[%s2025_s5 + $0x340] sm:$0xf]  ;;  %327 = vst [vmem:[%s2032_s6 + $0xc8] sm:$0xf] %v326_v50 }
  0x36   : > { %329 = vst [vmem:[%s2032_s6 + $0xcc] sm:$0xf] %v328_v51  ;;  %331 = vst [vmem:[%s2032_s6 + $0xd0] sm:$0xf] %v330_v52  ;;  %v332_v53 = vld [vmem:[%s2025_s5 + $0x350] sm:$0xf] }
  0x37   : > { %v334_v54 = vld [vmem:[%s2025_s5 + $0x360] sm:$0xf]  ;;  %v336_v55 = vld [vmem:[%s2025_s5 + $0x370] sm:$0xf]  ;;  %333 = vst [vmem:[%s2032_s6 + $0xd4] sm:$0xf] %v332_v53 }
  0x38   : > { %335 = vst [vmem:[%s2032_s6 + $0xd8] sm:$0xf] %v334_v54  ;;  %337 = vst [vmem:[%s2032_s6 + $0xdc] sm:$0xf] %v336_v55  ;;  %v338_v56 = vld [vmem:[%s2025_s5 + $0x380] sm:$0xf] }
  0x39   : > { %v340_v57 = vld [vmem:[%s2025_s5 + $0x390] sm:$0xf]  ;;  %v342_v58 = vld [vmem:[%s2025_s5 + $0x3a0] sm:$0xf]  ;;  %339 = vst [vmem:[%s2032_s6 + $0xe0] sm:$0xf] %v338_v56 }
  0x3a   : > { %341 = vst [vmem:[%s2032_s6 + $0xe4] sm:$0xf] %v340_v57  ;;  %343 = vst [vmem:[%s2032_s6 + $0xe8] sm:$0xf] %v342_v58  ;;  %v344_v59 = vld [vmem:[%s2025_s5 + $0x3b0] sm:$0xf] }
  0x3b   : > { %v346_v60 = vld [vmem:[%s2025_s5 + $0x3c0] sm:$0xf]  ;;  %v348_v61 = vld [vmem:[%s2025_s5 + $0x3d0] sm:$0xf]  ;;  %345 = vst [vmem:[%s2032_s6 + $0xec] sm:$0xf] %v344_v59 }
  0x3c   : > { %347 = vst [vmem:[%s2032_s6 + $0xf0] sm:$0xf] %v346_v60  ;;  %349 = vst [vmem:[%s2032_s6 + $0xf4] sm:$0xf] %v348_v61  ;;  %v350_v62 = vld [vmem:[%s2025_s5 + $0x3e0] sm:$0xf] }
  0x3d   : > { %v352_v63 = vld [vmem:[%s2025_s5 + $0x3f0] sm:$0xf]  ;;  %v354_v0 = vld [vmem:[%s2025_s5 + $0x400] sm:$0xf]  ;;  %351 = vst [vmem:[%s2032_s6 + $0xf8] sm:$0xf] %v350_v62 }
  0x3e   : > { %353 = vst [vmem:[%s2032_s6 + $0xfc] sm:$0xf] %v352_v63  ;;  %355 = vst [vmem:[%s2032_s6 + $0x100] sm:$0xf] %v354_v0  ;;  %v356_v1 = vld [vmem:[%s2025_s5 + $0x410] sm:$0xf] }
  0x3f   : > { %v358_v2 = vld [vmem:[%s2025_s5 + $0x420] sm:$0xf]  ;;  %v360_v3 = vld [vmem:[%s2025_s5 + $0x430] sm:$0xf]  ;;  %357 = vst [vmem:[%s2032_s6 + $0x104] sm:$0xf] %v356_v1 }
  0x40   : > { %359 = vst [vmem:[%s2032_s6 + $0x108] sm:$0xf] %v358_v2  ;;  %361 = vst [vmem:[%s2032_s6 + $0x10c] sm:$0xf] %v360_v3  ;;  %v362_v4 = vld [vmem:[%s2025_s5 + $0x440] sm:$0xf] }
  0x41   : > { %v364_v5 = vld [vmem:[%s2025_s5 + $0x450] sm:$0xf]  ;;  %v366_v6 = vld [vmem:[%s2025_s5 + $0x460] sm:$0xf]  ;;  %363 = vst [vmem:[%s2032_s6 + $0x110] sm:$0xf] %v362_v4 }
  0x42   : > { %365 = vst [vmem:[%s2032_s6 + $0x114] sm:$0xf] %v364_v5  ;;  %367 = vst [vmem:[%s2032_s6 + $0x118] sm:$0xf] %v366_v6  ;;  %v368_v7 = vld [vmem:[%s2025_s5 + $0x470] sm:$0xf] }
  0x43   : > { %369 = vst [vmem:[%s2032_s6 + $0x11c] sm:$0xf] %v368_v7 }
  0x44 PF: > { %p1585_p8 = scmp.ge.s32.totalorder %s1949_s19, 1  ;;  %p536_p9 = scmp.lt.s32.totalorder %s1949_s19, 5 }
  0x46   : > { %p537_p10 = pnand %p1585_p8, %p536_p9 }
  0x47   : > { %s543_s7 = sand.u32 (!%p537_p10), 1, %s1933_s15  }
  0x48   : > { %540 = sbr.rel (%p537_p10) target bundleno = 364 (0x16c), region = 73  ;;  %s1586_s21 = sshll.u32 (!%p537_p10), %s543_s7, 5 }
  0x49   : > { %s1803_s8 = smul.u32 (!%p537_p10), 288, %s543_s7  ;;  %s582_s15 = scalar_lea.vmem (!%p537_p10), [#allocation3], %s1586_s21 }
  0x4b   : > { %s2184_s13 = scalar_lea.vmem (!%p537_p10), [#allocation2], %s1803_s8 }
  0x4d   : > { %v1881_v8 = vld [vmem:[%s2379_s1 + $0x4] ss:$20 sps:$4 sm:$0xff]   ;;  %v1884_v9 = vld [vmem:[%s2379_s1 + $0xc] ss:$20 sps:$4 sm:$0xff]   ;;  %v1951_v10 = vmov 0   ;;  %v1851_v15 = vld [vmem:[%s2184_s13 + $0x70] sm:$0xff]  }
  0x4e   : > { %1846 = vset.pattern.permute.xlu1 %v1951_v10  ;;  %1845 = vset.pattern.permute.xlu0 %v1951_v10  ;;  %v1847_v11 = vld [vmem:[%s2184_s13 + $0x78] sm:$0xff]   ;;  %v1852_v16 = vld [vmem:[%s2184_s13 + $0xf0] sm:$0xff]   ;;  %v1855_v19 = vld [vmem:[%s2184_s13 + $0x68] sm:$0xff]   ;;  %vm1016_vm0 = vcmask 523264   ;;  %s1656_s7 = sshll.u32 (%p2012_p6), %s1941_s17, 2 }
  0x4f   : > { %1061 = vmatprep.mubr.bf16.mxu0 %v1881_v8  ;;  %1126 = vmatprep.mubr.bf16.mxu1 %v1884_v9  ;;  %v1848_v12 = vld [vmem:[%s2184_s13 + $0xf8] sm:$0xff]   ;;  %v1853_v17 = vld [vmem:[%s2184_s13 + $0x30] sm:$0xff]   ;;  %v1856_v20 = vld [vmem:[%s2184_s13 + $0xe8] sm:$0xff]   ;;  %s1395_s26 = scalar_lea.vmem (%p2012_p6), %s2382_s4, %s1656_s7 }
  0x50   : > { %1690 = vmatprep.subr.bf16.mxu0 %v1847_v11  ;;  %v1849_v13 = vld [vmem:[%s2184_s13 + $0x38] sm:$0xff]   ;;  %1730 = vmatprep.subr.bf16.mxu1 %v1848_v12  ;;  %v1854_v18 = vld [vmem:[%s2184_s13 + $0xb0] sm:$0xff]   ;;  %v1857_v21 = vld [vmem:[%s2184_s13 + $0x28] sm:$0xff]  }
  0x51   : > { %v1850_v14 = vld [vmem:[%s2184_s13 + $0xb8] sm:$0xff]   ;;  %1691 = vmatpush3.bf16.msra.mxu0 %v1849_v13  ;;  %v1858_v22 = vld [vmem:[%s2184_s13 + $0xa8] sm:$0xff]   ;;  %v1859_v23 = vld [vmem:[%s2184_s13 + $0x60] sm:$0xff]  }
  0x52   : > { %1731 = vmatpush3.bf16.msra.mxu1 %v1850_v14  ;;  %1692 = vmatprep.subr.bf16.mxu0 %v1851_v15  ;;  %v1860_v24 = vld [vmem:[%s2184_s13 + $0xe0] sm:$0xff]   ;;  %v1863_v27 = vld [vmem:[%s2184_s13 + $0x58] sm:$0xff]   ;;  %v1867_v31 = vld [vmem:[%s2184_s13 + $0x50] sm:$0xff]  }
  0x53   : > { %1732 = vmatprep.subr.bf16.mxu1 %v1852_v16  ;;  %v1861_v25 = vld [vmem:[%s2184_s13 + $0x20] sm:$0xff]   ;;  %v1864_v28 = vld [vmem:[%s2184_s13 + $0xd8] sm:$0xff]   ;;  %v1868_v32 = vld [vmem:[%s2184_s13 + $0xd0] sm:$0xff]  }
  0x54   : > { %v1862_v26 = vld [vmem:[%s2184_s13 + $0xa0] sm:$0xff]   ;;  %v1865_v29 = vld [vmem:[%s2184_s13 + $0x18] sm:$0xff]   ;;  %v1869_v33 = vld [vmem:[%s2184_s13 + $0x10] sm:$0xff]  }
  0x55   : > { %1693 = vmatpush3.bf16.msra.mxu0 %v1853_v17  ;;  %v1866_v30 = vld [vmem:[%s2184_s13 + $0x98] sm:$0xff]   ;;  %v1870_v34 = vld [vmem:[%s2184_s13 + $0x90] sm:$0xff]   ;;  %v1871_v35 = vld [vmem:[%s2184_s13 + $0x48] sm:$0xff]  }
  0x56   : > { %1733 = vmatpush3.bf16.msra.mxu1 %v1854_v18  ;;  %1694 = vmatprep.subr.bf16.mxu0 %v1855_v19  ;;  %v1872_v36 = vld [vmem:[%s2184_s13 + $0xc8] sm:$0xff]   ;;  %v1875_v39 = vld [vmem:[%s2184_s13 + $0x40] sm:$0xff]   ;;  %v1885_v45 = vld [vmem:[%s2184_s13 + $0x118] sm:$0xff]  }
  0x57   : > { %1734 = vmatprep.subr.bf16.mxu1 %v1856_v20  ;;  %v1873_v37 = vld [vmem:[%s2184_s13 + $0x8] sm:$0xff]   ;;  %v1876_v40 = vld [vmem:[%s2184_s13 + $0xc0] sm:$0xff]   ;;  %v1892_v48 = vld [vmem:[%s2184_s13 + $0x110] sm:$0xff]  }
  0x58   : > { %v1874_v38 = vld [vmem:[%s2184_s13 + $0x88] sm:$0xff]   ;;  %v1879_v41 = vld [vmem:[%s2379_s1] ss:$20 sps:$4 sm:$0xff]   ;;  %v1891_v51 = vld [vmem:[%s2379_s1 + $0x30] ss:$20 sps:$4 sm:$0xff]  }
  0x59   : > { %1695 = vmatpush3.bf16.msra.mxu0 %v1857_v21  ;;  %v1877_v42 = vld [vmem:[%s2184_s13] sm:$0xff]   ;;  %v1882_v43 = vld [vmem:[%s2379_s1 + $0x8] ss:$20 sps:$4 sm:$0xff]   ;;  %v1226_v55 = vld [vmem:[%s2380_s2 + $0x10] sm:$0xff] }
  0x5a   : > { %1735 = vmatpush3.bf16.msra.mxu1 %v1858_v22  ;;  %1696 = vmatprep.subr.bf16.mxu0 %v1859_v23  ;;  %v1878_v44 = vld [vmem:[%s2184_s13 + $0x80] sm:$0xff]   ;;  %v1888_v47 = vld [vmem:[%s2379_s1 + $0x34] ss:$20 sps:$4 sm:$0xff]   ;;  %v1895_v53 = vld [vmem:[%s2379_s1 + $0x5c] ss:$20 sps:$4 sm:$0xff]  }
  0x5b   : > { %1736 = vmatprep.subr.bf16.mxu1 %v1860_v24  ;;  %v1886_v46 = vld [vmem:[%s2379_s1 + $0x2c] ss:$20 sps:$4 sm:$0xff]   ;;  %v1890_v49 = vld [vmem:[%s2379_s1 + $0x28] ss:$20 sps:$4 sm:$0xff]   ;;  %v1897_v56 = vld [vmem:[%s2379_s1 + $0x50] ss:$20 sps:$4 sm:$0xff]   ;;  %1244 = vperm.xlu1 %1846, %v1226_v55  }
  0x5c   : > { %v1899_v50 = vld [vmem:[%s2184_s13 + $0x108] sm:$0xff]   ;;  %v1906_v54 = vld [vmem:[%s2184_s13 + $0x100] sm:$0xff]   ;;  %v1900_v59 = vld [vmem:[%s2379_s1 + $0x7c] ss:$20 sps:$4 sm:$0xff]  }
  0x5d   : > { %1697 = vmatpush3.bf16.msra.mxu0 %v1861_v25  ;;  %v1893_v52 = vld [vmem:[%s2379_s1 + $0x54] ss:$20 sps:$4 sm:$0xff]   ;;  %v1224_v57 = vld [vmem:[%s2380_s2] sm:$0xff]  ;;  %v1898_v58 = vld [vmem:[%s2379_s1 + $0x58] ss:$20 sps:$4 sm:$0xff]  }
  0x5e   : > { %1737 = vmatpush3.bf16.msra.mxu1 %v1862_v26  ;;  %1698 = vmatprep.subr.bf16.mxu0 %v1863_v27  ;;  %v1227_v60 = vld [vmem:[%s2380_s2 + $0x18] sm:$0xff]  ;;  %v1225_v62 = vld [vmem:[%s2380_s2 + $0x8] sm:$0xff]  ;;  %v1228_v0 = vld [vmem:[%s2380_s2 + $0x20] sm:$0xff] }
  0x5f   : > { %1738 = vmatprep.subr.bf16.mxu1 %v1864_v28  ;;  %1234 = vperm.xlu0 %1845, %v1224_v57   ;;  %v1902_v61 = vld [vmem:[%s2379_s1 + $0x84] ss:$20 sps:$4 sm:$0xff]   ;;  %v1229_v63 = vld [vmem:[%s2380_s2 + $0x28] sm:$0xff]  ;;  %v1905_v2 = vld [vmem:[%s2379_s1 + $0x80] ss:$20 sps:$4 sm:$0xff]  }
  0x60   : > { %1249 = vperm.xlu1 %1846, %v1227_v60   ;;  %v1904_v1 = vld [vmem:[%s2379_s1 + $0x78] ss:$20 sps:$4 sm:$0xff]   ;;  %v1907_v3 = vld [vmem:[%s2379_s1 + $0x10] ss:$20 sps:$4 sm:$0xff]   ;;  %v1908_v5 = vld [vmem:[%s2379_s1 + $0x60] ss:$20 sps:$4 sm:$0xff]  }
  0x61   : > { %1699 = vmatpush3.bf16.msra.mxu0 %v1865_v29  ;;  %v1231_v4 = vld [vmem:[%s2380_s2 + $0x38] sm:$0xff]  ;;  %v1230_v6 = vld [vmem:[%s2380_s2 + $0x30] sm:$0xff]  ;;  %v1281_v7 = vld [vmem:[%s2381_s3 + $0x8] sm:$0xff] }
  0x62   : > { %1739 = vmatpush3.bf16.msra.mxu1 %v1866_v30  ;;  %1700 = vmatprep.subr.bf16.mxu0 %v1867_v31  ;;  %v1280_v8 = vld [vmem:[%s2381_s3] sm:$0xff]  ;;  %v1909_v9 = vld [vmem:[%s2379_s1 + $0x38] ss:$20 sps:$4 sm:$0xff]   ;;  %v1910_v10 = vld [vmem:[%s2379_s1 + $0x88] ss:$20 sps:$4 sm:$0xff]  }
  0x63   : > { %1740 = vmatprep.subr.bf16.mxu1 %v1868_v32  ;;  %1239 = vperm.xlu0 %1845, %v1225_v62   ;;  %v1283_v11 = vld [vmem:[%s2381_s3 + $0x18] sm:$0xff]  ;;  %v1282_v12 = vld [vmem:[%s2381_s3 + $0x10] sm:$0xff]  ;;  %v1285_v13 = vld [vmem:[%s2381_s3 + $0x28] sm:$0xff] }
  0x64   : > { %1259 = vperm.xlu1 %1846, %v1229_v63   ;;  %v1284_v14 = vld [vmem:[%s2381_s3 + $0x20] sm:$0xff]  ;;  %v1287_v15 = vld [vmem:[%s2381_s3 + $0x38] sm:$0xff]  ;;  %v1286_v16 = vld [vmem:[%s2381_s3 + $0x30] sm:$0xff] }
  0x65   : > { %1701 = vmatpush3.bf16.msra.mxu0 %v1869_v33 }
  0x66   : > { %1741 = vmatpush3.bf16.msra.mxu1 %v1870_v34  ;;  %1702 = vmatprep.subr.bf16.mxu0 %v1871_v35 }
  0x67   : > { %1742 = vmatprep.subr.bf16.mxu1 %v1872_v36  ;;  %1254 = vperm.xlu0 %1845, %v1228_v0  }
  0x68   : > { %1269 = vperm.xlu1 %1846, %v1231_v4  }
  0x69   : > { %1703 = vmatpush3.bf16.msra.mxu0 %v1873_v37 }
  0x6a   : > { %1743 = vmatpush3.bf16.msra.mxu1 %v1874_v38  ;;  %1704 = vmatprep.subr.bf16.mxu0 %v1875_v39 }
  0x6b   : > { %1744 = vmatprep.subr.bf16.mxu1 %v1876_v40  ;;  %1264 = vperm.xlu0 %1845, %v1230_v6  }
  0x6c   : > { %1295 = vperm.xlu1 %1846, %v1281_v7  }
  0x6d   : > { %1705 = vmatpush3.bf16.msra.mxu0 %v1877_v42 }
  0x6e   : > { %1745 = vmatpush3.bf16.msra.mxu1 %v1878_v44  ;;  %1778 = vmatprep.subr.bf16.mxu0 %v1885_v45 }
  0x6f   : > { %1794 = vmatprep.subr.bf16.mxu1 %v1885_v45  ;;  %1290 = vperm.xlu0 %1845, %v1280_v8  }
  0x70   : > { %1062 = vmatmul.mubr.bf16.vlgmr.msra.gmra.mxu0 %v1879_v41  ;;  %1305 = vperm.xlu1 %1846, %v1283_v11  }
  0x71   : > { %1127 = vmatmul.mubr.bf16.vlgmr.msra.gmra.mxu1 %v1882_v43  ;;  %1779 = vmatpush3.bf16.msra.mxu0 %v1885_v45 }
  0x72   : > { %1798 = vmatpush3.bf16.msra.mxu1 %v1885_v45  ;;  %1069 = vmatprep.mubr.bf16.mxu0 %v1886_v46 }
  0x73   : > { %1134 = vmatprep.mubr.bf16.mxu1 %v1888_v47  ;;  %1780 = vmatprep.subr.bf16.mxu0 %v1892_v48 }
  0x74   : > { %1795 = vmatprep.subr.bf16.mxu1 %v1892_v48  ;;  %1300 = vperm.xlu0 %1845, %v1282_v12  }
  0x75   : > { %1781 = vmatpush3.bf16.msra.mxu0 %v1892_v48  ;;  %1315 = vperm.xlu1 %1846, %v1285_v13  }
  0x76   : > { %1799 = vmatpush3.bf16.msra.mxu1 %v1892_v48  ;;  %1782 = vmatprep.subr.bf16.mxu0 %v1899_v50 }
  0x77   : > { %1796 = vmatprep.subr.bf16.mxu1 %v1899_v50 }
  0x78   : > { %1070 = vmatmul.mubr.bf16.gmra.mxu0 %v1890_v49  ;;  %1310 = vperm.xlu0 %1845, %v1284_v14  }
  0x79   : > { %1135 = vmatmul.mubr.bf16.gmra.mxu1 %v1891_v51  ;;  %1077 = vmatprep.mubr.bf16.mxu0 %v1893_v52 }
  0x7a   : > { %1142 = vmatprep.mubr.bf16.mxu1 %v1895_v53  ;;  %1783 = vmatpush3.bf16.msra.mxu0 %v1899_v50 }
  0x7b   : > { %1800 = vmatpush3.bf16.msra.mxu1 %v1899_v50  ;;  %1784 = vmatprep.subr.bf16.mxu0 %v1906_v54 }
  0x7c   : > { %1797 = vmatprep.subr.bf16.mxu1 %v1906_v54  ;;  %1325 = vperm.xlu1 %1846, %v1287_v15  }
  0x7d   : > { %1320 = vperm.xlu0 %1845, %v1286_v16  }
  0x7e   : > { %1785 = vmatpush3.bf16.msra.mxu0 %v1906_v54 }
  0x7f   : > { %1801 = vmatpush3.bf16.msra.mxu1 %v1906_v54 }
  0x80   : > { %1078 = vmatmul.mubr.bf16.gmra.mxu0 %v1897_v56 }
  0x81   : > { %1143 = vmatmul.mubr.bf16.gmra.mxu1 %v1898_v58  ;;  %1085 = vmatprep.mubr.bf16.mxu0 %v1900_v59 }
  0x82   : > { %1150 = vmatprep.mubr.bf16.mxu1 %v1902_v61 }
  0x88   : > { %1086 = vmatmul.mubr.bf16.gmra.mxu0 %v1904_v1 }
  0x89   : > { %1151 = vmatmul.mubr.bf16.gmra.mxu1 %v1905_v2  ;;  %1786 = vmatprep.mubr.msk.bf16.mxu0 %vm1016_vm0, %v1907_v3 }
  0x8a   : > { %1790 = vmatprep.mubr.msk.bf16.mxu1 %vm1016_vm0, %v1908_v5 }
  0x90   : > { %1787 = vmatmul.mubr.msk.bf16.vlgmr.msra.gmra.mxu0 %vm1016_vm0, %v1909_v9 }
  0x91   : > { %1791 = vmatmul.mubr.msk.bf16.vlgmr.msra.gmra.mxu1 %vm1016_vm0, %v1910_v10 }
  0xd6   : > { %v2330_v18 = vpop.permute.xlu1 %1244 }
  0xda   : > { %v2328_v17 = vpop.permute.xlu0 %1234 }
  0xdb   : > { %v2334_v25 = vpop.permute.xlu1 %1249 }
  0xde   : > { %v2332_v22 = vpop.permute.xlu0 %1239 }
  0xdf   : > { %v2338_v33 = vpop.permute.xlu1 %1259 }
  0xe2   : > { %v2336_v30 = vpop.permute.xlu0 %1254 }
  0xe3   : > { %v2340_v41 = vpop.permute.xlu1 %1269 }
  0xe6   : > { %v1265_v38 = vpop.permute.xlu0 %1264 }
  0xe7   : > { %v2344_v49 = vpop.permute.xlu1 %1295 }
  0xea   : > { %v2342_v46 = vpop.permute.xlu0 %1290 }
  0xeb   : > { %v1306_v63 = vpop.permute.xlu1 %1305 }
  0xef   : > { %v1301_v54 = vpop.permute.xlu0 %1300 }
  0xf3   : > { %v1311_v14 = vpop.permute.xlu0 %1310 }
 0x130   : > { %v1706_v19 = vpop.f32.mrf.mxu0 }
 0x131   : > { %v1746_v20 = vpop.f32.mrf.mxu1 }
 0x132   : > { %v1707_v21 = vpop.f32.mrf.mxu0 }
 0x133   : > { %v1747_v23 = vpop.f32.mrf.mxu1  ;;  %v1708_v61 = vadd.f32 %v1707_v21, %v1706_v19 }
 0x134   : > { %v1709_v24 = vpop.f32.mrf.mxu0  ;;  %v1748_v62 = vadd.f32 %v1747_v23, %v1746_v20 }
 0x135   : > { %v1749_v26 = vpop.f32.mrf.mxu1 }
 0x136   : > { %v1710_v27 = vpop.f32.mrf.mxu0  ;;  %v1129_v19 = vadd.f32 %v1748_v62, %v1708_v61 }
 0x137   : > { %v1750_v28 = vpop.f32.mrf.mxu1  ;;  %v1711_v12 = vadd.f32 %v1710_v27, %v1709_v24 }
 0x138   : > { %v1712_v29 = vpop.f32.mrf.mxu0  ;;  %v1751_v13 = vadd.f32 %v1750_v28, %v1749_v26 }
 0x139   : > { %v1752_v31 = vpop.f32.mrf.mxu1 }
 0x13a   : > { %v1713_v32 = vpop.f32.mrf.mxu0 }
 0x13b   : > { %v1753_v34 = vpop.f32.mrf.mxu1  ;;  %v1714_v55 = vadd.f32 %v1713_v32, %v1712_v29  ;;  %v1316_v32 = vpop.permute.xlu1 %1315 }
 0x13c   : > { %v1715_v35 = vpop.f32.mrf.mxu0  ;;  %v1754_v56 = vadd.f32 %v1753_v34, %v1752_v31 }
 0x13d   : > { %v1755_v36 = vpop.f32.mrf.mxu1 }
 0x13e   : > { %v1716_v37 = vpop.f32.mrf.mxu0  ;;  %v1137_v7 = vadd.f32 %v1754_v56, %v1714_v55 }
 0x13f   : > { %v1756_v39 = vpop.f32.mrf.mxu1  ;;  %v1717_v4 = vadd.f32 %v1716_v37, %v1715_v35 }
 0x140   : > { %v1718_v40 = vpop.f32.mrf.mxu0  ;;  %v1757_v5 = vadd.f32 %v1756_v39, %v1755_v36 }
 0x141   : > { %v1758_v42 = vpop.f32.mrf.mxu1 }
 0x142   : > { %v1719_v43 = vpop.f32.mrf.mxu0  ;;  %v1140_v37 = vadd.f32 %v1757_v5, %v1717_v4 }
 0x143   : > { %v1759_v44 = vpop.f32.mrf.mxu1  ;;  %v1720_v1 = vadd.f32 %v1719_v43, %v1718_v40  ;;  %v1132_v43 = vadd.f32 %v1751_v13, %v1711_v12 }
 0x144   : > { %v1721_v45 = vpop.f32.mrf.mxu0  ;;  %v1760_v2 = vadd.f32 %v1759_v44, %v1758_v42 }
 0x145   : > { %v1761_v47 = vpop.f32.mrf.mxu1 }
 0x146   : > { %v1722_v48 = vpop.f32.mrf.mxu0  ;;  %v1145_v31 = vadd.f32 %v1760_v2, %v1720_v1 }
 0x147   : > { %v1762_v50 = vpop.f32.mrf.mxu1  ;;  %v1723_v20 = vadd.f32 %v1722_v48, %v1721_v45 }
 0x148   : > { %v1724_v51 = vpop.f32.mrf.mxu0  ;;  %v1763_v21 = vadd.f32 %v1762_v50, %v1761_v47  ;;  %v1321_v50 = vpop.permute.xlu0 %1320 }
 0x149   : > { %v1764_v52 = vpop.f32.mrf.mxu1 }
 0x14a   : > { %v1725_v53 = vpop.f32.mrf.mxu0  ;;  %v1148_v48 = vadd.f32 %v1763_v21, %v1723_v20 }
 0x14b   : > { %v1765_v57 = vpop.f32.mrf.mxu1  ;;  %v1726_v58 = vadd.f32 %v1725_v53, %v1724_v51 }
 0x14c   : > { %v1766_v59 = vadd.f32 %v1765_v57, %v1764_v52  ;;  %v1727_v60 = vpop.f32.mrf.mxu0 }
 0x14d   : > { %v1767_v0 = vpop.f32.mrf.mxu1 }
 0x14e   : > { %v1728_v3 = vpop.f32.mrf.mxu0  ;;  %v1153_v11 = vadd.f32 %v1766_v59, %v1726_v58 }
 0x14f   : > { %v1768_v6 = vpop.f32.mrf.mxu1  ;;  %v1729_v8 = vadd.f32 %v1728_v3, %v1727_v60 }
 0x150   : > { %v1769_v9 = vadd.f32 %v1768_v6, %v1767_v0  ;;  %v1788_v10 = vpop.f32.mrf.mxu0 }
 0x151   : > { %v1202_v15 = vadd.f32 %v1788_v10, %v1137_v7  ;;  %v1792_v16 = vpop.f32.mrf.mxu1 }
 0x152   : > { %v1218_v23 = vadd.f32 %v1792_v16, %v1153_v11  ;;  %v1193_v29 = vpop.f32.mrf.mxu0  ;;  %v1156_v24 = vadd.f32 %v1769_v9, %v1729_v8 }
 0x153   : > { %v1274_v34 = vmul.f32 %v2330_v18, %v1202_v15  ;;  %v1194_v35 = vadd.f32 %v1193_v29, %v1129_v19  ;;  %v1209_v36 = vpop.f32.mrf.mxu1 }
 0x154   : > { %v1278_v39 = vmul.f32 %v1265_v38, %v1218_v23  ;;  %v1210_v40 = vadd.f32 %v1209_v36, %v1145_v31  ;;  %v1789_v42 = vpop.f32.mrf.mxu0 }
 0x155   : > { %v1272_v26 = vmul.f32 %v2328_v17, %v1194_v35  ;;  %v1205_v27 = vadd.f32 %v1789_v42, %v1140_v37  ;;  %v1793_v28 = vpop.f32.mrf.mxu1  ;;  %v1330_v18 = vadd.f32 %v1301_v54, %v1274_v34  ;;  %v1326_v17 = vpop.permute.xlu1 %1325 }
 0x156   : > { %v1276_v44 = vmul.f32 %v2336_v30, %v1210_v40  ;;  %v1221_v45 = vadd.f32 %v1793_v28, %v1156_v24  ;;  %v1196_v47 = vpop.f32.mrf.mxu0  ;;  %v1334_v53 = vadd.f32 %v1321_v50, %v1278_v39 }
 0x157   : > { %v1275_v51 = vmul.f32 %v2334_v25, %v1205_v27  ;;  %v1197_v52 = vadd.f32 %v1196_v47, %v1132_v43  ;;  %v1212_v38 = vpop.f32.mrf.mxu1  ;;  %v1328_v57 = vadd.f32 %v2342_v46, %v1272_v26  ;;  %v1338_v61 = vmax.f32 %v1330_v18, 0.0 }
 0x158   : > { %v1279_v55 = vmul.f32 %v2340_v41, %v1221_v45  ;;  %v1213_v56 = vadd.f32 %v1212_v38, %v1148_v48  ;;  %v1332_v59 = vadd.f32 %v1311_v14, %v1276_v44  ;;  %v1342_v0 = vmax.f32 %v1334_v53, 0.0 }
 0x159   : > { %v1331_v58 = vadd.f32 %v1306_v63, %v1275_v51  ;;  %v1273_v30 = vmul.f32 %v2332_v22, %v1197_v52  ;;  %v1336_v2 = vmax.f32 %v1328_v57, 0.0 }
 0x15a   : > { %v1335_v60 = vadd.f32 %v1326_v17, %v1279_v55  ;;  %v1277_v54 = vmul.f32 %v2338_v33, %v1213_v56  ;;  %v1340_v46 = vmax.f32 %v1332_v59, 0.0 }
 0x15b   : > { %v1339_v25 = vmax.f32 %v1331_v58, 0.0  ;;  %v1329_v62 = vadd.f32 %v2344_v49, %v1273_v30 }
 0x15c   : > { %v1343_v1 = vmax.f32 %v1335_v60, 0.0  ;;  %v1333_v41 = vadd.f32 %v1316_v32, %v1277_v54 }
 0x15d   : > { %v1675_v3 = vpack.c.bf16 %v1339_v25, %v1338_v61  ;;  %v1337_v4 = vmax.f32 %v1329_v62, 0.0 }
 0x15e   : > { %v1685_v5 = vpack.c.bf16 %v1343_v1, %v1342_v0  ;;  %v1341_v6 = vmax.f32 %v1333_v41, 0.0  ;;  %1390 = sbr.rel (!%p2012_p6) target bundleno = 364 (0x16c), region = 81 }
 0x15f   : > { %1687 = vst [vmem:[%s582_s15 + $0x8] sm:$0xff] %v1675_v3   ;;  %v1670_v22 = vpack.c.bf16 %v1337_v4, %v1336_v2 }
 0x160   : > { %1689 = vst [vmem:[%s582_s15 + $0x18] sm:$0xff] %v1685_v5   ;;  %v1680_v63 = vpack.c.bf16 %v1341_v6, %v1340_v46 }
 0x161   : > { %1671 = vst [vmem:[%s582_s15] sm:$0xff] %v1670_v22  }
 0x162   : > { %1688 = vst [vmem:[%s582_s15 + $0x10] sm:$0xff] %v1680_v63  }
 0x166   : > { %v1416_v7 = vld [vmem:[%s582_s15 + $0x8] sm:$0xf]  ;;  %v1418_v8 = vld [vmem:[%s582_s15 + $0xc] sm:$0xf] }
 0x167   : > { %1417 = vst [vmem:[%s1395_s26 + $0x20] sm:$0xf] %v1416_v7  ;;  %1419 = vst [vmem:[%s1395_s26 + $0x30] sm:$0xf] %v1418_v8  ;;  %v1424_v11 = vld [vmem:[%s582_s15 + $0x18] sm:$0xf] }
 0x168   : > { %v1412_v33 = vld [vmem:[%s582_s15] sm:$0xf]  ;;  %v1414_v49 = vld [vmem:[%s582_s15 + $0x4] sm:$0xf]  ;;  %v1426_v12 = vld [vmem:[%s582_s15 + $0x1c] sm:$0xf] }
 0x169   : > { %v1420_v9 = vld [vmem:[%s582_s15 + $0x10] sm:$0xf]  ;;  %1413 = vst [vmem:[%s1395_s26] sm:$0xf] %v1412_v33  ;;  %1415 = vst [vmem:[%s1395_s26 + $0x10] sm:$0xf] %v1414_v49 }
 0x16a   : > { %1421 = vst [vmem:[%s1395_s26 + $0x40] sm:$0xf] %v1420_v9  ;;  %v1422_v10 = vld [vmem:[%s582_s15 + $0x14] sm:$0xf]  ;;  %1425 = vst [vmem:[%s1395_s26 + $0x60] sm:$0xf] %v1424_v11 }
 0x16b   : > { %1423 = vst [vmem:[%s1395_s26 + $0x50] sm:$0xf] %v1422_v10  ;;  %1427 = vst [vmem:[%s1395_s26 + $0x70] sm:$0xf] %v1426_v12 }
 0x16c PF: > { %s14_s19 = sadd.s32 1, %s1949_s19   ;;  %s2384_s15 = smov %s1937_s16 }
 0x16d   : > { %p11_p11 = scmp.ge.s32.totalorder %s14_s19, 6   ;;  %s2385_s16 = smov %s2017_s25 }
 0x16e   : > { %s2386_s17 = smov %s1945_s18  ;;  %s2387_s18 = smov %s2389_s20 }
 0x16f   :  { %13 = sbr.rel (!%p11_p11) target bundleno = 3 (0x3), region = 162 }

// kernel: preact_resnet_forward.46
= control target key start
LH: loop header
LB: loop body
LE: loop exit
PB: predicated region body
PF: predicated region fallthrough
CT: control target
= control target key end

     0   :  { %s2285_s21 = smov 0   ;;  %s2287_s22 = smov 0   ;;  %s2760_s0 = inlined_call_operand.vmem [shape: bf16[576,512], index: 0, kind: input, shape index: {}]   ;;  %s2761_s1 = inlined_call_operand.vmem [shape: bf16[64,576], index: 1, kind: input, shape index: {}]   ;;  %s2762_s2 = inlined_call_operand.vmem [shape: f32[64,1], index: 2, kind: input, shape index: {}]   ;;  %s2763_s3 = inlined_call_operand.vmem [shape: f32[64,1], index: 3, kind: input, shape index: {}]   ;;  %s2764_s4 = inlined_call_operand.vmem [shape: f32[64,512], index: 4, kind: input, shape index: {}]   ;;  %s2765_s5 = inlined_call_operand.vmem [shape: f32[64,512], index: 5, kind: output, shape index: {0}]   ;;  %s2766_s6 = inlined_call_operand.vmem [shape: bf16[64,512], index: 6, kind: output, shape index: {1}]  }
   0x1   :  { %s2289_s23 = smov 0   ;;  %s2291_s24 = smov 0  }
   0x2   :  { %s2293_s25 = smov 0  }
   0x3 LB: > { %s29_s26 = sadd.s32 1, %s2243_s24  ;;  %s1869_s27 = sadd.s32 4294967295, %s2247_s25   ;;  %s2247_s25 = sphi %s2293_s25, %s17_s25   ;;  %s2243_s24 = sphi %s2291_s24, %s2772_s24   ;;  %s2239_s23 = sphi %s2289_s23, %s2771_s23   ;;  %s2235_s22 = sphi %s2287_s22, %s2770_s22   ;;  %s2231_s21 = sphi %s2285_s21, %s2769_s21  }
   0x4   : > { %p31_p0 = scmp.ge.s32.totalorder %s29_s26, 4  ;;  %p43_p1 = scmp.ne.s32.totalorder %s2235_s22, %s2231_s21 }
   0x5   : > { %p44_p2 = scmp.eq.s32.totalorder %s2247_s25, 0  ;;  %p181_p4 = scmp.eq.s32.totalorder %s1869_s27, 3 }
   0x6   : > { %s2774_s26 = smov (%p31_p0, %s29_s26), 0  ;;  %s36_s30 = sadd.s32 1, %s2235_s22 }
   0x7   : > { %p2317_p3 = por %p44_p2, %p43_p1  ;;  %s33_s29 = ssub.s32 %s2243_s24, %s2774_s26 }
   0x8   : > { %p34_p5 = scmp.eq.s32.totalorder %s33_s29, 0  ;;  %p2324_p6 = por %p181_p4, %p43_p1 }
   0x9   : > { %p1875_p7 = scmp.ge.s32.totalorder %s2247_s25, 4 }
   0xa   : > { %s2329_s8 = scalar_select %p34_p5, %s2235_s22, %s36_s30  }
   0xb   : > { %259 = sbr.rel (%p1875_p7) target bundleno = 80 (0x50), region = 28 }
  0x10   : > { %262 = sbr.rel (!%p2317_p3) target bundleno = 68 (0x44), region = 32  ;;  %s264_s9 = sand.u32 (%p2317_p3), 1, %s2235_s22  }
  0x11   : > { %s1876_s10 = sshll.u32 (%p2317_p3), %s2243_s24, 2  ;;  %s2100_s11 = smul.u32 (%p2317_p3), 288, %s264_s9 }
  0x12   : > { %s2339_s14 = scalar_lea.vmem (%p2317_p3), %s2760_s0, %s1876_s10 }
  0x13   : > { %v285_v0 = vld [vmem:[%s2339_s14] sm:$0xf] (%p2317_p3)  ;;  %v287_v1 = vld [vmem:[%s2339_s14 + $0x10] sm:$0xf] (%p2317_p3)  ;;  %s2346_s15 = scalar_lea.vmem (%p2317_p3), [#allocation2], %s2100_s11 }
  0x14   : > { %v289_v2 = vld [vmem:[%s2339_s14 + $0x20] sm:$0xf] (%p2317_p3)  ;;  %v291_v3 = vld [vmem:[%s2339_s14 + $0x30] sm:$0xf] (%p2317_p3)  ;;  %286 = vst [vmem:[%s2346_s15] sm:$0xf] (%p2317_p3), %v285_v0 }
  0x15   : > { %v293_v4 = vld [vmem:[%s2339_s14 + $0x40] sm:$0xf]  ;;  %288 = vst [vmem:[%s2346_s15 + $0x4] sm:$0xf] %v287_v1  ;;  %290 = vst [vmem:[%s2346_s15 + $0x8] sm:$0xf] %v289_v2 }
  0x16   : > { %292 = vst [vmem:[%s2346_s15 + $0xc] sm:$0xf] %v291_v3  ;;  %294 = vst [vmem:[%s2346_s15 + $0x10] sm:$0xf] %v293_v4  ;;  %v295_v5 = vld [vmem:[%s2339_s14 + $0x50] sm:$0xf] }
  0x17   : > { %v297_v6 = vld [vmem:[%s2339_s14 + $0x60] sm:$0xf]  ;;  %v299_v7 = vld [vmem:[%s2339_s14 + $0x70] sm:$0xf]  ;;  %296 = vst [vmem:[%s2346_s15 + $0x14] sm:$0xf] %v295_v5 }
  0x18   : > { %298 = vst [vmem:[%s2346_s15 + $0x18] sm:$0xf] %v297_v6  ;;  %300 = vst [vmem:[%s2346_s15 + $0x1c] sm:$0xf] %v299_v7  ;;  %v301_v8 = vld [vmem:[%s2339_s14 + $0x80] sm:$0xf] }
  0x19   : > { %v303_v9 = vld [vmem:[%s2339_s14 + $0x90] sm:$0xf]  ;;  %v305_v10 = vld [vmem:[%s2339_s14 + $0xa0] sm:$0xf]  ;;  %302 = vst [vmem:[%s2346_s15 + $0x20] sm:$0xf] %v301_v8 }
  0x1a   : > { %304 = vst [vmem:[%s2346_s15 + $0x24] sm:$0xf] %v303_v9  ;;  %306 = vst [vmem:[%s2346_s15 + $0x28] sm:$0xf] %v305_v10  ;;  %v307_v11 = vld [vmem:[%s2339_s14 + $0xb0] sm:$0xf] }
  0x1b   : > { %v309_v12 = vld [vmem:[%s2339_s14 + $0xc0] sm:$0xf]  ;;  %v311_v13 = vld [vmem:[%s2339_s14 + $0xd0] sm:$0xf]  ;;  %308 = vst [vmem:[%s2346_s15 + $0x2c] sm:$0xf] %v307_v11 }
  0x1c   : > { %310 = vst [vmem:[%s2346_s15 + $0x30] sm:$0xf] %v309_v12  ;;  %312 = vst [vmem:[%s2346_s15 + $0x34] sm:$0xf] %v311_v13  ;;  %v313_v14 = vld [vmem:[%s2339_s14 + $0xe0] sm:$0xf] }
  0x1d   : > { %v315_v15 = vld [vmem:[%s2339_s14 + $0xf0] sm:$0xf]  ;;  %v317_v16 = vld [vmem:[%s2339_s14 + $0x100] sm:$0xf]  ;;  %314 = vst [vmem:[%s2346_s15 + $0x38] sm:$0xf] %v313_v14 }
  0x1e   : > { %316 = vst [vmem:[%s2346_s15 + $0x3c] sm:$0xf] %v315_v15  ;;  %318 = vst [vmem:[%s2346_s15 + $0x40] sm:$0xf] %v317_v16  ;;  %v319_v17 = vld [vmem:[%s2339_s14 + $0x110] sm:$0xf] }
  0x1f   : > { %v321_v18 = vld [vmem:[%s2339_s14 + $0x120] sm:$0xf]  ;;  %v323_v19 = vld [vmem:[%s2339_s14 + $0x130] sm:$0xf]  ;;  %320 = vst [vmem:[%s2346_s15 + $0x44] sm:$0xf] %v319_v17 }
  0x20   : > { %322 = vst [vmem:[%s2346_s15 + $0x48] sm:$0xf] %v321_v18  ;;  %324 = vst [vmem:[%s2346_s15 + $0x4c] sm:$0xf] %v323_v19  ;;  %v325_v20 = vld [vmem:[%s2339_s14 + $0x140] sm:$0xf] }
  0x21   : > { %v327_v21 = vld [vmem:[%s2339_s14 + $0x150] sm:$0xf]  ;;  %v329_v22 = vld [vmem:[%s2339_s14 + $0x160] sm:$0xf]  ;;  %326 = vst [vmem:[%s2346_s15 + $0x50] sm:$0xf] %v325_v20 }
  0x22   : > { %328 = vst [vmem:[%s2346_s15 + $0x54] sm:$0xf] %v327_v21  ;;  %330 = vst [vmem:[%s2346_s15 + $0x58] sm:$0xf] %v329_v22  ;;  %v331_v23 = vld [vmem:[%s2339_s14 + $0x170] sm:$0xf] }
  0x23   : > { %v333_v24 = vld [vmem:[%s2339_s14 + $0x180] sm:$0xf]  ;;  %v335_v25 = vld [vmem:[%s2339_s14 + $0x190] sm:$0xf]  ;;  %332 = vst [vmem:[%s2346_s15 + $0x5c] sm:$0xf] %v331_v23 }
  0x24   : > { %334 = vst [vmem:[%s2346_s15 + $0x60] sm:$0xf] %v333_v24  ;;  %336 = vst [vmem:[%s2346_s15 + $0x64] sm:$0xf] %v335_v25  ;;  %v337_v26 = vld [vmem:[%s2339_s14 + $0x1a0] sm:$0xf] }
  0x25   : > { %v339_v27 = vld [vmem:[%s2339_s14 + $0x1b0] sm:$0xf]  ;;  %v341_v28 = vld [vmem:[%s2339_s14 + $0x1c0] sm:$0xf]  ;;  %338 = vst [vmem:[%s2346_s15 + $0x68] sm:$0xf] %v337_v26 }
  0x26   : > { %340 = vst [vmem:[%s2346_s15 + $0x6c] sm:$0xf] %v339_v27  ;;  %342 = vst [vmem:[%s2346_s15 + $0x70] sm:$0xf] %v341_v28  ;;  %v343_v29 = vld [vmem:[%s2339_s14 + $0x1d0] sm:$0xf] }
  0x27   : > { %v345_v30 = vld [vmem:[%s2339_s14 + $0x1e0] sm:$0xf]  ;;  %v347_v31 = vld [vmem:[%s2339_s14 + $0x1f0] sm:$0xf]  ;;  %344 = vst [vmem:[%s2346_s15 + $0x74] sm:$0xf] %v343_v29 }
  0x28   : > { %346 = vst [vmem:[%s2346_s15 + $0x78] sm:$0xf] %v345_v30  ;;  %348 = vst [vmem:[%s2346_s15 + $0x7c] sm:$0xf] %v347_v31  ;;  %v349_v32 = vld [vmem:[%s2339_s14 + $0x200] sm:$0xf] }
  0x29   : > { %v351_v33 = vld [vmem:[%s2339_s14 + $0x210] sm:$0xf]  ;;  %v353_v34 = vld [vmem:[%s2339_s14 + $0x220] sm:$0xf]  ;;  %350 = vst [vmem:[%s2346_s15 + $0x80] sm:$0xf] %v349_v32 }
  0x2a   : > { %352 = vst [vmem:[%s2346_s15 + $0x84] sm:$0xf] %v351_v33  ;;  %354 = vst [vmem:[%s2346_s15 + $0x88] sm:$0xf] %v353_v34  ;;  %v355_v35 = vld [vmem:[%s2339_s14 + $0x230] sm:$0xf] }
  0x2b   : > { %v357_v36 = vld [vmem:[%s2339_s14 + $0x240] sm:$0xf]  ;;  %v359_v37 = vld [vmem:[%s2339_s14 + $0x250] sm:$0xf]  ;;  %356 = vst [vmem:[%s2346_s15 + $0x8c] sm:$0xf] %v355_v35 }
  0x2c   : > { %358 = vst [vmem:[%s2346_s15 + $0x90] sm:$0xf] %v357_v36  ;;  %360 = vst [vmem:[%s2346_s15 + $0x94] sm:$0xf] %v359_v37  ;;  %v361_v38 = vld [vmem:[%s2339_s14 + $0x260] sm:$0xf] }
  0x2d   : > { %v363_v39 = vld [vmem:[%s2339_s14 + $0x270] sm:$0xf]  ;;  %v365_v40 = vld [vmem:[%s2339_s14 + $0x280] sm:$0xf]  ;;  %362 = vst [vmem:[%s2346_s15 + $0x98] sm:$0xf] %v361_v38 }
  0x2e   : > { %364 = vst [vmem:[%s2346_s15 + $0x9c] sm:$0xf] %v363_v39  ;;  %366 = vst [vmem:[%s2346_s15 + $0xa0] sm:$0xf] %v365_v40  ;;  %v367_v41 = vld [vmem:[%s2339_s14 + $0x290] sm:$0xf] }
  0x2f   : > { %v369_v42 = vld [vmem:[%s2339_s14 + $0x2a0] sm:$0xf]  ;;  %v371_v43 = vld [vmem:[%s2339_s14 + $0x2b0] sm:$0xf]  ;;  %368 = vst [vmem:[%s2346_s15 + $0xa4] sm:$0xf] %v367_v41 }
  0x30   : > { %370 = vst [vmem:[%s2346_s15 + $0xa8] sm:$0xf] %v369_v42  ;;  %372 = vst [vmem:[%s2346_s15 + $0xac] sm:$0xf] %v371_v43  ;;  %v373_v44 = vld [vmem:[%s2339_s14 + $0x2c0] sm:$0xf] }
  0x31   : > { %v375_v45 = vld [vmem:[%s2339_s14 + $0x2d0] sm:$0xf]  ;;  %v377_v46 = vld [vmem:[%s2339_s14 + $0x2e0] sm:$0xf]  ;;  %374 = vst [vmem:[%s2346_s15 + $0xb0] sm:$0xf] %v373_v44 }
  0x32   : > { %376 = vst [vmem:[%s2346_s15 + $0xb4] sm:$0xf] %v375_v45  ;;  %378 = vst [vmem:[%s2346_s15 + $0xb8] sm:$0xf] %v377_v46  ;;  %v379_v47 = vld [vmem:[%s2339_s14 + $0x2f0] sm:$0xf] }
  0x33   : > { %v381_v48 = vld [vmem:[%s2339_s14 + $0x300] sm:$0xf]  ;;  %v383_v49 = vld [vmem:[%s2339_s14 + $0x310] sm:$0xf]  ;;  %380 = vst [vmem:[%s2346_s15 + $0xbc] sm:$0xf] %v379_v47 }
  0x34   : > { %382 = vst [vmem:[%s2346_s15 + $0xc0] sm:$0xf] %v381_v48  ;;  %384 = vst [vmem:[%s2346_s15 + $0xc4] sm:$0xf] %v383_v49  ;;  %v385_v50 = vld [vmem:[%s2339_s14 + $0x320] sm:$0xf] }
  0x35   : > { %v387_v51 = vld [vmem:[%s2339_s14 + $0x330] sm:$0xf]  ;;  %v389_v52 = vld [vmem:[%s2339_s14 + $0x340] sm:$0xf]  ;;  %386 = vst [vmem:[%s2346_s15 + $0xc8] sm:$0xf] %v385_v50 }
  0x36   : > { %388 = vst [vmem:[%s2346_s15 + $0xcc] sm:$0xf] %v387_v51  ;;  %390 = vst [vmem:[%s2346_s15 + $0xd0] sm:$0xf] %v389_v52  ;;  %v391_v53 = vld [vmem:[%s2339_s14 + $0x350] sm:$0xf] }
  0x37   : > { %v393_v54 = vld [vmem:[%s2339_s14 + $0x360] sm:$0xf]  ;;  %v395_v55 = vld [vmem:[%s2339_s14 + $0x370] sm:$0xf]  ;;  %392 = vst [vmem:[%s2346_s15 + $0xd4] sm:$0xf] %v391_v53 }
  0x38   : > { %394 = vst [vmem:[%s2346_s15 + $0xd8] sm:$0xf] %v393_v54  ;;  %396 = vst [vmem:[%s2346_s15 + $0xdc] sm:$0xf] %v395_v55  ;;  %v397_v56 = vld [vmem:[%s2339_s14 + $0x380] sm:$0xf] }
  0x39   : > { %v399_v57 = vld [vmem:[%s2339_s14 + $0x390] sm:$0xf]  ;;  %v401_v58 = vld [vmem:[%s2339_s14 + $0x3a0] sm:$0xf]  ;;  %398 = vst [vmem:[%s2346_s15 + $0xe0] sm:$0xf] %v397_v56 }
  0x3a   : > { %400 = vst [vmem:[%s2346_s15 + $0xe4] sm:$0xf] %v399_v57  ;;  %402 = vst [vmem:[%s2346_s15 + $0xe8] sm:$0xf] %v401_v58  ;;  %v403_v59 = vld [vmem:[%s2339_s14 + $0x3b0] sm:$0xf] }
  0x3b   : > { %v405_v60 = vld [vmem:[%s2339_s14 + $0x3c0] sm:$0xf]  ;;  %v407_v61 = vld [vmem:[%s2339_s14 + $0x3d0] sm:$0xf]  ;;  %404 = vst [vmem:[%s2346_s15 + $0xec] sm:$0xf] %v403_v59 }
  0x3c   : > { %406 = vst [vmem:[%s2346_s15 + $0xf0] sm:$0xf] %v405_v60  ;;  %408 = vst [vmem:[%s2346_s15 + $0xf4] sm:$0xf] %v407_v61  ;;  %v409_v62 = vld [vmem:[%s2339_s14 + $0x3e0] sm:$0xf] }
  0x3d   : > { %v411_v63 = vld [vmem:[%s2339_s14 + $0x3f0] sm:$0xf]  ;;  %v413_v0 = vld [vmem:[%s2339_s14 + $0x400] sm:$0xf]  ;;  %410 = vst [vmem:[%s2346_s15 + $0xf8] sm:$0xf] %v409_v62 }
  0x3e   : > { %412 = vst [vmem:[%s2346_s15 + $0xfc] sm:$0xf] %v411_v63  ;;  %414 = vst [vmem:[%s2346_s15 + $0x100] sm:$0xf] %v413_v0  ;;  %v415_v1 = vld [vmem:[%s2339_s14 + $0x410] sm:$0xf] }
  0x3f   : > { %v417_v2 = vld [vmem:[%s2339_s14 + $0x420] sm:$0xf]  ;;  %v419_v3 = vld [vmem:[%s2339_s14 + $0x430] sm:$0xf]  ;;  %416 = vst [vmem:[%s2346_s15 + $0x104] sm:$0xf] %v415_v1 }
  0x40   : > { %418 = vst [vmem:[%s2346_s15 + $0x108] sm:$0xf] %v417_v2  ;;  %420 = vst [vmem:[%s2346_s15 + $0x10c] sm:$0xf] %v419_v3  ;;  %v421_v4 = vld [vmem:[%s2339_s14 + $0x440] sm:$0xf] }
  0x41   : > { %v423_v5 = vld [vmem:[%s2339_s14 + $0x450] sm:$0xf]  ;;  %v425_v6 = vld [vmem:[%s2339_s14 + $0x460] sm:$0xf]  ;;  %422 = vst [vmem:[%s2346_s15 + $0x110] sm:$0xf] %v421_v4 }
  0x42   : > { %424 = vst [vmem:[%s2346_s15 + $0x114] sm:$0xf] %v423_v5  ;;  %426 = vst [vmem:[%s2346_s15 + $0x118] sm:$0xf] %v425_v6  ;;  %v427_v7 = vld [vmem:[%s2339_s14 + $0x470] sm:$0xf] }
  0x43   : > { %428 = vst [vmem:[%s2346_s15 + $0x11c] sm:$0xf] %v427_v7 }
  0x44 PF: > { %596 = sbr.rel (!%p2317_p3) target bundleno = 80 (0x50), region = 73  ;;  %s598_s16 = sand.u32 (%p2317_p3), 1, %s2235_s22  }
  0x45   : > { %s1878_s17 = sshll.u32 (%p2317_p3), %s2243_s24, 3  ;;  %s1877_s18 = sshll.u32 (%p2317_p3), %s598_s16, 6 }
  0x46   : > { %s605_s27 = scalar_lea.vmem (%p2317_p3), %s2764_s4, %s1878_s17  ;;  %s600_s29 = scalar_lea.vmem (%p2317_p3), [#allocation3], %s1877_s18 }
  0x47   : > { %v648_v8 = vld [vmem:[%s605_s27] sm:$0xff] (%p2317_p3) }
  0x48   : > { %v650_v9 = vld [vmem:[%s605_s27 + $0x20] sm:$0xff] (%p2317_p3)  ;;  %649 = vst [vmem:[%s600_s29] sm:$0xff] (%p2317_p3), %v648_v8 }
  0x49   : > { %v652_v10 = vld [vmem:[%s605_s27 + $0x40] sm:$0xff]  ;;  %651 = vst [vmem:[%s600_s29 + $0x8] sm:$0xff] %v650_v9 }
  0x4a   : > { %653 = vst [vmem:[%s600_s29 + $0x10] sm:$0xff] %v652_v10  ;;  %v654_v11 = vld [vmem:[%s605_s27 + $0x60] sm:$0xff] }
  0x4b   : > { %v656_v12 = vld [vmem:[%s605_s27 + $0x80] sm:$0xff]  ;;  %655 = vst [vmem:[%s600_s29 + $0x18] sm:$0xff] %v654_v11 }
  0x4c   : > { %v658_v13 = vld [vmem:[%s605_s27 + $0xa0] sm:$0xff]  ;;  %657 = vst [vmem:[%s600_s29 + $0x20] sm:$0xff] %v656_v12 }
  0x4d   : > { %659 = vst [vmem:[%s600_s29 + $0x28] sm:$0xff] %v658_v13  ;;  %v660_v14 = vld [vmem:[%s605_s27 + $0xc0] sm:$0xff] }
  0x4e   : > { %v662_v15 = vld [vmem:[%s605_s27 + $0xe0] sm:$0xff]  ;;  %661 = vst [vmem:[%s600_s29 + $0x30] sm:$0xff] %v660_v14 }
  0x4f   : > { %663 = vst [vmem:[%s600_s29 + $0x38] sm:$0xff] %v662_v15 }
  0x50 PF: > { %p1879_p8 = scmp.ge.s32.totalorder %s2247_s25, 1  ;;  %p668_p9 = scmp.lt.s32.totalorder %s2247_s25, 5 }
  0x52   : > { %p669_p10 = pnand %p1879_p8, %p668_p9 }
  0x53   : > { %s2497_s28 = sand.u32 (!%p669_p10), 1, %s2231_s21  }
  0x54   : > { %672 = sbr.rel (%p669_p10) target bundleno = 376 (0x178), region = 111  ;;  %s1880_s18 = sshll.u32 (!%p669_p10), %s2497_s28, 6 }
  0x55   : > { %s2101_s30 = smul.u32 (!%p669_p10), 288, %s2497_s28  ;;  %s684_s19 = scalar_lea.vmem (!%p669_p10), [#allocation3], %s1880_s18 }
  0x56   : > { %s1882_s20 = sshll.u32 (!%p669_p10), %s2497_s28, 5 }
  0x57   : > { %s2506_s13 = scalar_lea.vmem (!%p669_p10), [#allocation2], %s2101_s30  ;;  %s2711_s28 = scalar_lea.vmem (!%p669_p10), [#allocation5], %s1882_s20 }
  0x59   : > { %v2179_v16 = vld [vmem:[%s2761_s1 + $0x4] ss:$20 sps:$4 sm:$0xff]   ;;  %v2182_v17 = vld [vmem:[%s2761_s1 + $0xc] ss:$20 sps:$4 sm:$0xff]   ;;  %v2249_v18 = vmov 0   ;;  %v2149_v23 = vld [vmem:[%s2506_s13 + $0x70] sm:$0xff]  }
  0x5a   : > { %2144 = vset.pattern.permute.xlu1 %v2249_v18  ;;  %2143 = vset.pattern.permute.xlu0 %v2249_v18  ;;  %v2145_v19 = vld [vmem:[%s2506_s13 + $0x78] sm:$0xff]   ;;  %v2150_v24 = vld [vmem:[%s2506_s13 + $0xf0] sm:$0xff]   ;;  %v2153_v27 = vld [vmem:[%s2506_s13 + $0x68] sm:$0xff]   ;;  %vm1177_vm0 = vcmask 523264   ;;  %s1953_s27 = sshll.u32 (%p2324_p6), %s2239_s23, 3 }
  0x5b   : > { %1222 = vmatprep.mubr.bf16.mxu0 %v2179_v16  ;;  %1287 = vmatprep.mubr.bf16.mxu1 %v2182_v17  ;;  %v2146_v20 = vld [vmem:[%s2506_s13 + $0xf8] sm:$0xff]   ;;  %v2151_v25 = vld [vmem:[%s2506_s13 + $0x30] sm:$0xff]   ;;  %v2154_v28 = vld [vmem:[%s2506_s13 + $0xe8] sm:$0xff]   ;;  %s1568_s9 = scalar_lea.vmem (%p2324_p6), %s2765_s5, %s1953_s27 }
  0x5c   : > { %1988 = vmatprep.subr.bf16.mxu0 %v2145_v19  ;;  %v2147_v21 = vld [vmem:[%s2506_s13 + $0x38] sm:$0xff]   ;;  %2028 = vmatprep.subr.bf16.mxu1 %v2146_v20  ;;  %v2152_v26 = vld [vmem:[%s2506_s13 + $0xb0] sm:$0xff]   ;;  %v2155_v29 = vld [vmem:[%s2506_s13 + $0x28] sm:$0xff]  }
  0x5d   : > { %v2148_v22 = vld [vmem:[%s2506_s13 + $0xb8] sm:$0xff]   ;;  %1989 = vmatpush3.bf16.msra.mxu0 %v2147_v21  ;;  %v2156_v30 = vld [vmem:[%s2506_s13 + $0xa8] sm:$0xff]   ;;  %v2157_v31 = vld [vmem:[%s2506_s13 + $0x60] sm:$0xff]  }
  0x5e   : > { %2029 = vmatpush3.bf16.msra.mxu1 %v2148_v22  ;;  %1990 = vmatprep.subr.bf16.mxu0 %v2149_v23  ;;  %v2158_v32 = vld [vmem:[%s2506_s13 + $0xe0] sm:$0xff]   ;;  %v2161_v35 = vld [vmem:[%s2506_s13 + $0x58] sm:$0xff]   ;;  %v2165_v39 = vld [vmem:[%s2506_s13 + $0x50] sm:$0xff]  }
  0x5f   : > { %2030 = vmatprep.subr.bf16.mxu1 %v2150_v24  ;;  %v2159_v33 = vld [vmem:[%s2506_s13 + $0x20] sm:$0xff]   ;;  %v2162_v36 = vld [vmem:[%s2506_s13 + $0xd8] sm:$0xff]   ;;  %v2166_v40 = vld [vmem:[%s2506_s13 + $0xd0] sm:$0xff]  }
  0x60   : > { %v2160_v34 = vld [vmem:[%s2506_s13 + $0xa0] sm:$0xff]   ;;  %v2163_v37 = vld [vmem:[%s2506_s13 + $0x18] sm:$0xff]   ;;  %v2167_v41 = vld [vmem:[%s2506_s13 + $0x10] sm:$0xff]  }
  0x61   : > { %1991 = vmatpush3.bf16.msra.mxu0 %v2151_v25  ;;  %v2164_v38 = vld [vmem:[%s2506_s13 + $0x98] sm:$0xff]   ;;  %v2168_v42 = vld [vmem:[%s2506_s13 + $0x90] sm:$0xff]   ;;  %v2169_v43 = vld [vmem:[%s2506_s13 + $0x48] sm:$0xff]  }
  0x62   : > { %2031 = vmatpush3.bf16.msra.mxu1 %v2152_v26  ;;  %1992 = vmatprep.subr.bf16.mxu0 %v2153_v27  ;;  %v2170_v44 = vld [vmem:[%s2506_s13 + $0xc8] sm:$0xff]   ;;  %v2173_v47 = vld [vmem:[%s2506_s13 + $0x40] sm:$0xff]   ;;  %v2183_v53 = vld [vmem:[%s2506_s13 + $0x118] sm:$0xff]  }
  0x63   : > { %2032 = vmatprep.subr.bf16.mxu1 %v2154_v28  ;;  %v2171_v45 = vld [vmem:[%s2506_s13 + $0x8] sm:$0xff]   ;;  %v2174_v48 = vld [vmem:[%s2506_s13 + $0xc0] sm:$0xff]   ;;  %v2190_v56 = vld [vmem:[%s2506_s13 + $0x110] sm:$0xff]  }
  0x64   : > { %v2172_v46 = vld [vmem:[%s2506_s13 + $0x88] sm:$0xff]   ;;  %v2177_v49 = vld [vmem:[%s2761_s1] ss:$20 sps:$4 sm:$0xff]   ;;  %v2189_v59 = vld [vmem:[%s2761_s1 + $0x30] ss:$20 sps:$4 sm:$0xff]  }
  0x65   : > { %1993 = vmatpush3.bf16.msra.mxu0 %v2155_v29  ;;  %v2175_v50 = vld [vmem:[%s2506_s13] sm:$0xff]   ;;  %v2180_v51 = vld [vmem:[%s2761_s1 + $0x8] ss:$20 sps:$4 sm:$0xff]   ;;  %v1395_v63 = vld [vmem:[%s2762_s2 + $0x10] sm:$0xff] }
  0x66   : > { %2033 = vmatpush3.bf16.msra.mxu1 %v2156_v30  ;;  %1994 = vmatprep.subr.bf16.mxu0 %v2157_v31  ;;  %v2176_v52 = vld [vmem:[%s2506_s13 + $0x80] sm:$0xff]   ;;  %v2186_v55 = vld [vmem:[%s2761_s1 + $0x34] ss:$20 sps:$4 sm:$0xff]   ;;  %v2193_v61 = vld [vmem:[%s2761_s1 + $0x5c] ss:$20 sps:$4 sm:$0xff]  }
  0x67   : > { %2034 = vmatprep.subr.bf16.mxu1 %v2158_v32  ;;  %v2184_v54 = vld [vmem:[%s2761_s1 + $0x2c] ss:$20 sps:$4 sm:$0xff]   ;;  %v2188_v57 = vld [vmem:[%s2761_s1 + $0x28] ss:$20 sps:$4 sm:$0xff]   ;;  %v2195_v0 = vld [vmem:[%s2761_s1 + $0x50] ss:$20 sps:$4 sm:$0xff]   ;;  %1413 = vperm.xlu1 %2144, %v1395_v63  }
  0x68   : > { %v2197_v58 = vld [vmem:[%s2506_s13 + $0x108] sm:$0xff]   ;;  %v2204_v62 = vld [vmem:[%s2506_s13 + $0x100] sm:$0xff]   ;;  %v2198_v3 = vld [vmem:[%s2761_s1 + $0x7c] ss:$20 sps:$4 sm:$0xff]   ;;  %s2687_s13 = scalar_lea.vmem [#allocation4], %s1880_s18 }
  0x69   : > { %1995 = vmatpush3.bf16.msra.mxu0 %v2159_v33  ;;  %v2191_v60 = vld [vmem:[%s2761_s1 + $0x54] ss:$20 sps:$4 sm:$0xff]   ;;  %v1393_v1 = vld [vmem:[%s2762_s2] sm:$0xff]  ;;  %v2196_v2 = vld [vmem:[%s2761_s1 + $0x58] ss:$20 sps:$4 sm:$0xff]  }
  0x6a   : > { %2035 = vmatpush3.bf16.msra.mxu1 %v2160_v34  ;;  %1996 = vmatprep.subr.bf16.mxu0 %v2161_v35  ;;  %v1396_v4 = vld [vmem:[%s2762_s2 + $0x18] sm:$0xff]  ;;  %v1394_v6 = vld [vmem:[%s2762_s2 + $0x8] sm:$0xff]  ;;  %v1397_v8 = vld [vmem:[%s2762_s2 + $0x20] sm:$0xff] }
  0x6b   : > { %2036 = vmatprep.subr.bf16.mxu1 %v2162_v36  ;;  %1403 = vperm.xlu0 %2143, %v1393_v1   ;;  %v2200_v5 = vld [vmem:[%s2761_s1 + $0x84] ss:$20 sps:$4 sm:$0xff]   ;;  %v1398_v7 = vld [vmem:[%s2762_s2 + $0x28] sm:$0xff]  ;;  %v2203_v10 = vld [vmem:[%s2761_s1 + $0x80] ss:$20 sps:$4 sm:$0xff]  }
  0x6c   : > { %1418 = vperm.xlu1 %2144, %v1396_v4   ;;  %v2202_v9 = vld [vmem:[%s2761_s1 + $0x78] ss:$20 sps:$4 sm:$0xff]   ;;  %v2205_v11 = vld [vmem:[%s2761_s1 + $0x10] ss:$20 sps:$4 sm:$0xff]   ;;  %v2206_v13 = vld [vmem:[%s2761_s1 + $0x60] ss:$20 sps:$4 sm:$0xff]  }
  0x6d   : > { %1997 = vmatpush3.bf16.msra.mxu0 %v2163_v37  ;;  %v1400_v12 = vld [vmem:[%s2762_s2 + $0x38] sm:$0xff]  ;;  %v1399_v14 = vld [vmem:[%s2762_s2 + $0x30] sm:$0xff]  ;;  %v1450_v15 = vld [vmem:[%s2763_s3 + $0x8] sm:$0xff] }
  0x6e   : > { %2037 = vmatpush3.bf16.msra.mxu1 %v2164_v38  ;;  %1998 = vmatprep.subr.bf16.mxu0 %v2165_v39  ;;  %v1449_v16 = vld [vmem:[%s2763_s3] sm:$0xff]  ;;  %v2207_v17 = vld [vmem:[%s2761_s1 + $0x38] ss:$20 sps:$4 sm:$0xff]   ;;  %v2208_v18 = vld [vmem:[%s2761_s1 + $0x88] ss:$20 sps:$4 sm:$0xff]  }
  0x6f   : > { %2038 = vmatprep.subr.bf16.mxu1 %v2166_v40  ;;  %1408 = vperm.xlu0 %2143, %v1394_v6   ;;  %v1452_v19 = vld [vmem:[%s2763_s3 + $0x18] sm:$0xff]  ;;  %v1451_v20 = vld [vmem:[%s2763_s3 + $0x10] sm:$0xff]  ;;  %v1454_v21 = vld [vmem:[%s2763_s3 + $0x28] sm:$0xff] }
  0x70   : > { %1428 = vperm.xlu1 %2144, %v1398_v7   ;;  %v1453_v22 = vld [vmem:[%s2763_s3 + $0x20] sm:$0xff]  ;;  %v1456_v23 = vld [vmem:[%s2763_s3 + $0x38] sm:$0xff]  ;;  %v1455_v24 = vld [vmem:[%s2763_s3 + $0x30] sm:$0xff] }
  0x71   : > { %1999 = vmatpush3.bf16.msra.mxu0 %v2167_v41  ;;  %v853_v63 = vld [vmem:[%s684_s19] sm:$0xff] }
  0x72   : > { %2039 = vmatpush3.bf16.msra.mxu1 %v2168_v42  ;;  %2000 = vmatprep.subr.bf16.mxu0 %v2169_v43  ;;  %v857_v7 = vld [vmem:[%s684_s19 + $0x20] sm:$0xff] }
  0x73   : > { %2040 = vmatprep.subr.bf16.mxu1 %v2170_v44  ;;  %1423 = vperm.xlu0 %2143, %v1397_v8  }
  0x74   : > { %1438 = vperm.xlu1 %2144, %v1400_v12   ;;  %v856_v12 = vld [vmem:[%s684_s19 + $0x18] sm:$0xff] }
  0x75   : > { %2001 = vmatpush3.bf16.msra.mxu0 %v2171_v45 }
  0x76   : > { %2041 = vmatpush3.bf16.msra.mxu1 %v2172_v46  ;;  %2002 = vmatprep.subr.bf16.mxu0 %v2173_v47 }
  0x77   : > { %2042 = vmatprep.subr.bf16.mxu1 %v2174_v48  ;;  %1433 = vperm.xlu0 %2143, %v1399_v14   ;;  %v854_v14 = vld [vmem:[%s684_s19 + $0x8] sm:$0xff] }
  0x78   : > { %1464 = vperm.xlu1 %2144, %v1450_v15  }
  0x79   : > { %2003 = vmatpush3.bf16.msra.mxu0 %v2175_v50 }
  0x7a   : > { %2043 = vmatpush3.bf16.msra.mxu1 %v2176_v52  ;;  %2076 = vmatprep.subr.bf16.mxu0 %v2183_v53 }
  0x7b   : > { %2092 = vmatprep.subr.bf16.mxu1 %v2183_v53  ;;  %1459 = vperm.xlu0 %2143, %v1449_v16  }
  0x7c   : > { %1223 = vmatmul.mubr.bf16.vlgmr.msra.gmra.mxu0 %v2177_v49  ;;  %1474 = vperm.xlu1 %2144, %v1452_v19  }
  0x7d   : > { %1288 = vmatmul.mubr.bf16.vlgmr.msra.gmra.mxu1 %v2180_v51  ;;  %2077 = vmatpush3.bf16.msra.mxu0 %v2183_v53 }
  0x7e   : > { %2096 = vmatpush3.bf16.msra.mxu1 %v2183_v53  ;;  %1230 = vmatprep.mubr.bf16.mxu0 %v2184_v54 }
  0x7f   : > { %1295 = vmatprep.mubr.bf16.mxu1 %v2186_v55  ;;  %2078 = vmatprep.subr.bf16.mxu0 %v2190_v56 }
  0x80   : > { %2093 = vmatprep.subr.bf16.mxu1 %v2190_v56  ;;  %1469 = vperm.xlu0 %2143, %v1451_v20  }
  0x81   : > { %2079 = vmatpush3.bf16.msra.mxu0 %v2190_v56  ;;  %1484 = vperm.xlu1 %2144, %v1454_v21  }
  0x82   : > { %2097 = vmatpush3.bf16.msra.mxu1 %v2190_v56  ;;  %2080 = vmatprep.subr.bf16.mxu0 %v2197_v58 }
  0x83   : > { %2094 = vmatprep.subr.bf16.mxu1 %v2197_v58 }
  0x84   : > { %1231 = vmatmul.mubr.bf16.gmra.mxu0 %v2188_v57  ;;  %1479 = vperm.xlu0 %2143, %v1453_v22  }
  0x85   : > { %1296 = vmatmul.mubr.bf16.gmra.mxu1 %v2189_v59  ;;  %1238 = vmatprep.mubr.bf16.mxu0 %v2191_v60 }
  0x86   : > { %1303 = vmatprep.mubr.bf16.mxu1 %v2193_v61  ;;  %2081 = vmatpush3.bf16.msra.mxu0 %v2197_v58  ;;  %v855_v61 = vld [vmem:[%s684_s19 + $0x10] sm:$0xff] }
  0x87   : > { %2098 = vmatpush3.bf16.msra.mxu1 %v2197_v58  ;;  %2082 = vmatprep.subr.bf16.mxu0 %v2204_v62 }
  0x88   : > { %2095 = vmatprep.subr.bf16.mxu1 %v2204_v62  ;;  %1494 = vperm.xlu1 %2144, %v1456_v23   ;;  %v860_v23 = vld [vmem:[%s684_s19 + $0x38] sm:$0xff] }
  0x89   : > { %1489 = vperm.xlu0 %2143, %v1455_v24  }
  0x8a   : > { %2083 = vmatpush3.bf16.msra.mxu0 %v2204_v62 }
  0x8b   : > { %2099 = vmatpush3.bf16.msra.mxu1 %v2204_v62 }
  0x8c   : > { %1239 = vmatmul.mubr.bf16.gmra.mxu0 %v2195_v0 }
  0x8d   : > { %1304 = vmatmul.mubr.bf16.gmra.mxu1 %v2196_v2  ;;  %1246 = vmatprep.mubr.bf16.mxu0 %v2198_v3  ;;  %v859_v2 = vld [vmem:[%s684_s19 + $0x30] sm:$0xff] }
  0x8e   : > { %1311 = vmatprep.mubr.bf16.mxu1 %v2200_v5 }
  0x94   : > { %1247 = vmatmul.mubr.bf16.gmra.mxu0 %v2202_v9 }
  0x95   : > { %1312 = vmatmul.mubr.bf16.gmra.mxu1 %v2203_v10  ;;  %2084 = vmatprep.mubr.msk.bf16.mxu0 %vm1177_vm0, %v2205_v11 }
  0x96   : > { %2088 = vmatprep.mubr.msk.bf16.mxu1 %vm1177_vm0, %v2206_v13 }
  0x9c   : > { %2085 = vmatmul.mubr.msk.bf16.vlgmr.msra.gmra.mxu0 %vm1177_vm0, %v2207_v17 }
  0x9d   : > { %2089 = vmatmul.mubr.msk.bf16.vlgmr.msra.gmra.mxu1 %vm1177_vm0, %v2208_v18 }
  0xe2   : > { %v2652_v26 = vpop.permute.xlu1 %1413 }
  0xe6   : > { %v2650_v25 = vpop.permute.xlu0 %1403 }
  0xe7   : > { %v2656_v33 = vpop.permute.xlu1 %1418 }
  0xea   : > { %v2654_v30 = vpop.permute.xlu0 %1408 }
  0xeb   : > { %v2664_v41 = vpop.permute.xlu1 %1428 }
  0xee   : > { %v2662_v38 = vpop.permute.xlu0 %1423 }
  0xef   : > { %v2668_v49 = vpop.permute.xlu1 %1438 }
  0xf2   : > { %v2666_v46 = vpop.permute.xlu0 %1433 }
  0xf3   : > { %v2675_v57 = vpop.permute.xlu1 %1464 }
  0xf6   : > { %v2671_v54 = vpop.permute.xlu0 %1459 }
  0xf7   : > { %v2681_v15 = vpop.permute.xlu1 %1474 }
  0xfb   : > { %v2679_v4 = vpop.permute.xlu0 %1469 }
 0x13c   : > { %v2004_v27 = vpop.f32.mrf.mxu0 }
 0x13d   : > { %v2044_v28 = vpop.f32.mrf.mxu1 }
 0x13e   : > { %v2005_v29 = vpop.f32.mrf.mxu0 }
 0x13f   : > { %v2045_v31 = vpop.f32.mrf.mxu1  ;;  %v2006_v60 = vadd.f32 %v2005_v29, %v2004_v27  ;;  %v858_v29 = vld [vmem:[%s684_s19 + $0x28] sm:$0xff] }
 0x140   : > { %v2007_v32 = vpop.f32.mrf.mxu0  ;;  %v2046_v20 = vadd.f32 %v2045_v31, %v2044_v28 }
 0x141   : > { %v2658_v34 = vpop.f32.mrf.mxu1  ;;  %v1225_v10 = vadd.f32 %v2006_v60, %v853_v63 }
 0x142   : > { %v2008_v35 = vpop.f32.mrf.mxu0 }
 0x143   : > { %v2660_v36 = vpop.f32.mrf.mxu1  ;;  %v2009_v11 = vadd.f32 %v2008_v35, %v2007_v32 }
 0x144   : > { %v2010_v37 = vpop.f32.mrf.mxu0 }
 0x145   : > { %v2050_v39 = vpop.f32.mrf.mxu1  ;;  %v1228_v35 = vadd.f32 %v2009_v11, %v854_v14 }
 0x146   : > { %v2011_v40 = vpop.f32.mrf.mxu0 }
 0x147   : > { %v2051_v42 = vpop.f32.mrf.mxu1  ;;  %v2012_v58 = vadd.f32 %v2011_v40, %v2010_v37 }
 0x148   : > { %v2013_v43 = vpop.f32.mrf.mxu0  ;;  %v2052_v16 = vadd.f32 %v2051_v42, %v2050_v39  ;;  %v1480_v39 = vpop.permute.xlu0 %1479 }
 0x149   : > { %v2053_v44 = vpop.f32.mrf.mxu1  ;;  %v1233_v5 = vadd.f32 %v2012_v58, %v855_v61 }
 0x14a   : > { %v2014_v45 = vpop.f32.mrf.mxu0 }
 0x14b   : > { %v2054_v47 = vpop.f32.mrf.mxu1  ;;  %v2015_v6 = vadd.f32 %v2014_v45, %v2013_v43  ;;  %v1298_v43 = vadd.f32 %v2052_v16, %v1233_v5 }
 0x14c   : > { %v2016_v48 = vpop.f32.mrf.mxu0  ;;  %v2055_v42 = vadd.f32 %v2054_v47, %v2053_v44 }
 0x14d   : > { %v2056_v50 = vpop.f32.mrf.mxu1  ;;  %v1236_v27 = vadd.f32 %v2015_v6, %v856_v12 }
 0x14e   : > { %v2017_v51 = vpop.f32.mrf.mxu0 }
 0x14f   : > { %v2057_v52 = vpop.f32.mrf.mxu1  ;;  %v2018_v1 = vadd.f32 %v2017_v51, %v2016_v48  ;;  %v1290_v51 = vadd.f32 %v2046_v20, %v1225_v10 }
 0x150   : > { %v2019_v53 = vpop.f32.mrf.mxu0  ;;  %v2058_v45 = vadd.f32 %v2057_v52, %v2056_v50  ;;  %v1301_v52 = vadd.f32 %v2055_v42, %v1236_v27 }
 0x151   : > { %v2673_v55 = vpop.f32.mrf.mxu1  ;;  %v1241_v21 = vadd.f32 %v2018_v1, %v857_v7 }
 0x152   : > { %v2020_v56 = vpop.f32.mrf.mxu0 }
 0x153   : > { %v2060_v59 = vpop.f32.mrf.mxu1  ;;  %v2021_v22 = vadd.f32 %v2020_v56, %v2019_v53  ;;  %v2049_v53 = vadd.f32 %v2660_v36, %v2658_v34  ;;  %v1306_v63 = vadd.f32 %v2058_v45, %v1241_v21 }
 0x154   : > { %v2022_v62 = vpop.f32.mrf.mxu0  ;;  %v2061_v34 = vadd.f32 %v2060_v59, %v2673_v55  ;;  %v1490_v59 = vpop.permute.xlu0 %1489 }
 0x155   : > { %v2062_v0 = vpop.f32.mrf.mxu1  ;;  %v1244_v56 = vadd.f32 %v2021_v22, %v858_v29 }
 0x156   : > { %v2023_v3 = vpop.f32.mrf.mxu0 }
 0x157   : > { %v2024_v8 = vadd.f32 %v2023_v3, %v2022_v62  ;;  %v2063_v9 = vpop.f32.mrf.mxu1  ;;  %v1309_v55 = vadd.f32 %v2061_v34, %v1244_v56 }
 0x158   : > { %v2025_v13 = vpop.f32.mrf.mxu0  ;;  %v2064_v18 = vadd.f32 %v2063_v9, %v2062_v0  ;;  %v1485_v0 = vpop.permute.xlu1 %1484 }
 0x159   : > { %v1249_v17 = vadd.f32 %v2024_v8, %v859_v2  ;;  %v2065_v19 = vpop.f32.mrf.mxu1  ;;  %v1293_v8 = vadd.f32 %v2049_v53, %v1228_v35 }
 0x15a   : > { %v2026_v24 = vpop.f32.mrf.mxu0 }
 0x15b   : > { %v2027_v37 = vadd.f32 %v2026_v24, %v2025_v13  ;;  %v2066_v40 = vpop.f32.mrf.mxu1  ;;  %v1314_v32 = vadd.f32 %v2064_v18, %v1249_v17 }
 0x15c   : > { %v2086_v48 = vpop.f32.mrf.mxu0  ;;  %v2067_v60 = vadd.f32 %v2066_v40, %v2065_v19 }
 0x15d   : > { %v1252_v58 = vadd.f32 %v2027_v37, %v860_v23  ;;  %v1363_v28 = vadd.f32 %v2086_v48, %v1298_v43  ;;  %v2090_v31 = vpop.f32.mrf.mxu1 }
 0x15e   : > { %v1379_v61 = vadd.f32 %v2090_v31, %v1314_v32  ;;  %v1354_v62 = vpop.f32.mrf.mxu0 }
 0x15f   : > { %1387 = vst [vmem:[%s2687_s13 + $0x10] sm:$0xff] %v1363_v28  ;;  %v1443_v44 = vmul.f32 %v2652_v26, %v1363_v28  ;;  %v1355_v47 = vadd.f32 %v1354_v62, %v1290_v51  ;;  %v1370_v50 = vpop.f32.mrf.mxu1  ;;  %v1317_v1 = vadd.f32 %v2067_v60, %v1252_v58 }
 0x160   : > { %1391 = vst [vmem:[%s2687_s13 + $0x30] sm:$0xff] %v1379_v61  ;;  %v1447_v36 = vmul.f32 %v2666_v46, %v1379_v61  ;;  %v1371_v2 = vadd.f32 %v1370_v50, %v1306_v63  ;;  %v2087_v3 = vpop.f32.mrf.mxu0 }
 0x161   : > { %1385 = vst [vmem:[%s2687_s13] sm:$0xff] %v1355_v47  ;;  %v1441_v5 = vmul.f32 %v2650_v25, %v1355_v47  ;;  %v1366_v6 = vadd.f32 %v2087_v3, %v1301_v52  ;;  %v2091_v7 = vpop.f32.mrf.mxu1  ;;  %v1499_v46 = vadd.f32 %v2679_v4, %v1443_v44 }
 0x162   : > { %1389 = vst [vmem:[%s2687_s13 + $0x20] sm:$0xff] %v1371_v2  ;;  %v1445_v26 = vmul.f32 %v2662_v38, %v1371_v2  ;;  %v1382_v9 = vadd.f32 %v2091_v7, %v1317_v1  ;;  %v1357_v10 = vpop.f32.mrf.mxu0  ;;  %v1503_v13 = vadd.f32 %v1490_v59, %v1447_v36  ;;  %v1495_v38 = vpop.permute.xlu1 %1494 }
 0x163   : > { %1388 = vst [vmem:[%s2687_s13 + $0x18] sm:$0xff] %v1366_v6  ;;  %v1444_v11 = vmul.f32 %v2656_v33, %v1366_v6  ;;  %v1358_v25 = vadd.f32 %v1357_v10, %v1293_v8  ;;  %v1373_v12 = vpop.f32.mrf.mxu1  ;;  %v1497_v17 = vadd.f32 %v2671_v54, %v1441_v5  ;;  %v1507_v21 = vmax.f32 %v1499_v46, 0.0 }
 0x164   : > { %1392 = vst [vmem:[%s2687_s13 + $0x38] sm:$0xff] %v1382_v9  ;;  %v1448_v14 = vmul.f32 %v2668_v49, %v1382_v9  ;;  %v1374_v16 = vadd.f32 %v1373_v12, %v1309_v55  ;;  %v1501_v19 = vadd.f32 %v1480_v39, %v1445_v26  ;;  %v1511_v49 = vmax.f32 %v1503_v13, 0.0 }
 0x165   : > { %v1500_v18 = vadd.f32 %v2681_v15, %v1444_v11  ;;  %1386 = vst [vmem:[%s2687_s13 + $0x8] sm:$0xff] %v1358_v25  ;;  %v1442_v4 = vmul.f32 %v2654_v30, %v1358_v25  ;;  %v1505_v29 = vmax.f32 %v1497_v17, 0.0 }
 0x166   : > { %v1504_v20 = vadd.f32 %v1495_v38, %v1448_v14  ;;  %1390 = vst [vmem:[%s2687_s13 + $0x28] sm:$0xff] %v1374_v16  ;;  %v1446_v33 = vmul.f32 %v2664_v41, %v1374_v16  ;;  %v1509_v40 = vmax.f32 %v1501_v19, 0.0  ;;  %v1615_v35 = vld [vmem:[%s2687_s13 + $0x10] sm:$0xff] (%p2324_p6) }
 0x167   : > { %v1508_v22 = vmax.f32 %v1500_v18, 0.0  ;;  %v1498_v23 = vadd.f32 %v2675_v57, %v1442_v4  ;;  %1616 = vst [vmem:[%s1568_s9 + $0x40] sm:$0xff] (%p2324_p6), %v1615_v35  ;;  %v1623_v39 = vld [vmem:[%s2687_s13 + $0x30] sm:$0xff] (%p2324_p6) }
 0x168   : > { %v1512_v24 = vmax.f32 %v1504_v20, 0.0  ;;  %v1502_v27 = vadd.f32 %v1485_v0, %v1446_v33  ;;  %v1611_v57 = vld [vmem:[%s2687_s13] sm:$0xff] (%p2324_p6)  ;;  %1624 = vst [vmem:[%s1568_s9 + $0xc0] sm:$0xff] (%p2324_p6), %v1623_v39 }
 0x169   : > { %v1973_v54 = vpack.c.bf16 %v1508_v22, %v1507_v21  ;;  %v1506_v37 = vmax.f32 %v1498_v23, 0.0  ;;  %v1619_v48 = vld [vmem:[%s2687_s13 + $0x20] sm:$0xff] (%p2324_p6)  ;;  %1612 = vst [vmem:[%s1568_s9] sm:$0xff] (%p2324_p6), %v1611_v57 }
 0x16a   : > { %v1983_v15 = vpack.c.bf16 %v1512_v24, %v1511_v49  ;;  %v1510_v43 = vmax.f32 %v1502_v27, 0.0  ;;  %1563 = sbr.rel (!%p2324_p6) target bundleno = 367 (0x16f), region = 123  ;;  %v1617_v45 = vld [vmem:[%s2687_s13 + $0x18] sm:$0xff] (%p2324_p6)  ;;  %1620 = vst [vmem:[%s1568_s9 + $0x80] sm:$0xff] (%p2324_p6), %v1619_v48 }
 0x16b   : > { %1985 = vst [vmem:[%s2711_s28 + $0x8] sm:$0xff] %v1973_v54   ;;  %v1968_v30 = vpack.c.bf16 %v1506_v37, %v1505_v29  ;;  %1618 = vst [vmem:[%s1568_s9 + $0x60] sm:$0xff] (%p2324_p6), %v1617_v45  ;;  %v1625_v42 = vld [vmem:[%s2687_s13 + $0x38] sm:$0xff] (%p2324_p6) }
 0x16c   : > { %1987 = vst [vmem:[%s2711_s28 + $0x18] sm:$0xff] %v1983_v15   ;;  %v1978_v41 = vpack.c.bf16 %v1510_v43, %v1509_v40  ;;  %v1613_v32 = vld [vmem:[%s2687_s13 + $0x8] sm:$0xff] (%p2324_p6)  ;;  %1626 = vst [vmem:[%s1568_s9 + $0xe0] sm:$0xff] (%p2324_p6), %v1625_v42 }
 0x16d   : > { %1969 = vst [vmem:[%s2711_s28] sm:$0xff] %v1968_v30   ;;  %v1621_v51 = vld [vmem:[%s2687_s13 + $0x28] sm:$0xff] (%p2324_p6)  ;;  %1614 = vst [vmem:[%s1568_s9 + $0x20] sm:$0xff] (%p2324_p6), %v1613_v32 }
 0x16e   : > { %1986 = vst [vmem:[%s2711_s28 + $0x10] sm:$0xff] %v1978_v41   ;;  %1622 = vst [vmem:[%s1568_s9 + $0xa0] sm:$0xff] (%p2324_p6), %v1621_v51 }
 0x16f PF: > { %1632 = sbr.rel (!%p2324_p6) target bundleno = 376 (0x178), region = 161  ;;  %s1954_s10 = sshll.u32 (%p2324_p6), %s2239_s23, 2 }
 0x170   : > { %s1637_s21 = scalar_lea.vmem (%p2324_p6), %s2766_s6, %s1954_s10 }
 0x172   : > { %v1658_v28 = vld [vmem:[%s2711_s28 + $0x8] sm:$0xf] (%p2324_p6)  ;;  %v1660_v31 = vld [vmem:[%s2711_s28 + $0xc] sm:$0xf] (%p2324_p6) }
 0x173   : > { %1659 = vst [vmem:[%s1637_s21 + $0x20] sm:$0xf] (%p2324_p6), %v1658_v28  ;;  %1661 = vst [vmem:[%s1637_s21 + $0x30] sm:$0xf] (%p2324_p6), %v1660_v31  ;;  %v1666_v61 = vld [vmem:[%s2711_s28 + $0x18] sm:$0xf] (%p2324_p6) }
 0x174   : > { %v1654_v58 = vld [vmem:[%s2711_s28] sm:$0xf]  ;;  %v1656_v60 = vld [vmem:[%s2711_s28 + $0x4] sm:$0xf]  ;;  %v1668_v62 = vld [vmem:[%s2711_s28 + $0x1c] sm:$0xf] }
 0x175   : > { %v1662_v53 = vld [vmem:[%s2711_s28 + $0x10] sm:$0xf]  ;;  %1655 = vst [vmem:[%s1637_s21] sm:$0xf] %v1654_v58  ;;  %1657 = vst [vmem:[%s1637_s21 + $0x10] sm:$0xf] %v1656_v60 }
 0x176   : > { %1663 = vst [vmem:[%s1637_s21 + $0x40] sm:$0xf] %v1662_v53  ;;  %v1664_v56 = vld [vmem:[%s2711_s28 + $0x14] sm:$0xf]  ;;  %1667 = vst [vmem:[%s1637_s21 + $0x60] sm:$0xf] %v1666_v61 }
 0x177   : > { %1665 = vst [vmem:[%s1637_s21 + $0x50] sm:$0xf] %v1664_v56  ;;  %1669 = vst [vmem:[%s1637_s21 + $0x70] sm:$0xf] %v1668_v62 }
 0x178 PF: > { %s17_s25 = sadd.s32 1, %s2247_s25   ;;  %s2769_s21 = smov %s2235_s22 }
 0x179   : > { %p14_p11 = scmp.ge.s32.totalorder %s17_s25, 6   ;;  %s2770_s22 = smov %s2329_s8 }
 0x17a   : > { %s2771_s23 = smov %s2243_s24  ;;  %s2772_s24 = smov %s2774_s26 }
 0x17b   :  { %16 = sbr.rel (!%p14_p11) target bundleno = 3 (0x3), region = 262 }

// kernel: preact_resnet_forward.53
= control target key start
LH: loop header
LB: loop body
LE: loop exit
PB: predicated region body
PF: predicated region fallthrough
CT: control target
= control target key end

     0   :  { %s1549_s15 = smov 0   ;;  %s1551_s16 = smov 0   ;;  %s1771_s0 = inlined_call_operand.vmem [shape: bf16[576,128], index: 0, kind: input, shape index: {}]   ;;  %s1772_s1 = inlined_call_operand.vmem [shape: bf16[128,576], index: 1, kind: input, shape index: {}]   ;;  %s1773_s2 = inlined_call_operand.vmem [shape: f32[128,1], index: 2, kind: input, shape index: {}]   ;;  %s1774_s3 = inlined_call_operand.vmem [shape: f32[128,1], index: 3, kind: input, shape index: {}]   ;;  %s1775_s4 = inlined_call_operand.vmem [shape: bf16[128,128], index: 4, kind: output, shape index: {}]  }
   0x1   :  { %s1553_s17 = smov 0  }
   0x2 LB: > { %s23_s18 = sadd.s32 1, %s1517_s16  ;;  %p1185_p0 = scmp.ge.s32.totalorder %s1521_s17, 1  ;;  %s1521_s17 = sphi %s1553_s17, %s14_s17   ;;  %s1517_s16 = sphi %s1551_s16, %s1777_s16   ;;  %s1513_s15 = sphi %s1549_s15, %s1776_s15  }
   0x3   : > { %p24_p1 = scmp.ge.s32.totalorder %s23_s18, 2  ;;  %p209_p2 = scmp.lt.s32.totalorder %s1521_s17, 3 }
   0x5   : > { %s1779_s18 = smov (%p24_p1, %s23_s18), 0  ;;  %p210_p3 = pnand %p1185_p0, %p209_p2 }
   0x6   : > { %s1186_s27 = sshll.u32 (!%p210_p3), %s1513_s15, 3 }
   0x7   : > { %213 = sbr.rel (%p210_p3) target bundleno = 289 (0x121), region = 36  ;;  %p258_p4 = scmp.lt.s32.totalorder (!%p210_p3), %s1186_s27, 15 }
   0xc   : > { %v1435_v0 = vld [vmem:[%s1771_s0 + $0x78] sm:$0xff]   ;;  %v1439_v4 = vld [vmem:[%s1771_s0 + $0x70] sm:$0xff]   ;;  %v1523_v6 = vmov 0   ;;  %v1443_v9 = vld [vmem:[%s1771_s0 + $0x68] sm:$0xff]   ;;  %s1781_s27 = smov (!%p258_p4, %s1186_s27), 15  ;;  %vm698_vm0 = vcmask 523264  }
   0xd   : > { %v1436_v1 = vld [vmem:[%s1771_s0 + $0xf8] sm:$0xff]   ;;  %1295 = vmatprep.subr.bf16.mxu0 %v1435_v0  ;;  %v1440_v5 = vld [vmem:[%s1771_s0 + $0xf0] sm:$0xff]   ;;  %1434 = vset.pattern.permute.xlu1 %v1523_v6  ;;  %v1444_v10 = vld [vmem:[%s1771_s0 + $0xe8] sm:$0xff]   ;;  %s1407_s28 = smul.u32 20, %s1781_s27  ;;  %s1193_s10 = sshll.u32 %s1781_s27, 2 }
   0xe   : > { %v1437_v2 = vld [vmem:[%s1771_s0 + $0x38] sm:$0xff]   ;;  %1335 = vmatprep.subr.bf16.mxu1 %v1436_v1  ;;  %v1441_v7 = vld [vmem:[%s1771_s0 + $0x30] sm:$0xff]   ;;  %1433 = vset.pattern.permute.xlu0 %v1523_v6  ;;  %v1445_v11 = vld [vmem:[%s1771_s0 + $0x28] sm:$0xff]   ;;  %s283_s13 = scalar_lea.vmem %s1775_s4, %s1193_s10 }
   0xf   : > { %v1438_v3 = vld [vmem:[%s1771_s0 + $0xb8] sm:$0xff]   ;;  %1296 = vmatpush3.bf16.msra.mxu0 %v1437_v2  ;;  %v1442_v8 = vld [vmem:[%s1771_s0 + $0xb0] sm:$0xff]   ;;  %v1446_v12 = vld [vmem:[%s1771_s0 + $0xa8] sm:$0xff]   ;;  %s1666_s12 = scalar_lea.vmem %s1772_s1, %s1407_s28  ;;  %s1189_s28 = sshll.u32 %s1781_s27, 3 }
  0x10   : > { %1336 = vmatpush3.bf16.msra.mxu1 %v1438_v3  ;;  %1297 = vmatprep.subr.bf16.mxu0 %v1439_v4  ;;  %v1447_v13 = vld [vmem:[%s1771_s0 + $0x60] sm:$0xff]   ;;  %v1451_v17 = vld [vmem:[%s1771_s0 + $0x58] sm:$0xff]   ;;  %v1455_v21 = vld [vmem:[%s1771_s0 + $0x50] sm:$0xff]   ;;  %s1703_s7 = scalar_lea.vmem %s1773_s2, %s1189_s28  ;;  %s274_s15 = scalar_lea.vmem %s1774_s3, %s1189_s28 }
  0x11   : > { %1337 = vmatprep.subr.bf16.mxu1 %v1440_v5  ;;  %v1448_v14 = vld [vmem:[%s1771_s0 + $0xe0] sm:$0xff]   ;;  %v1452_v18 = vld [vmem:[%s1771_s0 + $0xd8] sm:$0xff]   ;;  %v1456_v22 = vld [vmem:[%s1771_s0 + $0xd0] sm:$0xff]  }
  0x12   : > { %v1449_v15 = vld [vmem:[%s1771_s0 + $0x20] sm:$0xff]   ;;  %v1453_v19 = vld [vmem:[%s1771_s0 + $0x18] sm:$0xff]   ;;  %v1457_v23 = vld [vmem:[%s1771_s0 + $0x10] sm:$0xff]  }
  0x13   : > { %1298 = vmatpush3.bf16.msra.mxu0 %v1441_v7  ;;  %v1450_v16 = vld [vmem:[%s1771_s0 + $0xa0] sm:$0xff]   ;;  %v1454_v20 = vld [vmem:[%s1771_s0 + $0x98] sm:$0xff]   ;;  %v1458_v24 = vld [vmem:[%s1771_s0 + $0x90] sm:$0xff]  }
  0x14   : > { %1338 = vmatpush3.bf16.msra.mxu1 %v1442_v8  ;;  %1299 = vmatprep.subr.bf16.mxu0 %v1443_v9  ;;  %v1459_v25 = vld [vmem:[%s1771_s0 + $0x48] sm:$0xff]   ;;  %v1463_v29 = vld [vmem:[%s1771_s0 + $0x40] sm:$0xff]   ;;  %v1473_v37 = vld [vmem:[%s1771_s0 + $0x118] sm:$0xff]  }
  0x15   : > { %1339 = vmatprep.subr.bf16.mxu1 %v1444_v10  ;;  %v1460_v26 = vld [vmem:[%s1771_s0 + $0xc8] sm:$0xff]   ;;  %v1464_v30 = vld [vmem:[%s1771_s0 + $0xc0] sm:$0xff]   ;;  %v1480_v40 = vld [vmem:[%s1771_s0 + $0x110] sm:$0xff]  }
  0x16   : > { %v1461_v27 = vld [vmem:[%s1771_s0 + $0x8] sm:$0xff]   ;;  %v1465_v31 = vld [vmem:[%s1771_s0] sm:$0xff]   ;;  %v1483_v44 = vld [vmem:[%s1666_s12 + $0x5c] ss:$20 sps:$4 sm:$0xff]  }
  0x17   : > { %1300 = vmatpush3.bf16.msra.mxu0 %v1445_v11  ;;  %v1462_v28 = vld [vmem:[%s1771_s0 + $0x88] sm:$0xff]   ;;  %v1466_v32 = vld [vmem:[%s1771_s0 + $0x80] sm:$0xff]   ;;  %v1488_v49 = vld [vmem:[%s1666_s12 + $0x7c] ss:$20 sps:$4 sm:$0xff]  }
  0x18   : > { %1340 = vmatpush3.bf16.msra.mxu1 %v1446_v12  ;;  %1301 = vmatprep.subr.bf16.mxu0 %v1447_v13  ;;  %v1467_v33 = vld [vmem:[%s1666_s12] ss:$20 sps:$4 sm:$0xff]   ;;  %v1469_v34 = vld [vmem:[%s1666_s12 + $0x4] ss:$20 sps:$4 sm:$0xff]   ;;  %v1470_v35 = vld [vmem:[%s1666_s12 + $0x8] ss:$20 sps:$4 sm:$0xff]  }
  0x19   : > { %1341 = vmatprep.subr.bf16.mxu1 %v1448_v14  ;;  %v1472_v36 = vld [vmem:[%s1666_s12 + $0xc] ss:$20 sps:$4 sm:$0xff]   ;;  %743 = vmatprep.mubr.bf16.mxu0 %v1469_v34  ;;  %v1476_v39 = vld [vmem:[%s1666_s12 + $0x34] ss:$20 sps:$4 sm:$0xff]   ;;  %v1479_v42 = vld [vmem:[%s1666_s12 + $0x30] ss:$20 sps:$4 sm:$0xff]  }
  0x1a   : > { %808 = vmatprep.mubr.bf16.mxu1 %v1472_v36  ;;  %v1474_v38 = vld [vmem:[%s1666_s12 + $0x2c] ss:$20 sps:$4 sm:$0xff]   ;;  %v1478_v41 = vld [vmem:[%s1666_s12 + $0x28] ss:$20 sps:$4 sm:$0xff]   ;;  %v1485_v47 = vld [vmem:[%s1666_s12 + $0x50] ss:$20 sps:$4 sm:$0xff]  }
  0x1b   : > { %1302 = vmatpush3.bf16.msra.mxu0 %v1449_v15  ;;  %v1481_v43 = vld [vmem:[%s1666_s12 + $0x54] ss:$20 sps:$4 sm:$0xff]   ;;  %v1494_v46 = vld [vmem:[%s1771_s0 + $0x100] sm:$0xff]   ;;  %v1486_v48 = vld [vmem:[%s1666_s12 + $0x58] ss:$20 sps:$4 sm:$0xff]  }
  0x1c   : > { %1342 = vmatpush3.bf16.msra.mxu1 %v1450_v16  ;;  %1303 = vmatprep.subr.bf16.mxu0 %v1451_v17  ;;  %v1487_v45 = vld [vmem:[%s1771_s0 + $0x108] sm:$0xff]   ;;  %v1490_v50 = vld [vmem:[%s1666_s12 + $0x84] ss:$20 sps:$4 sm:$0xff]   ;;  %v908_v51 = vld [vmem:[%s1703_s7 + $0x10] sm:$0xff] }
  0x1d   : > { %1343 = vmatprep.subr.bf16.mxu1 %v1452_v18  ;;  %v906_v52 = vld [vmem:[%s1703_s7] sm:$0xff]  ;;  %926 = vperm.xlu1 %1434, %v908_v51   ;;  %v909_v53 = vld [vmem:[%s1703_s7 + $0x18] sm:$0xff]  ;;  %v907_v54 = vld [vmem:[%s1703_s7 + $0x8] sm:$0xff] }
  0x1e   : > { %916 = vperm.xlu0 %1433, %v906_v52   ;;  %v1492_v55 = vld [vmem:[%s1666_s12 + $0x78] ss:$20 sps:$4 sm:$0xff]   ;;  %v1493_v56 = vld [vmem:[%s1666_s12 + $0x80] ss:$20 sps:$4 sm:$0xff]   ;;  %v1495_v57 = vld [vmem:[%s1666_s12 + $0x10] ss:$20 sps:$4 sm:$0xff]  }
  0x1f   : > { %1304 = vmatpush3.bf16.msra.mxu0 %v1453_v19  ;;  %v911_v58 = vld [vmem:[%s1703_s7 + $0x28] sm:$0xff]  ;;  %v1496_v59 = vld [vmem:[%s1666_s12 + $0x60] ss:$20 sps:$4 sm:$0xff]   ;;  %v913_v61 = vld [vmem:[%s1703_s7 + $0x38] sm:$0xff] }
  0x20   : > { %1344 = vmatpush3.bf16.msra.mxu1 %v1454_v20  ;;  %1305 = vmatprep.subr.bf16.mxu0 %v1455_v21  ;;  %v910_v60 = vld [vmem:[%s1703_s7 + $0x20] sm:$0xff]  ;;  %v912_v62 = vld [vmem:[%s1703_s7 + $0x30] sm:$0xff]  ;;  %v1497_v63 = vld [vmem:[%s1666_s12 + $0x38] ss:$20 sps:$4 sm:$0xff]  }
  0x21   : > { %1345 = vmatprep.subr.bf16.mxu1 %v1456_v22  ;;  %931 = vperm.xlu1 %1434, %v909_v53   ;;  %v1498_v0 = vld [vmem:[%s1666_s12 + $0x88] ss:$20 sps:$4 sm:$0xff]   ;;  %v962_v2 = vld [vmem:[%s274_s15] sm:$0xff]  ;;  %v964_v4 = vld [vmem:[%s274_s15 + $0x10] sm:$0xff] }
  0x22   : > { %921 = vperm.xlu0 %1433, %v907_v54   ;;  %v963_v1 = vld [vmem:[%s274_s15 + $0x8] sm:$0xff]  ;;  %v965_v3 = vld [vmem:[%s274_s15 + $0x18] sm:$0xff]  ;;  %v966_v6 = vld [vmem:[%s274_s15 + $0x20] sm:$0xff] }
  0x23   : > { %1306 = vmatpush3.bf16.msra.mxu0 %v1457_v23  ;;  %v967_v5 = vld [vmem:[%s274_s15 + $0x28] sm:$0xff]  ;;  %v969_v7 = vld [vmem:[%s274_s15 + $0x38] sm:$0xff]  ;;  %v968_v8 = vld [vmem:[%s274_s15 + $0x30] sm:$0xff] }
  0x24   : > { %1346 = vmatpush3.bf16.msra.mxu1 %v1458_v24  ;;  %1307 = vmatprep.subr.bf16.mxu0 %v1459_v25 }
  0x25   : > { %1347 = vmatprep.subr.bf16.mxu1 %v1460_v26  ;;  %941 = vperm.xlu1 %1434, %v911_v58  }
  0x26   : > { %936 = vperm.xlu0 %1433, %v910_v60  }
  0x27   : > { %1308 = vmatpush3.bf16.msra.mxu0 %v1461_v27 }
  0x28   : > { %1348 = vmatpush3.bf16.msra.mxu1 %v1462_v28  ;;  %1309 = vmatprep.subr.bf16.mxu0 %v1463_v29 }
  0x29   : > { %1349 = vmatprep.subr.bf16.mxu1 %v1464_v30  ;;  %951 = vperm.xlu1 %1434, %v913_v61  }
  0x2a   : > { %946 = vperm.xlu0 %1433, %v912_v62  }
  0x2b   : > { %1310 = vmatpush3.bf16.msra.mxu0 %v1465_v31 }
  0x2c   : > { %1350 = vmatpush3.bf16.msra.mxu1 %v1466_v32  ;;  %1383 = vmatprep.subr.bf16.mxu0 %v1473_v37 }
  0x2d   : > { %1399 = vmatprep.subr.bf16.mxu1 %v1473_v37  ;;  %977 = vperm.xlu1 %1434, %v963_v1  }
  0x2e   : > { %744 = vmatmul.mubr.bf16.vlgmr.msra.gmra.mxu0 %v1467_v33  ;;  %972 = vperm.xlu0 %1433, %v962_v2  }
  0x2f   : > { %809 = vmatmul.mubr.bf16.vlgmr.msra.gmra.mxu1 %v1470_v35  ;;  %1384 = vmatpush3.bf16.msra.mxu0 %v1473_v37 }
  0x30   : > { %1403 = vmatpush3.bf16.msra.mxu1 %v1473_v37  ;;  %751 = vmatprep.mubr.bf16.mxu0 %v1474_v38 }
  0x31   : > { %816 = vmatprep.mubr.bf16.mxu1 %v1476_v39  ;;  %1385 = vmatprep.subr.bf16.mxu0 %v1480_v40 }
  0x32   : > { %1400 = vmatprep.subr.bf16.mxu1 %v1480_v40  ;;  %987 = vperm.xlu1 %1434, %v965_v3  }
  0x33   : > { %1386 = vmatpush3.bf16.msra.mxu0 %v1480_v40  ;;  %982 = vperm.xlu0 %1433, %v964_v4  }
  0x34   : > { %1404 = vmatpush3.bf16.msra.mxu1 %v1480_v40  ;;  %1387 = vmatprep.subr.bf16.mxu0 %v1487_v45 }
  0x35   : > { %1401 = vmatprep.subr.bf16.mxu1 %v1487_v45 }
  0x36   : > { %752 = vmatmul.mubr.bf16.gmra.mxu0 %v1478_v41  ;;  %997 = vperm.xlu1 %1434, %v967_v5  }
  0x37   : > { %817 = vmatmul.mubr.bf16.gmra.mxu1 %v1479_v42  ;;  %759 = vmatprep.mubr.bf16.mxu0 %v1481_v43 }
  0x38   : > { %824 = vmatprep.mubr.bf16.mxu1 %v1483_v44  ;;  %1388 = vmatpush3.bf16.msra.mxu0 %v1487_v45 }
  0x39   : > { %1405 = vmatpush3.bf16.msra.mxu1 %v1487_v45  ;;  %1389 = vmatprep.subr.bf16.mxu0 %v1494_v46 }
  0x3a   : > { %1402 = vmatprep.subr.bf16.mxu1 %v1494_v46  ;;  %992 = vperm.xlu0 %1433, %v966_v6  }
  0x3b   : > { %1007 = vperm.xlu1 %1434, %v969_v7  }
  0x3c   : > { %1390 = vmatpush3.bf16.msra.mxu0 %v1494_v46 }
  0x3d   : > { %1406 = vmatpush3.bf16.msra.mxu1 %v1494_v46 }
  0x3e   : > { %760 = vmatmul.mubr.bf16.gmra.mxu0 %v1485_v47  ;;  %1002 = vperm.xlu0 %1433, %v968_v8  }
  0x3f   : > { %825 = vmatmul.mubr.bf16.gmra.mxu1 %v1486_v48  ;;  %767 = vmatprep.mubr.bf16.mxu0 %v1488_v49 }
  0x40   : > { %832 = vmatprep.mubr.bf16.mxu1 %v1490_v50 }
  0x46   : > { %768 = vmatmul.mubr.bf16.gmra.mxu0 %v1492_v55 }
  0x47   : > { %833 = vmatmul.mubr.bf16.gmra.mxu1 %v1493_v56  ;;  %1391 = vmatprep.mubr.msk.bf16.mxu0 %vm698_vm0, %v1495_v57 }
  0x48   : > { %1395 = vmatprep.mubr.msk.bf16.mxu1 %vm698_vm0, %v1496_v59 }
  0x4e   : > { %1392 = vmatmul.mubr.msk.bf16.vlgmr.msra.gmra.mxu0 %vm698_vm0, %v1497_v63 }
  0x4f   : > { %1396 = vmatmul.mubr.msk.bf16.vlgmr.msra.gmra.mxu1 %vm698_vm0, %v1498_v0 }
  0x98   : > { %v1733_v10 = vpop.permute.xlu1 %926 }
  0x99   : > { %v1731_v9 = vpop.permute.xlu0 %916 }
  0x9c   : > { %v1737_v17 = vpop.permute.xlu1 %931 }
  0x9d   : > { %v1735_v14 = vpop.permute.xlu0 %921 }
  0xa0   : > { %v1741_v25 = vpop.permute.xlu1 %941 }
  0xa1   : > { %v1739_v22 = vpop.permute.xlu0 %936 }
  0xa4   : > { %v1743_v33 = vpop.permute.xlu1 %951 }
  0xa5   : > { %v947_v30 = vpop.permute.xlu0 %946 }
  0xa8   : > { %v1747_v41 = vpop.permute.xlu1 %977 }
  0xa9   : > { %v1745_v38 = vpop.permute.xlu0 %972 }
  0xad   : > { %v988_v55 = vpop.permute.xlu1 %987 }
  0xae   : > { %v983_v46 = vpop.permute.xlu0 %982 }
  0xb5   : > { %v993_v6 = vpop.permute.xlu0 %992 }
  0xee   : > { %v1311_v11 = vpop.f32.mrf.mxu0 }
  0xef   : > { %v1351_v12 = vpop.f32.mrf.mxu1 }
  0xf0   : > { %v1312_v13 = vpop.f32.mrf.mxu0 }
  0xf1   : > { %v1352_v15 = vpop.f32.mrf.mxu1  ;;  %v1313_v53 = vadd.f32 %v1312_v13, %v1311_v11 }
  0xf2   : > { %v1314_v16 = vpop.f32.mrf.mxu0  ;;  %v1353_v54 = vadd.f32 %v1352_v15, %v1351_v12 }
  0xf3   : > { %v1354_v18 = vpop.f32.mrf.mxu1 }
  0xf4   : > { %v1315_v19 = vpop.f32.mrf.mxu0  ;;  %v811_v11 = vadd.f32 %v1353_v54, %v1313_v53 }
  0xf5   : > { %v1355_v20 = vpop.f32.mrf.mxu1  ;;  %v1316_v4 = vadd.f32 %v1315_v19, %v1314_v16 }
  0xf6   : > { %v1317_v21 = vpop.f32.mrf.mxu0  ;;  %v1356_v5 = vadd.f32 %v1355_v20, %v1354_v18 }
  0xf7   : > { %v1357_v23 = vpop.f32.mrf.mxu1 }
  0xf8   : > { %v1318_v24 = vpop.f32.mrf.mxu0 }
  0xf9   : > { %v1358_v26 = vpop.f32.mrf.mxu1  ;;  %v1319_v47 = vadd.f32 %v1318_v24, %v1317_v21  ;;  %v998_v24 = vpop.permute.xlu1 %997 }
  0xfa   : > { %v1320_v27 = vpop.f32.mrf.mxu0  ;;  %v1359_v48 = vadd.f32 %v1358_v26, %v1357_v23 }
  0xfb   : > { %v1360_v28 = vpop.f32.mrf.mxu1 }
  0xfc   : > { %v1321_v29 = vpop.f32.mrf.mxu0  ;;  %v819_v63 = vadd.f32 %v1359_v48, %v1319_v47 }
  0xfd   : > { %v1361_v31 = vpop.f32.mrf.mxu1  ;;  %v1322_v60 = vadd.f32 %v1321_v29, %v1320_v27 }
  0xfe   : > { %v1323_v32 = vpop.f32.mrf.mxu0  ;;  %v1362_v61 = vadd.f32 %v1361_v31, %v1360_v28 }
  0xff   : > { %v1363_v34 = vpop.f32.mrf.mxu1 }
 0x100   : > { %v1324_v35 = vpop.f32.mrf.mxu0  ;;  %v822_v29 = vadd.f32 %v1362_v61, %v1322_v60 }
 0x101   : > { %v1364_v36 = vpop.f32.mrf.mxu1  ;;  %v1325_v57 = vadd.f32 %v1324_v35, %v1323_v32  ;;  %v814_v35 = vadd.f32 %v1356_v5, %v1316_v4 }
 0x102   : > { %v1326_v37 = vpop.f32.mrf.mxu0  ;;  %v1365_v58 = vadd.f32 %v1364_v36, %v1363_v34 }
 0x103   : > { %v1366_v39 = vpop.f32.mrf.mxu1 }
 0x104   : > { %v1327_v40 = vpop.f32.mrf.mxu0  ;;  %v827_v23 = vadd.f32 %v1365_v58, %v1325_v57 }
 0x105   : > { %v1367_v42 = vpop.f32.mrf.mxu1  ;;  %v1328_v12 = vadd.f32 %v1327_v40, %v1326_v37 }
 0x106   : > { %v1329_v43 = vpop.f32.mrf.mxu0  ;;  %v1368_v13 = vadd.f32 %v1367_v42, %v1366_v39  ;;  %v1003_v42 = vpop.permute.xlu0 %1002 }
 0x107   : > { %v1369_v44 = vpop.f32.mrf.mxu1 }
 0x108   : > { %v1330_v45 = vpop.f32.mrf.mxu0  ;;  %v830_v40 = vadd.f32 %v1368_v13, %v1328_v12 }
 0x109   : > { %v1370_v49 = vpop.f32.mrf.mxu1  ;;  %v1331_v50 = vadd.f32 %v1330_v45, %v1329_v43 }
 0x10a   : > { %v1371_v51 = vadd.f32 %v1370_v49, %v1369_v44  ;;  %v1332_v52 = vpop.f32.mrf.mxu0 }
 0x10b   : > { %v1372_v56 = vpop.f32.mrf.mxu1 }
 0x10c   : > { %v1333_v59 = vpop.f32.mrf.mxu0  ;;  %v835_v3 = vadd.f32 %v1371_v51, %v1331_v50 }
 0x10d   : > { %v1373_v62 = vpop.f32.mrf.mxu1  ;;  %v1334_v0 = vadd.f32 %v1333_v59, %v1332_v52 }
 0x10e   : > { %v1374_v1 = vadd.f32 %v1373_v62, %v1372_v56  ;;  %v1393_v2 = vpop.f32.mrf.mxu0 }
 0x10f   : > { %v884_v7 = vadd.f32 %v1393_v2, %v819_v63  ;;  %v1397_v8 = vpop.f32.mrf.mxu1 }
 0x110   : > { %v900_v15 = vadd.f32 %v1397_v8, %v835_v3  ;;  %v875_v21 = vpop.f32.mrf.mxu0  ;;  %v838_v16 = vadd.f32 %v1374_v1, %v1334_v0 }
 0x111   : > { %v956_v26 = vmul.f32 %v1733_v10, %v884_v7  ;;  %v876_v27 = vadd.f32 %v875_v21, %v811_v11  ;;  %v891_v28 = vpop.f32.mrf.mxu1 }
 0x112   : > { %v960_v31 = vmul.f32 %v947_v30, %v900_v15  ;;  %v892_v32 = vadd.f32 %v891_v28, %v827_v23  ;;  %v1394_v34 = vpop.f32.mrf.mxu0 }
 0x113   : > { %v954_v18 = vmul.f32 %v1731_v9, %v876_v27  ;;  %v887_v19 = vadd.f32 %v1394_v34, %v822_v29  ;;  %v1398_v20 = vpop.f32.mrf.mxu1  ;;  %v1012_v10 = vadd.f32 %v983_v46, %v956_v26  ;;  %v1008_v9 = vpop.permute.xlu1 %1007 }
 0x114   : > { %v958_v36 = vmul.f32 %v1739_v22, %v892_v32  ;;  %v903_v37 = vadd.f32 %v1398_v20, %v838_v16  ;;  %v878_v39 = vpop.f32.mrf.mxu0  ;;  %v1016_v45 = vadd.f32 %v1003_v42, %v960_v31 }
 0x115   : > { %v957_v43 = vmul.f32 %v1737_v17, %v887_v19  ;;  %v879_v44 = vadd.f32 %v878_v39, %v814_v35  ;;  %v894_v30 = vpop.f32.mrf.mxu1  ;;  %v1010_v49 = vadd.f32 %v1745_v38, %v954_v18  ;;  %v1020_v46 = vmax.f32 %v1012_v10, 0.0 }
 0x116   : > { %v961_v47 = vmul.f32 %v1743_v33, %v903_v37  ;;  %v895_v48 = vadd.f32 %v894_v30, %v830_v40  ;;  %v1014_v51 = vadd.f32 %v993_v6, %v958_v36  ;;  %v1024_v56 = vmax.f32 %v1016_v45, 0.0 }
 0x117   : > { %v1013_v50 = vadd.f32 %v988_v55, %v957_v43  ;;  %v955_v22 = vmul.f32 %v1735_v14, %v879_v44  ;;  %v1018_v38 = vmax.f32 %v1010_v49, 0.0 }
 0x118   : > { %v1017_v52 = vadd.f32 %v1008_v9, %v961_v47  ;;  %v959_v53 = vmul.f32 %v1741_v25, %v895_v48  ;;  %v1022_v59 = vmax.f32 %v1014_v51, 0.0 }
 0x119   : > { %v1021_v54 = vmax.f32 %v1013_v50, 0.0  ;;  %v1011_v17 = vadd.f32 %v1747_v41, %v955_v22 }
 0x11a   : > { %v1025_v33 = vmax.f32 %v1017_v52, 0.0  ;;  %v1015_v57 = vadd.f32 %v998_v24, %v959_v53 }
 0x11b   : > { %v1280_v58 = vpack.c.bf16 %v1021_v54, %v1020_v46  ;;  %v1019_v55 = vmax.f32 %v1011_v17, 0.0 }
 0x11c   : > { %v1290_v14 = vpack.c.bf16 %v1025_v33, %v1024_v56  ;;  %v1023_v60 = vmax.f32 %v1015_v57, 0.0 }
 0x11d   : > { %1292 = vst [vmem:[%s283_s13 + $0x8] sm:$0xff] %v1280_v58   ;;  %v1275_v61 = vpack.c.bf16 %v1019_v55, %v1018_v38 }
 0x11e   : > { %1294 = vst [vmem:[%s283_s13 + $0x18] sm:$0xff] %v1290_v14   ;;  %v1285_v25 = vpack.c.bf16 %v1023_v60, %v1022_v59 }
 0x11f   : > { %1276 = vst [vmem:[%s283_s13] sm:$0xff] %v1275_v61  }
 0x120   : > { %1293 = vst [vmem:[%s283_s13 + $0x10] sm:$0xff] %v1285_v25  }
 0x121 PF: > { %s14_s17 = sadd.s32 1, %s1521_s17   ;;  %s1776_s15 = smov %s1517_s16 }
 0x122   : > { %p11_p5 = scmp.ge.s32.totalorder %s14_s17, 4   ;;  %s1777_s16 = smov %s1779_s18 }
 0x124   :  { %13 = sbr.rel (!%p11_p5) target bundleno = 2 (0x2), region = 75 }

// kernel: preact_resnet_forward.55
= control target key start
LH: loop header
LB: loop body
LE: loop exit
PB: predicated region body
PF: predicated region fallthrough
CT: control target
= control target key end

     0   :  { %s2262_s15 = smov 0   ;;  %s2264_s16 = smov 0   ;;  %s2664_s0 = inlined_call_operand.vmem [shape: bf16[1152,128], index: 0, kind: input, shape index: {}]   ;;  %s2665_s1 = inlined_call_operand.vmem [shape: bf16[128,1152], index: 1, kind: input, shape index: {}]   ;;  %s2666_s2 = inlined_call_operand.vmem [shape: f32[128,1], index: 2, kind: input, shape index: {}]   ;;  %s2667_s3 = inlined_call_operand.vmem [shape: f32[128,1], index: 3, kind: input, shape index: {}]   ;;  %s2668_s4 = inlined_call_operand.vmem [shape: bf16[128,128], index: 4, kind: output, shape index: {}]  }
   0x1   :  { %s2266_s17 = smov 0  }
   0x2 LB: > { %s23_s18 = sadd.s32 1, %s2230_s16  ;;  %p1690_p0 = scmp.ge.s32.totalorder %s2234_s17, 1  ;;  %s2234_s17 = sphi %s2266_s17, %s14_s17   ;;  %s2230_s16 = sphi %s2264_s16, %s2698_s16   ;;  %s2226_s15 = sphi %s2262_s15, %s2697_s15  }
   0x3   : > { %p24_p1 = scmp.ge.s32.totalorder %s23_s18, 2  ;;  %p209_p2 = scmp.lt.s32.totalorder %s2234_s17, 3 }
   0x5   : > { %s2700_s18 = smov (%p24_p1, %s23_s18), 0  ;;  %p210_p3 = pnand %p1690_p0, %p209_p2 }
   0x7   : > { %213 = sbr.rel (%p210_p3) target bundleno = 322 (0x142), region = 36 }
   0xc   : > { %v2088_v0 = vld [vmem:[%s2664_s0 + $0x78] sm:$0xff]   ;;  %v2236_v4 = vmov 0   ;;  %v2092_v5 = vld [vmem:[%s2664_s0 + $0x70] sm:$0xff]   ;;  %v2096_v9 = vld [vmem:[%s2664_s0 + $0x68] sm:$0xff]   ;;  %s1691_s27 = sshll.u32 %s2226_s15, 3 }
   0xd   : > { %v2089_v1 = vld [vmem:[%s2664_s0 + $0xf8] sm:$0xff]   ;;  %1848 = vmatprep.subr.bf16.mxu0 %v2088_v0  ;;  %2087 = vset.pattern.permute.xlu1 %v2236_v4  ;;  %v2093_v6 = vld [vmem:[%s2664_s0 + $0xf0] sm:$0xff]   ;;  %v2097_v10 = vld [vmem:[%s2664_s0 + $0xe8] sm:$0xff]   ;;  %p258_p4 = scmp.lt.s32.totalorder %s1691_s27, 15 }
   0xe   : > { %v2090_v2 = vld [vmem:[%s2664_s0 + $0x38] sm:$0xff]   ;;  %1888 = vmatprep.subr.bf16.mxu1 %v2089_v1  ;;  %2086 = vset.pattern.permute.xlu0 %v2236_v4  ;;  %v2094_v7 = vld [vmem:[%s2664_s0 + $0x30] sm:$0xff]   ;;  %v2098_v11 = vld [vmem:[%s2664_s0 + $0x28] sm:$0xff]  }
   0xf   : > { %v2091_v3 = vld [vmem:[%s2664_s0 + $0xb8] sm:$0xff]   ;;  %1849 = vmatpush3.bf16.msra.mxu0 %v2090_v2  ;;  %v2095_v8 = vld [vmem:[%s2664_s0 + $0xb0] sm:$0xff]   ;;  %v2099_v12 = vld [vmem:[%s2664_s0 + $0xa8] sm:$0xff]   ;;  %s2702_s27 = smov (!%p258_p4, %s1691_s27), 15 }
  0x10   : > { %1889 = vmatpush3.bf16.msra.mxu1 %v2091_v3  ;;  %1850 = vmatprep.subr.bf16.mxu0 %v2092_v5  ;;  %v2100_v13 = vld [vmem:[%s2664_s0 + $0x60] sm:$0xff]   ;;  %v2104_v17 = vld [vmem:[%s2664_s0 + $0x58] sm:$0xff]   ;;  %v2108_v21 = vld [vmem:[%s2664_s0 + $0x50] sm:$0xff]   ;;  %s2060_s28 = smul.u32 36, %s2702_s27  ;;  %s1694_s7 = sshll.u32 %s2702_s27, 3 }
  0x11   : > { %1890 = vmatprep.subr.bf16.mxu1 %v2093_v6  ;;  %v2101_v14 = vld [vmem:[%s2664_s0 + $0xe0] sm:$0xff]   ;;  %v2105_v18 = vld [vmem:[%s2664_s0 + $0xd8] sm:$0xff]   ;;  %v2109_v22 = vld [vmem:[%s2664_s0 + $0xd0] sm:$0xff]   ;;  %s2537_s11 = scalar_lea.vmem %s2666_s2, %s1694_s7  ;;  %s274_s23 = scalar_lea.vmem %s2667_s3, %s1694_s7 }
  0x12   : > { %v2102_v15 = vld [vmem:[%s2664_s0 + $0x20] sm:$0xff]   ;;  %v2106_v19 = vld [vmem:[%s2664_s0 + $0x18] sm:$0xff]   ;;  %v2110_v23 = vld [vmem:[%s2664_s0 + $0x10] sm:$0xff]   ;;  %s2379_s12 = scalar_lea.vmem %s2665_s1, %s2060_s28 }
  0x13   : > { %1851 = vmatpush3.bf16.msra.mxu0 %v2094_v7  ;;  %v2103_v16 = vld [vmem:[%s2664_s0 + $0xa0] sm:$0xff]   ;;  %v2107_v20 = vld [vmem:[%s2664_s0 + $0x98] sm:$0xff]   ;;  %v2111_v24 = vld [vmem:[%s2664_s0 + $0x90] sm:$0xff]  }
  0x14   : > { %1891 = vmatpush3.bf16.msra.mxu1 %v2095_v8  ;;  %1852 = vmatprep.subr.bf16.mxu0 %v2096_v9  ;;  %v2112_v25 = vld [vmem:[%s2664_s0 + $0x48] sm:$0xff]   ;;  %v2116_v29 = vld [vmem:[%s2664_s0 + $0x40] sm:$0xff]   ;;  %v2126_v37 = vld [vmem:[%s2664_s0 + $0x178] sm:$0xff]  }
  0x15   : > { %1892 = vmatprep.subr.bf16.mxu1 %v2097_v10  ;;  %v2113_v26 = vld [vmem:[%s2664_s0 + $0xc8] sm:$0xff]   ;;  %v2117_v30 = vld [vmem:[%s2664_s0 + $0xc0] sm:$0xff]   ;;  %v2127_v38 = vld [vmem:[%s2664_s0 + $0x1f8] sm:$0xff]  }
  0x16   : > { %v2114_v27 = vld [vmem:[%s2664_s0 + $0x8] sm:$0xff]   ;;  %v2118_v31 = vld [vmem:[%s2664_s0] sm:$0xff]   ;;  %v2128_v39 = vld [vmem:[%s2664_s0 + $0x138] sm:$0xff]  }
  0x17   : > { %1853 = vmatpush3.bf16.msra.mxu0 %v2098_v11  ;;  %v2115_v28 = vld [vmem:[%s2664_s0 + $0x88] sm:$0xff]   ;;  %v2119_v32 = vld [vmem:[%s2664_s0 + $0x80] sm:$0xff]   ;;  %v2129_v40 = vld [vmem:[%s2664_s0 + $0x1b8] sm:$0xff]  }
  0x18   : > { %1893 = vmatpush3.bf16.msra.mxu1 %v2099_v12  ;;  %1854 = vmatprep.subr.bf16.mxu0 %v2100_v13  ;;  %v2120_v33 = vld [vmem:[%s2379_s12] ss:$36 sps:$4 sm:$0xff]   ;;  %v2123_v35 = vld [vmem:[%s2379_s12 + $0x8] ss:$36 sps:$4 sm:$0xff]   ;;  %v2130_v41 = vld [vmem:[%s2664_s0 + $0x170] sm:$0xff]  }
  0x19   : > { %1894 = vmatprep.subr.bf16.mxu1 %v2101_v14  ;;  %v2122_v34 = vld [vmem:[%s2379_s12 + $0x4] ss:$36 sps:$4 sm:$0xff]   ;;  %v2125_v36 = vld [vmem:[%s2379_s12 + $0xc] ss:$36 sps:$4 sm:$0xff]   ;;  %v2136_v46 = vld [vmem:[%s2379_s12 + $0x54] ss:$36 sps:$4 sm:$0xff]  }
  0x1a   : > { %1118 = vmatprep.mubr.bf16.mxu0 %v2122_v34  ;;  %1183 = vmatprep.mubr.bf16.mxu1 %v2125_v36  ;;  %v2131_v42 = vld [vmem:[%s2664_s0 + $0x1f0] sm:$0xff]   ;;  %v2138_v47 = vld [vmem:[%s2379_s12 + $0x48] ss:$36 sps:$4 sm:$0xff]   ;;  %v2144_v53 = vld [vmem:[%s2664_s0 + $0x160] sm:$0xff]  }
  0x1b   : > { %1855 = vmatpush3.bf16.msra.mxu0 %v2102_v15  ;;  %v2132_v43 = vld [vmem:[%s2664_s0 + $0x130] sm:$0xff]   ;;  %v2140_v49 = vld [vmem:[%s2664_s0 + $0x168] sm:$0xff]   ;;  %v2145_v54 = vld [vmem:[%s2664_s0 + $0x1e0] sm:$0xff]  }
  0x1c   : > { %1895 = vmatpush3.bf16.msra.mxu1 %v2103_v16  ;;  %1856 = vmatprep.subr.bf16.mxu0 %v2104_v17  ;;  %v2133_v44 = vld [vmem:[%s2664_s0 + $0x1b0] sm:$0xff]   ;;  %v2141_v50 = vld [vmem:[%s2664_s0 + $0x1e8] sm:$0xff]   ;;  %v2146_v55 = vld [vmem:[%s2664_s0 + $0x120] sm:$0xff]  }
  0x1d   : > { %1896 = vmatprep.subr.bf16.mxu1 %v2105_v18  ;;  %v2134_v45 = vld [vmem:[%s2379_s12 + $0x4c] ss:$36 sps:$4 sm:$0xff]   ;;  %v2147_v56 = vld [vmem:[%s2664_s0 + $0x1a0] sm:$0xff]   ;;  %v2148_v57 = vld [vmem:[%s2379_s12 + $0x94] ss:$36 sps:$4 sm:$0xff]  }
  0x1e   : > { %v2139_v48 = vld [vmem:[%s2379_s12 + $0x50] ss:$36 sps:$4 sm:$0xff]   ;;  %v2142_v51 = vld [vmem:[%s2664_s0 + $0x128] sm:$0xff]   ;;  %v2150_v58 = vld [vmem:[%s2379_s12 + $0x9c] ss:$36 sps:$4 sm:$0xff]  }
  0x1f   : > { %1857 = vmatpush3.bf16.msra.mxu0 %v2106_v19  ;;  %v2143_v52 = vld [vmem:[%s2664_s0 + $0x1a8] sm:$0xff]   ;;  %v2152_v59 = vld [vmem:[%s2379_s12 + $0x90] ss:$36 sps:$4 sm:$0xff]   ;;  %v2153_v60 = vld [vmem:[%s2379_s12 + $0x98] ss:$36 sps:$4 sm:$0xff]  }
  0x20   : > { %1897 = vmatpush3.bf16.msra.mxu1 %v2107_v20  ;;  %1858 = vmatprep.subr.bf16.mxu0 %v2108_v21  ;;  %v2154_v61 = vld [vmem:[%s2664_s0 + $0x158] sm:$0xff]   ;;  %v2158_v1 = vld [vmem:[%s2664_s0 + $0x150] sm:$0xff]   ;;  %v2164_v6 = vld [vmem:[%s2379_s12 + $0xe4] ss:$36 sps:$4 sm:$0xff]  }
  0x21   : > { %1898 = vmatprep.subr.bf16.mxu1 %v2109_v22  ;;  %v2155_v62 = vld [vmem:[%s2664_s0 + $0x1d8] sm:$0xff]   ;;  %v2159_v2 = vld [vmem:[%s2664_s0 + $0x1d0] sm:$0xff]   ;;  %v2167_v8 = vld [vmem:[%s2379_s12 + $0xe0] ss:$36 sps:$4 sm:$0xff]  }
  0x22   : > { %v2156_v63 = vld [vmem:[%s2664_s0 + $0x118] sm:$0xff]   ;;  %v2160_v3 = vld [vmem:[%s2664_s0 + $0x110] sm:$0xff]   ;;  %v2168_v9 = vld [vmem:[%s2664_s0 + $0x148] sm:$0xff]  }
  0x23   : > { %1859 = vmatpush3.bf16.msra.mxu0 %v2110_v23  ;;  %v2157_v0 = vld [vmem:[%s2664_s0 + $0x198] sm:$0xff]   ;;  %v2161_v4 = vld [vmem:[%s2664_s0 + $0x190] sm:$0xff]   ;;  %v2169_v10 = vld [vmem:[%s2664_s0 + $0x1c8] sm:$0xff]  }
  0x24   : > { %1899 = vmatpush3.bf16.msra.mxu1 %v2111_v24  ;;  %1860 = vmatprep.subr.bf16.mxu0 %v2112_v25  ;;  %v2162_v5 = vld [vmem:[%s2379_s12 + $0xdc] ss:$36 sps:$4 sm:$0xff]   ;;  %v2170_v11 = vld [vmem:[%s2664_s0 + $0x108] sm:$0xff]   ;;  %v2176_v17 = vld [vmem:[%s2379_s12 + $0x10] ss:$36 sps:$4 sm:$0xff]  }
  0x25   : > { %1900 = vmatprep.subr.bf16.mxu1 %v2113_v26  ;;  %v2166_v7 = vld [vmem:[%s2379_s12 + $0xd8] ss:$36 sps:$4 sm:$0xff]   ;;  %v2171_v12 = vld [vmem:[%s2664_s0 + $0x188] sm:$0xff]   ;;  %v2172_v13 = vld [vmem:[%s2664_s0 + $0x140] sm:$0xff]  }
  0x26   : > { %v2173_v14 = vld [vmem:[%s2664_s0 + $0x1c0] sm:$0xff]   ;;  %v2178_v18 = vld [vmem:[%s2379_s12 + $0x14] ss:$36 sps:$4 sm:$0xff]   ;;  %v2200_v34 = vld [vmem:[%s2379_s12 + $0xec] ss:$36 sps:$4 sm:$0xff]  }
  0x27   : > { %1861 = vmatpush3.bf16.msra.mxu0 %v2114_v27  ;;  %v2174_v15 = vld [vmem:[%s2664_s0 + $0x100] sm:$0xff]   ;;  %v2179_v19 = vld [vmem:[%s2379_s12 + $0x18] ss:$36 sps:$4 sm:$0xff]   ;;  %v2183_v22 = vld [vmem:[%s2664_s0 + $0x230] sm:$0xff]  }
  0x28   : > { %1901 = vmatpush3.bf16.msra.mxu1 %v2115_v28  ;;  %1862 = vmatprep.subr.bf16.mxu0 %v2116_v29  ;;  %v2175_v16 = vld [vmem:[%s2664_s0 + $0x180] sm:$0xff]   ;;  %v2182_v21 = vld [vmem:[%s2664_s0 + $0x238] sm:$0xff]   ;;  %v2190_v27 = vld [vmem:[%s2664_s0 + $0x228] sm:$0xff]  }
  0x29   : > { %1902 = vmatprep.subr.bf16.mxu1 %v2117_v30  ;;  %v2181_v20 = vld [vmem:[%s2379_s12 + $0x1c] ss:$36 sps:$4 sm:$0xff]   ;;  %v2186_v24 = vld [vmem:[%s2379_s12 + $0x64] ss:$36 sps:$4 sm:$0xff]   ;;  %v2194_v29 = vld [vmem:[%s2379_s12 + $0xac] ss:$36 sps:$4 sm:$0xff]  }
  0x2a   : > { %v2184_v23 = vld [vmem:[%s2379_s12 + $0x5c] ss:$36 sps:$4 sm:$0xff]   ;;  %v2192_v28 = vld [vmem:[%s2379_s12 + $0xa4] ss:$36 sps:$4 sm:$0xff]   ;;  %v2199_v36 = vld [vmem:[%s2664_s0 + $0x210] sm:$0xff]  }
  0x2b   : > { %1863 = vmatpush3.bf16.msra.mxu0 %v2118_v31  ;;  %v2188_v25 = vld [vmem:[%s2379_s12 + $0x58] ss:$36 sps:$4 sm:$0xff]   ;;  %v2189_v26 = vld [vmem:[%s2379_s12 + $0x60] ss:$36 sps:$4 sm:$0xff]  }
  0x2c   : > { %1903 = vmatpush3.bf16.msra.mxu1 %v2119_v32  ;;  %1928 = vmatprep.subr.bf16.mxu0 %v2126_v37  ;;  %v2191_v30 = vld [vmem:[%s2664_s0 + $0x220] sm:$0xff]   ;;  %v2197_v32 = vld [vmem:[%s2379_s12 + $0xa8] ss:$36 sps:$4 sm:$0xff]   ;;  %v1413_v37 = vld [vmem:[%s2537_s11 + $0x10] sm:$0xff] }
  0x2d   : > { %1968 = vmatprep.subr.bf16.mxu1 %v2127_v38  ;;  %v2196_v31 = vld [vmem:[%s2379_s12 + $0xa0] ss:$36 sps:$4 sm:$0xff]   ;;  %1431 = vperm.xlu1 %2087, %v1413_v37  }
  0x2e   : > { %1119 = vmatmul.mubr.bf16.vlgmr.msra.gmra.mxu0 %v2120_v33  ;;  %v2198_v33 = vld [vmem:[%s2664_s0 + $0x218] sm:$0xff]   ;;  %v1411_v38 = vld [vmem:[%s2537_s11] sm:$0xff] }
  0x2f   : > { %1184 = vmatmul.mubr.bf16.vlgmr.msra.gmra.mxu1 %v2123_v35  ;;  %1929 = vmatpush3.bf16.msra.mxu0 %v2128_v39  ;;  %v2202_v35 = vld [vmem:[%s2379_s12 + $0xf4] ss:$36 sps:$4 sm:$0xff]   ;;  %v2204_v39 = vld [vmem:[%s2379_s12 + $0xe8] ss:$36 sps:$4 sm:$0xff]  }
  0x30   : > { %1969 = vmatpush3.bf16.msra.mxu1 %v2129_v40  ;;  %1930 = vmatprep.subr.bf16.mxu0 %v2130_v41  ;;  %v2206_v40 = vld [vmem:[%s2664_s0 + $0x208] sm:$0xff]   ;;  %v2205_v41 = vld [vmem:[%s2379_s12 + $0xf0] ss:$36 sps:$4 sm:$0xff]  }
  0x31   : > { %1970 = vmatprep.subr.bf16.mxu1 %v2131_v42  ;;  %1126 = vmatprep.mubr.bf16.mxu0 %v2134_v45  ;;  %v2208_v42 = vld [vmem:[%s2379_s12 + $0x20] ss:$36 sps:$4 sm:$0xff]   ;;  %v1414_v45 = vld [vmem:[%s2537_s11 + $0x18] sm:$0xff] }
  0x32   : > { %1191 = vmatprep.mubr.bf16.mxu1 %v2136_v46  ;;  %1421 = vperm.xlu0 %2086, %v1411_v38   ;;  %v1412_v46 = vld [vmem:[%s2537_s11 + $0x8] sm:$0xff] }
  0x33   : > { %1931 = vmatpush3.bf16.msra.mxu0 %v2132_v43  ;;  %v2209_v43 = vld [vmem:[%s2379_s12 + $0xb0] ss:$36 sps:$4 sm:$0xff]   ;;  %1436 = vperm.xlu1 %2087, %v1414_v45  }
  0x34   : > { %1971 = vmatpush3.bf16.msra.mxu1 %v2133_v44  ;;  %1932 = vmatprep.subr.bf16.mxu0 %v2140_v49  ;;  %v2207_v44 = vld [vmem:[%s2664_s0 + $0x200] sm:$0xff]   ;;  %v2211_v49 = vld [vmem:[%s2379_s12 + $0xf8] ss:$36 sps:$4 sm:$0xff]  }
  0x35   : > { %1972 = vmatprep.subr.bf16.mxu1 %v2141_v50  ;;  %v1415_v50 = vld [vmem:[%s2537_s11 + $0x20] sm:$0xff] }
  0x36   : > { %1127 = vmatmul.mubr.bf16.gmra.mxu0 %v2138_v47  ;;  %v2210_v47 = vld [vmem:[%s2379_s12 + $0x68] ss:$36 sps:$4 sm:$0xff]   ;;  %1426 = vperm.xlu0 %2086, %v1412_v46   ;;  %s1698_s12 = sshll.u32 %s2702_s27, 2 }
  0x37   : > { %1192 = vmatmul.mubr.bf16.gmra.mxu1 %v2139_v48  ;;  %1933 = vmatpush3.bf16.msra.mxu0 %v2142_v51  ;;  %v1416_v48 = vld [vmem:[%s2537_s11 + $0x28] sm:$0xff]  ;;  %v1418_v51 = vld [vmem:[%s2537_s11 + $0x38] sm:$0xff]  ;;  %s283_s26 = scalar_lea.vmem %s2668_s4, %s1698_s12 }
  0x38   : > { %1973 = vmatpush3.bf16.msra.mxu1 %v2143_v52  ;;  %1934 = vmatprep.subr.bf16.mxu0 %v2144_v53  ;;  %v1417_v52 = vld [vmem:[%s2537_s11 + $0x30] sm:$0xff]  ;;  %v1468_v53 = vld [vmem:[%s274_s23 + $0x8] sm:$0xff] }
  0x39   : > { %1974 = vmatprep.subr.bf16.mxu1 %v2145_v54  ;;  %1134 = vmatprep.mubr.bf16.mxu0 %v2148_v57  ;;  %v1467_v54 = vld [vmem:[%s274_s23] sm:$0xff]  ;;  %v1472_v57 = vld [vmem:[%s274_s23 + $0x28] sm:$0xff] }
  0x3a   : > { %1199 = vmatprep.mubr.bf16.mxu1 %v2150_v58  ;;  %1446 = vperm.xlu1 %2087, %v1416_v48   ;;  %v1471_v58 = vld [vmem:[%s274_s23 + $0x20] sm:$0xff] }
  0x3b   : > { %1935 = vmatpush3.bf16.msra.mxu0 %v2146_v55  ;;  %1441 = vperm.xlu0 %2086, %v1415_v50   ;;  %v1470_v55 = vld [vmem:[%s274_s23 + $0x18] sm:$0xff] }
  0x3c   : > { %1975 = vmatpush3.bf16.msra.mxu1 %v2147_v56  ;;  %1936 = vmatprep.subr.bf16.mxu0 %v2154_v61  ;;  %v1469_v56 = vld [vmem:[%s274_s23 + $0x10] sm:$0xff] }
  0x3d   : > { %1976 = vmatprep.subr.bf16.mxu1 %v2155_v62 }
  0x3e   : > { %1135 = vmatmul.mubr.bf16.gmra.mxu0 %v2152_v59  ;;  %1456 = vperm.xlu1 %2087, %v1418_v51   ;;  %v1474_v59 = vld [vmem:[%s274_s23 + $0x38] sm:$0xff] }
  0x3f   : > { %1200 = vmatmul.mubr.bf16.gmra.mxu1 %v2153_v60  ;;  %1937 = vmatpush3.bf16.msra.mxu0 %v2156_v63  ;;  %v1473_v60 = vld [vmem:[%s274_s23 + $0x30] sm:$0xff] }
  0x40   : > { %1977 = vmatpush3.bf16.msra.mxu1 %v2157_v0  ;;  %1938 = vmatprep.subr.bf16.mxu0 %v2158_v1 }
  0x41   : > { %1978 = vmatprep.subr.bf16.mxu1 %v2159_v2  ;;  %1142 = vmatprep.mubr.bf16.mxu0 %v2162_v5 }
  0x42   : > { %1207 = vmatprep.mubr.bf16.mxu1 %v2164_v6  ;;  %1451 = vperm.xlu0 %2086, %v1417_v52  }
  0x43   : > { %1939 = vmatpush3.bf16.msra.mxu0 %v2160_v3  ;;  %1482 = vperm.xlu1 %2087, %v1468_v53  }
  0x44   : > { %1979 = vmatpush3.bf16.msra.mxu1 %v2161_v4  ;;  %1940 = vmatprep.subr.bf16.mxu0 %v2168_v9 }
  0x45   : > { %1980 = vmatprep.subr.bf16.mxu1 %v2169_v10 }
  0x46   : > { %1143 = vmatmul.mubr.bf16.gmra.mxu0 %v2166_v7  ;;  %1477 = vperm.xlu0 %2086, %v1467_v54  }
  0x47   : > { %1208 = vmatmul.mubr.bf16.gmra.mxu1 %v2167_v8  ;;  %1941 = vmatpush3.bf16.msra.mxu0 %v2170_v11 }
  0x48   : > { %1981 = vmatpush3.bf16.msra.mxu1 %v2171_v12  ;;  %1942 = vmatprep.subr.bf16.mxu0 %v2172_v13 }
  0x49   : > { %1982 = vmatprep.subr.bf16.mxu1 %v2173_v14  ;;  %1248 = vmatprep.mubr.bf16.mxu0 %v2178_v18 }
  0x4a   : > { %1313 = vmatprep.mubr.bf16.mxu1 %v2181_v20  ;;  %1492 = vperm.xlu1 %2087, %v1470_v55  }
  0x4b   : > { %1943 = vmatpush3.bf16.msra.mxu0 %v2174_v15  ;;  %1487 = vperm.xlu0 %2086, %v1469_v56  }
  0x4c   : > { %1983 = vmatpush3.bf16.msra.mxu1 %v2175_v16  ;;  %2020 = vmatprep.subr.bf16.mxu0 %v2182_v21 }
  0x4d   : > { %2044 = vmatprep.subr.bf16.mxu1 %v2182_v21 }
  0x4e   : > { %1249 = vmatmul.mubr.bf16.vlgmr.msra.gmra.mxu0 %v2176_v17  ;;  %1502 = vperm.xlu1 %2087, %v1472_v57  }
  0x4f   : > { %1314 = vmatmul.mubr.bf16.vlgmr.msra.gmra.mxu1 %v2179_v19  ;;  %2021 = vmatpush3.bf16.msra.mxu0 %v2182_v21 }
  0x50   : > { %2052 = vmatpush3.bf16.msra.mxu1 %v2182_v21  ;;  %2022 = vmatprep.subr.bf16.mxu0 %v2183_v22 }
  0x51   : > { %2045 = vmatprep.subr.bf16.mxu1 %v2183_v22  ;;  %1256 = vmatprep.mubr.bf16.mxu0 %v2184_v23 }
  0x52   : > { %1321 = vmatprep.mubr.bf16.mxu1 %v2186_v24  ;;  %1497 = vperm.xlu0 %2086, %v1471_v58  }
  0x53   : > { %2023 = vmatpush3.bf16.msra.mxu0 %v2183_v22  ;;  %1512 = vperm.xlu1 %2087, %v1474_v59  }
  0x54   : > { %2053 = vmatpush3.bf16.msra.mxu1 %v2183_v22  ;;  %2024 = vmatprep.subr.bf16.mxu0 %v2190_v27 }
  0x55   : > { %2046 = vmatprep.subr.bf16.mxu1 %v2190_v27 }
  0x56   : > { %1257 = vmatmul.mubr.bf16.gmra.mxu0 %v2188_v25  ;;  %1507 = vperm.xlu0 %2086, %v1473_v60  }
  0x57   : > { %1322 = vmatmul.mubr.bf16.gmra.mxu1 %v2189_v26  ;;  %1264 = vmatprep.mubr.bf16.mxu0 %v2192_v28 }
  0x58   : > { %2025 = vmatpush3.bf16.msra.mxu0 %v2190_v27  ;;  %1329 = vmatprep.mubr.bf16.mxu1 %v2194_v29 }
  0x59   : > { %2054 = vmatpush3.bf16.msra.mxu1 %v2190_v27  ;;  %2026 = vmatprep.subr.bf16.mxu0 %v2191_v30 }
  0x5a   : > { %2047 = vmatprep.subr.bf16.mxu1 %v2191_v30 }
  0x5c   : > { %2027 = vmatpush3.bf16.msra.mxu0 %v2191_v30 }
  0x5d   : > { %2055 = vmatpush3.bf16.msra.mxu1 %v2191_v30  ;;  %2028 = vmatprep.subr.bf16.mxu0 %v2198_v33 }
  0x5e   : > { %1265 = vmatmul.mubr.bf16.gmra.mxu0 %v2196_v31  ;;  %2048 = vmatprep.subr.bf16.mxu1 %v2198_v33 }
  0x5f   : > { %1330 = vmatmul.mubr.bf16.gmra.mxu1 %v2197_v32  ;;  %1272 = vmatprep.mubr.bf16.mxu0 %v2200_v34 }
  0x60   : > { %2029 = vmatpush3.bf16.msra.mxu0 %v2198_v33  ;;  %1337 = vmatprep.mubr.bf16.mxu1 %v2202_v35 }
  0x61   : > { %2056 = vmatpush3.bf16.msra.mxu1 %v2198_v33  ;;  %2030 = vmatprep.subr.bf16.mxu0 %v2199_v36 }
  0x62   : > { %2049 = vmatprep.subr.bf16.mxu1 %v2199_v36 }
  0x64   : > { %2031 = vmatpush3.bf16.msra.mxu0 %v2199_v36 }
  0x65   : > { %2057 = vmatpush3.bf16.msra.mxu1 %v2199_v36  ;;  %2032 = vmatprep.subr.bf16.mxu0 %v2206_v40 }
  0x66   : > { %1273 = vmatmul.mubr.bf16.gmra.mxu0 %v2204_v39  ;;  %2050 = vmatprep.subr.bf16.mxu1 %v2206_v40 }
  0x67   : > { %1338 = vmatmul.mubr.bf16.gmra.mxu1 %v2205_v41  ;;  %2036 = vmatprep.mubr.bf16.mxu0 %v2208_v42 }
  0x68   : > { %2033 = vmatpush3.bf16.msra.mxu0 %v2206_v40  ;;  %2040 = vmatprep.mubr.bf16.mxu1 %v2209_v43 }
  0x69   : > { %2058 = vmatpush3.bf16.msra.mxu1 %v2206_v40  ;;  %2034 = vmatprep.subr.bf16.mxu0 %v2207_v44 }
  0x6a   : > { %2051 = vmatprep.subr.bf16.mxu1 %v2207_v44 }
  0x6c   : > { %2035 = vmatpush3.bf16.msra.mxu0 %v2207_v44 }
  0x6d   : > { %2059 = vmatpush3.bf16.msra.mxu1 %v2207_v44 }
  0x6f   : > { %2037 = vmatmul.mubr.bf16.vlgmr.msra.gmra.mxu0 %v2210_v47 }
  0x70   : > { %2041 = vmatmul.mubr.bf16.vlgmr.msra.gmra.mxu1 %v2211_v49 }
  0xa8   : > { %v2582_v31 = vpop.permute.xlu1 %1431 }
  0xa9   : > { %2670 = vst [vmem:[#allocation3_spill] sm:$0xff] %v2582_v31 }
  0xad   : > { %v2580_v29 = vpop.permute.xlu0 %1421 }
  0xae   : > { %2669 = vst [vmem:[#allocation2_spill] sm:$0xff] %v2580_v29  ;;  %v2596_v39 = vpop.permute.xlu1 %1436 }
  0xaf   : > { %2673 = vst [vmem:[#allocation6_spill] sm:$0xff] %v2596_v39 }
  0xb1   : > { %v2590_v36 = vpop.permute.xlu0 %1426 }
  0xb2   : > { %2671 = vst [vmem:[#allocation4_spill] sm:$0xff] %v2590_v36 }
  0xb5   : > { %v2602_v47 = vpop.permute.xlu1 %1446 }
  0xb6   : > { %v2600_v44 = vpop.permute.xlu0 %1441  ;;  %2676 = vst [vmem:[#allocation9_spill] sm:$0xff] %v2602_v47 }
  0xb7   : > { %2675 = vst [vmem:[#allocation8_spill] sm:$0xff] %v2600_v44 }
  0xb9   : > { %v2612_v55 = vpop.permute.xlu1 %1456 }
  0xba   : > { %2681 = vst [vmem:[#allocation14_spill] sm:$0xff] %v2612_v55 }
  0xbd   : > { %v2608_v52 = vpop.permute.xlu0 %1451 }
  0xbe   : > { %2679 = vst [vmem:[#allocation12_spill] sm:$0xff] %v2608_v52 }
  0xc1   : > { %v2616_v31 = vpop.permute.xlu0 %1477 }
  0xee   : > { %v1864_v61 = vpop.f32.mrf.mxu0 }
  0xef   : > { %v1904_v62 = vpop.f32.mrf.mxu1 }
  0xf0   : > { %v1865_v63 = vpop.f32.mrf.mxu0 }
  0xf1   : > { %v1905_v0 = vpop.f32.mrf.mxu1  ;;  %v1866_v58 = vadd.f32 %v1865_v63, %v1864_v61 }
  0xf2   : > { %v2564_v1 = vpop.f32.mrf.mxu0  ;;  %v1906_v59 = vadd.f32 %v1905_v0, %v1904_v62 }
  0xf3   : > { %v2566_v2 = vpop.f32.mrf.mxu1 }
  0xf4   : > { %v2568_v3 = vpop.f32.mrf.mxu0  ;;  %v1186_v62 = vadd.f32 %v1906_v59, %v1866_v58 }
  0xf5   : > { %v2570_v4 = vpop.f32.mrf.mxu1 }
  0xf6   : > { %v1870_v5 = vpop.f32.mrf.mxu0 }
  0xf7   : > { %v1910_v6 = vpop.f32.mrf.mxu1 }
  0xf8   : > { %v1871_v7 = vpop.f32.mrf.mxu0 }
  0xf9   : > { %v1911_v8 = vpop.f32.mrf.mxu1  ;;  %v1872_v36 = vadd.f32 %v1871_v7, %v1870_v5 }
  0xfa   : > { %v1873_v9 = vpop.f32.mrf.mxu0  ;;  %v1912_v39 = vadd.f32 %v1911_v8, %v1910_v6 }
  0xfb   : > { %v1913_v10 = vpop.f32.mrf.mxu1 }
  0xfc   : > { %v1874_v11 = vpop.f32.mrf.mxu0  ;;  %v1194_v6 = vadd.f32 %v1912_v39, %v1872_v36 }
  0xfd   : > { %v1914_v12 = vpop.f32.mrf.mxu1 }
  0xfe   : > { %v1876_v13 = vpop.f32.mrf.mxu0  ;;  %v1915_v52 = vadd.f32 %v1914_v12, %v1913_v10  ;;  %v1909_v10 = vadd.f32 %v2570_v4, %v2566_v2 }
  0xff   : > { %v1916_v14 = vpop.f32.mrf.mxu1 }
 0x100   : > { %v1877_v15 = vpop.f32.mrf.mxu0 }
 0x101   : > { %v1917_v16 = vpop.f32.mrf.mxu1 }
 0x102   : > { %v2572_v17 = vpop.f32.mrf.mxu0  ;;  %v1918_v55 = vadd.f32 %v1917_v16, %v1916_v14  ;;  %v1488_v16 = vpop.permute.xlu0 %1487 }
 0x103   : > { %v2574_v18 = vpop.f32.mrf.mxu1 }
 0x104   : > { %v2576_v19 = vpop.f32.mrf.mxu0 }
 0x105   : > { %v2578_v20 = vpop.f32.mrf.mxu1 }
 0x106   : > { %v1882_v21 = vpop.f32.mrf.mxu0 }
 0x107   : > { %v1922_v22 = vpop.f32.mrf.mxu1 }
 0x108   : > { %v1883_v23 = vpop.f32.mrf.mxu0 }
 0x109   : > { %v1923_v24 = vpop.f32.mrf.mxu1  ;;  %v1884_v44 = vadd.f32 %v1883_v23, %v1882_v21 }
 0x10a   : > { %v1885_v25 = vpop.f32.mrf.mxu0  ;;  %v1924_v29 = vadd.f32 %v1923_v24, %v1922_v22 }
 0x10b   : > { %v1925_v26 = vpop.f32.mrf.mxu1 }
 0x10c   : > { %v1886_v27 = vpop.f32.mrf.mxu0  ;;  %v1210_v7 = vadd.f32 %v1924_v29, %v1884_v44 }
 0x10d   : > { %v1926_v28 = vpop.f32.mrf.mxu1  ;;  %v1887_v63 = vadd.f32 %v1886_v27, %v1885_v25  ;;  %v1881_v25 = vadd.f32 %v2576_v19, %v2572_v17 }
 0x10e   : > { %v1944_v30 = vpop.f32.mrf.mxu0  ;;  %v1927_v0 = vadd.f32 %v1926_v28, %v1925_v26  ;;  %v1921_v26 = vadd.f32 %v2578_v20, %v2574_v18 }
 0x10f   : > { %v2584_v32 = vpop.f32.mrf.mxu1 }
 0x110   : > { %v1945_v33 = vpop.f32.mrf.mxu0  ;;  %v1213_v27 = vadd.f32 %v1927_v0, %v1887_v63  ;;  %v1205_v44 = vadd.f32 %v1921_v26, %v1881_v25 }
 0x111   : > { %v2586_v34 = vpop.f32.mrf.mxu1  ;;  %v1946_v8 = vadd.f32 %v1945_v33, %v1944_v30 }
 0x112   : > { %v2588_v35 = vpop.f32.mrf.mxu0  ;;  %v1986_v17 = vadd.f32 %v2586_v34, %v2584_v32 }
 0x113   : > { %v2592_v37 = vpop.f32.mrf.mxu1  ;;  %v1251_v2 = vadd.f32 %v1946_v8, %v1186_v62 }
 0x114   : > { %2672 = vst [vmem:[#allocation5_spill] sm:$0xff] %v2592_v37  ;;  %v2594_v38 = vpop.f32.mrf.mxu0 }
 0x115   : > { %v2598_v40 = vpop.f32.mrf.mxu1  ;;  %v1949_v4 = vadd.f32 %v2594_v38, %v2588_v35  ;;  %v1498_v38 = vpop.permute.xlu0 %1497 }
 0x116   : > { %2674 = vst [vmem:[#allocation7_spill] sm:$0xff] %v2598_v40  ;;  %v1950_v41 = vpop.f32.mrf.mxu0  ;;  %v1875_v40 = vadd.f32 %v1874_v11, %v1873_v9  ;;  %v1869_v9 = vadd.f32 %v2568_v3, %v2564_v1 }
 0x117   : > { %v1990_v42 = vpop.f32.mrf.mxu1 }
 0x118   : > { %v1951_v43 = vpop.f32.mrf.mxu0  ;;  %v1197_v11 = vadd.f32 %v1915_v52, %v1875_v40  ;;  %v1189_v36 = vadd.f32 %v1909_v10, %v1869_v9 }
 0x119   : > { %v1991_v45 = vpop.f32.mrf.mxu1  ;;  %v1952_v61 = vadd.f32 %v1951_v43, %v1950_v41 }
 0x11a   : > { %v1953_v46 = vpop.f32.mrf.mxu0  ;;  %v1992_v30 = vadd.f32 %v1991_v45, %v1990_v42  ;;  %v1254_v35 = vadd.f32 %v1949_v4, %v1189_v36 }
 0x11b   : > { %v2604_v48 = vpop.f32.mrf.mxu1  ;;  %v1259_v22 = vadd.f32 %v1952_v61, %v1194_v6  ;;  %v2686_v59 = vld [vmem:[#allocation5_spill] sm:$0xff] }
 0x11c   : > { %2677 = vst [vmem:[#allocation10_spill] sm:$0xff] %v2604_v48  ;;  %v1954_v49 = vpop.f32.mrf.mxu0  ;;  %v1878_v48 = vadd.f32 %v1877_v15, %v1876_v13 }
 0x11d   : > { %v2606_v50 = vpop.f32.mrf.mxu1  ;;  %v1955_v23 = vadd.f32 %v1954_v49, %v1953_v46  ;;  %v1324_v20 = vadd.f32 %v1992_v30, %v1259_v22 }
 0x11e   : > { %2678 = vst [vmem:[#allocation11_spill] sm:$0xff] %v2606_v50  ;;  %v1956_v51 = vpop.f32.mrf.mxu0  ;;  %v1202_v15 = vadd.f32 %v1918_v55, %v1878_v48 }
 0x11f   : > { %v2610_v53 = vpop.f32.mrf.mxu1  ;;  %v1262_v18 = vadd.f32 %v1955_v23, %v1197_v11  ;;  %v2692_v23 = vld [vmem:[#allocation8_spill] sm:$0xff] }
 0x120   : > { %2680 = vst [vmem:[#allocation13_spill] sm:$0xff] %v2610_v53  ;;  %v1957_v54 = vpop.f32.mrf.mxu0  ;;  %v2620_v53 = vpop.permute.xlu1 %1482 }
 0x121   : > { %v1997_v56 = vpop.f32.mrf.mxu1  ;;  %v1958_v12 = vadd.f32 %v1957_v54, %v1956_v51  ;;  %v1316_v54 = vadd.f32 %v1986_v17, %v1251_v2  ;;  %v2695_v17 = vld [vmem:[#allocation4_spill] sm:$0xff] }
 0x122   : > { %v1959_v57 = vpop.f32.mrf.mxu0 }
 0x123   : > { %v2614_v60 = vpop.f32.mrf.mxu1  ;;  %v1267_v39 = vadd.f32 %v1958_v12, %v1202_v15  ;;  %v2684_v42 = vld [vmem:[#allocation10_spill] sm:$0xff] }
 0x124   : > { %2682 = vst [vmem:[#allocation15_spill] sm:$0xff] %v2614_v60  ;;  %v1960_v47 = vpop.f32.mrf.mxu0  ;;  %v1493_v29 = vpop.permute.xlu1 %1492  ;;  %v2691_v12 = vld [vmem:[#allocation2_spill] sm:$0xff] }
 0x125   : > { %v2618_v37 = vpop.f32.mrf.mxu1  ;;  %v1961_v40 = vadd.f32 %v1960_v47, %v1959_v57  ;;  %v2685_v45 = vld [vmem:[#allocation11_spill] sm:$0xff] }
 0x126   : > { %v1962_v50 = vpop.f32.mrf.mxu0  ;;  %v1995_v51 = vadd.f32 %v2685_v45, %v2684_v42 }
 0x127   : > { %v2002_v60 = vpop.f32.mrf.mxu1  ;;  %v2683_v46 = vld [vmem:[#allocation13_spill] sm:$0xff]  ;;  %v1270_v55 = vadd.f32 %v1961_v40, %v1205_v44 }
 0x128   : > { %v1963_v5 = vpop.f32.mrf.mxu0  ;;  %v1998_v48 = vadd.f32 %v1997_v56, %v2683_v46  ;;  %v1503_v62 = vpop.permute.xlu1 %1502  ;;  %v2688_v56 = vld [vmem:[#allocation3_spill] sm:$0xff]  ;;  %v1327_v6 = vadd.f32 %v1995_v51, %v1262_v18  ;;  %v2696_v44 = vld [vmem:[#allocation9_spill] sm:$0xff] }
 0x129   : > { %v1964_v21 = vadd.f32 %v1963_v5, %v1962_v50  ;;  %v2003_v13 = vpop.f32.mrf.mxu1 }
 0x12a   : > { %v1965_v14 = vpop.f32.mrf.mxu0  ;;  %v2004_v1 = vadd.f32 %v2003_v13, %v2002_v60  ;;  %v1332_v32 = vadd.f32 %v1998_v48, %v1267_v39  ;;  %v2687_v60 = vld [vmem:[#allocation7_spill] sm:$0xff] }
 0x12b   : > { %v1275_v24 = vadd.f32 %v1964_v21, %v1210_v7  ;;  %v2005_v3 = vpop.f32.mrf.mxu1  ;;  %v1989_v61 = vadd.f32 %v2687_v60, %v2686_v59  ;;  %v2689_v7 = vld [vmem:[#allocation15_spill] sm:$0xff]  ;;  %v2690_v21 = vld [vmem:[#allocation12_spill] sm:$0xff] }
 0x12c   : > { %v1966_v28 = vpop.f32.mrf.mxu0  ;;  %v2001_v8 = vadd.f32 %v2618_v37, %v2689_v7  ;;  %v1513_v40 = vpop.permute.xlu1 %1512 }
 0x12d   : > { %v1967_v33 = vadd.f32 %v1966_v28, %v1965_v14  ;;  %v2006_v41 = vpop.f32.mrf.mxu1  ;;  %v1340_v43 = vadd.f32 %v2004_v1, %v1275_v24  ;;  %v1319_v22 = vadd.f32 %v1989_v61, %v1254_v35  ;;  %v1508_v1 = vpop.permute.xlu0 %1507  ;;  %v2693_v28 = vld [vmem:[#allocation6_spill] sm:$0xff] }
 0x12e   : > { %v2007_v49 = vadd.f32 %v2006_v41, %v2005_v3 }
 0x12f   : > { %v1278_v19 = vadd.f32 %v1967_v33, %v1213_v27  ;;  %v2038_v50 = vpop.f32.mrf.mxu0  ;;  %v1335_v27 = vadd.f32 %v2001_v8, %v1270_v55  ;;  %v2694_v33 = vld [vmem:[#allocation14_spill] sm:$0xff] }
 0x130   : > { %v1389_v52 = vadd.f32 %v2038_v50, %v1324_v20  ;;  %v2042_v47 = vpop.f32.mrf.mxu1 }
 0x131   : > { %v1405_v57 = vadd.f32 %v2042_v47, %v1340_v43  ;;  %v1380_v58 = vpop.f32.mrf.mxu0  ;;  %v1343_v34 = vadd.f32 %v2007_v49, %v1278_v19 }
 0x132   : > { %v1461_v63 = vmul.f32 %v2688_v56, %v1389_v52  ;;  %v1381_v0 = vadd.f32 %v1380_v58, %v1316_v54  ;;  %v1396_v5 = vpop.f32.mrf.mxu1 }
 0x133   : > { %v1465_v9 = vmul.f32 %v2690_v21, %v1405_v57  ;;  %v1397_v10 = vadd.f32 %v1396_v5, %v1332_v32  ;;  %v2039_v11 = vpop.f32.mrf.mxu0 }
 0x134   : > { %v1459_v13 = vmul.f32 %v2691_v12, %v1381_v0  ;;  %v1392_v14 = vadd.f32 %v2039_v11, %v1327_v6  ;;  %v2043_v15 = vpop.f32.mrf.mxu1  ;;  %v1517_v3 = vadd.f32 %v1488_v16, %v1461_v63 }
 0x135   : > { %v1463_v24 = vmul.f32 %v2692_v23, %v1397_v10  ;;  %v1408_v25 = vadd.f32 %v2043_v15, %v1343_v34  ;;  %v1383_v26 = vpop.f32.mrf.mxu0  ;;  %v1521_v30 = vadd.f32 %v1508_v1, %v1465_v9 }
 0x136   : > { %v1462_v2 = vmul.f32 %v2693_v28, %v1392_v14  ;;  %v1384_v37 = vadd.f32 %v1383_v26, %v1319_v22  ;;  %v1399_v4 = vpop.f32.mrf.mxu1  ;;  %v1515_v41 = vadd.f32 %v2616_v31, %v1459_v13  ;;  %v1525_v16 = vmax.f32 %v1517_v3, 0.0 }
 0x137   : > { %v1466_v36 = vmul.f32 %v2694_v33, %v1408_v25  ;;  %v1400_v39 = vadd.f32 %v1399_v4, %v1335_v27  ;;  %v1519_v19 = vadd.f32 %v1498_v38, %v1463_v24  ;;  %v1529_v50 = vmax.f32 %v1521_v30, 0.0 }
 0x138   : > { %v1518_v43 = vadd.f32 %v1493_v29, %v1462_v2  ;;  %v1460_v18 = vmul.f32 %v2695_v17, %v1384_v37  ;;  %v1523_v31 = vmax.f32 %v1515_v41, 0.0 }
 0x139   : > { %v1522_v20 = vadd.f32 %v1513_v40, %v1466_v36  ;;  %v1464_v46 = vmul.f32 %v2696_v44, %v1400_v39  ;;  %v1527_v51 = vmax.f32 %v1519_v19, 0.0 }
 0x13a   : > { %v1526_v48 = vmax.f32 %v1518_v43, 0.0  ;;  %v1516_v49 = vadd.f32 %v2620_v53, %v1460_v18 }
 0x13b   : > { %v1530_v35 = vmax.f32 %v1522_v20, 0.0  ;;  %v1520_v42 = vadd.f32 %v1503_v62, %v1464_v46 }
 0x13c   : > { %v1833_v45 = vpack.c.bf16 %v1526_v48, %v1525_v16  ;;  %v1524_v29 = vmax.f32 %v1516_v49, 0.0 }
 0x13d   : > { %v1843_v52 = vpack.c.bf16 %v1530_v35, %v1529_v50  ;;  %v1528_v38 = vmax.f32 %v1520_v42, 0.0 }
 0x13e   : > { %1845 = vst [vmem:[%s283_s26 + $0x8] sm:$0xff] %v1833_v45   ;;  %v1828_v47 = vpack.c.bf16 %v1524_v29, %v1523_v31 }
 0x13f   : > { %1847 = vst [vmem:[%s283_s26 + $0x18] sm:$0xff] %v1843_v52   ;;  %v1838_v54 = vpack.c.bf16 %v1528_v38, %v1527_v51 }
 0x140   : > { %1829 = vst [vmem:[%s283_s26] sm:$0xff] %v1828_v47  }
 0x141   : > { %1846 = vst [vmem:[%s283_s26 + $0x10] sm:$0xff] %v1838_v54  }
 0x142 PF: > { %s14_s17 = sadd.s32 1, %s2234_s17   ;;  %s2697_s15 = smov %s2230_s16 }
 0x143   : > { %p11_p5 = scmp.ge.s32.totalorder %s14_s17, 4   ;;  %s2698_s16 = smov %s2700_s18 }
 0x145   :  { %13 = sbr.rel (!%p11_p5) target bundleno = 2 (0x2), region = 75 }

// kernel: preact_resnet_forward.54
= control target key start
LH: loop header
LB: loop body
LE: loop exit
PB: predicated region body
PF: predicated region fallthrough
CT: control target
= control target key end

     0   :  { %s2399_s18 = smov 0   ;;  %s2401_s19 = smov 0   ;;  %s2860_s0 = inlined_call_operand.vmem [shape: bf16[1216,128], index: 0, kind: input, shape index: {}]   ;;  %s2861_s1 = inlined_call_operand.vmem [shape: bf16[128,1216], index: 1, kind: input, shape index: {}]   ;;  %s2862_s2 = inlined_call_operand.vmem [shape: f32[128,1], index: 2, kind: input, shape index: {}]   ;;  %s2863_s3 = inlined_call_operand.vmem [shape: f32[128,1], index: 3, kind: input, shape index: {}]   ;;  %s2864_s4 = inlined_call_operand.vmem [shape: f32[128,128], index: 4, kind: output, shape index: {0}]   ;;  %s2865_s5 = inlined_call_operand.vmem [shape: bf16[128,128], index: 5, kind: output, shape index: {1}]  }
   0x1   :  { %s2403_s20 = smov 0  }
   0x2 LB: > { %s25_s21 = sadd.s32 1, %s2362_s19  ;;  %p1848_p0 = scmp.ge.s32.totalorder %s2366_s20, 1  ;;  %s2366_s20 = sphi %s2403_s20, %s16_s20   ;;  %s2362_s19 = sphi %s2401_s19, %s2871_s19   ;;  %s2358_s18 = sphi %s2399_s18, %s2870_s18  }
   0x3   : > { %p26_p1 = scmp.ge.s32.totalorder %s25_s21, 2  ;;  %p239_p2 = scmp.lt.s32.totalorder %s2366_s20, 3 }
   0x5   : > { %s2873_s21 = smov (%p26_p1, %s25_s21), 0  ;;  %p240_p3 = pnand %p1848_p0, %p239_p2 }
   0x7   : > { %243 = sbr.rel (%p240_p3) target bundleno = 347 (0x15b), region = 36 }
   0xc   : > { %v2208_v0 = vld [vmem:[%s2860_s0 + $0x78] sm:$0xff]   ;;  %v2210_v2 = vld [vmem:[%s2860_s0 + $0x70] sm:$0xff]   ;;  %v2368_v4 = vmov 0   ;;  %v2212_v5 = vld [vmem:[%s2860_s0 + $0x68] sm:$0xff]   ;;  %s1849_s9 = sshll.u32 %s2358_s18, 3  ;;  %vm1179_vm0 = vcmask 523264  }
   0xd   : > { %v2209_v1 = vld [vmem:[%s2860_s0 + $0x38] sm:$0xff]   ;;  %2020 = vmatprep.subr.bf16.mxu1 %v2208_v0  ;;  %v2211_v3 = vld [vmem:[%s2860_s0 + $0x30] sm:$0xff]   ;;  %2207 = vset.pattern.permute.xlu1 %v2368_v4  ;;  %v2213_v6 = vld [vmem:[%s2860_s0 + $0x28] sm:$0xff]   ;;  %p298_p4 = scmp.lt.s32.totalorder %s1849_s9, 15 }
   0xe   : > { %2021 = vmatpush3.bf16.msra.mxu1 %v2209_v1  ;;  %2206 = vset.pattern.permute.xlu0 %v2368_v4  ;;  %v2214_v7 = vld [vmem:[%s2860_s0 + $0x60] sm:$0xff]   ;;  %v2218_v9 = vld [vmem:[%s2860_s0 + $0x178] sm:$0xff]   ;;  %v2222_v13 = vld [vmem:[%s2860_s0 + $0x170] sm:$0xff]  }
   0xf   : > { %2022 = vmatprep.subr.bf16.mxu1 %v2210_v2  ;;  %v2215_v8 = vld [vmem:[%s2860_s0 + $0x20] sm:$0xff]   ;;  %v2219_v10 = vld [vmem:[%s2860_s0 + $0x138] sm:$0xff]   ;;  %2100 = vmatprep.subr.bf16.mxu0 %v2218_v9  ;;  %s2875_s9 = smov (!%p298_p4, %s1849_s9), 15  ;;  %v2223_v14 = vld [vmem:[%s2860_s0 + $0x130] sm:$0xff]  }
  0x10   : > { %v2216_v11 = vld [vmem:[%s2860_s0 + $0x58] sm:$0xff]   ;;  %2101 = vmatpush3.bf16.msra.mxu0 %v2219_v10  ;;  %v2220_v15 = vld [vmem:[%s2860_s0 + $0x50] sm:$0xff]   ;;  %v2226_v17 = vld [vmem:[%s2860_s0 + $0x168] sm:$0xff]   ;;  %s2180_s11 = smul.u32 40, %s2875_s9  ;;  %s2702_s12 = sshll.u32 %s2875_s9, 3 }
  0x11   : > { %v2217_v12 = vld [vmem:[%s2860_s0 + $0x18] sm:$0xff]   ;;  %2102 = vmatprep.subr.bf16.mxu0 %v2222_v13  ;;  %v2221_v16 = vld [vmem:[%s2860_s0 + $0x10] sm:$0xff]   ;;  %v2227_v18 = vld [vmem:[%s2860_s0 + $0x128] sm:$0xff]   ;;  %s308_s15 = scalar_lea.vmem %s2862_s2, %s2702_s12  ;;  %s314_s18 = scalar_lea.vmem %s2863_s3, %s2702_s12 }
  0x12   : > { %2023 = vmatpush3.bf16.msra.mxu1 %v2211_v3  ;;  %v2224_v19 = vld [vmem:[%s2860_s0 + $0x48] sm:$0xff]   ;;  %v2230_v21 = vld [vmem:[%s2860_s0 + $0x160] sm:$0xff]   ;;  %s2491_s25 = scalar_lea.vmem %s2861_s1, %s2180_s11  ;;  %v2235_v26 = vld [vmem:[%s2860_s0 + $0xf8] sm:$0xff]   ;;  %s2797_s23 = scalar_lea.vmem %s2864_s4, %s2702_s12 }
  0x13   : > { %2024 = vmatprep.subr.bf16.mxu1 %v2212_v5  ;;  %v2225_v20 = vld [vmem:[%s2860_s0 + $0x8] sm:$0xff]   ;;  %v2231_v22 = vld [vmem:[%s2860_s0 + $0x120] sm:$0xff]   ;;  %v2237_v28 = vld [vmem:[%s2860_s0 + $0x158] sm:$0xff]   ;;  %s1858_s24 = sshll.u32 %s2875_s9, 2 }
  0x14   : > { %2103 = vmatpush3.bf16.msra.mxu0 %v2223_v14  ;;  %v2228_v23 = vld [vmem:[%s2860_s0 + $0x40] sm:$0xff]   ;;  %v2238_v29 = vld [vmem:[%s2860_s0 + $0x118] sm:$0xff]   ;;  %v2239_v31 = vld [vmem:[%s2860_s0 + $0xf0] sm:$0xff]   ;;  %s2823_s27 = scalar_lea.vmem %s2865_s5, %s1858_s24 }
  0x15   : > { %2104 = vmatprep.subr.bf16.mxu0 %v2226_v17  ;;  %v2234_v24 = vld [vmem:[%s2491_s25 + $0x4] ss:$40 sps:$4 sm:$0xff]   ;;  %v2232_v27 = vld [vmem:[%s2491_s25] ss:$40 sps:$4 sm:$0xff]   ;;  %v2236_v30 = vld [vmem:[%s2860_s0 + $0xb8] sm:$0xff]  }
  0x16   : > { %2025 = vmatpush3.bf16.msra.mxu1 %v2213_v6  ;;  %v2229_v25 = vld [vmem:[%s2860_s0] sm:$0xff]   ;;  %1224 = vmatprep.mubr.bf16.mxu1 %v2234_v24  ;;  %v2241_v32 = vld [vmem:[%s2860_s0 + $0x150] sm:$0xff]   ;;  %v2246_v37 = vld [vmem:[%s2860_s0 + $0xe8] sm:$0xff]  }
  0x17   : > { %2026 = vmatprep.subr.bf16.mxu1 %v2214_v7  ;;  %v2242_v33 = vld [vmem:[%s2860_s0 + $0x110] sm:$0xff]   ;;  %v2248_v38 = vld [vmem:[%s2860_s0 + $0x148] sm:$0xff]   ;;  %v2250_v41 = vld [vmem:[%s2860_s0 + $0xe0] sm:$0xff]  }
  0x18   : > { %2105 = vmatpush3.bf16.msra.mxu0 %v2227_v18  ;;  %v2243_v34 = vld [vmem:[%s2491_s25 + $0x54] ss:$40 sps:$4 sm:$0xff]   ;;  %v2245_v36 = vld [vmem:[%s2491_s25 + $0x50] ss:$40 sps:$4 sm:$0xff]   ;;  %v2249_v39 = vld [vmem:[%s2860_s0 + $0x108] sm:$0xff]  }
  0x19   : > { %2106 = vmatprep.subr.bf16.mxu0 %v2230_v21  ;;  %v2240_v35 = vld [vmem:[%s2860_s0 + $0xb0] sm:$0xff]   ;;  %v2247_v40 = vld [vmem:[%s2860_s0 + $0xa8] sm:$0xff]   ;;  %v2252_v42 = vld [vmem:[%s2860_s0 + $0x140] sm:$0xff]  }
  0x1a   : > { %2027 = vmatpush3.bf16.msra.mxu1 %v2215_v8  ;;  %v2253_v43 = vld [vmem:[%s2860_s0 + $0x100] sm:$0xff]   ;;  %v2257_v47 = vld [vmem:[%s2860_s0 + $0xd8] sm:$0xff]   ;;  %v2263_v52 = vld [vmem:[%s2860_s0 + $0xd0] sm:$0xff]  }
  0x1b   : > { %2028 = vmatprep.subr.bf16.mxu1 %v2216_v11  ;;  %v2251_v44 = vld [vmem:[%s2860_s0 + $0xa0] sm:$0xff]   ;;  %v2258_v48 = vld [vmem:[%s2860_s0 + $0x98] sm:$0xff]   ;;  %v2264_v53 = vld [vmem:[%s2860_s0 + $0x90] sm:$0xff]  }
  0x1c   : > { %2107 = vmatpush3.bf16.msra.mxu0 %v2231_v22  ;;  %v2254_v45 = vld [vmem:[%s2491_s25 + $0xa4] ss:$40 sps:$4 sm:$0xff]   ;;  %v2256_v46 = vld [vmem:[%s2491_s25 + $0xa0] ss:$40 sps:$4 sm:$0xff]   ;;  %v2259_v49 = vld [vmem:[%s2491_s25 + $0x10] ss:$40 sps:$4 sm:$0xff]  }
  0x1d   : > { %2108 = vmatprep.subr.bf16.mxu0 %v2237_v28  ;;  %v2261_v50 = vld [vmem:[%s2491_s25 + $0x14] ss:$40 sps:$4 sm:$0xff]   ;;  %v2268_v56 = vld [vmem:[%s2491_s25 + $0xf0] ss:$40 sps:$4 sm:$0xff]   ;;  %v2269_v57 = vld [vmem:[%s2860_s0 + $0xc8] sm:$0xff]  }
  0x1e   : > { %2029 = vmatpush3.bf16.msra.mxu1 %v2217_v12  ;;  %v2262_v51 = vld [vmem:[%s2860_s0 + $0x238] sm:$0xff]   ;;  %1354 = vmatprep.mubr.bf16.mxu0 %v2261_v50  ;;  %v2265_v54 = vld [vmem:[%s2860_s0 + $0x230] sm:$0xff]   ;;  %v2270_v58 = vld [vmem:[%s2860_s0 + $0x88] sm:$0xff]  }
  0x1f   : > { %2030 = vmatprep.subr.bf16.mxu1 %v2220_v15  ;;  %v2266_v55 = vld [vmem:[%s2491_s25 + $0xf4] ss:$40 sps:$4 sm:$0xff]   ;;  %v2271_v59 = vld [vmem:[%s2860_s0 + $0x228] sm:$0xff]   ;;  %v2272_v60 = vld [vmem:[%s2860_s0 + $0xc0] sm:$0xff]  }
  0x20   : > { %2109 = vmatpush3.bf16.msra.mxu0 %v2238_v29  ;;  %v2273_v61 = vld [vmem:[%s2860_s0 + $0x80] sm:$0xff]   ;;  %v2277_v63 = vld [vmem:[%s2491_s25 + $0xc] ss:$40 sps:$4 sm:$0xff]   ;;  %v2278_v0 = vld [vmem:[%s2860_s0 + $0x1f8] sm:$0xff]  }
  0x21   : > { %2110 = vmatprep.subr.bf16.mxu0 %v2241_v32  ;;  %v2274_v62 = vld [vmem:[%s2860_s0 + $0x220] sm:$0xff]   ;;  %v2275_v1 = vld [vmem:[%s2491_s25 + $0x8] ss:$40 sps:$4 sm:$0xff]   ;;  %v2279_v2 = vld [vmem:[%s2860_s0 + $0x1b8] sm:$0xff]  }
  0x22   : > { %2031 = vmatpush3.bf16.msra.mxu1 %v2221_v16  ;;  %v2280_v3 = vld [vmem:[%s2860_s0 + $0x218] sm:$0xff]   ;;  %v2281_v5 = vld [vmem:[%s2860_s0 + $0x1f0] sm:$0xff]   ;;  %v2287_v10 = vld [vmem:[%s2491_s25 + $0x64] ss:$40 sps:$4 sm:$0xff]  }
  0x23   : > { %2032 = vmatprep.subr.bf16.mxu1 %v2224_v19  ;;  %v2282_v6 = vld [vmem:[%s2860_s0 + $0x1b0] sm:$0xff]   ;;  %v2284_v7 = vld [vmem:[%s2491_s25 + $0x5c] ss:$40 sps:$4 sm:$0xff]   ;;  %v2286_v9 = vld [vmem:[%s2491_s25 + $0x58] ss:$40 sps:$4 sm:$0xff]  }
  0x24   : > { %2111 = vmatpush3.bf16.msra.mxu0 %v2242_v33  ;;  %v2283_v8 = vld [vmem:[%s2860_s0 + $0x210] sm:$0xff]   ;;  %v2289_v11 = vld [vmem:[%s2860_s0 + $0x1e8] sm:$0xff]   ;;  %v2293_v15 = vld [vmem:[%s2860_s0 + $0x1e0] sm:$0xff]  }
  0x25   : > { %2112 = vmatprep.subr.bf16.mxu0 %v2248_v38  ;;  %v2290_v12 = vld [vmem:[%s2491_s25 + $0x60] ss:$40 sps:$4 sm:$0xff]   ;;  %v2296_v18 = vld [vmem:[%s2491_s25 + $0xac] ss:$40 sps:$4 sm:$0xff]   ;;  %v2301_v21 = vld [vmem:[%s2860_s0 + $0x1d8] sm:$0xff]  }
  0x26   : > { %2033 = vmatpush3.bf16.msra.mxu1 %v2225_v20  ;;  %v2291_v13 = vld [vmem:[%s2860_s0 + $0x1a8] sm:$0xff]   ;;  %v2294_v16 = vld [vmem:[%s2860_s0 + $0x1a0] sm:$0xff]   ;;  %v2299_v20 = vld [vmem:[%s2491_s25 + $0xb4] ss:$40 sps:$4 sm:$0xff]  }
  0x27   : > { %2034 = vmatprep.subr.bf16.mxu1 %v2228_v23  ;;  %v2292_v14 = vld [vmem:[%s2860_s0 + $0x208] sm:$0xff]   ;;  %v2295_v17 = vld [vmem:[%s2860_s0 + $0x200] sm:$0xff]   ;;  %v2302_v22 = vld [vmem:[%s2491_s25 + $0xb0] ss:$40 sps:$4 sm:$0xff]  }
  0x28   : > { %2113 = vmatpush3.bf16.msra.mxu0 %v2249_v39  ;;  %v2298_v19 = vld [vmem:[%s2491_s25 + $0xa8] ss:$40 sps:$4 sm:$0xff]   ;;  %v2303_v23 = vld [vmem:[%s2860_s0 + $0x198] sm:$0xff]  }
  0x29   : > { %2114 = vmatprep.subr.bf16.mxu0 %v2252_v42  ;;  %v2304_v24 = vld [vmem:[%s2860_s0 + $0x258] sm:$0xff]   ;;  %v2314_v32 = vld [vmem:[%s2491_s25 + $0x100] ss:$40 sps:$4 sm:$0xff]   ;;  %v2326_v42 = vld [vmem:[%s2491_s25 + $0x6c] ss:$40 sps:$4 sm:$0xff]  }
  0x2a   : > { %2035 = vmatpush3.bf16.msra.mxu1 %v2229_v25  ;;  %v2305_v25 = vld [vmem:[%s2860_s0 + $0x1d0] sm:$0xff]   ;;  %v2308_v28 = vld [vmem:[%s2491_s25 + $0xfc] ss:$40 sps:$4 sm:$0xff]   ;;  %v2310_v29 = vld [vmem:[%s2491_s25 + $0xf8] ss:$40 sps:$4 sm:$0xff]  }
  0x2b   : > { %2060 = vmatprep.subr.bf16.mxu1 %v2235_v26  ;;  %v2306_v26 = vld [vmem:[%s2860_s0 + $0x190] sm:$0xff]   ;;  %v2315_v33 = vld [vmem:[%s2860_s0 + $0x188] sm:$0xff]   ;;  %v2320_v38 = vld [vmem:[%s2491_s25 + $0x18] ss:$40 sps:$4 sm:$0xff]  }
  0x2c   : > { %2115 = vmatpush3.bf16.msra.mxu0 %v2253_v43  ;;  %v2322_v39 = vld [vmem:[%s2491_s25 + $0x1c] ss:$40 sps:$4 sm:$0xff]   ;;  %v1526_v50 = vld [vmem:[%s308_s15 + $0x8] sm:$0xff] }
  0x2d   : > { %1225 = vmatmul.mubr.bf16.vlgmr.msra.gmra.mxu1 %v2232_v27  ;;  %1452 = vmatprep.subr.bf16.mxu0 %v2368_v4  ;;  %v2307_v27 = vld [vmem:[%s2860_s0 + $0x250] sm:$0xff]  }
  0x2e   : > { %2061 = vmatpush3.bf16.msra.mxu1 %v2236_v30  ;;  %1232 = vmatprep.mubr.bf16.mxu1 %v2243_v34  ;;  %v2311_v30 = vld [vmem:[%s2491_s25 + $0x104] ss:$40 sps:$4 sm:$0xff]   ;;  %v2329_v43 = vld [vmem:[%s2491_s25 + $0x74] ss:$40 sps:$4 sm:$0xff]  }
  0x2f   : > { %2062 = vmatprep.subr.bf16.mxu1 %v2239_v31  ;;  %1355 = vmatmul.mubr.bf16.vlgmr.msra.gmra.mxu0 %v2259_v49  ;;  %v2313_v31 = vld [vmem:[%s2860_s0 + $0x1c8] sm:$0xff]   ;;  %v1528_v49 = vld [vmem:[%s308_s15 + $0x18] sm:$0xff] }
  0x30   : > { %1453 = vmatpush1.bf16.msra.mxu0 %v2262_v51  ;;  %1362 = vmatprep.mubr.bf16.mxu0 %v2287_v10  ;;  %v2316_v34 = vld [vmem:[%s2860_s0 + $0x248] sm:$0xff]  }
  0x31   : > { %1454 = vmatprep.subr.bf16.mxu0 %v2368_v4  ;;  %v1530_v51 = vld [vmem:[%s308_s15 + $0x28] sm:$0xff] }
  0x32   : > { %2063 = vmatpush3.bf16.msra.mxu1 %v2240_v35  ;;  %v2317_v35 = vld [vmem:[%s2860_s0 + $0x1c0] sm:$0xff]  }
  0x33   : > { %2064 = vmatprep.subr.bf16.mxu1 %v2246_v37  ;;  %v2319_v37 = vld [vmem:[%s2860_s0 + $0x240] sm:$0xff]  }
  0x34   : > { %1455 = vmatpush1.bf16.msra.mxu0 %v2265_v54  ;;  %v2337_v54 = vld [vmem:[%s2491_s25 + $0xc0] ss:$40 sps:$4 sm:$0xff]  }
  0x35   : > { %1233 = vmatmul.mubr.bf16.gmra.mxu1 %v2245_v36  ;;  %1456 = vmatprep.subr.bf16.mxu0 %v2368_v4  ;;  %v2318_v36 = vld [vmem:[%s2860_s0 + $0x180] sm:$0xff]  }
  0x36   : > { %2065 = vmatpush3.bf16.msra.mxu1 %v2247_v40  ;;  %1240 = vmatprep.mubr.bf16.mxu1 %v2254_v45  ;;  %v2323_v40 = vld [vmem:[%s2491_s25 + $0x20] ss:$40 sps:$4 sm:$0xff]   ;;  %v1527_v45 = vld [vmem:[%s308_s15 + $0x10] sm:$0xff] }
  0x37   : > { %2066 = vmatprep.subr.bf16.mxu1 %v2250_v41  ;;  %1363 = vmatmul.mubr.bf16.gmra.mxu0 %v2290_v12  ;;  %v2325_v41 = vld [vmem:[%s2491_s25 + $0x24] ss:$40 sps:$4 sm:$0xff]  }
  0x38   : > { %1457 = vmatpush1.bf16.msra.mxu0 %v2271_v59  ;;  %1370 = vmatprep.mubr.bf16.mxu0 %v2299_v20  ;;  %v1582_v59 = vld [vmem:[%s314_s18 + $0x8] sm:$0xff] }
  0x39   : > { %1458 = vmatprep.subr.bf16.mxu0 %v2368_v4  ;;  %1545 = vperm.xlu1 %2207, %v1527_v45  }
  0x3a   : > { %2067 = vmatpush3.bf16.msra.mxu1 %v2251_v44  ;;  %v2331_v44 = vld [vmem:[%s2491_s25 + $0x70] ss:$40 sps:$4 sm:$0xff]  }
  0x3b   : > { %2068 = vmatprep.subr.bf16.mxu1 %v2257_v47  ;;  %v2335_v47 = vld [vmem:[%s2491_s25 + $0xc4] ss:$40 sps:$4 sm:$0xff]  }
  0x3c   : > { %1459 = vmatpush1.bf16.msra.mxu0 %v2274_v62  ;;  %v2343_v62 = vld [vmem:[%s2491_s25 + $0x110] ss:$40 sps:$4 sm:$0xff]  }
  0x3d   : > { %1241 = vmatmul.mubr.bf16.gmra.mxu1 %v2256_v46  ;;  %1460 = vmatprep.subr.bf16.mxu0 %v2368_v4  ;;  %v2332_v46 = vld [vmem:[%s2491_s25 + $0xbc] ss:$40 sps:$4 sm:$0xff]  }
  0x3e   : > { %2069 = vmatpush3.bf16.msra.mxu1 %v2258_v48  ;;  %1248 = vmatprep.mubr.bf16.mxu1 %v2266_v55  ;;  %v1525_v48 = vld [vmem:[%s308_s15] sm:$0xff]  ;;  %v2338_v55 = vld [vmem:[%s2491_s25 + $0x10c] ss:$40 sps:$4 sm:$0xff]  }
  0x3f   : > { %2070 = vmatprep.subr.bf16.mxu1 %v2263_v52  ;;  %1371 = vmatmul.mubr.bf16.gmra.mxu0 %v2302_v22  ;;  %v1529_v52 = vld [vmem:[%s308_s15 + $0x20] sm:$0xff] }
  0x40   : > { %1461 = vmatpush1.bf16.msra.mxu0 %v2280_v3  ;;  %1378 = vmatprep.mubr.bf16.mxu0 %v2311_v30  ;;  %v1588_v3 = vld [vmem:[%s314_s18 + $0x38] sm:$0xff] }
  0x41   : > { %1462 = vmatprep.subr.bf16.mxu0 %v2368_v4  ;;  %1535 = vperm.xlu0 %2206, %v1525_v48  }
  0x42   : > { %2071 = vmatpush3.bf16.msra.mxu1 %v2264_v53  ;;  %1550 = vperm.xlu1 %2207, %v1528_v49   ;;  %v2334_v53 = vld [vmem:[%s2491_s25 + $0xb8] ss:$40 sps:$4 sm:$0xff]  }
  0x43   : > { %2072 = vmatprep.subr.bf16.mxu1 %v2269_v57  ;;  %v1532_v57 = vld [vmem:[%s308_s15 + $0x38] sm:$0xff] }
  0x44   : > { %1463 = vmatpush1.bf16.msra.mxu0 %v2283_v8 }
  0x45   : > { %1249 = vmatmul.mubr.bf16.gmra.mxu1 %v2268_v56  ;;  %1464 = vmatprep.subr.bf16.mxu0 %v2368_v4  ;;  %v2341_v56 = vld [vmem:[%s2491_s25 + $0x114] ss:$40 sps:$4 sm:$0xff]  }
  0x46   : > { %2073 = vmatpush3.bf16.msra.mxu1 %v2270_v58  ;;  %1289 = vmatprep.mubr.bf16.mxu1 %v2277_v63  ;;  %v1531_v58 = vld [vmem:[%s308_s15 + $0x30] sm:$0xff]  ;;  %v1584_v63 = vld [vmem:[%s314_s18 + $0x18] sm:$0xff] }
  0x47   : > { %2074 = vmatprep.subr.bf16.mxu1 %v2272_v60  ;;  %1379 = vmatmul.mubr.bf16.gmra.mxu0 %v2314_v32  ;;  %v1581_v60 = vld [vmem:[%s314_s18] sm:$0xff] }
  0x48   : > { %1465 = vmatpush1.bf16.msra.mxu0 %v2292_v14  ;;  %1975 = vmatprep.mubr.msk.bf16.mxu0 %vm1179_vm0, %v2325_v41 }
  0x49   : > { %1466 = vmatprep.subr.bf16.mxu0 %v2368_v4  ;;  %1540 = vperm.xlu0 %2206, %v1526_v50  }
  0x4a   : > { %2075 = vmatpush3.bf16.msra.mxu1 %v2273_v61  ;;  %1560 = vperm.xlu1 %2207, %v1530_v51   ;;  %v2340_v61 = vld [vmem:[%s2491_s25 + $0x108] ss:$40 sps:$4 sm:$0xff]  }
  0x4b   : > { %2140 = vmatprep.subr.bf16.mxu1 %v2278_v0  ;;  %v1583_v0 = vld [vmem:[%s314_s18 + $0x10] sm:$0xff] }
  0x4c   : > { %1467 = vmatpush1.bf16.msra.mxu0 %v2295_v17 }
  0x4d   : > { %1290 = vmatmul.mubr.bf16.vlgmr.msra.gmra.mxu1 %v2275_v1  ;;  %1476 = vmatprep.subr.bf16.mxu0 %v2368_v4  ;;  %v1586_v1 = vld [vmem:[%s314_s18 + $0x28] sm:$0xff] }
  0x4e   : > { %2141 = vmatpush3.bf16.msra.mxu1 %v2279_v2  ;;  %1297 = vmatprep.mubr.bf16.mxu1 %v2284_v7  ;;  %v1585_v2 = vld [vmem:[%s314_s18 + $0x20] sm:$0xff] }
  0x4f   : > { %2142 = vmatprep.subr.bf16.mxu1 %v2281_v5  ;;  %1555 = vperm.xlu0 %2206, %v1529_v52   ;;  %v1587_v5 = vld [vmem:[%s314_s18 + $0x30] sm:$0xff] }
  0x50   : > { %1477 = vmatpush2.bf16.msra.mxu0 %v2304_v24  ;;  %1570 = vperm.xlu1 %2207, %v1532_v57  }
  0x51   : > { %1478 = vmatprep.subr.bf16.mxu0 %v2368_v4 }
  0x52   : > { %2143 = vmatpush3.bf16.msra.mxu1 %v2282_v6 }
  0x53   : > { %2144 = vmatprep.subr.bf16.mxu1 %v2289_v11  ;;  %1565 = vperm.xlu0 %2206, %v1531_v58  }
  0x54   : > { %1479 = vmatpush2.bf16.msra.mxu0 %v2307_v27  ;;  %1596 = vperm.xlu1 %2207, %v1582_v59  }
  0x55   : > { %1298 = vmatmul.mubr.bf16.gmra.mxu1 %v2286_v9  ;;  %1480 = vmatprep.subr.bf16.mxu0 %v2368_v4 }
  0x56   : > { %2145 = vmatpush3.bf16.msra.mxu1 %v2291_v13  ;;  %1305 = vmatprep.mubr.bf16.mxu1 %v2296_v18 }
  0x57   : > { %2146 = vmatprep.subr.bf16.mxu1 %v2293_v15  ;;  %1591 = vperm.xlu0 %2206, %v1581_v60  }
  0x58   : > { %1481 = vmatpush2.bf16.msra.mxu0 %v2316_v34  ;;  %1606 = vperm.xlu1 %2207, %v1584_v63  }
  0x59   : > { %1482 = vmatprep.subr.bf16.mxu0 %v2368_v4  ;;  %v2328_v4 = vld [vmem:[%s2491_s25 + $0x68] ss:$40 sps:$4 sm:$0xff]  }
  0x5a   : > { %2147 = vmatpush3.bf16.msra.mxu1 %v2294_v16 }
  0x5b   : > { %2148 = vmatprep.subr.bf16.mxu1 %v2301_v21  ;;  %1601 = vperm.xlu0 %2206, %v1583_v0  }
  0x5c   : > { %1483 = vmatpush2.bf16.msra.mxu0 %v2319_v37  ;;  %1616 = vperm.xlu1 %2207, %v1586_v1  }
  0x5d   : > { %1306 = vmatmul.mubr.bf16.gmra.mxu1 %v2298_v19 }
  0x5e   : > { %2149 = vmatpush3.bf16.msra.mxu1 %v2303_v23  ;;  %1313 = vmatprep.mubr.bf16.mxu1 %v2308_v28 }
  0x5f   : > { %2150 = vmatprep.subr.bf16.mxu1 %v2305_v25  ;;  %1485 = vmatmul.mubr.bf16.vlgmr.msra.gmra.mxu0 %v2323_v40 }
  0x60   : > { %1976 = vmatprep.mubr.msk.bf16.mxu0 %vm1179_vm0, %v2329_v43  ;;  %1611 = vperm.xlu0 %2206, %v1585_v2  }
  0x61   : > { %1626 = vperm.xlu1 %2207, %v1588_v3  }
  0x62   : > { %2151 = vmatpush3.bf16.msra.mxu1 %v2306_v26 }
  0x63   : > { %2152 = vmatprep.subr.bf16.mxu1 %v2313_v31 }
  0x64   : > { %1621 = vperm.xlu0 %2206, %v1587_v5  }
  0x65   : > { %1314 = vmatmul.mubr.bf16.gmra.mxu1 %v2310_v29 }
  0x66   : > { %2153 = vmatpush3.bf16.msra.mxu1 %v2315_v33  ;;  %1419 = vmatprep.mubr.bf16.mxu1 %v2322_v39 }
  0x67   : > { %2154 = vmatprep.subr.bf16.mxu1 %v2317_v35  ;;  %1493 = vmatmul.mubr.bf16.gmra.mxu0 %v2331_v44 }
  0x68   : > { %1977 = vmatprep.mubr.msk.bf16.mxu0 %vm1179_vm0, %v2335_v47 }
  0x6a   : > { %2155 = vmatpush3.bf16.msra.mxu1 %v2318_v36 }
  0x6d   : > { %1420 = vmatmul.mubr.bf16.vlgmr.msra.gmra.mxu1 %v2320_v38 }
  0x6e   : > { %1427 = vmatprep.mubr.bf16.mxu1 %v2326_v42 }
  0x6f   : > { %1501 = vmatmul.mubr.bf16.gmra.mxu0 %v2337_v54 }
  0x70   : > { %1978 = vmatprep.mubr.msk.bf16.mxu0 %vm1179_vm0, %v2341_v56 }
  0x75   : > { %1428 = vmatmul.mubr.bf16.gmra.mxu1 %v2328_v4 }
  0x76   : > { %1435 = vmatprep.mubr.bf16.mxu1 %v2332_v46 }
  0x77   : > { %1509 = vmatmul.mubr.bf16.gmra.mxu0 %v2343_v62 }
  0x7d   : > { %1436 = vmatmul.mubr.bf16.gmra.mxu1 %v2334_v53 }
  0x7e   : > { %1443 = vmatprep.mubr.bf16.mxu1 %v2338_v55 }
  0x85   : > { %1444 = vmatmul.mubr.bf16.gmra.mxu1 %v2340_v61 }
  0xb4   : > { %v2763_v45 = vpop.permute.xlu1 %1545 }
  0xbc   : > { %v1536_v43 = vpop.permute.xlu0 %1535 }
  0xbd   : > { %v2775_v53 = vpop.permute.xlu1 %1550 }
  0xc4   : > { %v1541_v49 = vpop.permute.xlu0 %1540 }
  0xc5   : > { %v2787_v2 = vpop.permute.xlu1 %1560 }
  0xca   : > { %v2785_v61 = vpop.permute.xlu0 %1555 }
  0xed   : > { %v2036_v6 = vpop.f32.mrf.mxu1 }
  0xef   : > { %v2037_v7 = vpop.f32.mrf.mxu1  ;;  %v2116_v18 = vpop.f32.mrf.mxu0 }
  0xf0   : > { %v2038_v56 = vadd.f32 %v2037_v7, %v2036_v6 }
  0xf1   : > { %v2039_v8 = vpop.f32.mrf.mxu1  ;;  %v2117_v21 = vpop.f32.mrf.mxu0 }
  0xf2   : > { %v2118_v1 = vadd.f32 %v2117_v21, %v2116_v18 }
  0xf3   : > { %v2040_v9 = vpop.f32.mrf.mxu1  ;;  %v2119_v24 = vpop.f32.mrf.mxu0 }
  0xf4   : > { %v2041_v0 = vadd.f32 %v2040_v9, %v2039_v8 }
  0xf5   : > { %v2725_v10 = vpop.f32.mrf.mxu1  ;;  %v2120_v27 = vpop.f32.mrf.mxu0 }
  0xf7   : > { %v2727_v11 = vpop.f32.mrf.mxu1  ;;  %v2122_v30 = vpop.f32.mrf.mxu0 }
  0xf9   : > { %v2729_v12 = vpop.f32.mrf.mxu1  ;;  %v2123_v32 = vpop.f32.mrf.mxu0 }
  0xfa   : > { %v2124_v8 = vadd.f32 %v2123_v32, %v2122_v30 }
  0xfb   : > { %v2731_v13 = vpop.f32.mrf.mxu1  ;;  %v2749_v34 = vpop.f32.mrf.mxu0 }
  0xfd   : > { %v2733_v14 = vpop.f32.mrf.mxu1  ;;  %v2751_v36 = vpop.f32.mrf.mxu0 }
  0xff   : > { %v2735_v15 = vpop.f32.mrf.mxu1  ;;  %v2753_v38 = vpop.f32.mrf.mxu0 }
 0x101   : > { %v2737_v16 = vpop.f32.mrf.mxu1  ;;  %v2755_v40 = vpop.f32.mrf.mxu0 }
 0x103   : > { %v2739_v17 = vpop.f32.mrf.mxu1  ;;  %v2757_v42 = vpop.f32.mrf.mxu0 }
 0x105   : > { %v2741_v19 = vpop.f32.mrf.mxu1  ;;  %v2761_v44 = vpop.f32.mrf.mxu0 }
 0x107   : > { %v2743_v20 = vpop.f32.mrf.mxu1  ;;  %v2767_v47 = vpop.f32.mrf.mxu0 }
 0x109   : > { %v2745_v22 = vpop.f32.mrf.mxu1  ;;  %v2771_v50 = vpop.f32.mrf.mxu0 }
 0x10b   : > { %v2747_v23 = vpop.f32.mrf.mxu1  ;;  %v2777_v54 = vpop.f32.mrf.mxu0 }
 0x10c   : > { %2866 = vst [vmem:[#allocation2_spill] sm:$0xff] %v2777_v54 }
 0x10d   : > { %v2076_v25 = vpop.f32.mrf.mxu1  ;;  %v2781_v57 = vpop.f32.mrf.mxu0 }
 0x10e   : > { %2867 = vst [vmem:[#allocation3_spill] sm:$0xff] %v2781_v57 }
 0x10f   : > { %v2077_v26 = vpop.f32.mrf.mxu1 }
 0x110   : > { %v2078_v52 = vadd.f32 %v2077_v26, %v2076_v25 }
 0x111   : > { %v2079_v28 = vpop.f32.mrf.mxu1 }
 0x112   : > { %v1292_v59 = vadd.f32 %v2078_v52, %v2038_v56  ;;  %v2791_v52 = vpop.permute.xlu0 %1565 }
 0x113   : > { %v2080_v29 = vpop.f32.mrf.mxu1 }
 0x114   : > { %v2081_v60 = vadd.f32 %v2080_v29, %v2079_v28  ;;  %v1357_v6 = vadd.f32 %v2118_v1, %v1292_v59  ;;  %v2044_v28 = vadd.f32 %v2727_v11, %v2725_v10  ;;  %v2121_v29 = vadd.f32 %v2120_v27, %v2119_v24 }
 0x115   : > { %v2082_v31 = vpop.f32.mrf.mxu1  ;;  %v2047_v11 = vadd.f32 %v2731_v13, %v2729_v12  ;;  %v2050_v13 = vadd.f32 %v2735_v15, %v2733_v14  ;;  %v2053_v15 = vadd.f32 %v2739_v17, %v2737_v16 }
 0x116   : > { %v1295_v25 = vadd.f32 %v2081_v60, %v2041_v0 }
 0x117   : > { %v2083_v33 = vpop.f32.mrf.mxu1 }
 0x118   : > { %v2084_v26 = vadd.f32 %v2083_v33, %v2082_v31  ;;  %v2799_v33 = vpop.permute.xlu1 %1570  ;;  %v1360_v60 = vadd.f32 %v2121_v29, %v1295_v25 }
 0x119   : > { %v2085_v35 = vpop.f32.mrf.mxu1 }
 0x11a   : > { %v1300_v31 = vadd.f32 %v2084_v26, %v2044_v28 }
 0x11b   : > { %v2086_v37 = vpop.f32.mrf.mxu1 }
 0x11c   : > { %v2087_v9 = vadd.f32 %v2086_v37, %v2085_v35  ;;  %v1365_v35 = vadd.f32 %v2124_v8, %v1300_v31 }
 0x11d   : > { %v2088_v39 = vpop.f32.mrf.mxu1 }
 0x11e   : > { %v1303_v1 = vadd.f32 %v2087_v9, %v2047_v11 }
 0x11f   : > { %v2089_v41 = vpop.f32.mrf.mxu1  ;;  %v1486_v63 = vpop.f32.mrf.mxu0 }
 0x120   : > { %v2090_v37 = vadd.f32 %v2089_v41, %v2088_v39  ;;  %v2130_v39 = vadd.f32 %v2755_v40, %v2753_v38 }
 0x121   : > { %v2759_v4 = vpop.f32.mrf.mxu1  ;;  %v1488_v5 = vpop.f32.mrf.mxu0 }
 0x123   : > { %v2765_v46 = vpop.f32.mrf.mxu1  ;;  %v1489_v54 = vpop.f32.mrf.mxu0 }
 0x124   : > { %v2093_v41 = vadd.f32 %v2765_v46, %v2759_v4 }
 0x125   : > { %v2769_v48 = vpop.f32.mrf.mxu1  ;;  %v1491_v21 = vpop.f32.mrf.mxu0 }
 0x126   : > { %v1311_v21 = vadd.f32 %v2093_v41, %v2053_v15 }
 0x127   : > { %v2773_v51 = vpop.f32.mrf.mxu1  ;;  %v1494_v27 = vpop.f32.mrf.mxu0 }
 0x128   : > { %v2096_v4 = vadd.f32 %v2773_v51, %v2769_v48  ;;  %v2133_v48 = vadd.f32 %v2761_v44, %v2757_v42 }
 0x129   : > { %v2779_v55 = vpop.f32.mrf.mxu1  ;;  %v1496_v32 = vpop.f32.mrf.mxu0 }
 0x12a   : > { %v2136_v32 = vadd.f32 %v2771_v50, %v2767_v47 }
 0x12b   : > { %v2783_v58 = vpop.f32.mrf.mxu1  ;;  %v1497_v12 = vpop.f32.mrf.mxu0 }
 0x12d   : > { %v2156_v62 = vpop.f32.mrf.mxu1 }
 0x12f   : > { %v2157_v3 = vpop.f32.mrf.mxu1 }
 0x130   : > { %v2158_v7 = vadd.f32 %v2157_v3, %v2156_v62  ;;  %v1592_v3 = vpop.permute.xlu0 %1591 }
 0x131   : > { %v2159_v57 = vpop.f32.mrf.mxu1 }
 0x132   : > { %v1422_v56 = vadd.f32 %v2158_v7, %v1357_v6 }
 0x133   : > { %v2160_v18 = vpop.f32.mrf.mxu1 }
 0x134   : > { %v1487_v59 = vadd.f32 %v1486_v63, %v1422_v56  ;;  %v2161_v10 = vadd.f32 %v2160_v18, %v2159_v57  ;;  %v2127_v57 = vadd.f32 %v2751_v36, %v2749_v34  ;;  %v1499_v34 = vpop.f32.mrf.mxu0  ;;  %v1308_v36 = vadd.f32 %v2090_v37, %v2050_v13  ;;  %v1602_v31 = vpop.permute.xlu0 %1601 }
 0x135   : > { %v2162_v24 = vpop.f32.mrf.mxu1 }
 0x136   : > { %1517 = vst [vmem:[%s2797_s23] sm:$0xff] %v1487_v59  ;;  %v1573_v62 = vmul.f32 %v1536_v43, %v1487_v59  ;;  %v1425_v0 = vadd.f32 %v2161_v10, %v1360_v60  ;;  %v1597_v43 = vpop.permute.xlu1 %1596  ;;  %v1368_v28 = vadd.f32 %v2127_v57, %v1303_v1  ;;  %v1502_v8 = vpop.f32.mrf.mxu0  ;;  %v1373_v46 = vadd.f32 %v2130_v39, %v1308_v36 }
 0x137   : > { %v2163_v30 = vpop.f32.mrf.mxu1  ;;  %v1376_v1 = vadd.f32 %v2133_v48, %v1311_v21 }
 0x138   : > { %v1490_v5 = vadd.f32 %v1489_v54, %v1425_v0  ;;  %v2164_v26 = vadd.f32 %v2163_v30, %v2162_v24  ;;  %v1629_v25 = vadd.f32 %v1592_v3, %v1573_v62  ;;  %v1504_v17 = vpop.f32.mrf.mxu0  ;;  %v2059_v3 = vadd.f32 %v2747_v23, %v2745_v22  ;;  %v2868_v23 = vld [vmem:[#allocation2_spill] sm:$0xff] }
 0x139   : > { %v2165_v63 = vpop.f32.mrf.mxu1 }
 0x13a   : > { %1518 = vst [vmem:[%s2797_s23 + $0x8] sm:$0xff] %v1490_v5  ;;  %v1574_v6 = vmul.f32 %v1541_v49, %v1490_v5  ;;  %v1430_v7 = vadd.f32 %v2164_v26, %v1365_v35  ;;  %v1637_v9 = vmax.f32 %v1629_v25, 0.0  ;;  %v1505_v11 = vpop.f32.mrf.mxu0  ;;  %v1607_v24 = vpop.permute.xlu1 %1606 }
 0x13b   : > { %v2166_v54 = vpop.f32.mrf.mxu1 }
 0x13c   : > { %v1630_v29 = vadd.f32 %v1597_v43, %v1574_v6  ;;  %v1495_v56 = vadd.f32 %v1494_v27, %v1430_v7  ;;  %v2167_v14 = vadd.f32 %v2166_v54, %v2165_v63 }
 0x13d   : > { %v2168_v49 = vpop.f32.mrf.mxu1 }
 0x13e   : > { %v1638_v18 = vmax.f32 %v1630_v29, 0.0  ;;  %1519 = vst [vmem:[%s2797_s23 + $0x10] sm:$0xff] %v1495_v56  ;;  %v1575_v38 = vmul.f32 %v2763_v45, %v1495_v56  ;;  %v1433_v40 = vadd.f32 %v2167_v14, %v1368_v28  ;;  %v2056_v45 = vadd.f32 %v2743_v20, %v2741_v19  ;;  %v1507_v19 = vpop.f32.mrf.mxu0  ;;  %v2869_v28 = vld [vmem:[#allocation3_spill] sm:$0xff]  ;;  %v1617_v41 = vpop.permute.xlu1 %1616 }
 0x13f   : > { %v2169_v16 = vpop.f32.mrf.mxu1  ;;  %v2099_v20 = vadd.f32 %v2783_v58, %v2779_v55  ;;  %v1612_v58 = vpop.permute.xlu0 %1611  ;;  %v2139_v39 = vadd.f32 %v2869_v28, %v2868_v23 }
 0x140   : > { %v2000_v59 = vpack.c.bf16 %v1638_v18, %v1637_v9  ;;  %v1498_v60 = vadd.f32 %v1497_v12, %v1433_v40  ;;  %v2170_v10 = vadd.f32 %v2169_v16, %v2168_v49  ;;  %v1631_v27 = vadd.f32 %v1602_v31, %v1575_v38 }
 0x141   : > { %v2171_v51 = vpop.f32.mrf.mxu1  ;;  %v1316_v30 = vadd.f32 %v2096_v4, %v2056_v45  ;;  %v1319_v55 = vadd.f32 %v2099_v20, %v2059_v3 }
 0x142   : > { %2001 = vst [vmem:[%s2823_s27] sm:$0xff] %v2000_v59   ;;  %1520 = vst [vmem:[%s2797_s23 + $0x18] sm:$0xff] %v1498_v60  ;;  %v1576_v62 = vmul.f32 %v2775_v53, %v1498_v60  ;;  %v1438_v0 = vadd.f32 %v2170_v10, %v1373_v46  ;;  %v1510_v53 = vpop.f32.mrf.mxu0  ;;  %v1639_v26 = vmax.f32 %v1631_v27, 0.0  ;;  %v1627_v17 = vpop.permute.xlu1 %1626 }
 0x143   : > { %v2172_v35 = vpop.f32.mrf.mxu1  ;;  %v1381_v50 = vadd.f32 %v2136_v32, %v1316_v30  ;;  %v1384_v56 = vadd.f32 %v2139_v39, %v1319_v55  ;;  %v1622_v4 = vpop.permute.xlu0 %1621 }
 0x144   : > { %v1632_v42 = vadd.f32 %v1607_v24, %v1576_v62  ;;  %v1503_v44 = vadd.f32 %v1502_v8, %v1438_v0  ;;  %v2173_v37 = vadd.f32 %v2172_v35, %v2171_v51  ;;  %v1512_v13 = vpop.f32.mrf.mxu0 }
 0x145   : > { %v2174_v5 = vpop.f32.mrf.mxu1 }
 0x146   : > { %v1640_v57 = vmax.f32 %v1632_v42, 0.0  ;;  %1521 = vst [vmem:[%s2797_s23 + $0x20] sm:$0xff] %v1503_v44  ;;  %v1577_v63 = vmul.f32 %v2785_v61, %v1503_v44  ;;  %v1441_v47 = vadd.f32 %v2173_v37, %v1376_v1  ;;  %v1513_v22 = vpop.f32.mrf.mxu0 }
 0x147   : > { %v2175_v12 = vpop.f32.mrf.mxu1 }
 0x148   : > { %v2005_v43 = vpack.c.bf16 %v1640_v57, %v1639_v26  ;;  %v1506_v25 = vadd.f32 %v1505_v11, %v1441_v47  ;;  %v2176_v6 = vadd.f32 %v2175_v12, %v2174_v5  ;;  %v1633_v54 = vadd.f32 %v1612_v58, %v1577_v63  ;;  %v1515_v29 = vpop.f32.mrf.mxu0 }
 0x149   : > { %v2177_v7 = vpop.f32.mrf.mxu1 }
 0x14a   : > { %2017 = vst [vmem:[%s2823_s27 + $0x8] sm:$0xff] %v2005_v43   ;;  %1522 = vst [vmem:[%s2797_s23 + $0x28] sm:$0xff] %v1506_v25  ;;  %v1578_v61 = vmul.f32 %v2787_v2, %v1506_v25  ;;  %v1446_v34 = vadd.f32 %v2176_v6, %v1381_v50  ;;  %v1641_v8 = vmax.f32 %v1633_v54, 0.0 }
 0x14b   : > { %v2178_v36 = vpop.f32.mrf.mxu1 }
 0x14c   : > { %v1634_v14 = vadd.f32 %v1617_v41, %v1578_v61  ;;  %v1511_v15 = vadd.f32 %v1510_v53, %v1446_v34  ;;  %v2179_v49 = vadd.f32 %v2178_v36, %v2177_v7 }
 0x14e   : > { %v1642_v9 = vmax.f32 %v1634_v14, 0.0  ;;  %1523 = vst [vmem:[%s2797_s23 + $0x30] sm:$0xff] %v1511_v15  ;;  %v1579_v18 = vmul.f32 %v2791_v52, %v1511_v15  ;;  %v1449_v38 = vadd.f32 %v2179_v49, %v1384_v56 }
 0x150   : > { %v2010_v40 = vpack.c.bf16 %v1642_v9, %v1641_v8  ;;  %v1514_v21 = vadd.f32 %v1513_v22, %v1449_v38  ;;  %v1635_v2 = vadd.f32 %v1622_v4, %v1579_v18 }
 0x152   : > { %2018 = vst [vmem:[%s2823_s27 + $0x10] sm:$0xff] %v2010_v40   ;;  %1524 = vst [vmem:[%s2797_s23 + $0x38] sm:$0xff] %v1514_v21  ;;  %v1580_v16 = vmul.f32 %v2799_v33, %v1514_v21  ;;  %v1643_v31 = vmax.f32 %v1635_v2, 0.0 }
 0x154   : > { %v1636_v46 = vadd.f32 %v1627_v17, %v1580_v16 }
 0x156   : > { %v1644_v59 = vmax.f32 %v1636_v46, 0.0 }
 0x158   : > { %v2015_v60 = vpack.c.bf16 %v1644_v59, %v1643_v31 }
 0x15a   : > { %2019 = vst [vmem:[%s2823_s27 + $0x18] sm:$0xff] %v2015_v60  }
 0x15b PF: > { %s16_s20 = sadd.s32 1, %s2366_s20   ;;  %s2870_s18 = smov %s2362_s19 }
 0x15c   : > { %p13_p5 = scmp.ge.s32.totalorder %s16_s20, 4   ;;  %s2871_s19 = smov %s2873_s21 }
 0x15e   :  { %15 = sbr.rel (!%p13_p5) target bundleno = 2 (0x2), region = 87 }

// kernel: preact_resnet_forward.56
= control target key start
LH: loop header
LB: loop body
LE: loop exit
PB: predicated region body
PF: predicated region fallthrough
CT: control target
= control target key end

     0   :  { %s2460_s21 = smov 0   ;;  %s2462_s22 = smov 0   ;;  %s2944_s0 = inlined_call_operand.vmem [shape: bf16[1152,128], index: 0, kind: input, shape index: {}]   ;;  %s2945_s1 = inlined_call_operand.vmem [shape: bf16[128,1152], index: 1, kind: input, shape index: {}]   ;;  %s2946_s2 = inlined_call_operand.vmem [shape: f32[128,1], index: 2, kind: input, shape index: {}]   ;;  %s2947_s3 = inlined_call_operand.vmem [shape: f32[128,1], index: 3, kind: input, shape index: {}]   ;;  %s2948_s4 = inlined_call_operand.vmem [shape: f32[128,128], index: 4, kind: input, shape index: {}]   ;;  %s2949_s5 = inlined_call_operand.vmem [shape: f32[128,128], index: 5, kind: output, shape index: {0}]   ;;  %s2950_s6 = inlined_call_operand.vmem [shape: bf16[128,128], index: 6, kind: output, shape index: {1}]  }
   0x1   :  { %s2464_s23 = smov 0  }
   0x2 LB: > { %s26_s24 = sadd.s32 1, %s2418_s22  ;;  %p1874_p0 = scmp.ge.s32.totalorder %s2422_s23, 1  ;;  %s2422_s23 = sphi %s2464_s23, %s17_s23   ;;  %s2418_s22 = sphi %s2462_s22, %s2972_s22   ;;  %s2414_s21 = sphi %s2460_s21, %s2971_s21  }
   0x3   : > { %p27_p1 = scmp.ge.s32.totalorder %s26_s24, 2  ;;  %p280_p2 = scmp.lt.s32.totalorder %s2422_s23, 3 }
   0x5   : > { %s2974_s24 = smov (%p27_p1, %s26_s24), 0  ;;  %p281_p3 = pnand %p1874_p0, %p280_p2 }
   0x7   : > { %284 = sbr.rel (%p281_p3) target bundleno = 322 (0x142), region = 40 }
   0xc   : > { %v2276_v0 = vld [vmem:[%s2944_s0 + $0x78] sm:$0xff]   ;;  %v2424_v4 = vmov 0   ;;  %v2280_v5 = vld [vmem:[%s2944_s0 + $0x70] sm:$0xff]   ;;  %v2284_v9 = vld [vmem:[%s2944_s0 + $0x68] sm:$0xff]   ;;  %s1875_s11 = sshll.u32 %s2414_s21, 3 }
   0xd   : > { %v2277_v1 = vld [vmem:[%s2944_s0 + $0xf8] sm:$0xff]   ;;  %2036 = vmatprep.subr.bf16.mxu0 %v2276_v0  ;;  %2275 = vset.pattern.permute.xlu1 %v2424_v4  ;;  %v2281_v6 = vld [vmem:[%s2944_s0 + $0xf0] sm:$0xff]   ;;  %v2285_v10 = vld [vmem:[%s2944_s0 + $0xe8] sm:$0xff]   ;;  %p349_p4 = scmp.lt.s32.totalorder %s1875_s11, 15 }
   0xe   : > { %v2278_v2 = vld [vmem:[%s2944_s0 + $0x38] sm:$0xff]   ;;  %2076 = vmatprep.subr.bf16.mxu1 %v2277_v1  ;;  %2274 = vset.pattern.permute.xlu0 %v2424_v4  ;;  %v2282_v7 = vld [vmem:[%s2944_s0 + $0x30] sm:$0xff]   ;;  %v2286_v11 = vld [vmem:[%s2944_s0 + $0x28] sm:$0xff]  }
   0xf   : > { %v2279_v3 = vld [vmem:[%s2944_s0 + $0xb8] sm:$0xff]   ;;  %2037 = vmatpush3.bf16.msra.mxu0 %v2278_v2  ;;  %v2283_v8 = vld [vmem:[%s2944_s0 + $0xb0] sm:$0xff]   ;;  %v2287_v12 = vld [vmem:[%s2944_s0 + $0xa8] sm:$0xff]   ;;  %s2976_s11 = smov (!%p349_p4, %s1875_s11), 15 }
  0x10   : > { %2077 = vmatpush3.bf16.msra.mxu1 %v2279_v3  ;;  %2038 = vmatprep.subr.bf16.mxu0 %v2280_v5  ;;  %v2288_v13 = vld [vmem:[%s2944_s0 + $0x60] sm:$0xff]   ;;  %v2292_v17 = vld [vmem:[%s2944_s0 + $0x58] sm:$0xff]   ;;  %v2296_v21 = vld [vmem:[%s2944_s0 + $0x50] sm:$0xff]   ;;  %s2248_s14 = smul.u32 36, %s2976_s11  ;;  %s2725_s7 = sshll.u32 %s2976_s11, 3 }
  0x11   : > { %2078 = vmatprep.subr.bf16.mxu1 %v2281_v6  ;;  %v2289_v14 = vld [vmem:[%s2944_s0 + $0xe0] sm:$0xff]   ;;  %v2293_v18 = vld [vmem:[%s2944_s0 + $0xd8] sm:$0xff]   ;;  %v2297_v22 = vld [vmem:[%s2944_s0 + $0xd0] sm:$0xff]   ;;  %s2736_s13 = scalar_lea.vmem %s2946_s2, %s2725_s7  ;;  %s365_s21 = scalar_lea.vmem %s2947_s3, %s2725_s7 }
  0x12   : > { %v2290_v15 = vld [vmem:[%s2944_s0 + $0x20] sm:$0xff]   ;;  %v2294_v19 = vld [vmem:[%s2944_s0 + $0x18] sm:$0xff]   ;;  %v2298_v23 = vld [vmem:[%s2944_s0 + $0x10] sm:$0xff]   ;;  %s2577_s28 = scalar_lea.vmem %s2945_s1, %s2248_s14  ;;  %s2836_s25 = scalar_lea.vmem %s2948_s4, %s2725_s7 }
  0x13   : > { %2039 = vmatpush3.bf16.msra.mxu0 %v2282_v7  ;;  %v2291_v16 = vld [vmem:[%s2944_s0 + $0xa0] sm:$0xff]   ;;  %v2295_v20 = vld [vmem:[%s2944_s0 + $0x98] sm:$0xff]   ;;  %v2299_v24 = vld [vmem:[%s2944_s0 + $0x90] sm:$0xff]   ;;  %s2903_s29 = scalar_lea.vmem %s2949_s5, %s2725_s7  ;;  %s1886_s30 = sshll.u32 %s2976_s11, 2 }
  0x14   : > { %2079 = vmatpush3.bf16.msra.mxu1 %v2283_v8  ;;  %2040 = vmatprep.subr.bf16.mxu0 %v2284_v9  ;;  %v2300_v25 = vld [vmem:[%s2944_s0 + $0x48] sm:$0xff]   ;;  %v2304_v29 = vld [vmem:[%s2944_s0 + $0x40] sm:$0xff]   ;;  %v2314_v37 = vld [vmem:[%s2944_s0 + $0x178] sm:$0xff]   ;;  %s392_s9 = scalar_lea.vmem %s2950_s6, %s1886_s30 }
  0x15   : > { %2080 = vmatprep.subr.bf16.mxu1 %v2285_v10  ;;  %v2301_v26 = vld [vmem:[%s2944_s0 + $0xc8] sm:$0xff]   ;;  %v2305_v30 = vld [vmem:[%s2944_s0 + $0xc0] sm:$0xff]   ;;  %v2315_v38 = vld [vmem:[%s2944_s0 + $0x1f8] sm:$0xff]  }
  0x16   : > { %v2302_v27 = vld [vmem:[%s2944_s0 + $0x8] sm:$0xff]   ;;  %v2306_v31 = vld [vmem:[%s2944_s0] sm:$0xff]   ;;  %v2316_v39 = vld [vmem:[%s2944_s0 + $0x138] sm:$0xff]  }
  0x17   : > { %2041 = vmatpush3.bf16.msra.mxu0 %v2286_v11  ;;  %v2303_v28 = vld [vmem:[%s2944_s0 + $0x88] sm:$0xff]   ;;  %v2307_v32 = vld [vmem:[%s2944_s0 + $0x80] sm:$0xff]   ;;  %v2317_v40 = vld [vmem:[%s2944_s0 + $0x1b8] sm:$0xff]  }
  0x18   : > { %2081 = vmatpush3.bf16.msra.mxu1 %v2287_v12  ;;  %2042 = vmatprep.subr.bf16.mxu0 %v2288_v13  ;;  %v2308_v33 = vld [vmem:[%s2577_s28] ss:$36 sps:$4 sm:$0xff]   ;;  %v2311_v35 = vld [vmem:[%s2577_s28 + $0x8] ss:$36 sps:$4 sm:$0xff]   ;;  %v2318_v41 = vld [vmem:[%s2944_s0 + $0x170] sm:$0xff]  }
  0x19   : > { %2082 = vmatprep.subr.bf16.mxu1 %v2289_v14  ;;  %v2310_v34 = vld [vmem:[%s2577_s28 + $0x4] ss:$36 sps:$4 sm:$0xff]   ;;  %v2313_v36 = vld [vmem:[%s2577_s28 + $0xc] ss:$36 sps:$4 sm:$0xff]   ;;  %v2324_v46 = vld [vmem:[%s2577_s28 + $0x54] ss:$36 sps:$4 sm:$0xff]  }
  0x1a   : > { %1235 = vmatprep.mubr.bf16.mxu0 %v2310_v34  ;;  %1300 = vmatprep.mubr.bf16.mxu1 %v2313_v36  ;;  %v2319_v42 = vld [vmem:[%s2944_s0 + $0x1f0] sm:$0xff]   ;;  %v2326_v47 = vld [vmem:[%s2577_s28 + $0x48] ss:$36 sps:$4 sm:$0xff]   ;;  %v2332_v53 = vld [vmem:[%s2944_s0 + $0x160] sm:$0xff]  }
  0x1b   : > { %2043 = vmatpush3.bf16.msra.mxu0 %v2290_v15  ;;  %v2320_v43 = vld [vmem:[%s2944_s0 + $0x130] sm:$0xff]   ;;  %v2328_v49 = vld [vmem:[%s2944_s0 + $0x168] sm:$0xff]   ;;  %v2333_v54 = vld [vmem:[%s2944_s0 + $0x1e0] sm:$0xff]  }
  0x1c   : > { %2083 = vmatpush3.bf16.msra.mxu1 %v2291_v16  ;;  %2044 = vmatprep.subr.bf16.mxu0 %v2292_v17  ;;  %v2321_v44 = vld [vmem:[%s2944_s0 + $0x1b0] sm:$0xff]   ;;  %v2329_v50 = vld [vmem:[%s2944_s0 + $0x1e8] sm:$0xff]   ;;  %v2334_v55 = vld [vmem:[%s2944_s0 + $0x120] sm:$0xff]  }
  0x1d   : > { %2084 = vmatprep.subr.bf16.mxu1 %v2293_v18  ;;  %v2322_v45 = vld [vmem:[%s2577_s28 + $0x4c] ss:$36 sps:$4 sm:$0xff]   ;;  %v2335_v56 = vld [vmem:[%s2944_s0 + $0x1a0] sm:$0xff]   ;;  %v2336_v57 = vld [vmem:[%s2577_s28 + $0x94] ss:$36 sps:$4 sm:$0xff]  }
  0x1e   : > { %v2327_v48 = vld [vmem:[%s2577_s28 + $0x50] ss:$36 sps:$4 sm:$0xff]   ;;  %v2330_v51 = vld [vmem:[%s2944_s0 + $0x128] sm:$0xff]   ;;  %v2338_v58 = vld [vmem:[%s2577_s28 + $0x9c] ss:$36 sps:$4 sm:$0xff]  }
  0x1f   : > { %2045 = vmatpush3.bf16.msra.mxu0 %v2294_v19  ;;  %v2331_v52 = vld [vmem:[%s2944_s0 + $0x1a8] sm:$0xff]   ;;  %v2340_v59 = vld [vmem:[%s2577_s28 + $0x90] ss:$36 sps:$4 sm:$0xff]   ;;  %v2341_v60 = vld [vmem:[%s2577_s28 + $0x98] ss:$36 sps:$4 sm:$0xff]  }
  0x20   : > { %2085 = vmatpush3.bf16.msra.mxu1 %v2295_v20  ;;  %2046 = vmatprep.subr.bf16.mxu0 %v2296_v21  ;;  %v2342_v61 = vld [vmem:[%s2944_s0 + $0x158] sm:$0xff]   ;;  %v2346_v1 = vld [vmem:[%s2944_s0 + $0x150] sm:$0xff]   ;;  %v2352_v6 = vld [vmem:[%s2577_s28 + $0xe4] ss:$36 sps:$4 sm:$0xff]  }
  0x21   : > { %2086 = vmatprep.subr.bf16.mxu1 %v2297_v22  ;;  %v2343_v62 = vld [vmem:[%s2944_s0 + $0x1d8] sm:$0xff]   ;;  %v2347_v2 = vld [vmem:[%s2944_s0 + $0x1d0] sm:$0xff]   ;;  %v2355_v8 = vld [vmem:[%s2577_s28 + $0xe0] ss:$36 sps:$4 sm:$0xff]  }
  0x22   : > { %v2344_v63 = vld [vmem:[%s2944_s0 + $0x118] sm:$0xff]   ;;  %v2348_v3 = vld [vmem:[%s2944_s0 + $0x110] sm:$0xff]   ;;  %v2356_v9 = vld [vmem:[%s2944_s0 + $0x148] sm:$0xff]  }
  0x23   : > { %2047 = vmatpush3.bf16.msra.mxu0 %v2298_v23  ;;  %v2345_v0 = vld [vmem:[%s2944_s0 + $0x198] sm:$0xff]   ;;  %v2349_v4 = vld [vmem:[%s2944_s0 + $0x190] sm:$0xff]   ;;  %v2357_v10 = vld [vmem:[%s2944_s0 + $0x1c8] sm:$0xff]  }
  0x24   : > { %2087 = vmatpush3.bf16.msra.mxu1 %v2299_v24  ;;  %2048 = vmatprep.subr.bf16.mxu0 %v2300_v25  ;;  %v2350_v5 = vld [vmem:[%s2577_s28 + $0xdc] ss:$36 sps:$4 sm:$0xff]   ;;  %v2358_v11 = vld [vmem:[%s2944_s0 + $0x108] sm:$0xff]   ;;  %v2364_v17 = vld [vmem:[%s2577_s28 + $0x10] ss:$36 sps:$4 sm:$0xff]  }
  0x25   : > { %2088 = vmatprep.subr.bf16.mxu1 %v2301_v26  ;;  %v2354_v7 = vld [vmem:[%s2577_s28 + $0xd8] ss:$36 sps:$4 sm:$0xff]   ;;  %v2359_v12 = vld [vmem:[%s2944_s0 + $0x188] sm:$0xff]   ;;  %v2360_v13 = vld [vmem:[%s2944_s0 + $0x140] sm:$0xff]  }
  0x26   : > { %v2361_v14 = vld [vmem:[%s2944_s0 + $0x1c0] sm:$0xff]   ;;  %v2366_v18 = vld [vmem:[%s2577_s28 + $0x14] ss:$36 sps:$4 sm:$0xff]   ;;  %v2388_v34 = vld [vmem:[%s2577_s28 + $0xec] ss:$36 sps:$4 sm:$0xff]  }
  0x27   : > { %2049 = vmatpush3.bf16.msra.mxu0 %v2302_v27  ;;  %v2362_v15 = vld [vmem:[%s2944_s0 + $0x100] sm:$0xff]   ;;  %v2367_v19 = vld [vmem:[%s2577_s28 + $0x18] ss:$36 sps:$4 sm:$0xff]   ;;  %v2371_v22 = vld [vmem:[%s2944_s0 + $0x230] sm:$0xff]  }
  0x28   : > { %2089 = vmatpush3.bf16.msra.mxu1 %v2303_v28  ;;  %2050 = vmatprep.subr.bf16.mxu0 %v2304_v29  ;;  %v2363_v16 = vld [vmem:[%s2944_s0 + $0x180] sm:$0xff]   ;;  %v2370_v21 = vld [vmem:[%s2944_s0 + $0x238] sm:$0xff]   ;;  %v2378_v27 = vld [vmem:[%s2944_s0 + $0x228] sm:$0xff]  }
  0x29   : > { %2090 = vmatprep.subr.bf16.mxu1 %v2305_v30  ;;  %v2369_v20 = vld [vmem:[%s2577_s28 + $0x1c] ss:$36 sps:$4 sm:$0xff]   ;;  %v2374_v24 = vld [vmem:[%s2577_s28 + $0x64] ss:$36 sps:$4 sm:$0xff]   ;;  %v2382_v29 = vld [vmem:[%s2577_s28 + $0xac] ss:$36 sps:$4 sm:$0xff]  }
  0x2a   : > { %v2372_v23 = vld [vmem:[%s2577_s28 + $0x5c] ss:$36 sps:$4 sm:$0xff]   ;;  %v2380_v28 = vld [vmem:[%s2577_s28 + $0xa4] ss:$36 sps:$4 sm:$0xff]   ;;  %v2387_v36 = vld [vmem:[%s2944_s0 + $0x210] sm:$0xff]  }
  0x2b   : > { %2051 = vmatpush3.bf16.msra.mxu0 %v2306_v31  ;;  %v2376_v25 = vld [vmem:[%s2577_s28 + $0x58] ss:$36 sps:$4 sm:$0xff]   ;;  %v2377_v26 = vld [vmem:[%s2577_s28 + $0x60] ss:$36 sps:$4 sm:$0xff]  }
  0x2c   : > { %2091 = vmatpush3.bf16.msra.mxu1 %v2307_v32  ;;  %2116 = vmatprep.subr.bf16.mxu0 %v2314_v37  ;;  %v2379_v30 = vld [vmem:[%s2944_s0 + $0x220] sm:$0xff]   ;;  %v2385_v32 = vld [vmem:[%s2577_s28 + $0xa8] ss:$36 sps:$4 sm:$0xff]   ;;  %v1538_v37 = vld [vmem:[%s2736_s13 + $0x10] sm:$0xff] }
  0x2d   : > { %2156 = vmatprep.subr.bf16.mxu1 %v2315_v38  ;;  %v2384_v31 = vld [vmem:[%s2577_s28 + $0xa0] ss:$36 sps:$4 sm:$0xff]   ;;  %1556 = vperm.xlu1 %2275, %v1538_v37  }
  0x2e   : > { %1236 = vmatmul.mubr.bf16.vlgmr.msra.gmra.mxu0 %v2308_v33  ;;  %v2386_v33 = vld [vmem:[%s2944_s0 + $0x218] sm:$0xff]   ;;  %v1536_v38 = vld [vmem:[%s2736_s13] sm:$0xff] }
  0x2f   : > { %1301 = vmatmul.mubr.bf16.vlgmr.msra.gmra.mxu1 %v2311_v35  ;;  %2117 = vmatpush3.bf16.msra.mxu0 %v2316_v39  ;;  %v2390_v35 = vld [vmem:[%s2577_s28 + $0xf4] ss:$36 sps:$4 sm:$0xff]   ;;  %v2392_v39 = vld [vmem:[%s2577_s28 + $0xe8] ss:$36 sps:$4 sm:$0xff]  }
  0x30   : > { %2157 = vmatpush3.bf16.msra.mxu1 %v2317_v40  ;;  %2118 = vmatprep.subr.bf16.mxu0 %v2318_v41  ;;  %v2394_v40 = vld [vmem:[%s2944_s0 + $0x208] sm:$0xff]   ;;  %v2393_v41 = vld [vmem:[%s2577_s28 + $0xf0] ss:$36 sps:$4 sm:$0xff]  }
  0x31   : > { %2158 = vmatprep.subr.bf16.mxu1 %v2319_v42  ;;  %1243 = vmatprep.mubr.bf16.mxu0 %v2322_v45  ;;  %v2396_v42 = vld [vmem:[%s2577_s28 + $0x20] ss:$36 sps:$4 sm:$0xff]   ;;  %v1539_v45 = vld [vmem:[%s2736_s13 + $0x18] sm:$0xff] }
  0x32   : > { %1308 = vmatprep.mubr.bf16.mxu1 %v2324_v46  ;;  %1546 = vperm.xlu0 %2274, %v1536_v38   ;;  %v1537_v46 = vld [vmem:[%s2736_s13 + $0x8] sm:$0xff] }
  0x33   : > { %2119 = vmatpush3.bf16.msra.mxu0 %v2320_v43  ;;  %v2397_v43 = vld [vmem:[%s2577_s28 + $0xb0] ss:$36 sps:$4 sm:$0xff]   ;;  %1561 = vperm.xlu1 %2275, %v1539_v45  }
  0x34   : > { %2159 = vmatpush3.bf16.msra.mxu1 %v2321_v44  ;;  %2120 = vmatprep.subr.bf16.mxu0 %v2328_v49  ;;  %v2395_v44 = vld [vmem:[%s2944_s0 + $0x200] sm:$0xff]   ;;  %v2399_v49 = vld [vmem:[%s2577_s28 + $0xf8] ss:$36 sps:$4 sm:$0xff]  }
  0x35   : > { %2160 = vmatprep.subr.bf16.mxu1 %v2329_v50  ;;  %v1540_v50 = vld [vmem:[%s2736_s13 + $0x20] sm:$0xff] }
  0x36   : > { %1244 = vmatmul.mubr.bf16.gmra.mxu0 %v2326_v47  ;;  %v2398_v47 = vld [vmem:[%s2577_s28 + $0x68] ss:$36 sps:$4 sm:$0xff]   ;;  %1551 = vperm.xlu0 %2274, %v1537_v46  }
  0x37   : > { %1309 = vmatmul.mubr.bf16.gmra.mxu1 %v2327_v48  ;;  %2121 = vmatpush3.bf16.msra.mxu0 %v2330_v51  ;;  %v1541_v48 = vld [vmem:[%s2736_s13 + $0x28] sm:$0xff]  ;;  %v1543_v51 = vld [vmem:[%s2736_s13 + $0x38] sm:$0xff] }
  0x38   : > { %2161 = vmatpush3.bf16.msra.mxu1 %v2331_v52  ;;  %2122 = vmatprep.subr.bf16.mxu0 %v2332_v53  ;;  %v1542_v52 = vld [vmem:[%s2736_s13 + $0x30] sm:$0xff]  ;;  %v1593_v53 = vld [vmem:[%s365_s21 + $0x8] sm:$0xff] }
  0x39   : > { %2162 = vmatprep.subr.bf16.mxu1 %v2333_v54  ;;  %1251 = vmatprep.mubr.bf16.mxu0 %v2336_v57  ;;  %v1592_v54 = vld [vmem:[%s365_s21] sm:$0xff]  ;;  %v1597_v57 = vld [vmem:[%s365_s21 + $0x28] sm:$0xff] }
  0x3a   : > { %1316 = vmatprep.mubr.bf16.mxu1 %v2338_v58  ;;  %1571 = vperm.xlu1 %2275, %v1541_v48   ;;  %v1596_v58 = vld [vmem:[%s365_s21 + $0x20] sm:$0xff] }
  0x3b   : > { %2123 = vmatpush3.bf16.msra.mxu0 %v2334_v55  ;;  %1566 = vperm.xlu0 %2274, %v1540_v50   ;;  %v1595_v55 = vld [vmem:[%s365_s21 + $0x18] sm:$0xff] }
  0x3c   : > { %2163 = vmatpush3.bf16.msra.mxu1 %v2335_v56  ;;  %2124 = vmatprep.subr.bf16.mxu0 %v2342_v61  ;;  %v1594_v56 = vld [vmem:[%s365_s21 + $0x10] sm:$0xff] }
  0x3d   : > { %2164 = vmatprep.subr.bf16.mxu1 %v2343_v62 }
  0x3e   : > { %1252 = vmatmul.mubr.bf16.gmra.mxu0 %v2340_v59  ;;  %1581 = vperm.xlu1 %2275, %v1543_v51   ;;  %v1599_v59 = vld [vmem:[%s365_s21 + $0x38] sm:$0xff] }
  0x3f   : > { %1317 = vmatmul.mubr.bf16.gmra.mxu1 %v2341_v60  ;;  %2125 = vmatpush3.bf16.msra.mxu0 %v2344_v63  ;;  %v1598_v60 = vld [vmem:[%s365_s21 + $0x30] sm:$0xff] }
  0x40   : > { %2165 = vmatpush3.bf16.msra.mxu1 %v2345_v0  ;;  %2126 = vmatprep.subr.bf16.mxu0 %v2346_v1 }
  0x41   : > { %2166 = vmatprep.subr.bf16.mxu1 %v2347_v2  ;;  %1259 = vmatprep.mubr.bf16.mxu0 %v2350_v5 }
  0x42   : > { %1324 = vmatprep.mubr.bf16.mxu1 %v2352_v6  ;;  %1576 = vperm.xlu0 %2274, %v1542_v52  }
  0x43   : > { %2127 = vmatpush3.bf16.msra.mxu0 %v2348_v3  ;;  %1607 = vperm.xlu1 %2275, %v1593_v53   ;;  %v579_v53 = vld [vmem:[%s2836_s25] sm:$0xff] }
  0x44   : > { %2167 = vmatpush3.bf16.msra.mxu1 %v2349_v4  ;;  %2128 = vmatprep.subr.bf16.mxu0 %v2356_v9 }
  0x45   : > { %2168 = vmatprep.subr.bf16.mxu1 %v2357_v10 }
  0x46   : > { %1260 = vmatmul.mubr.bf16.gmra.mxu0 %v2354_v7  ;;  %1602 = vperm.xlu0 %2274, %v1592_v54  }
  0x47   : > { %1325 = vmatmul.mubr.bf16.gmra.mxu1 %v2355_v8  ;;  %2129 = vmatpush3.bf16.msra.mxu0 %v2358_v11 }
  0x48   : > { %2169 = vmatpush3.bf16.msra.mxu1 %v2359_v12  ;;  %2130 = vmatprep.subr.bf16.mxu0 %v2360_v13 }
  0x49   : > { %2170 = vmatprep.subr.bf16.mxu1 %v2361_v14  ;;  %1365 = vmatprep.mubr.bf16.mxu0 %v2366_v18 }
  0x4a   : > { %1430 = vmatprep.mubr.bf16.mxu1 %v2369_v20  ;;  %1617 = vperm.xlu1 %2275, %v1595_v55  }
  0x4b   : > { %2131 = vmatpush3.bf16.msra.mxu0 %v2362_v15  ;;  %1612 = vperm.xlu0 %2274, %v1594_v56  }
  0x4c   : > { %2171 = vmatpush3.bf16.msra.mxu1 %v2363_v16  ;;  %2208 = vmatprep.subr.bf16.mxu0 %v2370_v21 }
  0x4d   : > { %2232 = vmatprep.subr.bf16.mxu1 %v2370_v21 }
  0x4e   : > { %1366 = vmatmul.mubr.bf16.vlgmr.msra.gmra.mxu0 %v2364_v17  ;;  %1627 = vperm.xlu1 %2275, %v1597_v57  }
  0x4f   : > { %1431 = vmatmul.mubr.bf16.vlgmr.msra.gmra.mxu1 %v2367_v19  ;;  %2209 = vmatpush3.bf16.msra.mxu0 %v2370_v21 }
  0x50   : > { %2240 = vmatpush3.bf16.msra.mxu1 %v2370_v21  ;;  %2210 = vmatprep.subr.bf16.mxu0 %v2371_v22 }
  0x51   : > { %2233 = vmatprep.subr.bf16.mxu1 %v2371_v22  ;;  %1373 = vmatprep.mubr.bf16.mxu0 %v2372_v23 }
  0x52   : > { %1438 = vmatprep.mubr.bf16.mxu1 %v2374_v24  ;;  %1622 = vperm.xlu0 %2274, %v1596_v58   ;;  %v581_v58 = vld [vmem:[%s2836_s25 + $0x10] sm:$0xff] }
  0x53   : > { %2211 = vmatpush3.bf16.msra.mxu0 %v2371_v22  ;;  %1637 = vperm.xlu1 %2275, %v1599_v59  }
  0x54   : > { %2241 = vmatpush3.bf16.msra.mxu1 %v2371_v22  ;;  %2212 = vmatprep.subr.bf16.mxu0 %v2378_v27 }
  0x55   : > { %2234 = vmatprep.subr.bf16.mxu1 %v2378_v27 }
  0x56   : > { %1374 = vmatmul.mubr.bf16.gmra.mxu0 %v2376_v25  ;;  %1632 = vperm.xlu0 %2274, %v1598_v60  }
  0x57   : > { %1439 = vmatmul.mubr.bf16.gmra.mxu1 %v2377_v26  ;;  %1381 = vmatprep.mubr.bf16.mxu0 %v2380_v28 }
  0x58   : > { %2213 = vmatpush3.bf16.msra.mxu0 %v2378_v27  ;;  %1446 = vmatprep.mubr.bf16.mxu1 %v2382_v29 }
  0x59   : > { %2242 = vmatpush3.bf16.msra.mxu1 %v2378_v27  ;;  %2214 = vmatprep.subr.bf16.mxu0 %v2379_v30 }
  0x5a   : > { %2235 = vmatprep.subr.bf16.mxu1 %v2379_v30 }
  0x5c   : > { %2215 = vmatpush3.bf16.msra.mxu0 %v2379_v30 }
  0x5d   : > { %2243 = vmatpush3.bf16.msra.mxu1 %v2379_v30  ;;  %2216 = vmatprep.subr.bf16.mxu0 %v2386_v33 }
  0x5e   : > { %1382 = vmatmul.mubr.bf16.gmra.mxu0 %v2384_v31  ;;  %2236 = vmatprep.subr.bf16.mxu1 %v2386_v33 }
  0x5f   : > { %1447 = vmatmul.mubr.bf16.gmra.mxu1 %v2385_v32  ;;  %1389 = vmatprep.mubr.bf16.mxu0 %v2388_v34 }
  0x60   : > { %2217 = vmatpush3.bf16.msra.mxu0 %v2386_v33  ;;  %1454 = vmatprep.mubr.bf16.mxu1 %v2390_v35 }
  0x61   : > { %2244 = vmatpush3.bf16.msra.mxu1 %v2386_v33  ;;  %2218 = vmatprep.subr.bf16.mxu0 %v2387_v36 }
  0x62   : > { %2237 = vmatprep.subr.bf16.mxu1 %v2387_v36 }
  0x64   : > { %2219 = vmatpush3.bf16.msra.mxu0 %v2387_v36 }
  0x65   : > { %2245 = vmatpush3.bf16.msra.mxu1 %v2387_v36  ;;  %2220 = vmatprep.subr.bf16.mxu0 %v2394_v40 }
  0x66   : > { %1390 = vmatmul.mubr.bf16.gmra.mxu0 %v2392_v39  ;;  %2238 = vmatprep.subr.bf16.mxu1 %v2394_v40 }
  0x67   : > { %1455 = vmatmul.mubr.bf16.gmra.mxu1 %v2393_v41  ;;  %2224 = vmatprep.mubr.bf16.mxu0 %v2396_v42 }
  0x68   : > { %2221 = vmatpush3.bf16.msra.mxu0 %v2394_v40  ;;  %2228 = vmatprep.mubr.bf16.mxu1 %v2397_v43 }
  0x69   : > { %2246 = vmatpush3.bf16.msra.mxu1 %v2394_v40  ;;  %2222 = vmatprep.subr.bf16.mxu0 %v2395_v44 }
  0x6a   : > { %2239 = vmatprep.subr.bf16.mxu1 %v2395_v44 }
  0x6c   : > { %2223 = vmatpush3.bf16.msra.mxu0 %v2395_v44 }
  0x6d   : > { %2247 = vmatpush3.bf16.msra.mxu1 %v2395_v44 }
  0x6f   : > { %2225 = vmatmul.mubr.bf16.vlgmr.msra.gmra.mxu0 %v2398_v47 }
  0x70   : > { %2229 = vmatmul.mubr.bf16.vlgmr.msra.gmra.mxu1 %v2399_v49 }
  0xa8   : > { %v2802_v31 = vpop.permute.xlu1 %1556 }
  0xa9   : > { %2952 = vst [vmem:[#allocation3_spill] sm:$0xff] %v2802_v31 }
  0xad   : > { %v2798_v29 = vpop.permute.xlu0 %1546 }
  0xae   : > { %2951 = vst [vmem:[#allocation2_spill] sm:$0xff] %v2798_v29  ;;  %v2818_v39 = vpop.permute.xlu1 %1561 }
  0xaf   : > { %2955 = vst [vmem:[#allocation6_spill] sm:$0xff] %v2818_v39 }
  0xb1   : > { %v2812_v36 = vpop.permute.xlu0 %1551 }
  0xb2   : > { %2953 = vst [vmem:[#allocation4_spill] sm:$0xff] %v2812_v36 }
  0xb5   : > { %v2830_v47 = vpop.permute.xlu1 %1571 }
  0xb6   : > { %v2824_v44 = vpop.permute.xlu0 %1566  ;;  %2958 = vst [vmem:[#allocation9_spill] sm:$0xff] %v2830_v47 }
  0xb7   : > { %2957 = vst [vmem:[#allocation8_spill] sm:$0xff] %v2824_v44  ;;  %v580_v44 = vld [vmem:[%s2836_s25 + $0x8] sm:$0xff] }
  0xb9   : > { %v2848_v60 = vpop.permute.xlu1 %1581 }
  0xba   : > { %2960 = vst [vmem:[#allocation11_spill] sm:$0xff] %v2848_v60  ;;  %v583_v60 = vld [vmem:[%s2836_s25 + $0x20] sm:$0xff] }
  0xbd   : > { %v2843_v54 = vpop.permute.xlu0 %1576 }
  0xbe   : > { %2959 = vst [vmem:[#allocation10_spill] sm:$0xff] %v2843_v54  ;;  %v582_v54 = vld [vmem:[%s2836_s25 + $0x18] sm:$0xff] }
  0xee   : > { %v2052_v61 = vpop.f32.mrf.mxu0 }
  0xef   : > { %v2762_v62 = vpop.f32.mrf.mxu1 }
  0xf0   : > { %v2053_v63 = vpop.f32.mrf.mxu0 }
  0xf1   : > { %v2764_v0 = vpop.f32.mrf.mxu1  ;;  %v2054_v50 = vadd.f32 %v2053_v63, %v2052_v61  ;;  %v585_v63 = vld [vmem:[%s2836_s25 + $0x30] sm:$0xff] }
  0xf2   : > { %v2055_v1 = vpop.f32.mrf.mxu0 }
  0xf3   : > { %v2766_v2 = vpop.f32.mrf.mxu1  ;;  %v1238_v47 = vadd.f32 %v2054_v50, %v579_v53  ;;  %v586_v53 = vld [vmem:[%s2836_s25 + $0x38] sm:$0xff] }
  0xf4   : > { %v2056_v3 = vpop.f32.mrf.mxu0 }
  0xf5   : > { %v2768_v4 = vpop.f32.mrf.mxu1  ;;  %v2057_v61 = vadd.f32 %v2056_v3, %v2055_v1  ;;  %v2861_v1 = vpop.permute.xlu0 %1602 }
  0xf6   : > { %v2058_v5 = vpop.f32.mrf.mxu0 }
  0xf7   : > { %v2770_v6 = vpop.f32.mrf.mxu1 }
  0xf8   : > { %v2059_v7 = vpop.f32.mrf.mxu0 }
  0xf9   : > { %v2772_v8 = vpop.f32.mrf.mxu1  ;;  %v2060_v55 = vadd.f32 %v2059_v7, %v2058_v5  ;;  %v2094_v5 = vadd.f32 %v2764_v0, %v2762_v62  ;;  %v2097_v0 = vadd.f32 %v2768_v4, %v2766_v2 }
  0xfa   : > { %v2061_v9 = vpop.f32.mrf.mxu0 }
  0xfb   : > { %v2774_v10 = vpop.f32.mrf.mxu1  ;;  %v1246_v7 = vadd.f32 %v2060_v55, %v581_v58  ;;  %v1303_v3 = vadd.f32 %v2094_v5, %v1238_v47 }
  0xfc   : > { %v2062_v11 = vpop.f32.mrf.mxu0 }
  0xfd   : > { %v2776_v12 = vpop.f32.mrf.mxu1  ;;  %v2063_v29 = vadd.f32 %v2062_v11, %v2061_v9  ;;  %v2100_v9 = vadd.f32 %v2772_v8, %v2770_v6 }
  0xfe   : > { %v2064_v13 = vpop.f32.mrf.mxu0 }
  0xff   : > { %v2778_v14 = vpop.f32.mrf.mxu1  ;;  %v1311_v55 = vadd.f32 %v2100_v9, %v1246_v7 }
 0x100   : > { %v2065_v15 = vpop.f32.mrf.mxu0 }
 0x101   : > { %v2780_v16 = vpop.f32.mrf.mxu1  ;;  %v2066_v31 = vadd.f32 %v2065_v15, %v2064_v13  ;;  %v1249_v13 = vadd.f32 %v2063_v29, %v582_v54 }
 0x102   : > { %v2782_v17 = vpop.f32.mrf.mxu0  ;;  %v2106_v29 = vadd.f32 %v2780_v16, %v2778_v14 }
 0x103   : > { %v2784_v18 = vpop.f32.mrf.mxu1  ;;  %v1254_v47 = vadd.f32 %v2066_v31, %v583_v60 }
 0x104   : > { %v2786_v19 = vpop.f32.mrf.mxu0 }
 0x105   : > { %v2788_v20 = vpop.f32.mrf.mxu1  ;;  %v1319_v60 = vadd.f32 %v2106_v29, %v1254_v47 }
 0x106   : > { %v2070_v21 = vpop.f32.mrf.mxu0 }
 0x107   : > { %v2790_v22 = vpop.f32.mrf.mxu1 }
 0x108   : > { %v2071_v23 = vpop.f32.mrf.mxu0 }
 0x109   : > { %v2792_v24 = vpop.f32.mrf.mxu1  ;;  %v2072_v59 = vadd.f32 %v2071_v23, %v2070_v21 }
 0x10a   : > { %v2073_v25 = vpop.f32.mrf.mxu0  ;;  %v2112_v15 = vadd.f32 %v2792_v24, %v2790_v22 }
 0x10b   : > { %v2794_v26 = vpop.f32.mrf.mxu1  ;;  %v1262_v50 = vadd.f32 %v2072_v59, %v585_v63  ;;  %v2103_v59 = vadd.f32 %v2776_v12, %v2774_v10 }
 0x10c   : > { %v2074_v27 = vpop.f32.mrf.mxu0 }
 0x10d   : > { %v2796_v28 = vpop.f32.mrf.mxu1  ;;  %v1327_v2 = vadd.f32 %v2112_v15, %v1262_v50 }
 0x10e   : > { %v2800_v30 = vpop.f32.mrf.mxu0  ;;  %v2115_v31 = vadd.f32 %v2796_v28, %v2794_v26 }
 0x10f   : > { %v2804_v32 = vpop.f32.mrf.mxu1 }
 0x110   : > { %v2806_v33 = vpop.f32.mrf.mxu0 }
 0x111   : > { %v2808_v34 = vpop.f32.mrf.mxu1  ;;  %v2134_v4 = vadd.f32 %v2806_v33, %v2800_v30 }
 0x112   : > { %v2810_v35 = vpop.f32.mrf.mxu0 }
 0x113   : > { %v2814_v37 = vpop.f32.mrf.mxu1  ;;  %v1368_v14 = vadd.f32 %v2134_v4, %v1303_v3 }
 0x114   : > { %2954 = vst [vmem:[#allocation5_spill] sm:$0xff] %v2814_v37  ;;  %v2816_v38 = vpop.f32.mrf.mxu0  ;;  %v1241_v37 = vadd.f32 %v2057_v61, %v580_v44  ;;  %v2069_v44 = vadd.f32 %v2786_v19, %v2782_v17  ;;  %v584_v61 = vld [vmem:[%s2836_s25 + $0x28] sm:$0xff] }
 0x115   : > { %v2820_v40 = vpop.f32.mrf.mxu1  ;;  %v2137_v16 = vadd.f32 %v2816_v38, %v2810_v35 }
 0x116   : > { %2956 = vst [vmem:[#allocation7_spill] sm:$0xff] %v2820_v40  ;;  %v2138_v41 = vpop.f32.mrf.mxu0  ;;  %v2075_v40 = vadd.f32 %v2074_v27, %v2073_v25  ;;  %v2871_v25 = vpop.permute.xlu1 %1607  ;;  %v1306_v24 = vadd.f32 %v2097_v0, %v1241_v37  ;;  %v1257_v30 = vadd.f32 %v2069_v44, %v584_v61  ;;  %v2964_v61 = vld [vmem:[#allocation10_spill] sm:$0xff] }
 0x117   : > { %v2822_v42 = vpop.f32.mrf.mxu1 }
 0x118   : > { %v2139_v43 = vpop.f32.mrf.mxu0  ;;  %v1265_v58 = vadd.f32 %v2075_v40, %v586_v53  ;;  %v2174_v53 = vadd.f32 %v2808_v34, %v2804_v32 }
 0x119   : > { %v2826_v45 = vpop.f32.mrf.mxu1  ;;  %v2140_v27 = vadd.f32 %v2139_v43, %v2138_v41  ;;  %v1314_v41 = vadd.f32 %v2103_v59, %v1249_v13  ;;  %v2884_v43 = vpop.permute.xlu0 %1612 }
 0x11a   : > { %v2828_v46 = vpop.f32.mrf.mxu0  ;;  %v1330_v33 = vadd.f32 %v2115_v31, %v1265_v58  ;;  %v2889_v26 = vpop.permute.xlu1 %1617  ;;  %v2180_v28 = vadd.f32 %v2826_v45, %v2822_v42  ;;  %v1433_v45 = vadd.f32 %v2174_v53, %v1368_v14  ;;  %v2963_v58 = vld [vmem:[#allocation3_spill] sm:$0xff] }
 0x11b   : > { %v2838_v48 = vpop.f32.mrf.mxu1  ;;  %v1376_v10 = vadd.f32 %v2140_v27, %v1311_v55  ;;  %v2961_v27 = vld [vmem:[#allocation5_spill] sm:$0xff] }
 0x11c   : > { %v2142_v49 = vpop.f32.mrf.mxu0 }
 0x11d   : > { %v2840_v51 = vpop.f32.mrf.mxu1  ;;  %v2143_v12 = vadd.f32 %v2142_v49, %v2828_v46  ;;  %v2109_v46 = vadd.f32 %v2788_v20, %v2784_v18  ;;  %v1441_v35 = vadd.f32 %v2180_v28, %v1376_v10  ;;  %v1371_v20 = vadd.f32 %v2137_v16, %v1306_v24  ;;  %v2962_v55 = vld [vmem:[#allocation7_spill] sm:$0xff]  ;;  %v2965_v24 = vld [vmem:[#allocation2_spill] sm:$0xff] }
 0x11e   : > { %v2144_v52 = vpop.f32.mrf.mxu0  ;;  %v2183_v32 = vadd.f32 %v2840_v51, %v2838_v48  ;;  %v2177_v47 = vadd.f32 %v2962_v55, %v2961_v27  ;;  %v1628_v44 = vpop.permute.xlu1 %1627 }
 0x11f   : > { %v2845_v56 = vpop.f32.mrf.mxu1  ;;  %v1379_v3 = vadd.f32 %v2143_v12, %v1314_v41  ;;  %v1322_v38 = vadd.f32 %v2109_v46, %v1257_v30 }
 0x120   : > { %v2145_v57 = vpop.f32.mrf.mxu0 }
 0x121   : > { %v2851_v36 = vpop.f32.mrf.mxu1  ;;  %v2146_v17 = vadd.f32 %v2145_v57, %v2144_v52  ;;  %v1444_v51 = vadd.f32 %v2183_v32, %v1379_v3 }
 0x122   : > { %v2147_v39 = vpop.f32.mrf.mxu0  ;;  %v1638_v28 = vpop.permute.xlu1 %1637 }
 0x123   : > { %v2857_v21 = vpop.f32.mrf.mxu1  ;;  %v1384_v49 = vadd.f32 %v2146_v17, %v1319_v60  ;;  %v2967_v60 = vld [vmem:[#allocation6_spill] sm:$0xff] }
 0x124   : > { %v2148_v23 = vpop.f32.mrf.mxu0 }
 0x125   : > { %v2865_v11 = vpop.f32.mrf.mxu1  ;;  %v2149_v57 = vadd.f32 %v2148_v23, %v2147_v39  ;;  %v1623_v39 = vpop.permute.xlu0 %1622 }
 0x126   : > { %v2150_v62 = vpop.f32.mrf.mxu0  ;;  %v2189_v59 = vadd.f32 %v2865_v11, %v2857_v21 }
 0x127   : > { %v2190_v6 = vpop.f32.mrf.mxu1  ;;  %v1387_v23 = vadd.f32 %v2149_v57, %v1322_v38 }
 0x128   : > { %v2151_v8 = vpop.f32.mrf.mxu0 }
 0x129   : > { %v2152_v22 = vadd.f32 %v2151_v8, %v2150_v62  ;;  %v2191_v19 = vpop.f32.mrf.mxu1  ;;  %v2186_v62 = vadd.f32 %v2851_v36, %v2845_v56  ;;  %v1452_v21 = vadd.f32 %v2189_v59, %v1387_v23  ;;  %v1633_v11 = vpop.permute.xlu0 %1632 }
 0x12a   : > { %v2153_v40 = vpop.f32.mrf.mxu0  ;;  %v2192_v37 = vadd.f32 %v2191_v19, %v2190_v6  ;;  %v1436_v19 = vadd.f32 %v2177_v47, %v1371_v20 }
 0x12b   : > { %v1392_v54 = vadd.f32 %v2152_v22, %v1327_v2  ;;  %v2193_v63 = vpop.f32.mrf.mxu1  ;;  %v1449_v56 = vadd.f32 %v2186_v62, %v1384_v49  ;;  %v2969_v49 = vld [vmem:[#allocation4_spill] sm:$0xff] }
 0x12c   : > { %v2154_v5 = vpop.f32.mrf.mxu0 }
 0x12d   : > { %v2155_v52 = vadd.f32 %v2154_v5, %v2153_v40  ;;  %v2194_v7 = vpop.f32.mrf.mxu1  ;;  %v1457_v50 = vadd.f32 %v2192_v37, %v1392_v54  ;;  %v2966_v40 = vld [vmem:[#allocation8_spill] sm:$0xff]  ;;  %v2968_v5 = vld [vmem:[#allocation11_spill] sm:$0xff] }
 0x12e   : > { %v2195_v0 = vadd.f32 %v2194_v7, %v2193_v63 }
 0x12f   : > { %v1395_v9 = vadd.f32 %v2155_v52, %v1330_v33  ;;  %v2226_v18 = vpop.f32.mrf.mxu0 }
 0x130   : > { %v1506_v34 = vadd.f32 %v2226_v18, %v1441_v35  ;;  %v2230_v42 = vpop.f32.mrf.mxu1 }
 0x131   : > { %v1522_v13 = vadd.f32 %v2230_v42, %v1457_v50  ;;  %v1497_v36 = vpop.f32.mrf.mxu0  ;;  %v1460_v15 = vadd.f32 %v2195_v0, %v1395_v9  ;;  %v2970_v50 = vld [vmem:[#allocation9_spill] sm:$0xff] }
 0x132   : > { %1530 = vst [vmem:[%s2903_s29 + $0x10] sm:$0xff] %v1506_v34  ;;  %v1586_v6 = vmul.f32 %v2963_v58, %v1506_v34  ;;  %v1498_v8 = vadd.f32 %v1497_v36, %v1433_v45  ;;  %v1513_v48 = vpop.f32.mrf.mxu1 }
 0x133   : > { %1534 = vst [vmem:[%s2903_s29 + $0x30] sm:$0xff] %v1522_v13  ;;  %v1590_v2 = vmul.f32 %v2964_v61, %v1522_v13  ;;  %v1514_v4 = vadd.f32 %v1513_v48, %v1449_v56  ;;  %v2227_v22 = vpop.f32.mrf.mxu0 }
 0x134   : > { %1528 = vst [vmem:[%s2903_s29] sm:$0xff] %v1498_v8  ;;  %v1584_v29 = vmul.f32 %v2965_v24, %v1498_v8  ;;  %v1509_v31 = vadd.f32 %v2227_v22, %v1444_v51  ;;  %v2231_v17 = vpop.f32.mrf.mxu1  ;;  %v1642_v54 = vadd.f32 %v2884_v43, %v1586_v6 }
 0x135   : > { %1532 = vst [vmem:[%s2903_s29 + $0x20] sm:$0xff] %v1514_v4  ;;  %v1588_v41 = vmul.f32 %v2966_v40, %v1514_v4  ;;  %v1525_v10 = vadd.f32 %v2231_v17, %v1460_v15  ;;  %v1500_v12 = vpop.f32.mrf.mxu0  ;;  %v1646_v63 = vadd.f32 %v1633_v11, %v1590_v2 }
 0x136   : > { %1531 = vst [vmem:[%s2903_s29 + $0x18] sm:$0xff] %v1509_v31  ;;  %v1587_v30 = vmul.f32 %v2967_v60, %v1509_v31  ;;  %v1501_v33 = vadd.f32 %v1500_v12, %v1436_v19  ;;  %v1516_v37 = vpop.f32.mrf.mxu1  ;;  %v1640_v52 = vadd.f32 %v2861_v1, %v1584_v29  ;;  %v1650_v3 = vmax.f32 %v1642_v54, 0.0 }
 0x137   : > { %1535 = vst [vmem:[%s2903_s29 + $0x38] sm:$0xff] %v1525_v10  ;;  %v1591_v14 = vmul.f32 %v2968_v5, %v1525_v10  ;;  %v1517_v16 = vadd.f32 %v1516_v37, %v1452_v21  ;;  %v1644_v57 = vadd.f32 %v1623_v39, %v1588_v41  ;;  %v1654_v38 = vmax.f32 %v1646_v63, 0.0 }
 0x138   : > { %v1643_v46 = vadd.f32 %v2889_v26, %v1587_v30  ;;  %1529 = vst [vmem:[%s2903_s29 + $0x8] sm:$0xff] %v1501_v33  ;;  %v1585_v43 = vmul.f32 %v2969_v49, %v1501_v33  ;;  %v1648_v26 = vmax.f32 %v1640_v52, 0.0 }
 0x139   : > { %v1647_v7 = vadd.f32 %v1638_v28, %v1591_v14  ;;  %1533 = vst [vmem:[%s2903_s29 + $0x28] sm:$0xff] %v1517_v16  ;;  %v1589_v53 = vmul.f32 %v2970_v50, %v1517_v16  ;;  %v1652_v20 = vmax.f32 %v1644_v57, 0.0 }
 0x13a   : > { %v1651_v9 = vmax.f32 %v1643_v46, 0.0  ;;  %v1641_v35 = vadd.f32 %v2871_v25, %v1585_v43 }
 0x13b   : > { %v1655_v1 = vmax.f32 %v1647_v7, 0.0  ;;  %v1645_v62 = vadd.f32 %v1628_v44, %v1589_v53 }
 0x13c   : > { %v2021_v0 = vpack.c.bf16 %v1651_v9, %v1650_v3  ;;  %v1649_v18 = vmax.f32 %v1641_v35, 0.0 }
 0x13d   : > { %v2031_v39 = vpack.c.bf16 %v1655_v1, %v1654_v38  ;;  %v1653_v32 = vmax.f32 %v1645_v62, 0.0 }
 0x13e   : > { %2033 = vst [vmem:[%s392_s9 + $0x8] sm:$0xff] %v2021_v0   ;;  %v2016_v34 = vpack.c.bf16 %v1649_v18, %v1648_v26 }
 0x13f   : > { %2035 = vst [vmem:[%s392_s9 + $0x18] sm:$0xff] %v2031_v39   ;;  %v2026_v42 = vpack.c.bf16 %v1653_v32, %v1652_v20 }
 0x140   : > { %2017 = vst [vmem:[%s392_s9] sm:$0xff] %v2016_v34  }
 0x141   : > { %2034 = vst [vmem:[%s392_s9 + $0x10] sm:$0xff] %v2026_v42  }
 0x142 PF: > { %s17_s23 = sadd.s32 1, %s2422_s23   ;;  %s2971_s21 = smov %s2418_s22 }
 0x143   : > { %p14_p5 = scmp.ge.s32.totalorder %s17_s23, 4   ;;  %s2972_s22 = smov %s2974_s24 }
 0x145   :  { %16 = sbr.rel (!%p14_p5) target bundleno = 2 (0x2), region = 94 }

// kernel: preact_resnet_forward.63
= control target key start
LH: loop header
LB: loop body
LE: loop exit
PB: predicated region body
PF: predicated region fallthrough
CT: control target
= control target key end

     0   :  { %s693_s0 = inlined_call_operand.vmem [shape: bf16[128,128], index: 0, kind: input, shape index: {}]   ;;  %s694_s1 = inlined_call_operand.vmem [shape: f32[128,2], index: 1, kind: input, shape index: {}]   ;;  %s695_s2 = inlined_call_operand.vmem [shape: f32[10,128], index: 2, kind: input, shape index: {}]   ;;  %s696_s3 = inlined_call_operand.vmem [shape: f32[10,1], index: 3, kind: input, shape index: {}]   ;;  %s697_s4 = inlined_call_operand.vmem [shape: f32[10,2], index: 4, kind: output, shape index: {0}]   ;;  %s698_s5 = inlined_call_operand.hbm [shape: f32[128,2], index: 5, kind: output, shape index: {1}]  }
   0x1   :  { %v67_v0 = vld [vmem:[%s694_s1 + $0x78] sm:$0xff]  ;;  %v66_v1 = vld [vmem:[%s694_s1 + $0x70] sm:$0xff]  ;;  %v65_v2 = vld [vmem:[%s694_s1 + $0x68] sm:$0xff] }
   0x2   :  { %431 = vmatprep.subr.mxu0 %v67_v0  ;;  %v64_v3 = vld [vmem:[%s694_s1 + $0x60] sm:$0xff]  ;;  %v63_v5 = vld [vmem:[%s694_s1 + $0x58] sm:$0xff]  ;;  %v62_v7 = vld [vmem:[%s694_s1 + $0x50] sm:$0xff] }
   0x3   :  { %432 = vmatpush3.msra.mxu0 %v67_v0  ;;  %v343_v4 = vld [vmem:[%s693_s0] sm:$0xff]  }
   0x4   :  { %433 = vmatprep.subr.mxu0 %v66_v1  ;;  %v344_v6 = vunpack.c.l.bf16 %v343_v4 }
   0x5   :  { %434 = vmatpush3.msra.mxu0 %v66_v1 }
   0x6   :  { %435 = vmatprep.subr.mxu0 %v65_v2  ;;  %463 = vmatprep.mubr.f32.mxu0 %v344_v6 }
   0x7   :  { %436 = vmatpush3.msra.mxu0 %v65_v2 }
   0x8   :  { %437 = vmatprep.subr.mxu0 %v64_v3 }
   0x9   :  { %438 = vmatpush3.msra.mxu0 %v64_v3 }
   0xa   :  { %11 = vsyncpa [#allocation3], 0  ;;  %439 = vmatprep.subr.mxu0 %v63_v5  ;;  %v61_v8 = vld [vmem:[%s694_s1 + $0x48] sm:$0xff]  ;;  %v60_v9 = vld [vmem:[%s694_s1 + $0x40] sm:$0xff]  ;;  %v345_v19 = vunpack.c.h.bf16 %v343_v4  ;;  %v549_v42 = vmov 0   ;;  %vm213_vm0 = vcmask 15360  }
   0xb   :  { %440 = vmatpush3.msra.mxu0 %v63_v5  ;;  %v59_v10 = vld [vmem:[%s694_s1 + $0x38] sm:$0xff]  ;;  %v58_v11 = vld [vmem:[%s694_s1 + $0x30] sm:$0xff]  ;;  %v57_v12 = vld [vmem:[%s694_s1 + $0x28] sm:$0xff]  ;;  %526 = vset.pattern.permute.xlu0 %v549_v42  ;;  %s550_s21 = smov [#allocation2]  }
   0xc   :  { %441 = vmatprep.subr.mxu0 %v62_v7  ;;  %v56_v13 = vld [vmem:[%s694_s1 + $0x20] sm:$0xff]  ;;  %v55_v14 = vld [vmem:[%s694_s1 + $0x18] sm:$0xff]  ;;  %v54_v15 = vld [vmem:[%s694_s1 + $0x10] sm:$0xff]  ;;  %s329_s22 = sshll.u32 %s550_s21, 4  ;;  %s330_s22 = int_to_ptr.vmem [resolvable:$true] %s329_s22 }
   0xd   :  { %442 = vmatpush3.msra.mxu0 %v62_v7  ;;  %v53_v16 = vld [vmem:[%s694_s1 + $0x8] sm:$0xff]  ;;  %v52_v18 = vld [vmem:[%s694_s1] sm:$0xff]  ;;  %v375_v21 = vld [vmem:[%s693_s0 + $0x10] sm:$0xff]   ;;  %s527_s23 = scalar_lea.vmem %s330_s22, 2048  ;;  %p532_p1 = scmp.lt.s32.totalorder %s330_s22, %s330_s22 }
   0xe   :  { %443 = vmatprep.subr.mxu0 %v61_v8  ;;  %v374_v17 = vld [vmem:[%s693_s0 + $0x8] sm:$0xff]   ;;  %v352_v23 = vunpack.c.l.bf16 %v375_v21  ;;  %v376_v24 = vld [vmem:[%s693_s0 + $0x18] sm:$0xff]   ;;  %v353_v25 = vunpack.c.h.bf16 %v375_v21  ;;  %v377_v27 = vld [vmem:[%s693_s0 + $0x20] sm:$0xff]   ;;  %p528_p0 = scmp.ne.s32.totalorder %s330_s22, %s527_s23  ;;  %p533_p2 = scmp.lt.s32.totalorder %s527_s23, %s527_s23 }
   0xf   :  { %444 = vmatpush3.msra.mxu0 %v61_v8  ;;  %v348_v20 = vunpack.c.l.bf16 %v374_v17  ;;  %v349_v22 = vunpack.c.h.bf16 %v374_v17  ;;  %v356_v26 = vunpack.c.l.bf16 %v376_v24  ;;  %v357_v28 = vunpack.c.h.bf16 %v376_v24  ;;  %v378_v30 = vld [vmem:[%s693_s0 + $0x28] sm:$0xff]   ;;  %v379_v33 = vld [vmem:[%s693_s0 + $0x30] sm:$0xff]   ;;  %v380_v36 = vld [vmem:[%s693_s0 + $0x38] sm:$0xff]  }
  0x10   :  { %445 = vmatprep.subr.mxu0 %v60_v9  ;;  %v360_v29 = vunpack.c.l.bf16 %v377_v27  ;;  %v361_v31 = vunpack.c.h.bf16 %v377_v27  ;;  %v364_v32 = vunpack.c.l.bf16 %v378_v30  ;;  %v365_v34 = vunpack.c.h.bf16 %v378_v30  ;;  %v230_v40 = vld [vmem:[%s695_s2] sm:$0xff]  ;;  %v233_v43 = vld [vmem:[%s696_s3 + $0x8] sm:$0x3]  ;;  %p534_p3 = por %p533_p2, %p532_p1 }
  0x11   :  { %446 = vmatpush3.msra.mxu0 %v60_v9  ;;  %v368_v35 = vunpack.c.l.bf16 %v379_v33  ;;  %v369_v37 = vunpack.c.h.bf16 %v379_v33  ;;  %v372_v38 = vunpack.c.l.bf16 %v380_v36  ;;  %v373_v39 = vunpack.c.h.bf16 %v380_v36  ;;  %519 = vmatprep.mubr.f32.mxu1 %v230_v40  ;;  %v232_v41 = vld [vmem:[%s696_s3] sm:$0xff]  ;;  %v231_v60 = vld [vmem:[%s695_s2 + $0x8] sm:$0x3] }
  0x12   :  { %447 = vmatprep.subr.mxu0 %v59_v10  ;;  %236 = vperm.xlu0 %526, %v232_v41   ;;  %p535_p4 = pnand %p534_p3, %p528_p0 }
  0x13   :  { %448 = vmatpush3.msra.mxu0 %v59_v10 }
  0x14   :  { %449 = vmatprep.subr.mxu0 %v58_v11 }
  0x15   :  { %450 = vmatpush3.msra.mxu0 %v58_v11 }
  0x16   :  { %451 = vmatprep.subr.mxu0 %v57_v12  ;;  %241 = vperm.xlu0 %526, %v233_v43  }
  0x17   :  { %452 = vmatpush3.msra.mxu0 %v57_v12 }
  0x18   :  { %453 = vmatprep.subr.mxu0 %v56_v13 }
  0x19   :  { %454 = vmatpush3.msra.mxu0 %v56_v13 }
  0x1a   :  { %455 = vmatprep.subr.mxu0 %v55_v14 }
  0x1b   :  { %456 = vmatpush3.msra.mxu0 %v55_v14 }
  0x1c   :  { %457 = vmatprep.subr.mxu0 %v54_v15 }
  0x1d   :  { %458 = vmatpush3.msra.mxu0 %v54_v15 }
  0x1e   :  { %459 = vmatprep.subr.mxu0 %v53_v16 }
  0x1f   :  { %460 = vmatpush3.msra.mxu0 %v53_v16 }
  0x20   :  { %461 = vmatprep.subr.mxu0 %v52_v18 }
  0x21   :  { %462 = vmatpush3.msra.mxu0 %v52_v18 }
  0x22   :  { %464 = vmatmul.mubr.f32.vlgmr.msra.gmra.mxu0 %v345_v19 }
  0x23   :  { %466 = vmatprep.mubr.f32.mxu0 %v348_v20 }
  0x26   :  { %467 = vmatmul.mubr.f32.gmra.mxu0 %v349_v22 }
  0x27   :  { %469 = vmatprep.mubr.f32.mxu0 %v352_v23 }
  0x2a   :  { %470 = vmatmul.mubr.f32.gmra.mxu0 %v353_v25 }
  0x2b   :  { %472 = vmatprep.mubr.f32.mxu0 %v356_v26 }
  0x2e   :  { %473 = vmatmul.mubr.f32.gmra.mxu0 %v357_v28 }
  0x2f   :  { %475 = vmatprep.mubr.f32.mxu0 %v360_v29 }
  0x32   :  { %476 = vmatmul.mubr.f32.gmra.mxu0 %v361_v31 }
  0x33   :  { %478 = vmatprep.mubr.f32.mxu0 %v364_v32 }
  0x36   :  { %479 = vmatmul.mubr.f32.gmra.mxu0 %v365_v34 }
  0x37   :  { %481 = vmatprep.mubr.f32.mxu0 %v368_v35 }
  0x3a   :  { %482 = vmatmul.mubr.f32.gmra.mxu0 %v369_v37 }
  0x3b   :  { %484 = vmatprep.mubr.f32.mxu0 %v372_v38 }
  0x3e   :  { %485 = vmatmul.mubr.f32.gmra.mxu0 %v373_v39 }
  0xe2   :  { %v465_v44 = vpop.f32.mrf.mxu0 }
  0xe3   :  { %215 = vst.msk [vmem:[#allocation2 + $0x8] sm:$0xff] %vm213_vm0, %v465_v44 }
  0xe4   :  { %v134_v45 = vpop.f32.mrf.mxu0 }
  0xe5   :  { %214 = vst.msk [vmem:[#allocation2] sm:$0xff] %vm213_vm0, %v134_v45 }
  0xe6   :  { %v468_v46 = vpop.f32.mrf.mxu0 }
  0xe7   :  { %217 = vst.msk [vmem:[#allocation2 + $0x18] sm:$0xff] %vm213_vm0, %v468_v46 }
  0xe8   :  { %v144_v47 = vpop.f32.mrf.mxu0 }
  0xe9   :  { %216 = vst.msk [vmem:[#allocation2 + $0x10] sm:$0xff] %vm213_vm0, %v144_v47 }
  0xea   :  { %v471_v48 = vpop.f32.mrf.mxu0 }
  0xeb   :  { %219 = vst.msk [vmem:[#allocation2 + $0x28] sm:$0xff] %vm213_vm0, %v471_v48 }
  0xec   :  { %v154_v49 = vpop.f32.mrf.mxu0 }
  0xed   :  { %218 = vst.msk [vmem:[#allocation2 + $0x20] sm:$0xff] %vm213_vm0, %v154_v49 }
  0xee   :  { %v474_v50 = vpop.f32.mrf.mxu0 }
  0xef   :  { %221 = vst.msk [vmem:[#allocation2 + $0x38] sm:$0xff] %vm213_vm0, %v474_v50 }
  0xf0   :  { %v164_v51 = vpop.f32.mrf.mxu0 }
  0xf1   :  { %220 = vst.msk [vmem:[#allocation2 + $0x30] sm:$0xff] %vm213_vm0, %v164_v51 }
  0xf2   :  { %v477_v52 = vpop.f32.mrf.mxu0 }
  0xf3   :  { %223 = vst.msk [vmem:[#allocation2 + $0x48] sm:$0xff] %vm213_vm0, %v477_v52 }
  0xf4   :  { %v174_v53 = vpop.f32.mrf.mxu0 }
  0xf5   :  { %222 = vst.msk [vmem:[#allocation2 + $0x40] sm:$0xff] %vm213_vm0, %v174_v53 }
  0xf6   :  { %v480_v54 = vpop.f32.mrf.mxu0 }
  0xf7   :  { %225 = vst.msk [vmem:[#allocation2 + $0x58] sm:$0xff] %vm213_vm0, %v480_v54 }
  0xf8   :  { %v184_v55 = vpop.f32.mrf.mxu0 }
  0xf9   :  { %224 = vst.msk [vmem:[#allocation2 + $0x50] sm:$0xff] %vm213_vm0, %v184_v55 }
  0xfa   :  { %v483_v56 = vpop.f32.mrf.mxu0 }
  0xfb   :  { %227 = vst.msk [vmem:[#allocation2 + $0x68] sm:$0xff] %vm213_vm0, %v483_v56 }
  0xfc   :  { %v194_v57 = vpop.f32.mrf.mxu0 }
  0xfd   :  { %226 = vst.msk [vmem:[#allocation2 + $0x60] sm:$0xff] %vm213_vm0, %v194_v57 }
  0xfe   :  { %v486_v58 = vpop.f32.mrf.mxu0 }
  0xff   :  { %229 = vst.msk [vmem:[#allocation2 + $0x78] sm:$0xff] %vm213_vm0, %v486_v58  ;;  %487 = vmatprep.subr.mxu1 %v486_v58 }
 0x100   :  { %v204_v59 = vpop.f32.mrf.mxu0  ;;  %488 = vmatpush3.msra.mxu1 %v486_v58 }
 0x101   :  { %228 = vst.msk [vmem:[#allocation2 + $0x70] sm:$0xff] %vm213_vm0, %v204_v59  ;;  %489 = vmatprep.subr.mxu1 %v204_v59 }
 0x102   :  { %490 = vmatpush3.msra.mxu1 %v204_v59 }
 0x103   :  { %491 = vmatprep.subr.mxu1 %v483_v56 }
 0x104   :  { %492 = vmatpush3.msra.mxu1 %v483_v56 }
 0x105   :  { %493 = vmatprep.subr.mxu1 %v194_v57 }
 0x106   :  { %494 = vmatpush3.msra.mxu1 %v194_v57 }
 0x107   :  { %495 = vmatprep.subr.mxu1 %v480_v54 }
 0x108   :  { %496 = vmatpush3.msra.mxu1 %v480_v54 }
 0x109   :  { %497 = vmatprep.subr.mxu1 %v184_v55 }
 0x10a   :  { %498 = vmatpush3.msra.mxu1 %v184_v55 }
 0x10b   :  { %499 = vmatprep.subr.mxu1 %v477_v52 }
 0x10c   :  { %500 = vmatpush3.msra.mxu1 %v477_v52 }
 0x10d   :  { %501 = vmatprep.subr.mxu1 %v174_v53 }
 0x10e   :  { %502 = vmatpush3.msra.mxu1 %v174_v53 }
 0x10f   :  { %503 = vmatprep.subr.mxu1 %v474_v50 }
 0x110   :  { %504 = vmatpush3.msra.mxu1 %v474_v50 }
 0x111   :  { %505 = vmatprep.subr.mxu1 %v164_v51 }
 0x112   :  { %506 = vmatpush3.msra.mxu1 %v164_v51 }
 0x113   :  { %507 = vmatprep.subr.mxu1 %v471_v48 }
 0x114   :  { %508 = vmatpush3.msra.mxu1 %v471_v48 }
 0x115   :  { %509 = vmatprep.subr.mxu1 %v154_v49 }
 0x116   :  { %510 = vmatpush3.msra.mxu1 %v154_v49 }
 0x117   :  { %511 = vmatprep.subr.mxu1 %v468_v46 }
 0x118   :  { %512 = vmatpush3.msra.mxu1 %v468_v46 }
 0x119   :  { %513 = vmatprep.subr.mxu1 %v144_v47 }
 0x11a   :  { %514 = vmatpush3.msra.mxu1 %v144_v47 }
 0x11b   :  { %515 = vmatprep.subr.mxu1 %v465_v44 }
 0x11c   :  { %516 = vmatpush3.msra.mxu1 %v465_v44 }
 0x11d   :  { %517 = vmatprep.subr.mxu1 %v134_v45 }
 0x11e   :  { %518 = vmatpush3.msra.mxu1 %v134_v45 }
 0x11f   :  { %520 = vmatmul.mubr.f32.vlgmr.msra.gmra.mxu1 %v231_v60 }
 0x120   :  { %538 = shalt.err (!%p535_p4)
}
 0x121   :  { %s551_s24 = smov 128   ;;  %s552_s25 = smov 8   ;;  %v237_v61 = vpop.permute.xlu0 %236  ;;  %vm320_vm1 = vcmask 9216  }
 0x122   :  { %335 = dma.vmem_to_hbm [thread:$0]  %s330_s22, 2048, %s698_s5, [#allocation3], %s551_s24, %s551_s24, %s552_s25  }
 0x125   :  { %v242_v62 = vpop.permute.xlu0 %241 }
 0x1df   :  { %v521_v63 = vpop.f32.mrf.mxu1 }
 0x1e0   :  { %v316_v0 = vadd.f32 %v521_v63, %v242_v62 }
 0x1e1   :  { %v310_v1 = vpop.f32.mrf.mxu1 }
 0x1e2   :  { %321 = vst.msk [vmem:[%s697_s4 + $0x8] sm:$0x3] %vm320_vm1, %v316_v0  ;;  %v311_v2 = vadd.f32 %v310_v1, %v237_v61 }
 0x1e4   :  { %319 = vst.msk [vmem:[%s697_s4] sm:$0xff] %vm213_vm0, %v311_v2 }
 0x1e5   :  { %547 = dma.done.wait [#allocation3], 2048  }
 0x1e6   :  { %548 = vsyncadd [#allocation3], 4294965248 }
 0x1e7   :  { %341 = vsyncpa [#allocation3], 1 }

// kernel: preact_resnet_forward.62
= control target key start
LH: loop header
LB: loop body
LE: loop exit
PB: predicated region body
PF: predicated region fallthrough
CT: control target
= control target key end

     0   :  { %s2352_s18 = smov 0   ;;  %s2354_s19 = smov 0   ;;  %s2816_s0 = inlined_call_operand.vmem [shape: bf16[1152,128], index: 0, kind: input, shape index: {}]   ;;  %s2817_s1 = inlined_call_operand.vmem [shape: bf16[128,1152], index: 1, kind: input, shape index: {}]   ;;  %s2818_s2 = inlined_call_operand.vmem [shape: f32[128,1], index: 2, kind: input, shape index: {}]   ;;  %s2819_s3 = inlined_call_operand.vmem [shape: f32[128,1], index: 3, kind: input, shape index: {}]   ;;  %s2820_s4 = inlined_call_operand.vmem [shape: f32[128,128], index: 4, kind: input, shape index: {}]   ;;  %s2821_s5 = inlined_call_operand.vmem [shape: bf16[128,128], index: 5, kind: output, shape index: {}]  }
   0x1   :  { %s2356_s20 = smov 0  }
   0x2 LB: > { %s24_s21 = sadd.s32 1, %s2315_s19  ;;  %p1773_p0 = scmp.ge.s32.totalorder %s2319_s20, 1  ;;  %s2319_s20 = sphi %s2356_s20, %s15_s20   ;;  %s2315_s19 = sphi %s2354_s19, %s2843_s19   ;;  %s2311_s18 = sphi %s2352_s18, %s2842_s18  }
   0x3   : > { %p25_p1 = scmp.ge.s32.totalorder %s24_s21, 2  ;;  %p250_p2 = scmp.lt.s32.totalorder %s2319_s20, 3 }
   0x5   : > { %s2845_s21 = smov (%p25_p1, %s24_s21), 0  ;;  %p251_p3 = pnand %p1773_p0, %p250_p2 }
   0x7   : > { %254 = sbr.rel (%p251_p3) target bundleno = 322 (0x142), region = 40 }
   0xc   : > { %v2173_v0 = vld [vmem:[%s2816_s0 + $0x78] sm:$0xff]   ;;  %v2321_v4 = vmov 0   ;;  %v2177_v5 = vld [vmem:[%s2816_s0 + $0x70] sm:$0xff]   ;;  %v2181_v9 = vld [vmem:[%s2816_s0 + $0x68] sm:$0xff]   ;;  %s1774_s6 = sshll.u32 %s2311_s18, 3 }
   0xd   : > { %v2174_v1 = vld [vmem:[%s2816_s0 + $0xf8] sm:$0xff]   ;;  %1933 = vmatprep.subr.bf16.mxu0 %v2173_v0  ;;  %2172 = vset.pattern.permute.xlu1 %v2321_v4  ;;  %v2178_v6 = vld [vmem:[%s2816_s0 + $0xf0] sm:$0xff]   ;;  %v2182_v10 = vld [vmem:[%s2816_s0 + $0xe8] sm:$0xff]   ;;  %p309_p4 = scmp.lt.s32.totalorder %s1774_s6, 15 }
   0xe   : > { %v2175_v2 = vld [vmem:[%s2816_s0 + $0x38] sm:$0xff]   ;;  %1973 = vmatprep.subr.bf16.mxu1 %v2174_v1  ;;  %2171 = vset.pattern.permute.xlu0 %v2321_v4  ;;  %v2179_v7 = vld [vmem:[%s2816_s0 + $0x30] sm:$0xff]   ;;  %v2183_v11 = vld [vmem:[%s2816_s0 + $0x28] sm:$0xff]  }
   0xf   : > { %v2176_v3 = vld [vmem:[%s2816_s0 + $0xb8] sm:$0xff]   ;;  %1934 = vmatpush3.bf16.msra.mxu0 %v2175_v2  ;;  %v2180_v8 = vld [vmem:[%s2816_s0 + $0xb0] sm:$0xff]   ;;  %v2184_v12 = vld [vmem:[%s2816_s0 + $0xa8] sm:$0xff]   ;;  %s2847_s6 = smov (!%p309_p4, %s1774_s6), 15 }
  0x10   : > { %1974 = vmatpush3.bf16.msra.mxu1 %v2176_v3  ;;  %1935 = vmatprep.subr.bf16.mxu0 %v2177_v5  ;;  %v2185_v13 = vld [vmem:[%s2816_s0 + $0x60] sm:$0xff]   ;;  %v2189_v17 = vld [vmem:[%s2816_s0 + $0x58] sm:$0xff]   ;;  %v2193_v21 = vld [vmem:[%s2816_s0 + $0x50] sm:$0xff]   ;;  %s2145_s8 = smul.u32 36, %s2847_s6  ;;  %s2617_s16 = sshll.u32 %s2847_s6, 3 }
  0x11   : > { %1975 = vmatprep.subr.bf16.mxu1 %v2178_v6  ;;  %v2186_v14 = vld [vmem:[%s2816_s0 + $0xe0] sm:$0xff]   ;;  %v2190_v18 = vld [vmem:[%s2816_s0 + $0xd8] sm:$0xff]   ;;  %v2194_v22 = vld [vmem:[%s2816_s0 + $0xd0] sm:$0xff]   ;;  %s2628_s26 = scalar_lea.vmem %s2818_s2, %s2617_s16  ;;  %s325_s9 = scalar_lea.vmem %s2819_s3, %s2617_s16 }
  0x12   : > { %v2187_v15 = vld [vmem:[%s2816_s0 + $0x20] sm:$0xff]   ;;  %v2191_v19 = vld [vmem:[%s2816_s0 + $0x18] sm:$0xff]   ;;  %v2195_v23 = vld [vmem:[%s2816_s0 + $0x10] sm:$0xff]   ;;  %s2469_s22 = scalar_lea.vmem %s2817_s1, %s2145_s8  ;;  %s2728_s11 = scalar_lea.vmem %s2820_s4, %s2617_s16 }
  0x13   : > { %1936 = vmatpush3.bf16.msra.mxu0 %v2179_v7  ;;  %v2188_v16 = vld [vmem:[%s2816_s0 + $0xa0] sm:$0xff]   ;;  %v2192_v20 = vld [vmem:[%s2816_s0 + $0x98] sm:$0xff]   ;;  %v2196_v24 = vld [vmem:[%s2816_s0 + $0x90] sm:$0xff]   ;;  %s1783_s12 = sshll.u32 %s2847_s6, 2 }
  0x14   : > { %1976 = vmatpush3.bf16.msra.mxu1 %v2180_v8  ;;  %1937 = vmatprep.subr.bf16.mxu0 %v2181_v9  ;;  %v2197_v25 = vld [vmem:[%s2816_s0 + $0x48] sm:$0xff]   ;;  %v2201_v29 = vld [vmem:[%s2816_s0 + $0x40] sm:$0xff]   ;;  %v2211_v37 = vld [vmem:[%s2816_s0 + $0x178] sm:$0xff]   ;;  %s343_s18 = scalar_lea.vmem %s2821_s5, %s1783_s12 }
  0x15   : > { %1977 = vmatprep.subr.bf16.mxu1 %v2182_v10  ;;  %v2198_v26 = vld [vmem:[%s2816_s0 + $0xc8] sm:$0xff]   ;;  %v2202_v30 = vld [vmem:[%s2816_s0 + $0xc0] sm:$0xff]   ;;  %v2212_v38 = vld [vmem:[%s2816_s0 + $0x1f8] sm:$0xff]  }
  0x16   : > { %v2199_v27 = vld [vmem:[%s2816_s0 + $0x8] sm:$0xff]   ;;  %v2203_v31 = vld [vmem:[%s2816_s0] sm:$0xff]   ;;  %v2213_v39 = vld [vmem:[%s2816_s0 + $0x138] sm:$0xff]  }
  0x17   : > { %1938 = vmatpush3.bf16.msra.mxu0 %v2183_v11  ;;  %v2200_v28 = vld [vmem:[%s2816_s0 + $0x88] sm:$0xff]   ;;  %v2204_v32 = vld [vmem:[%s2816_s0 + $0x80] sm:$0xff]   ;;  %v2214_v40 = vld [vmem:[%s2816_s0 + $0x1b8] sm:$0xff]  }
  0x18   : > { %1978 = vmatpush3.bf16.msra.mxu1 %v2184_v12  ;;  %1939 = vmatprep.subr.bf16.mxu0 %v2185_v13  ;;  %v2205_v33 = vld [vmem:[%s2469_s22] ss:$36 sps:$4 sm:$0xff]   ;;  %v2208_v35 = vld [vmem:[%s2469_s22 + $0x8] ss:$36 sps:$4 sm:$0xff]   ;;  %v2215_v41 = vld [vmem:[%s2816_s0 + $0x170] sm:$0xff]  }
  0x19   : > { %1979 = vmatprep.subr.bf16.mxu1 %v2186_v14  ;;  %v2207_v34 = vld [vmem:[%s2469_s22 + $0x4] ss:$36 sps:$4 sm:$0xff]   ;;  %v2210_v36 = vld [vmem:[%s2469_s22 + $0xc] ss:$36 sps:$4 sm:$0xff]   ;;  %v2221_v46 = vld [vmem:[%s2469_s22 + $0x54] ss:$36 sps:$4 sm:$0xff]  }
  0x1a   : > { %1186 = vmatprep.mubr.bf16.mxu0 %v2207_v34  ;;  %1251 = vmatprep.mubr.bf16.mxu1 %v2210_v36  ;;  %v2216_v42 = vld [vmem:[%s2816_s0 + $0x1f0] sm:$0xff]   ;;  %v2223_v47 = vld [vmem:[%s2469_s22 + $0x48] ss:$36 sps:$4 sm:$0xff]   ;;  %v2229_v53 = vld [vmem:[%s2816_s0 + $0x160] sm:$0xff]  }
  0x1b   : > { %1940 = vmatpush3.bf16.msra.mxu0 %v2187_v15  ;;  %v2217_v43 = vld [vmem:[%s2816_s0 + $0x130] sm:$0xff]   ;;  %v2225_v49 = vld [vmem:[%s2816_s0 + $0x168] sm:$0xff]   ;;  %v2230_v54 = vld [vmem:[%s2816_s0 + $0x1e0] sm:$0xff]  }
  0x1c   : > { %1980 = vmatpush3.bf16.msra.mxu1 %v2188_v16  ;;  %1941 = vmatprep.subr.bf16.mxu0 %v2189_v17  ;;  %v2218_v44 = vld [vmem:[%s2816_s0 + $0x1b0] sm:$0xff]   ;;  %v2226_v50 = vld [vmem:[%s2816_s0 + $0x1e8] sm:$0xff]   ;;  %v2231_v55 = vld [vmem:[%s2816_s0 + $0x120] sm:$0xff]  }
  0x1d   : > { %1981 = vmatprep.subr.bf16.mxu1 %v2190_v18  ;;  %v2219_v45 = vld [vmem:[%s2469_s22 + $0x4c] ss:$36 sps:$4 sm:$0xff]   ;;  %v2232_v56 = vld [vmem:[%s2816_s0 + $0x1a0] sm:$0xff]   ;;  %v2233_v57 = vld [vmem:[%s2469_s22 + $0x94] ss:$36 sps:$4 sm:$0xff]  }
  0x1e   : > { %v2224_v48 = vld [vmem:[%s2469_s22 + $0x50] ss:$36 sps:$4 sm:$0xff]   ;;  %v2227_v51 = vld [vmem:[%s2816_s0 + $0x128] sm:$0xff]   ;;  %v2235_v58 = vld [vmem:[%s2469_s22 + $0x9c] ss:$36 sps:$4 sm:$0xff]  }
  0x1f   : > { %1942 = vmatpush3.bf16.msra.mxu0 %v2191_v19  ;;  %v2228_v52 = vld [vmem:[%s2816_s0 + $0x1a8] sm:$0xff]   ;;  %v2237_v59 = vld [vmem:[%s2469_s22 + $0x90] ss:$36 sps:$4 sm:$0xff]   ;;  %v2238_v60 = vld [vmem:[%s2469_s22 + $0x98] ss:$36 sps:$4 sm:$0xff]  }
  0x20   : > { %1982 = vmatpush3.bf16.msra.mxu1 %v2192_v20  ;;  %1943 = vmatprep.subr.bf16.mxu0 %v2193_v21  ;;  %v2239_v61 = vld [vmem:[%s2816_s0 + $0x158] sm:$0xff]   ;;  %v2243_v1 = vld [vmem:[%s2816_s0 + $0x150] sm:$0xff]   ;;  %v2249_v6 = vld [vmem:[%s2469_s22 + $0xe4] ss:$36 sps:$4 sm:$0xff]  }
  0x21   : > { %1983 = vmatprep.subr.bf16.mxu1 %v2194_v22  ;;  %v2240_v62 = vld [vmem:[%s2816_s0 + $0x1d8] sm:$0xff]   ;;  %v2244_v2 = vld [vmem:[%s2816_s0 + $0x1d0] sm:$0xff]   ;;  %v2252_v8 = vld [vmem:[%s2469_s22 + $0xe0] ss:$36 sps:$4 sm:$0xff]  }
  0x22   : > { %v2241_v63 = vld [vmem:[%s2816_s0 + $0x118] sm:$0xff]   ;;  %v2245_v3 = vld [vmem:[%s2816_s0 + $0x110] sm:$0xff]   ;;  %v2253_v9 = vld [vmem:[%s2816_s0 + $0x148] sm:$0xff]  }
  0x23   : > { %1944 = vmatpush3.bf16.msra.mxu0 %v2195_v23  ;;  %v2242_v0 = vld [vmem:[%s2816_s0 + $0x198] sm:$0xff]   ;;  %v2246_v4 = vld [vmem:[%s2816_s0 + $0x190] sm:$0xff]   ;;  %v2254_v10 = vld [vmem:[%s2816_s0 + $0x1c8] sm:$0xff]  }
  0x24   : > { %1984 = vmatpush3.bf16.msra.mxu1 %v2196_v24  ;;  %1945 = vmatprep.subr.bf16.mxu0 %v2197_v25  ;;  %v2247_v5 = vld [vmem:[%s2469_s22 + $0xdc] ss:$36 sps:$4 sm:$0xff]   ;;  %v2255_v11 = vld [vmem:[%s2816_s0 + $0x108] sm:$0xff]   ;;  %v2261_v17 = vld [vmem:[%s2469_s22 + $0x10] ss:$36 sps:$4 sm:$0xff]  }
  0x25   : > { %1985 = vmatprep.subr.bf16.mxu1 %v2198_v26  ;;  %v2251_v7 = vld [vmem:[%s2469_s22 + $0xd8] ss:$36 sps:$4 sm:$0xff]   ;;  %v2256_v12 = vld [vmem:[%s2816_s0 + $0x188] sm:$0xff]   ;;  %v2257_v13 = vld [vmem:[%s2816_s0 + $0x140] sm:$0xff]  }
  0x26   : > { %v2258_v14 = vld [vmem:[%s2816_s0 + $0x1c0] sm:$0xff]   ;;  %v2263_v18 = vld [vmem:[%s2469_s22 + $0x14] ss:$36 sps:$4 sm:$0xff]   ;;  %v2285_v34 = vld [vmem:[%s2469_s22 + $0xec] ss:$36 sps:$4 sm:$0xff]  }
  0x27   : > { %1946 = vmatpush3.bf16.msra.mxu0 %v2199_v27  ;;  %v2259_v15 = vld [vmem:[%s2816_s0 + $0x100] sm:$0xff]   ;;  %v2264_v19 = vld [vmem:[%s2469_s22 + $0x18] ss:$36 sps:$4 sm:$0xff]   ;;  %v2268_v22 = vld [vmem:[%s2816_s0 + $0x230] sm:$0xff]  }
  0x28   : > { %1986 = vmatpush3.bf16.msra.mxu1 %v2200_v28  ;;  %1947 = vmatprep.subr.bf16.mxu0 %v2201_v29  ;;  %v2260_v16 = vld [vmem:[%s2816_s0 + $0x180] sm:$0xff]   ;;  %v2267_v21 = vld [vmem:[%s2816_s0 + $0x238] sm:$0xff]   ;;  %v2275_v27 = vld [vmem:[%s2816_s0 + $0x228] sm:$0xff]  }
  0x29   : > { %1987 = vmatprep.subr.bf16.mxu1 %v2202_v30  ;;  %v2266_v20 = vld [vmem:[%s2469_s22 + $0x1c] ss:$36 sps:$4 sm:$0xff]   ;;  %v2271_v24 = vld [vmem:[%s2469_s22 + $0x64] ss:$36 sps:$4 sm:$0xff]   ;;  %v2279_v29 = vld [vmem:[%s2469_s22 + $0xac] ss:$36 sps:$4 sm:$0xff]  }
  0x2a   : > { %v2269_v23 = vld [vmem:[%s2469_s22 + $0x5c] ss:$36 sps:$4 sm:$0xff]   ;;  %v2277_v28 = vld [vmem:[%s2469_s22 + $0xa4] ss:$36 sps:$4 sm:$0xff]   ;;  %v2284_v36 = vld [vmem:[%s2816_s0 + $0x210] sm:$0xff]  }
  0x2b   : > { %1948 = vmatpush3.bf16.msra.mxu0 %v2203_v31  ;;  %v2273_v25 = vld [vmem:[%s2469_s22 + $0x58] ss:$36 sps:$4 sm:$0xff]   ;;  %v2274_v26 = vld [vmem:[%s2469_s22 + $0x60] ss:$36 sps:$4 sm:$0xff]  }
  0x2c   : > { %1988 = vmatpush3.bf16.msra.mxu1 %v2204_v32  ;;  %2013 = vmatprep.subr.bf16.mxu0 %v2211_v37  ;;  %v2276_v30 = vld [vmem:[%s2816_s0 + $0x220] sm:$0xff]   ;;  %v2282_v32 = vld [vmem:[%s2469_s22 + $0xa8] ss:$36 sps:$4 sm:$0xff]   ;;  %v1481_v37 = vld [vmem:[%s2628_s26 + $0x10] sm:$0xff] }
  0x2d   : > { %2053 = vmatprep.subr.bf16.mxu1 %v2212_v38  ;;  %v2281_v31 = vld [vmem:[%s2469_s22 + $0xa0] ss:$36 sps:$4 sm:$0xff]   ;;  %1499 = vperm.xlu1 %2172, %v1481_v37  }
  0x2e   : > { %1187 = vmatmul.mubr.bf16.vlgmr.msra.gmra.mxu0 %v2205_v33  ;;  %v2283_v33 = vld [vmem:[%s2816_s0 + $0x218] sm:$0xff]   ;;  %v1479_v38 = vld [vmem:[%s2628_s26] sm:$0xff] }
  0x2f   : > { %1252 = vmatmul.mubr.bf16.vlgmr.msra.gmra.mxu1 %v2208_v35  ;;  %2014 = vmatpush3.bf16.msra.mxu0 %v2213_v39  ;;  %v2287_v35 = vld [vmem:[%s2469_s22 + $0xf4] ss:$36 sps:$4 sm:$0xff]   ;;  %v2289_v39 = vld [vmem:[%s2469_s22 + $0xe8] ss:$36 sps:$4 sm:$0xff]  }
  0x30   : > { %2054 = vmatpush3.bf16.msra.mxu1 %v2214_v40  ;;  %2015 = vmatprep.subr.bf16.mxu0 %v2215_v41  ;;  %v2291_v40 = vld [vmem:[%s2816_s0 + $0x208] sm:$0xff]   ;;  %v2290_v41 = vld [vmem:[%s2469_s22 + $0xf0] ss:$36 sps:$4 sm:$0xff]  }
  0x31   : > { %2055 = vmatprep.subr.bf16.mxu1 %v2216_v42  ;;  %1194 = vmatprep.mubr.bf16.mxu0 %v2219_v45  ;;  %v2293_v42 = vld [vmem:[%s2469_s22 + $0x20] ss:$36 sps:$4 sm:$0xff]   ;;  %v1482_v45 = vld [vmem:[%s2628_s26 + $0x18] sm:$0xff] }
  0x32   : > { %1259 = vmatprep.mubr.bf16.mxu1 %v2221_v46  ;;  %1489 = vperm.xlu0 %2171, %v1479_v38   ;;  %v1480_v46 = vld [vmem:[%s2628_s26 + $0x8] sm:$0xff] }
  0x33   : > { %2016 = vmatpush3.bf16.msra.mxu0 %v2217_v43  ;;  %v2294_v43 = vld [vmem:[%s2469_s22 + $0xb0] ss:$36 sps:$4 sm:$0xff]   ;;  %1504 = vperm.xlu1 %2172, %v1482_v45  }
  0x34   : > { %2056 = vmatpush3.bf16.msra.mxu1 %v2218_v44  ;;  %2017 = vmatprep.subr.bf16.mxu0 %v2225_v49  ;;  %v2292_v44 = vld [vmem:[%s2816_s0 + $0x200] sm:$0xff]   ;;  %v2296_v49 = vld [vmem:[%s2469_s22 + $0xf8] ss:$36 sps:$4 sm:$0xff]  }
  0x35   : > { %2057 = vmatprep.subr.bf16.mxu1 %v2226_v50  ;;  %v1483_v50 = vld [vmem:[%s2628_s26 + $0x20] sm:$0xff] }
  0x36   : > { %1195 = vmatmul.mubr.bf16.gmra.mxu0 %v2223_v47  ;;  %v2295_v47 = vld [vmem:[%s2469_s22 + $0x68] ss:$36 sps:$4 sm:$0xff]   ;;  %1494 = vperm.xlu0 %2171, %v1480_v46  }
  0x37   : > { %1260 = vmatmul.mubr.bf16.gmra.mxu1 %v2224_v48  ;;  %2018 = vmatpush3.bf16.msra.mxu0 %v2227_v51  ;;  %v1484_v48 = vld [vmem:[%s2628_s26 + $0x28] sm:$0xff]  ;;  %v1486_v51 = vld [vmem:[%s2628_s26 + $0x38] sm:$0xff] }
  0x38   : > { %2058 = vmatpush3.bf16.msra.mxu1 %v2228_v52  ;;  %2019 = vmatprep.subr.bf16.mxu0 %v2229_v53  ;;  %v1485_v52 = vld [vmem:[%s2628_s26 + $0x30] sm:$0xff]  ;;  %v1536_v53 = vld [vmem:[%s325_s9 + $0x8] sm:$0xff] }
  0x39   : > { %2059 = vmatprep.subr.bf16.mxu1 %v2230_v54  ;;  %1202 = vmatprep.mubr.bf16.mxu0 %v2233_v57  ;;  %v1535_v54 = vld [vmem:[%s325_s9] sm:$0xff]  ;;  %v1540_v57 = vld [vmem:[%s325_s9 + $0x28] sm:$0xff] }
  0x3a   : > { %1267 = vmatprep.mubr.bf16.mxu1 %v2235_v58  ;;  %1514 = vperm.xlu1 %2172, %v1484_v48   ;;  %v1539_v58 = vld [vmem:[%s325_s9 + $0x20] sm:$0xff] }
  0x3b   : > { %2020 = vmatpush3.bf16.msra.mxu0 %v2231_v55  ;;  %1509 = vperm.xlu0 %2171, %v1483_v50   ;;  %v1538_v55 = vld [vmem:[%s325_s9 + $0x18] sm:$0xff] }
  0x3c   : > { %2060 = vmatpush3.bf16.msra.mxu1 %v2232_v56  ;;  %2021 = vmatprep.subr.bf16.mxu0 %v2239_v61  ;;  %v1537_v56 = vld [vmem:[%s325_s9 + $0x10] sm:$0xff] }
  0x3d   : > { %2061 = vmatprep.subr.bf16.mxu1 %v2240_v62 }
  0x3e   : > { %1203 = vmatmul.mubr.bf16.gmra.mxu0 %v2237_v59  ;;  %1524 = vperm.xlu1 %2172, %v1486_v51   ;;  %v1542_v59 = vld [vmem:[%s325_s9 + $0x38] sm:$0xff] }
  0x3f   : > { %1268 = vmatmul.mubr.bf16.gmra.mxu1 %v2238_v60  ;;  %2022 = vmatpush3.bf16.msra.mxu0 %v2241_v63  ;;  %v1541_v60 = vld [vmem:[%s325_s9 + $0x30] sm:$0xff] }
  0x40   : > { %2062 = vmatpush3.bf16.msra.mxu1 %v2242_v0  ;;  %2023 = vmatprep.subr.bf16.mxu0 %v2243_v1 }
  0x41   : > { %2063 = vmatprep.subr.bf16.mxu1 %v2244_v2  ;;  %1210 = vmatprep.mubr.bf16.mxu0 %v2247_v5 }
  0x42   : > { %1275 = vmatprep.mubr.bf16.mxu1 %v2249_v6  ;;  %1519 = vperm.xlu0 %2171, %v1485_v52  }
  0x43   : > { %2024 = vmatpush3.bf16.msra.mxu0 %v2245_v3  ;;  %1550 = vperm.xlu1 %2172, %v1536_v53   ;;  %v530_v53 = vld [vmem:[%s2728_s11] sm:$0xff] }
  0x44   : > { %2064 = vmatpush3.bf16.msra.mxu1 %v2246_v4  ;;  %2025 = vmatprep.subr.bf16.mxu0 %v2253_v9 }
  0x45   : > { %2065 = vmatprep.subr.bf16.mxu1 %v2254_v10 }
  0x46   : > { %1211 = vmatmul.mubr.bf16.gmra.mxu0 %v2251_v7  ;;  %1545 = vperm.xlu0 %2171, %v1535_v54  }
  0x47   : > { %1276 = vmatmul.mubr.bf16.gmra.mxu1 %v2252_v8  ;;  %2026 = vmatpush3.bf16.msra.mxu0 %v2255_v11 }
  0x48   : > { %2066 = vmatpush3.bf16.msra.mxu1 %v2256_v12  ;;  %2027 = vmatprep.subr.bf16.mxu0 %v2257_v13 }
  0x49   : > { %2067 = vmatprep.subr.bf16.mxu1 %v2258_v14  ;;  %1316 = vmatprep.mubr.bf16.mxu0 %v2263_v18 }
  0x4a   : > { %1381 = vmatprep.mubr.bf16.mxu1 %v2266_v20  ;;  %1560 = vperm.xlu1 %2172, %v1538_v55  }
  0x4b   : > { %2028 = vmatpush3.bf16.msra.mxu0 %v2259_v15  ;;  %1555 = vperm.xlu0 %2171, %v1537_v56  }
  0x4c   : > { %2068 = vmatpush3.bf16.msra.mxu1 %v2260_v16  ;;  %2105 = vmatprep.subr.bf16.mxu0 %v2267_v21 }
  0x4d   : > { %2129 = vmatprep.subr.bf16.mxu1 %v2267_v21 }
  0x4e   : > { %1317 = vmatmul.mubr.bf16.vlgmr.msra.gmra.mxu0 %v2261_v17  ;;  %1570 = vperm.xlu1 %2172, %v1540_v57  }
  0x4f   : > { %1382 = vmatmul.mubr.bf16.vlgmr.msra.gmra.mxu1 %v2264_v19  ;;  %2106 = vmatpush3.bf16.msra.mxu0 %v2267_v21 }
  0x50   : > { %2137 = vmatpush3.bf16.msra.mxu1 %v2267_v21  ;;  %2107 = vmatprep.subr.bf16.mxu0 %v2268_v22 }
  0x51   : > { %2130 = vmatprep.subr.bf16.mxu1 %v2268_v22  ;;  %1324 = vmatprep.mubr.bf16.mxu0 %v2269_v23 }
  0x52   : > { %1389 = vmatprep.mubr.bf16.mxu1 %v2271_v24  ;;  %1565 = vperm.xlu0 %2171, %v1539_v58   ;;  %v532_v58 = vld [vmem:[%s2728_s11 + $0x10] sm:$0xff] }
  0x53   : > { %2108 = vmatpush3.bf16.msra.mxu0 %v2268_v22  ;;  %1580 = vperm.xlu1 %2172, %v1542_v59  }
  0x54   : > { %2138 = vmatpush3.bf16.msra.mxu1 %v2268_v22  ;;  %2109 = vmatprep.subr.bf16.mxu0 %v2275_v27 }
  0x55   : > { %2131 = vmatprep.subr.bf16.mxu1 %v2275_v27 }
  0x56   : > { %1325 = vmatmul.mubr.bf16.gmra.mxu0 %v2273_v25  ;;  %1575 = vperm.xlu0 %2171, %v1541_v60  }
  0x57   : > { %1390 = vmatmul.mubr.bf16.gmra.mxu1 %v2274_v26  ;;  %1332 = vmatprep.mubr.bf16.mxu0 %v2277_v28 }
  0x58   : > { %2110 = vmatpush3.bf16.msra.mxu0 %v2275_v27  ;;  %1397 = vmatprep.mubr.bf16.mxu1 %v2279_v29 }
  0x59   : > { %2139 = vmatpush3.bf16.msra.mxu1 %v2275_v27  ;;  %2111 = vmatprep.subr.bf16.mxu0 %v2276_v30 }
  0x5a   : > { %2132 = vmatprep.subr.bf16.mxu1 %v2276_v30 }
  0x5c   : > { %2112 = vmatpush3.bf16.msra.mxu0 %v2276_v30 }
  0x5d   : > { %2140 = vmatpush3.bf16.msra.mxu1 %v2276_v30  ;;  %2113 = vmatprep.subr.bf16.mxu0 %v2283_v33 }
  0x5e   : > { %1333 = vmatmul.mubr.bf16.gmra.mxu0 %v2281_v31  ;;  %2133 = vmatprep.subr.bf16.mxu1 %v2283_v33 }
  0x5f   : > { %1398 = vmatmul.mubr.bf16.gmra.mxu1 %v2282_v32  ;;  %1340 = vmatprep.mubr.bf16.mxu0 %v2285_v34 }
  0x60   : > { %2114 = vmatpush3.bf16.msra.mxu0 %v2283_v33  ;;  %1405 = vmatprep.mubr.bf16.mxu1 %v2287_v35 }
  0x61   : > { %2141 = vmatpush3.bf16.msra.mxu1 %v2283_v33  ;;  %2115 = vmatprep.subr.bf16.mxu0 %v2284_v36 }
  0x62   : > { %2134 = vmatprep.subr.bf16.mxu1 %v2284_v36 }
  0x64   : > { %2116 = vmatpush3.bf16.msra.mxu0 %v2284_v36 }
  0x65   : > { %2142 = vmatpush3.bf16.msra.mxu1 %v2284_v36  ;;  %2117 = vmatprep.subr.bf16.mxu0 %v2291_v40 }
  0x66   : > { %1341 = vmatmul.mubr.bf16.gmra.mxu0 %v2289_v39  ;;  %2135 = vmatprep.subr.bf16.mxu1 %v2291_v40 }
  0x67   : > { %1406 = vmatmul.mubr.bf16.gmra.mxu1 %v2290_v41  ;;  %2121 = vmatprep.mubr.bf16.mxu0 %v2293_v42 }
  0x68   : > { %2118 = vmatpush3.bf16.msra.mxu0 %v2291_v40  ;;  %2125 = vmatprep.mubr.bf16.mxu1 %v2294_v43 }
  0x69   : > { %2143 = vmatpush3.bf16.msra.mxu1 %v2291_v40  ;;  %2119 = vmatprep.subr.bf16.mxu0 %v2292_v44 }
  0x6a   : > { %2136 = vmatprep.subr.bf16.mxu1 %v2292_v44 }
  0x6c   : > { %2120 = vmatpush3.bf16.msra.mxu0 %v2292_v44 }
  0x6d   : > { %2144 = vmatpush3.bf16.msra.mxu1 %v2292_v44 }
  0x6f   : > { %2122 = vmatmul.mubr.bf16.vlgmr.msra.gmra.mxu0 %v2295_v47 }
  0x70   : > { %2126 = vmatmul.mubr.bf16.vlgmr.msra.gmra.mxu1 %v2296_v49 }
  0xa8   : > { %v2694_v31 = vpop.permute.xlu1 %1499 }
  0xa9   : > { %2823 = vst [vmem:[#allocation3_spill] sm:$0xff] %v2694_v31 }
  0xad   : > { %v2690_v29 = vpop.permute.xlu0 %1489 }
  0xae   : > { %2822 = vst [vmem:[#allocation2_spill] sm:$0xff] %v2690_v29  ;;  %v2710_v39 = vpop.permute.xlu1 %1504 }
  0xaf   : > { %2826 = vst [vmem:[#allocation6_spill] sm:$0xff] %v2710_v39 }
  0xb1   : > { %v2704_v36 = vpop.permute.xlu0 %1494 }
  0xb2   : > { %2824 = vst [vmem:[#allocation4_spill] sm:$0xff] %v2704_v36 }
  0xb5   : > { %v2722_v47 = vpop.permute.xlu1 %1514 }
  0xb6   : > { %v2716_v44 = vpop.permute.xlu0 %1509  ;;  %2829 = vst [vmem:[#allocation9_spill] sm:$0xff] %v2722_v47 }
  0xb7   : > { %2828 = vst [vmem:[#allocation8_spill] sm:$0xff] %v2716_v44  ;;  %v531_v44 = vld [vmem:[%s2728_s11 + $0x8] sm:$0xff] }
  0xb9   : > { %v2740_v60 = vpop.permute.xlu1 %1524 }
  0xba   : > { %2831 = vst [vmem:[#allocation11_spill] sm:$0xff] %v2740_v60  ;;  %v534_v60 = vld [vmem:[%s2728_s11 + $0x20] sm:$0xff] }
  0xbd   : > { %v2735_v54 = vpop.permute.xlu0 %1519 }
  0xbe   : > { %2830 = vst [vmem:[#allocation10_spill] sm:$0xff] %v2735_v54  ;;  %v533_v54 = vld [vmem:[%s2728_s11 + $0x18] sm:$0xff] }
  0xee   : > { %v1949_v61 = vpop.f32.mrf.mxu0 }
  0xef   : > { %v2654_v62 = vpop.f32.mrf.mxu1 }
  0xf0   : > { %v1950_v63 = vpop.f32.mrf.mxu0 }
  0xf1   : > { %v2656_v0 = vpop.f32.mrf.mxu1  ;;  %v1951_v50 = vadd.f32 %v1950_v63, %v1949_v61  ;;  %v536_v63 = vld [vmem:[%s2728_s11 + $0x30] sm:$0xff] }
  0xf2   : > { %v1952_v1 = vpop.f32.mrf.mxu0 }
  0xf3   : > { %v2658_v2 = vpop.f32.mrf.mxu1  ;;  %v1189_v47 = vadd.f32 %v1951_v50, %v530_v53  ;;  %v537_v53 = vld [vmem:[%s2728_s11 + $0x38] sm:$0xff] }
  0xf4   : > { %v1953_v3 = vpop.f32.mrf.mxu0 }
  0xf5   : > { %v2660_v4 = vpop.f32.mrf.mxu1  ;;  %v1954_v61 = vadd.f32 %v1953_v3, %v1952_v1  ;;  %v2753_v1 = vpop.permute.xlu0 %1545 }
  0xf6   : > { %v1955_v5 = vpop.f32.mrf.mxu0 }
  0xf7   : > { %v2662_v6 = vpop.f32.mrf.mxu1 }
  0xf8   : > { %v1956_v7 = vpop.f32.mrf.mxu0 }
  0xf9   : > { %v2664_v8 = vpop.f32.mrf.mxu1  ;;  %v1957_v55 = vadd.f32 %v1956_v7, %v1955_v5  ;;  %v1991_v5 = vadd.f32 %v2656_v0, %v2654_v62  ;;  %v1994_v0 = vadd.f32 %v2660_v4, %v2658_v2 }
  0xfa   : > { %v1958_v9 = vpop.f32.mrf.mxu0 }
  0xfb   : > { %v2666_v10 = vpop.f32.mrf.mxu1  ;;  %v1197_v7 = vadd.f32 %v1957_v55, %v532_v58  ;;  %v1254_v3 = vadd.f32 %v1991_v5, %v1189_v47 }
  0xfc   : > { %v1959_v11 = vpop.f32.mrf.mxu0 }
  0xfd   : > { %v2668_v12 = vpop.f32.mrf.mxu1  ;;  %v1960_v29 = vadd.f32 %v1959_v11, %v1958_v9  ;;  %v1997_v9 = vadd.f32 %v2664_v8, %v2662_v6 }
  0xfe   : > { %v1961_v13 = vpop.f32.mrf.mxu0 }
  0xff   : > { %v2670_v14 = vpop.f32.mrf.mxu1  ;;  %v1262_v55 = vadd.f32 %v1997_v9, %v1197_v7 }
 0x100   : > { %v1962_v15 = vpop.f32.mrf.mxu0 }
 0x101   : > { %v2672_v16 = vpop.f32.mrf.mxu1  ;;  %v1963_v31 = vadd.f32 %v1962_v15, %v1961_v13  ;;  %v1200_v13 = vadd.f32 %v1960_v29, %v533_v54 }
 0x102   : > { %v2674_v17 = vpop.f32.mrf.mxu0  ;;  %v2003_v29 = vadd.f32 %v2672_v16, %v2670_v14 }
 0x103   : > { %v2676_v18 = vpop.f32.mrf.mxu1  ;;  %v1205_v47 = vadd.f32 %v1963_v31, %v534_v60 }
 0x104   : > { %v2678_v19 = vpop.f32.mrf.mxu0 }
 0x105   : > { %v2680_v20 = vpop.f32.mrf.mxu1  ;;  %v1270_v60 = vadd.f32 %v2003_v29, %v1205_v47 }
 0x106   : > { %v1967_v21 = vpop.f32.mrf.mxu0 }
 0x107   : > { %v2682_v22 = vpop.f32.mrf.mxu1 }
 0x108   : > { %v1968_v23 = vpop.f32.mrf.mxu0 }
 0x109   : > { %v2684_v24 = vpop.f32.mrf.mxu1  ;;  %v1969_v59 = vadd.f32 %v1968_v23, %v1967_v21 }
 0x10a   : > { %v1970_v25 = vpop.f32.mrf.mxu0  ;;  %v2009_v15 = vadd.f32 %v2684_v24, %v2682_v22 }
 0x10b   : > { %v2686_v26 = vpop.f32.mrf.mxu1  ;;  %v1213_v50 = vadd.f32 %v1969_v59, %v536_v63  ;;  %v2000_v59 = vadd.f32 %v2668_v12, %v2666_v10 }
 0x10c   : > { %v1971_v27 = vpop.f32.mrf.mxu0 }
 0x10d   : > { %v2688_v28 = vpop.f32.mrf.mxu1  ;;  %v1278_v2 = vadd.f32 %v2009_v15, %v1213_v50 }
 0x10e   : > { %v2692_v30 = vpop.f32.mrf.mxu0  ;;  %v2012_v31 = vadd.f32 %v2688_v28, %v2686_v26 }
 0x10f   : > { %v2696_v32 = vpop.f32.mrf.mxu1 }
 0x110   : > { %v2698_v33 = vpop.f32.mrf.mxu0 }
 0x111   : > { %v2700_v34 = vpop.f32.mrf.mxu1  ;;  %v2031_v4 = vadd.f32 %v2698_v33, %v2692_v30 }
 0x112   : > { %v2702_v35 = vpop.f32.mrf.mxu0 }
 0x113   : > { %v2706_v37 = vpop.f32.mrf.mxu1  ;;  %v1319_v7 = vadd.f32 %v2031_v4, %v1254_v3 }
 0x114   : > { %2825 = vst [vmem:[#allocation5_spill] sm:$0xff] %v2706_v37  ;;  %v2708_v38 = vpop.f32.mrf.mxu0  ;;  %v1192_v37 = vadd.f32 %v1954_v61, %v531_v44  ;;  %v1966_v44 = vadd.f32 %v2678_v19, %v2674_v17  ;;  %v535_v61 = vld [vmem:[%s2728_s11 + $0x28] sm:$0xff] }
 0x115   : > { %v2712_v40 = vpop.f32.mrf.mxu1  ;;  %v2034_v14 = vadd.f32 %v2708_v38, %v2702_v35 }
 0x116   : > { %2827 = vst [vmem:[#allocation7_spill] sm:$0xff] %v2712_v40  ;;  %v2035_v41 = vpop.f32.mrf.mxu0  ;;  %v1972_v40 = vadd.f32 %v1971_v27, %v1970_v25  ;;  %v2763_v25 = vpop.permute.xlu1 %1550  ;;  %v1257_v24 = vadd.f32 %v1994_v0, %v1192_v37  ;;  %v1208_v63 = vadd.f32 %v1966_v44, %v535_v61 }
 0x117   : > { %v2714_v42 = vpop.f32.mrf.mxu1 }
 0x118   : > { %v2036_v43 = vpop.f32.mrf.mxu0  ;;  %v1216_v58 = vadd.f32 %v1972_v40, %v537_v53  ;;  %v2071_v53 = vadd.f32 %v2700_v34, %v2696_v32 }
 0x119   : > { %v2718_v45 = vpop.f32.mrf.mxu1  ;;  %v2037_v27 = vadd.f32 %v2036_v43, %v2035_v41  ;;  %v1265_v41 = vadd.f32 %v2000_v59, %v1200_v13  ;;  %v1556_v43 = vpop.permute.xlu0 %1555 }
 0x11a   : > { %v2720_v46 = vpop.f32.mrf.mxu0  ;;  %v1281_v30 = vadd.f32 %v2012_v31, %v1216_v58  ;;  %v1561_v16 = vpop.permute.xlu1 %1560  ;;  %v2077_v26 = vadd.f32 %v2718_v45, %v2714_v42  ;;  %v1322_v45 = vadd.f32 %v2034_v14, %v1257_v24  ;;  %v2836_v24 = vld [vmem:[#allocation2_spill] sm:$0xff] }
 0x11b   : > { %v2730_v48 = vpop.f32.mrf.mxu1  ;;  %v1327_v54 = vadd.f32 %v2037_v27, %v1262_v55  ;;  %v2832_v47 = vld [vmem:[#allocation5_spill] sm:$0xff] }
 0x11c   : > { %v2039_v49 = vpop.f32.mrf.mxu0 }
 0x11d   : > { %v2732_v51 = vpop.f32.mrf.mxu1  ;;  %v2040_v10 = vadd.f32 %v2039_v49, %v2720_v46  ;;  %v1566_v13 = vpop.permute.xlu0 %1565  ;;  %v2833_v44 = vld [vmem:[#allocation7_spill] sm:$0xff] }
 0x11e   : > { %v2041_v52 = vpop.f32.mrf.mxu0  ;;  %v2074_v58 = vadd.f32 %v2833_v44, %v2832_v47 }
 0x11f   : > { %v2737_v56 = vpop.f32.mrf.mxu1  ;;  %v1330_v9 = vadd.f32 %v2040_v10, %v1265_v41 }
 0x120   : > { %v2042_v57 = vpop.f32.mrf.mxu0 }
 0x121   : > { %v2743_v36 = vpop.f32.mrf.mxu1  ;;  %v2043_v17 = vadd.f32 %v2042_v57, %v2041_v52  ;;  %v2006_v52 = vadd.f32 %v2680_v20, %v2676_v18  ;;  %v2080_v18 = vadd.f32 %v2732_v51, %v2730_v48  ;;  %v2835_v51 = vld [vmem:[#allocation10_spill] sm:$0xff] }
 0x122   : > { %v2044_v39 = vpop.f32.mrf.mxu0  ;;  %v2083_v35 = vadd.f32 %v2743_v36, %v2737_v56  ;;  %v2834_v36 = vld [vmem:[#allocation3_spill] sm:$0xff] }
 0x123   : > { %v2749_v21 = vpop.f32.mrf.mxu1  ;;  %v1335_v46 = vadd.f32 %v2043_v17, %v1270_v60  ;;  %v1273_v0 = vadd.f32 %v2006_v52, %v1208_v63  ;;  %v1395_v61 = vadd.f32 %v2080_v18, %v1330_v9  ;;  %v1576_v60 = vpop.permute.xlu0 %1575 }
 0x124   : > { %v2045_v23 = vpop.f32.mrf.mxu0 }
 0x125   : > { %v2757_v11 = vpop.f32.mrf.mxu1  ;;  %v2046_v49 = vadd.f32 %v2045_v23, %v2044_v39  ;;  %v1384_v23 = vadd.f32 %v2071_v53, %v1319_v7  ;;  %v1400_v34 = vadd.f32 %v2083_v35, %v1335_v46  ;;  %v2840_v46 = vld [vmem:[#allocation4_spill] sm:$0xff]  ;;  %v2841_v53 = vld [vmem:[#allocation9_spill] sm:$0xff] }
 0x126   : > { %v2047_v62 = vpop.f32.mrf.mxu0  ;;  %v2086_v48 = vadd.f32 %v2757_v11, %v2749_v21 }
 0x127   : > { %v2087_v6 = vpop.f32.mrf.mxu1  ;;  %v1338_v15 = vadd.f32 %v2046_v49, %v1273_v0 }
 0x128   : > { %v2048_v8 = vpop.f32.mrf.mxu0 }
 0x129   : > { %v2049_v22 = vadd.f32 %v2048_v8, %v2047_v62  ;;  %v2088_v19 = vpop.f32.mrf.mxu1  ;;  %v1392_v62 = vadd.f32 %v2077_v26, %v1327_v54 }
 0x12a   : > { %v2050_v40 = vpop.f32.mrf.mxu0  ;;  %v2089_v33 = vadd.f32 %v2088_v19, %v2087_v6  ;;  %v1571_v6 = vpop.permute.xlu1 %1570  ;;  %v1387_v19 = vadd.f32 %v2074_v58, %v1322_v45 }
 0x12b   : > { %v1343_v12 = vadd.f32 %v2049_v22, %v1278_v2  ;;  %v2090_v37 = vpop.f32.mrf.mxu1 }
 0x12c   : > { %v2051_v5 = vpop.f32.mrf.mxu0 }
 0x12d   : > { %v2052_v28 = vadd.f32 %v2051_v5, %v2050_v40  ;;  %v2091_v57 = vpop.f32.mrf.mxu1  ;;  %v1408_v50 = vadd.f32 %v2089_v33, %v1343_v12  ;;  %v2837_v40 = vld [vmem:[#allocation8_spill] sm:$0xff]  ;;  %v1403_v12 = vadd.f32 %v2086_v48, %v1338_v15  ;;  %v2839_v5 = vld [vmem:[#allocation11_spill] sm:$0xff] }
 0x12e   : > { %v2092_v38 = vadd.f32 %v2091_v57, %v2090_v37  ;;  %v1581_v26 = vpop.permute.xlu1 %1580 }
 0x12f   : > { %v1346_v3 = vadd.f32 %v2052_v28, %v1281_v30  ;;  %v2123_v42 = vpop.f32.mrf.mxu0  ;;  %v2838_v30 = vld [vmem:[#allocation6_spill] sm:$0xff] }
 0x130   : > { %v1457_v20 = vadd.f32 %v2123_v42, %v1392_v62  ;;  %v2127_v39 = vpop.f32.mrf.mxu1 }
 0x131   : > { %v1473_v27 = vadd.f32 %v2127_v39, %v1408_v50  ;;  %v1448_v32 = vpop.f32.mrf.mxu0  ;;  %v1411_v55 = vadd.f32 %v2092_v38, %v1346_v3 }
 0x132   : > { %v1529_v56 = vmul.f32 %v2834_v36, %v1457_v20  ;;  %v1449_v8 = vadd.f32 %v1448_v32, %v1384_v23  ;;  %v1464_v59 = vpop.f32.mrf.mxu1 }
 0x133   : > { %v1533_v2 = vmul.f32 %v2835_v51, %v1473_v27  ;;  %v1465_v4 = vadd.f32 %v1464_v59, %v1400_v34  ;;  %v2124_v22 = vpop.f32.mrf.mxu0 }
 0x134   : > { %v1527_v29 = vmul.f32 %v2836_v24, %v1449_v8  ;;  %v1460_v31 = vadd.f32 %v2124_v22, %v1395_v61  ;;  %v2128_v17 = vpop.f32.mrf.mxu1  ;;  %v1585_v63 = vadd.f32 %v1556_v43, %v1529_v56 }
 0x135   : > { %v1531_v41 = vmul.f32 %v2837_v40, %v1465_v4  ;;  %v1476_v54 = vadd.f32 %v2128_v17, %v1411_v55  ;;  %v1451_v10 = vpop.f32.mrf.mxu0  ;;  %v1589_v37 = vadd.f32 %v1576_v60, %v1533_v2 }
 0x136   : > { %v1530_v33 = vmul.f32 %v2838_v30, %v1460_v31  ;;  %v1452_v21 = vadd.f32 %v1451_v10, %v1387_v19  ;;  %v1467_v11 = vpop.f32.mrf.mxu1  ;;  %v1583_v28 = vadd.f32 %v2753_v1, %v1527_v29  ;;  %v1593_v43 = vmax.f32 %v1585_v63, 0.0 }
 0x137   : > { %v1534_v7 = vmul.f32 %v2839_v5, %v1476_v54  ;;  %v1468_v14 = vadd.f32 %v1467_v11, %v1403_v12  ;;  %v1587_v57 = vadd.f32 %v1566_v13, %v1531_v41  ;;  %v1597_v0 = vmax.f32 %v1589_v37, 0.0 }
 0x138   : > { %v1586_v52 = vadd.f32 %v1561_v16, %v1530_v33  ;;  %v1528_v49 = vmul.f32 %v2840_v46, %v1452_v21  ;;  %v1591_v1 = vmax.f32 %v1583_v28, 0.0 }
 0x139   : > { %v1590_v50 = vadd.f32 %v1581_v26, %v1534_v7  ;;  %v1532_v9 = vmul.f32 %v2841_v53, %v1468_v14  ;;  %v1595_v45 = vmax.f32 %v1587_v57, 0.0 }
 0x13a   : > { %v1594_v3 = vmax.f32 %v1586_v52, 0.0  ;;  %v1584_v62 = vadd.f32 %v2763_v25, %v1528_v49 }
 0x13b   : > { %v1598_v35 = vmax.f32 %v1590_v50, 0.0  ;;  %v1588_v38 = vadd.f32 %v1571_v6, %v1532_v9 }
 0x13c   : > { %v1918_v42 = vpack.c.bf16 %v1594_v3, %v1593_v43  ;;  %v1592_v16 = vmax.f32 %v1584_v62, 0.0 }
 0x13d   : > { %v1928_v18 = vpack.c.bf16 %v1598_v35, %v1597_v0  ;;  %v1596_v13 = vmax.f32 %v1588_v38, 0.0 }
 0x13e   : > { %1930 = vst [vmem:[%s343_s18 + $0x8] sm:$0xff] %v1918_v42   ;;  %v1913_v20 = vpack.c.bf16 %v1592_v16, %v1591_v1 }
 0x13f   : > { %1932 = vst [vmem:[%s343_s18 + $0x18] sm:$0xff] %v1928_v18   ;;  %v1923_v39 = vpack.c.bf16 %v1596_v13, %v1595_v45 }
 0x140   : > { %1914 = vst [vmem:[%s343_s18] sm:$0xff] %v1913_v20  }
 0x141   : > { %1931 = vst [vmem:[%s343_s18 + $0x10] sm:$0xff] %v1923_v39  }
 0x142 PF: > { %s15_s20 = sadd.s32 1, %s2319_s20   ;;  %s2842_s18 = smov %s2315_s19 }
 0x143   : > { %p12_p5 = scmp.ge.s32.totalorder %s15_s20, 4   ;;  %s2843_s19 = smov %s2845_s21 }
 0x145   :  { %14 = sbr.rel (!%p12_p5) target bundleno = 2 (0x2), region = 82 }

</bundles_post_ra>
